<compile_context>
chip_gen: v7x
topology: tpu7x:2x2x1
jax: 0.10.0
libtpu: 0.0.40
codegen_flags: <defaults>
</compile_context>

<pallas_src>
import functools

import numpy as np

import jax
import jax.numpy as jnp
from jax.experimental import pallas as pl
from jax.experimental.pallas import tpu as pltpu


_DOT_DTYPE = jnp.bfloat16   # MXU input dtype; accumulation stays float32.


def _round_up(x, m):
    return (x + m - 1) // m * m


def _gap_select_matrix(bt, h, w):
    """(bt, bt*(h+2)*(w+2)) 0/1 matrix selecting the pixel rows of every sample
    in the guarded flat layout (used for the global-average-pool dot)."""
    wp = w + 2
    ss = (h + 2) * wp
    g = np.zeros((bt, bt * ss), np.float32)
    for b in range(bt):
        for y in range(h):
            r0 = b * ss + (y + 1) * wp + 1
            g[b, r0:r0 + w] = 1.0
    return g


# ----------------------------------------------------------------------------
# Fused kernel
# ----------------------------------------------------------------------------
def _build_kernel(BT, H, W, CIN, C1, C2, C3, GA1, GA2, GA3):
    H2, W2, H3, W3 = H // 2, W // 2, H // 4, W // 4
    WP1, WP2, WP3 = W + 2, W2 + 2, W3 + 2
    SS1, SS2, SS3 = (H + 2) * WP1, (H2 + 2) * WP2, (H3 + 2) * WP3
    R1, R2, R3 = BT * SS1, BT * SS2, BT * SS3
    INV_GAP = 1.0 / float(H3 * W3)

    def im2col(src_ref, base, wp, rows, cin, im_ref):
        # 9 shifted contiguous copies (taps).  Guard rows/cols of src are zero,
        # so no boundary masks are needed; lane-concat puts all taps on K.
        for t in range(9):
            dh, dw = t // 3 - 1, t % 3 - 1
            off = base + dh * wp + dw
            im_ref[:, t * cin:(t + 1) * cin] = src_ref[off:off + rows, :]

    def conv_relu(im_ref, w_ref, b_ref):
        # single MXU dot over the fused K = 9*Cin axis; bias + ReLU epilogue.
        acc = jnp.dot(im_ref[...], w_ref[...],
                      preferred_element_type=jnp.float32)
        return jnp.maximum(acc + b_ref[...], 0.0)

    def maxpool_into(c_ref, h, w, wp, ss, dst_ref, dbase, wp_d, ss_d):
        # 2x2 / stride-2 max pool: pure-VPU max of 4 stride-2 row views of the
        # conv output, stored contiguously into the next stage's guarded
        # layout.  (Statically unrolled: BT*h/2 small iterations.)
        wh = w // 2
        for b in range(BT):
            for i in range(h // 2):
                s0 = b * ss + (2 * i + 1) * wp + 1
                d0 = dbase + b * ss_d + (i + 1) * wp_d + 1
                m = jnp.maximum(
                    jnp.maximum(c_ref[pl.ds(s0, wh, stride=2), :],
                                c_ref[pl.ds(s0 + 1, wh, stride=2), :]),
                    jnp.maximum(c_ref[pl.ds(s0 + wp, wh, stride=2), :],
                                c_ref[pl.ds(s0 + wp + 1, wh, stride=2), :]))
                dst_ref[d0:d0 + wh, :] = m.astype(dst_ref.dtype)

    def kernel(x_ref, w1_ref, b1_ref, w2_ref, b2_ref, w3_ref, b3_ref,
               g_ref, wf1_ref, bf1_ref, wf2_ref, bf2_ref,
               out_ref,
               im1_ref, c1_ref, p1_ref, im2_ref, c2_ref, p2_ref, im3_ref):
        # Zero the pooled-activation buffers once per grid step so their guard
        # border (= the convs' zero padding) is exact; pixel rows are
        # overwritten by the pooling stores below.
        p1_ref[...] = jnp.zeros_like(p1_ref)
        p2_ref[...] = jnp.zeros_like(p2_ref)

        # conv1 + ReLU : (BT,H,W,CIN) -> (BT,H,W,C1)
        im2col(x_ref, GA1, WP1, R1, CIN, im1_ref)
        c1_ref[...] = conv_relu(im1_ref, w1_ref, b1_ref)
        # maxpool 2x2  -> (BT,H/2,W/2,C1)  (bf16, guarded layout)
        maxpool_into(c1_ref, H, W, WP1, SS1, p1_ref, GA2, WP2, SS2)

        # conv2 + ReLU -> (BT,H/2,W/2,C2)
        im2col(p1_ref, GA2, WP2, R2, C1, im2_ref)
        c2_ref[...] = conv_relu(im2_ref, w2_ref, b2_ref)
        # maxpool 2x2  -> (BT,H/4,W/4,C2)
        maxpool_into(c2_ref, H2, W2, WP2, SS2, p2_ref, GA3, WP3, SS3)

        # conv3 + ReLU -> (BT,H/4,W/4,C3), kept as a value
        im2col(p2_ref, GA3, WP3, R3, C2, im3_ref)
        o3 = conv_relu(im3_ref, w3_ref, b3_ref)               # (R3, C3) f32

        # AdaptiveAvgPool2d((1,1)) + Flatten: tiny bf16 dot with the 0/1
        # pixel-select matrix, scaled in f32.
        gap = jnp.dot(g_ref[...], o3.astype(_DOT_DTYPE),
                      preferred_element_type=jnp.float32) * INV_GAP

        # classifier: Linear(128,64) + ReLU, Linear(64,2) (padded to 128 lanes)
        h1 = jnp.maximum(
            jnp.dot(gap.astype(_DOT_DTYPE), wf1_ref[...],
                    preferred_element_type=jnp.float32) + bf1_ref[...], 0.0)
        out = jnp.dot(h1.astype(_DOT_DTYPE), wf2_ref[...],
                      preferred_element_type=jnp.float32) + bf2_ref[...]
        out_ref[...] = out

    return kernel


# ----------------------------------------------------------------------------
# Forward pass wrapper (matches CNNModel.forward semantics)
# ----------------------------------------------------------------------------
@functools.partial(jax.jit, static_argnames=("block_batch",))
def cnn_forward(x_nchw, params, *, block_batch=8):
    B, C, H, W = x_nchw.shape
    assert H % 4 == 0 and W % 4 == 0, "two 2x2 max-pools need H, W divisible by 4"

    C1, C2, C3, NH, NO = 32, 64, 128, 64, 2
    NOP = 128                                     # lane-padded classifier output
    CIN = _round_up(max(C, 8), 8)                 # lane-tidy input channels

    # Batch tile: keep nb >= 2 so both v7x TensorCores get grid steps
    # (block_batch bounds VMEM; raise it on 1-TC chips for fewer grid steps).
    BT = int(min(block_batch, max(1, -(-B // 2))))
    Bp = _round_up(B, BT)
    nb = Bp // BT

    H2, W2, H3, W3 = H // 2, W // 2, H // 4, W // 4
    WP1, WP2, WP3 = W + 2, W2 + 2, W3 + 2
    SS1, SS2, SS3 = (H + 2) * WP1, (H2 + 2) * WP2, (H3 + 2) * WP3
    R1, R2, R3 = BT * SS1, BT * SS2, BT * SS3
    GA1 = _round_up(WP1 + 1, 8)                   # guard rows so all 9 conv taps
    GA2 = _round_up(WP2 + 1, 8)                   # are plain in-bounds offset
    GA3 = _round_up(WP3 + 1, 8)                   # loads (no masks)
    XROWS = _round_up(R1 + 2 * GA1, 8)            # 8-aligned input block rows

    # NCHW -> guarded flat "pixel-row" layout: a zero border row/col around
    # every sample, channels on the lane axis, bf16 (MXU input dtype).
    x = jnp.transpose(x_nchw, (0, 2, 3, 1)).astype(jnp.float32)
    x = jnp.pad(x, ((0, Bp - B), (0, 0), (0, 0), (0, CIN - C)))
    x = jnp.pad(x, ((0, 0), (1, 1), (1, 1), (0, 0)))
    x = x.reshape(nb, R1, CIN)
    x = jnp.pad(x, ((0, 0), (GA1, XROWS - R1 - GA1), (0, 0))).astype(_DOT_DTYPE)

    # Conv weights as (9*Cin, Cout) bf16 (row = (kh*3 + kw)*Cin + cin).
    # NOTE: real nn.Conv2d checkpoints are (Cout, Cin, kh, kw) and nn.Linear is
    # (out, in); transpose to (kh, kw, Cin, Cout) / (in, out) before use here.
    w1 = jnp.pad(params["w1"], ((0, 0), (0, 0), (0, CIN - C), (0, 0)))
    w1 = w1.reshape(9 * CIN, C1).astype(_DOT_DTYPE)
    w2 = params["w2"].reshape(9 * C1, C2).astype(_DOT_DTYPE)
    w3 = params["w3"].reshape(9 * C2, C3).astype(_DOT_DTYPE)
    wf1 = params["wf1"].astype(_DOT_DTYPE)
    wf2 = jnp.pad(params["wf2"], ((0, 0), (0, NOP - NO))).astype(_DOT_DTYPE)
    b1 = params["b1"].reshape(1, C1).astype(jnp.float32)
    b2 = params["b2"].reshape(1, C2).astype(jnp.float32)
    b3 = params["b3"].reshape(1, C3).astype(jnp.float32)
    bf1 = params["bf1"].reshape(1, NH).astype(jnp.float32)
    bf2 = jnp.pad(params["bf2"], (0, NOP - NO)).reshape(1, NOP).astype(jnp.float32)

    g = jnp.asarray(_gap_select_matrix(BT, H3, W3), dtype=_DOT_DTYPE)

    kernel = _build_kernel(BT, H, W, CIN, C1, C2, C3, GA1, GA2, GA3)

    def const(*shape):
        return pl.BlockSpec(shape, lambda i: (0,) * len(shape))

    scratch_shapes = [
        pltpu.VMEM((R1, 9 * CIN), _DOT_DTYPE),        # conv1 im2col
        pltpu.VMEM((R1, C1), jnp.float32),            # conv1 out (feeds pool1)
        pltpu.VMEM((R2 + 2 * GA2, C1), _DOT_DTYPE),   # pool1 out, guarded
        pltpu.VMEM((R2, 9 * C1), _DOT_DTYPE),         # conv2 im2col
        pltpu.VMEM((R2, C2), jnp.float32),            # conv2 out (feeds pool2)
        pltpu.VMEM((R3 + 2 * GA3, C2), _DOT_DTYPE),   # pool2 out, guarded
        pltpu.VMEM((R3, 9 * C2), _DOT_DTYPE),         # conv3 im2col
    ]

    # Explicit VMEM budget: scratch + double-buffered I/O blocks + constants.
    scratch_bytes = (R1 * 9 * CIN * 2 + R1 * C1 * 4 +
                     (R2 + 2 * GA2) * C1 * 2 + R2 * 9 * C1 * 2 + R2 * C2 * 4 +
                     (R3 + 2 * GA3) * C2 * 2 + R3 * 9 * C2 * 2)
    io_bytes = 2 * (XROWS * CIN * 2 + BT * NOP * 4)
    const_bytes = (2 * 2 * (9 * CIN * C1 + 9 * C1 * C2 + 9 * C2 * C3 +
                            C3 * NH + NH * NOP + BT * R3) +
                   2 * 4 * (C1 + C2 + C3 + NH + NOP))
    vmem_limit = int(min(64 * 1024 * 1024,
                         max(scratch_bytes + io_bytes + const_bytes + (8 << 20),
                             16 * 1024 * 1024)))

    out = pl.pallas_call(
        kernel,
        out_shape=jax.ShapeDtypeStruct((nb, BT, NOP), jnp.float32),
        grid=(nb,),
        in_specs=[
            pl.BlockSpec((None, XROWS, CIN), lambda i: (i, 0, 0)),
            const(9 * CIN, C1), const(1, C1),
            const(9 * C1, C2), const(1, C2),
            const(9 * C2, C3), const(1, C3),
            const(BT, R3),
            const(C3, NH), const(1, NH),
            const(NH, NOP), const(1, NOP),
        ],
        out_specs=pl.BlockSpec((None, BT, NOP), lambda i: (i, 0, 0)),
        scratch_shapes=scratch_shapes,
        compiler_params=pltpu.CompilerParams(
            dimension_semantics=("parallel",),
            vmem_limit_bytes=vmem_limit),
    )(x, w1, b1, w2, b2, w3, b3, g, wf1, bf1, wf2, bf2)

    return out.reshape(Bp, NOP)[:B, :NO]


# ----------------------------------------------------------------------------
# Parameter init (deterministic, synthetic)
# ----------------------------------------------------------------------------
def init_params(key):
    ks = jax.random.split(key, 5)

    def conv_w(k, cin, cout):
        fan_in = 9 * cin
        return (jax.random.normal(k, (3, 3, cin, cout), jnp.float32)
                * (2.0 / fan_in) ** 0.5)

    def lin_w(k, fin, fout):
        return (jax.random.normal(k, (fin, fout), jnp.float32)
                * (2.0 / fin) ** 0.5)

    return {
        "w1": conv_w(ks[0], 3, 32),    "b1": jnp.zeros((32,), jnp.float32),
        "w2": conv_w(ks[1], 32, 64),   "b2": jnp.zeros((64,), jnp.float32),
        "w3": conv_w(ks[2], 64, 128),  "b3": jnp.zeros((128,), jnp.float32),
        "wf1": lin_w(ks[3], 128, 64),  "bf1": jnp.zeros((64,), jnp.float32),
        "wf2": lin_w(ks[4], 64, 2),    "bf2": jnp.zeros((2,), jnp.float32),
    }


if __name__ == "__main__":
    key = jax.random.PRNGKey(0)
    k_x, k_p = jax.random.split(key)

    # Small deterministic input: batch=2, channels=3 (Conv2d(3, ...)), 16x16.
    x = jax.random.normal(k_x, (2, 3, 16, 16), jnp.float32)
    params = init_params(k_p)

    out = cnn_forward(x, params)
    out = jax.block_until_ready(out)
    assert out.shape == (2, 2) and out.dtype == jnp.float32
    assert bool(jnp.all(jnp.isfinite(out)))
    print("KERNEL_OK")
</pallas_src>

<mosaic_0001>
module attributes {stable_mosaic.version = 11 : i64} {
  func.func @kernel(%arg0: i32, %arg1: memref<1x376x8xbf16, #tpu.memory_space<vmem>>, %arg2: memref<72x32xbf16, #tpu.memory_space<vmem>>, %arg3: memref<1x32xf32, #tpu.memory_space<vmem>>, %arg4: memref<288x64xbf16, #tpu.memory_space<vmem>>, %arg5: memref<1x64xf32, #tpu.memory_space<vmem>>, %arg6: memref<576x128xbf16, #tpu.memory_space<vmem>>, %arg7: memref<1x128xf32, #tpu.memory_space<vmem>>, %arg8: memref<1x36xbf16, #tpu.memory_space<vmem>>, %arg9: memref<128x64xbf16, #tpu.memory_space<vmem>>, %arg10: memref<1x64xf32, #tpu.memory_space<vmem>>, %arg11: memref<64x128xbf16, #tpu.memory_space<vmem>>, %arg12: memref<1x128xf32, #tpu.memory_space<vmem>>, %arg13: memref<1x1x128xf32, #tpu.memory_space<vmem>>, %arg14: memref<324x72xbf16, #tpu.memory_space<vmem>>, %arg15: memref<324x32xf32, #tpu.memory_space<vmem>>, %arg16: memref<132x32xbf16, #tpu.memory_space<vmem>>, %arg17: memref<100x288xbf16, #tpu.memory_space<vmem>>, %arg18: memref<100x64xf32, #tpu.memory_space<vmem>>, %arg19: memref<52x64xbf16, #tpu.memory_space<vmem>>, %arg20: memref<36x576xbf16, #tpu.memory_space<vmem>>) attributes {dimension_semantics = [#tpu.dimension_semantics<parallel>], iteration_bounds = array<i64: 2>, scalar_prefetch = 0 : i64, scratch_operands = 7 : i64, tpu.core_type = #tpu.core_type<tc>, window_params = [{transform_indices = @transform_0, window_bounds = array<i64: 1, 376, 8>}, {pipeline_mode = #tpu.pipeline_mode<synchronous>, transform_indices = @transform_1, window_bounds = array<i64: 72, 32>}, {pipeline_mode = #tpu.pipeline_mode<synchronous>, transform_indices = @transform_2, window_bounds = array<i64: 1, 32>}, {pipeline_mode = #tpu.pipeline_mode<synchronous>, transform_indices = @transform_3, window_bounds = array<i64: 288, 64>}, {pipeline_mode = #tpu.pipeline_mode<synchronous>, transform_indices = @transform_4, window_bounds = array<i64: 1, 64>}, {pipeline_mode = #tpu.pipeline_mode<synchronous>, transform_indices = @transform_5, window_bounds = array<i64: 576, 128>}, {pipeline_mode = #tpu.pipeline_mode<synchronous>, transform_indices = @transform_6, window_bounds = array<i64: 1, 128>}, {pipeline_mode = #tpu.pipeline_mode<synchronous>, transform_indices = @transform_7, window_bounds = array<i64: 1, 36>}, {pipeline_mode = #tpu.pipeline_mode<synchronous>, transform_indices = @transform_8, window_bounds = array<i64: 128, 64>}, {pipeline_mode = #tpu.pipeline_mode<synchronous>, transform_indices = @transform_9, window_bounds = array<i64: 1, 64>}, {pipeline_mode = #tpu.pipeline_mode<synchronous>, transform_indices = @transform_10, window_bounds = array<i64: 64, 128>}, {pipeline_mode = #tpu.pipeline_mode<synchronous>, transform_indices = @transform_11, window_bounds = array<i64: 1, 128>}, {transform_indices = @transform_12, window_bounds = array<i64: 1, 1, 128>}]} {
    %cst = arith.constant 0.000000e+00 : bf16
    %0 = vector.broadcast %cst : bf16 to vector<132x32xbf16>
    %c0 = arith.constant 0 : index
    %c0_0 = arith.constant 0 : index
    %1 = vector.load %arg16[%c0, %c0_0] : memref<132x32xbf16, #tpu.memory_space<vmem>>, vector<132x32xbf16>
    tpu.vector_store %arg16[%c0, %c0_0], %0 {strides = array<i32>} : memref<132x32xbf16, #tpu.memory_space<vmem>>, vector<132x32xbf16>,
    %cst_1 = arith.constant 0.000000e+00 : bf16
    %2 = vector.broadcast %cst_1 : bf16 to vector<52x64xbf16>
    %c0_2 = arith.constant 0 : index
    %c0_3 = arith.constant 0 : index
    %3 = vector.load %arg19[%c0_2, %c0_3] : memref<52x64xbf16, #tpu.memory_space<vmem>>, vector<52x64xbf16>
    tpu.vector_store %arg19[%c0_2, %c0_3], %2 {strides = array<i32>} : memref<52x64xbf16, #tpu.memory_space<vmem>>, vector<52x64xbf16>,
    %c0_4 = arith.constant 0 : index
    %c5 = arith.constant 5 : index
    %c0_5 = arith.constant 0 : index
    %4 = vector.load %arg1[%c0_4, %c5, %c0_5] : memref<1x376x8xbf16, #tpu.memory_space<vmem>>, vector<1x324x8xbf16>
    %5 = vector.shape_cast %4 : vector<1x324x8xbf16> to vector<324x8xbf16>
    %c0_6 = arith.constant 0 : index
    %c0_7 = arith.constant 0 : index
    %6 = vector.load %arg14[%c0_6, %c0_7] : memref<324x72xbf16, #tpu.memory_space<vmem>>, vector<324x8xbf16>
    tpu.vector_store %arg14[%c0_6, %c0_7], %5 {strides = array<i32>} : memref<324x72xbf16, #tpu.memory_space<vmem>>, vector<324x8xbf16>,
    %c0_8 = arith.constant 0 : index
    %c6 = arith.constant 6 : index
    %c0_9 = arith.constant 0 : index
    %7 = vector.load %arg1[%c0_8, %c6, %c0_9] : memref<1x376x8xbf16, #tpu.memory_space<vmem>>, vector<1x324x8xbf16>
    %8 = vector.shape_cast %7 : vector<1x324x8xbf16> to vector<324x8xbf16>
    %c0_10 = arith.constant 0 : index
    %c8 = arith.constant 8 : index
    %9 = vector.load %arg14[%c0_10, %c8] : memref<324x72xbf16, #tpu.memory_space<vmem>>, vector<324x8xbf16>
    tpu.vector_store %arg14[%c0_10, %c8], %8 {strides = array<i32>} : memref<324x72xbf16, #tpu.memory_space<vmem>>, vector<324x8xbf16>,
    %c0_11 = arith.constant 0 : index
    %c7 = arith.constant 7 : index
    %c0_12 = arith.constant 0 : index
    %10 = vector.load %arg1[%c0_11, %c7, %c0_12] : memref<1x376x8xbf16, #tpu.memory_space<vmem>>, vector<1x324x8xbf16>
    %11 = vector.shape_cast %10 : vector<1x324x8xbf16> to vector<324x8xbf16>
    %c0_13 = arith.constant 0 : index
    %c16 = arith.constant 16 : index
    %12 = vector.load %arg14[%c0_13, %c16] : memref<324x72xbf16, #tpu.memory_space<vmem>>, vector<324x8xbf16>
    tpu.vector_store %arg14[%c0_13, %c16], %11 {strides = array<i32>} : memref<324x72xbf16, #tpu.memory_space<vmem>>, vector<324x8xbf16>,
    %c0_14 = arith.constant 0 : index
    %c23 = arith.constant 23 : index
    %c0_15 = arith.constant 0 : index
    %13 = vector.load %arg1[%c0_14, %c23, %c0_15] : memref<1x376x8xbf16, #tpu.memory_space<vmem>>, vector<1x324x8xbf16>
    %14 = vector.shape_cast %13 : vector<1x324x8xbf16> to vector<324x8xbf16>
    %c0_16 = arith.constant 0 : index
    %c24 = arith.constant 24 : index
    %15 = vector.load %arg14[%c0_16, %c24] : memref<324x72xbf16, #tpu.memory_space<vmem>>, vector<324x8xbf16>
    tpu.vector_store %arg14[%c0_16, %c24], %14 {strides = array<i32>} : memref<324x72xbf16, #tpu.memory_space<vmem>>, vector<324x8xbf16>,
    %c0_17 = arith.constant 0 : index
    %c24_18 = arith.constant 24 : index
    %c0_19 = arith.constant 0 : index
    %16 = vector.load %arg1[%c0_17, %c24_18, %c0_19] : memref<1x376x8xbf16, #tpu.memory_space<vmem>>, vector<1x324x8xbf16>
    %17 = vector.shape_cast %16 : vector<1x324x8xbf16> to vector<324x8xbf16>
    %c0_20 = arith.constant 0 : index
    %c32 = arith.constant 32 : index
    %18 = vector.load %arg14[%c0_20, %c32] : memref<324x72xbf16, #tpu.memory_space<vmem>>, vector<324x8xbf16>
    tpu.vector_store %arg14[%c0_20, %c32], %17 {strides = array<i32>} : memref<324x72xbf16, #tpu.memory_space<vmem>>, vector<324x8xbf16>,
    %c0_21 = arith.constant 0 : index
    %c25 = arith.constant 25 : index
    %c0_22 = arith.constant 0 : index
    %19 = vector.load %arg1[%c0_21, %c25, %c0_22] : memref<1x376x8xbf16, #tpu.memory_space<vmem>>, vector<1x324x8xbf16>
    %20 = vector.shape_cast %19 : vector<1x324x8xbf16> to vector<324x8xbf16>
    %c0_23 = arith.constant 0 : index
    %c40 = arith.constant 40 : index
    %21 = vector.load %arg14[%c0_23, %c40] : memref<324x72xbf16, #tpu.memory_space<vmem>>, vector<324x8xbf16>
    tpu.vector_store %arg14[%c0_23, %c40], %20 {strides = array<i32>} : memref<324x72xbf16, #tpu.memory_space<vmem>>, vector<324x8xbf16>,
    %c0_24 = arith.constant 0 : index
    %c41 = arith.constant 41 : index
    %c0_25 = arith.constant 0 : index
    %22 = vector.load %arg1[%c0_24, %c41, %c0_25] : memref<1x376x8xbf16, #tpu.memory_space<vmem>>, vector<1x324x8xbf16>
    %23 = vector.shape_cast %22 : vector<1x324x8xbf16> to vector<324x8xbf16>
    %c0_26 = arith.constant 0 : index
    %c48 = arith.constant 48 : index
    %24 = vector.load %arg14[%c0_26, %c48] : memref<324x72xbf16, #tpu.memory_space<vmem>>, vector<324x8xbf16>
    tpu.vector_store %arg14[%c0_26, %c48], %23 {strides = array<i32>} : memref<324x72xbf16, #tpu.memory_space<vmem>>, vector<324x8xbf16>,
    %c0_27 = arith.constant 0 : index
    %c42 = arith.constant 42 : index
    %c0_28 = arith.constant 0 : index
    %25 = vector.load %arg1[%c0_27, %c42, %c0_28] : memref<1x376x8xbf16, #tpu.memory_space<vmem>>, vector<1x324x8xbf16>
    %26 = vector.shape_cast %25 : vector<1x324x8xbf16> to vector<324x8xbf16>
    %c0_29 = arith.constant 0 : index
    %c56 = arith.constant 56 : index
    %27 = vector.load %arg14[%c0_29, %c56] : memref<324x72xbf16, #tpu.memory_space<vmem>>, vector<324x8xbf16>
    tpu.vector_store %arg14[%c0_29, %c56], %26 {strides = array<i32>} : memref<324x72xbf16, #tpu.memory_space<vmem>>, vector<324x8xbf16>,
    %c0_30 = arith.constant 0 : index
    %c43 = arith.constant 43 : index
    %c0_31 = arith.constant 0 : index
    %28 = vector.load %arg1[%c0_30, %c43, %c0_31] : memref<1x376x8xbf16, #tpu.memory_space<vmem>>, vector<1x324x8xbf16>
    %29 = vector.shape_cast %28 : vector<1x324x8xbf16> to vector<324x8xbf16>
    %c0_32 = arith.constant 0 : index
    %c64 = arith.constant 64 : index
    %30 = vector.load %arg14[%c0_32, %c64] : memref<324x72xbf16, #tpu.memory_space<vmem>>, vector<324x8xbf16>
    tpu.vector_store %arg14[%c0_32, %c64], %29 {strides = array<i32>} : memref<324x72xbf16, #tpu.memory_space<vmem>>, vector<324x8xbf16>,
    %c0_33 = arith.constant 0 : index
    %c0_34 = arith.constant 0 : index
    %31 = vector.load %arg14[%c0_33, %c0_34] : memref<324x72xbf16, #tpu.memory_space<vmem>>, vector<324x72xbf16>
    %c0_35 = arith.constant 0 : index
    %c0_36 = arith.constant 0 : index
    %32 = vector.load %arg2[%c0_35, %c0_36] : memref<72x32xbf16, #tpu.memory_space<vmem>>, vector<72x32xbf16>
    %cst_37 = arith.constant dense<0.000000e+00> : vector<324x32xf32>
    %33 = tpu.matmul %31, %32, %cst_37 {dimension_numbers = #tpu.dot_dimension_numbers<[1], [0], [0], [1], [0, 0, 1, 1], [], []>} : vector<324x72xbf16>, vector<72x32xbf16>, vector<324x32xf32> -> vector<324x32xf32>
    %c0_38 = arith.constant 0 : index
    %c0_39 = arith.constant 0 : index
    %34 = vector.load %arg3[%c0_38, %c0_39] : memref<1x32xf32, #tpu.memory_space<vmem>>, vector<1x32xf32>
    %35 = vector.broadcast %34 : vector<1x32xf32> to vector<324x32xf32>
    %36 = arith.addf %33, %35 : vector<324x32xf32>
    %cst_40 = arith.constant 0.000000e+00 : f32
    %37 = vector.broadcast %cst_40 : f32 to vector<324x32xf32>
    %38 = arith.maximumf %36, %37 : vector<324x32xf32>
    %c0_41 = arith.constant 0 : index
    %c0_42 = arith.constant 0 : index
    %39 = vector.load %arg15[%c0_41, %c0_42] : memref<324x32xf32, #tpu.memory_space<vmem>>, vector<324x32xf32>
    tpu.vector_store %arg15[%c0_41, %c0_42], %38 {strides = array<i32>} : memref<324x32xf32, #tpu.memory_space<vmem>>, vector<324x32xf32>,
    %c19 = arith.constant 19 : index
    %c0_43 = arith.constant 0 : index
    %40 = tpu.strided_load %arg15[%c19, %c0_43] {strides = array<i32: 2, 1>} : memref<324x32xf32, #tpu.memory_space<vmem>>, vector<8x32xf32>
    %c20 = arith.constant 20 : index
    %c0_44 = arith.constant 0 : index
    %41 = tpu.strided_load %arg15[%c20, %c0_44] {strides = array<i32: 2, 1>} : memref<324x32xf32, #tpu.memory_space<vmem>>, vector<8x32xf32>
    %42 = arith.maximumf %40, %41 : vector<8x32xf32>
    %c37 = arith.constant 37 : index
    %c0_45 = arith.constant 0 : index
    %43 = tpu.strided_load %arg15[%c37, %c0_45] {strides = array<i32: 2, 1>} : memref<324x32xf32, #tpu.memory_space<vmem>>, vector<8x32xf32>
    %c38 = arith.constant 38 : index
    %c0_46 = arith.constant 0 : index
    %44 = tpu.strided_load %arg15[%c38, %c0_46] {strides = array<i32: 2, 1>} : memref<324x32xf32, #tpu.memory_space<vmem>>, vector<8x32xf32>
    %45 = arith.maximumf %43, %44 : vector<8x32xf32>
    %46 = arith.maximumf %42, %45 : vector<8x32xf32>
    %47 = arith.truncf %46 : vector<8x32xf32> to vector<8x32xbf16>
    %c27 = arith.constant 27 : index
    %c0_47 = arith.constant 0 : index
    %48 = vector.load %arg16[%c27, %c0_47] : memref<132x32xbf16, #tpu.memory_space<vmem>>, vector<8x32xbf16>
    tpu.vector_store %arg16[%c27, %c0_47], %47 {strides = array<i32>} : memref<132x32xbf16, #tpu.memory_space<vmem>>, vector<8x32xbf16>,
    %c55 = arith.constant 55 : index
    %c0_48 = arith.constant 0 : index
    %49 = tpu.strided_load %arg15[%c55, %c0_48] {strides = array<i32: 2, 1>} : memref<324x32xf32, #tpu.memory_space<vmem>>, vector<8x32xf32>
    %c56_49 = arith.constant 56 : index
    %c0_50 = arith.constant 0 : index
    %50 = tpu.strided_load %arg15[%c56_49, %c0_50] {strides = array<i32: 2, 1>} : memref<324x32xf32, #tpu.memory_space<vmem>>, vector<8x32xf32>
    %51 = arith.maximumf %49, %50 : vector<8x32xf32>
    %c73 = arith.constant 73 : index
    %c0_51 = arith.constant 0 : index
    %52 = tpu.strided_load %arg15[%c73, %c0_51] {strides = array<i32: 2, 1>} : memref<324x32xf32, #tpu.memory_space<vmem>>, vector<8x32xf32>
    %c74 = arith.constant 74 : index
    %c0_52 = arith.constant 0 : index
    %53 = tpu.strided_load %arg15[%c74, %c0_52] {strides = array<i32: 2, 1>} : memref<324x32xf32, #tpu.memory_space<vmem>>, vector<8x32xf32>
    %54 = arith.maximumf %52, %53 : vector<8x32xf32>
    %55 = arith.maximumf %51, %54 : vector<8x32xf32>
    %56 = arith.truncf %55 : vector<8x32xf32> to vector<8x32xbf16>
    %c37_53 = arith.constant 37 : index
    %c0_54 = arith.constant 0 : index
    %57 = vector.load %arg16[%c37_53, %c0_54] : memref<132x32xbf16, #tpu.memory_space<vmem>>, vector<8x32xbf16>
    tpu.vector_store %arg16[%c37_53, %c0_54], %56 {strides = array<i32>} : memref<132x32xbf16, #tpu.memory_space<vmem>>, vector<8x32xbf16>,
    %c91 = arith.constant 91 : index
    %c0_55 = arith.constant 0 : index
    %58 = tpu.strided_load %arg15[%c91, %c0_55] {strides = array<i32: 2, 1>} : memref<324x32xf32, #tpu.memory_space<vmem>>, vector<8x32xf32>
    %c92 = arith.constant 92 : index
    %c0_56 = arith.constant 0 : index
    %59 = tpu.strided_load %arg15[%c92, %c0_56] {strides = array<i32: 2, 1>} : memref<324x32xf32, #tpu.memory_space<vmem>>, vector<8x32xf32>
    %60 = arith.maximumf %58, %59 : vector<8x32xf32>
    %c109 = arith.constant 109 : index
    %c0_57 = arith.constant 0 : index
    %61 = tpu.strided_load %arg15[%c109, %c0_57] {strides = array<i32: 2, 1>} : memref<324x32xf32, #tpu.memory_space<vmem>>, vector<8x32xf32>
    %c110 = arith.constant 110 : index
    %c0_58 = arith.constant 0 : index
    %62 = tpu.strided_load %arg15[%c110, %c0_58] {strides = array<i32: 2, 1>} : memref<324x32xf32, #tpu.memory_space<vmem>>, vector<8x32xf32>
    %63 = arith.maximumf %61, %62 : vector<8x32xf32>
    %64 = arith.maximumf %60, %63 : vector<8x32xf32>
    %65 = arith.truncf %64 : vector<8x32xf32> to vector<8x32xbf16>
    %c47 = arith.constant 47 : index
    %c0_59 = arith.constant 0 : index
    %66 = vector.load %arg16[%c47, %c0_59] : memref<132x32xbf16, #tpu.memory_space<vmem>>, vector<8x32xbf16>
    tpu.vector_store %arg16[%c47, %c0_59], %65 {strides = array<i32>} : memref<132x32xbf16, #tpu.memory_space<vmem>>, vector<8x32xbf16>,
    %c127 = arith.constant 127 : index
    %c0_60 = arith.constant 0 : index
    %67 = tpu.strided_load %arg15[%c127, %c0_60] {strides = array<i32: 2, 1>} : memref<324x32xf32, #tpu.memory_space<vmem>>, vector<8x32xf32>
    %c128 = arith.constant 128 : index
    %c0_61 = arith.constant 0 : index
    %68 = tpu.strided_load %arg15[%c128, %c0_61] {strides = array<i32: 2, 1>} : memref<324x32xf32, #tpu.memory_space<vmem>>, vector<8x32xf32>
    %69 = arith.maximumf %67, %68 : vector<8x32xf32>
    %c145 = arith.constant 145 : index
    %c0_62 = arith.constant 0 : index
    %70 = tpu.strided_load %arg15[%c145, %c0_62] {strides = array<i32: 2, 1>} : memref<324x32xf32, #tpu.memory_space<vmem>>, vector<8x32xf32>
    %c146 = arith.constant 146 : index
    %c0_63 = arith.constant 0 : index
    %71 = tpu.strided_load %arg15[%c146, %c0_63] {strides = array<i32: 2, 1>} : memref<324x32xf32, #tpu.memory_space<vmem>>, vector<8x32xf32>
    %72 = arith.maximumf %70, %71 : vector<8x32xf32>
    %73 = arith.maximumf %69, %72 : vector<8x32xf32>
    %74 = arith.truncf %73 : vector<8x32xf32> to vector<8x32xbf16>
    %c57 = arith.constant 57 : index
    %c0_64 = arith.constant 0 : index
    %75 = vector.load %arg16[%c57, %c0_64] : memref<132x32xbf16, #tpu.memory_space<vmem>>, vector<8x32xbf16>
    tpu.vector_store %arg16[%c57, %c0_64], %74 {strides = array<i32>} : memref<132x32xbf16, #tpu.memory_space<vmem>>, vector<8x32xbf16>,
    %c163 = arith.constant 163 : index
    %c0_65 = arith.constant 0 : index
    %76 = tpu.strided_load %arg15[%c163, %c0_65] {strides = array<i32: 2, 1>} : memref<324x32xf32, #tpu.memory_space<vmem>>, vector<8x32xf32>
    %c164 = arith.constant 164 : index
    %c0_66 = arith.constant 0 : index
    %77 = tpu.strided_load %arg15[%c164, %c0_66] {strides = array<i32: 2, 1>} : memref<324x32xf32, #tpu.memory_space<vmem>>, vector<8x32xf32>
    %78 = arith.maximumf %76, %77 : vector<8x32xf32>
    %c181 = arith.constant 181 : index
    %c0_67 = arith.constant 0 : index
    %79 = tpu.strided_load %arg15[%c181, %c0_67] {strides = array<i32: 2, 1>} : memref<324x32xf32, #tpu.memory_space<vmem>>, vector<8x32xf32>
    %c182 = arith.constant 182 : index
    %c0_68 = arith.constant 0 : index
    %80 = tpu.strided_load %arg15[%c182, %c0_68] {strides = array<i32: 2, 1>} : memref<324x32xf32, #tpu.memory_space<vmem>>, vector<8x32xf32>
    %81 = arith.maximumf %79, %80 : vector<8x32xf32>
    %82 = arith.maximumf %78, %81 : vector<8x32xf32>
    %83 = arith.truncf %82 : vector<8x32xf32> to vector<8x32xbf16>
    %c67 = arith.constant 67 : index
    %c0_69 = arith.constant 0 : index
    %84 = vector.load %arg16[%c67, %c0_69] : memref<132x32xbf16, #tpu.memory_space<vmem>>, vector<8x32xbf16>
    tpu.vector_store %arg16[%c67, %c0_69], %83 {strides = array<i32>} : memref<132x32xbf16, #tpu.memory_space<vmem>>, vector<8x32xbf16>,
    %c199 = arith.constant 199 : index
    %c0_70 = arith.constant 0 : index
    %85 = tpu.strided_load %arg15[%c199, %c0_70] {strides = array<i32: 2, 1>} : memref<324x32xf32, #tpu.memory_space<vmem>>, vector<8x32xf32>
    %c200 = arith.constant 200 : index
    %c0_71 = arith.constant 0 : index
    %86 = tpu.strided_load %arg15[%c200, %c0_71] {strides = array<i32: 2, 1>} : memref<324x32xf32, #tpu.memory_space<vmem>>, vector<8x32xf32>
    %87 = arith.maximumf %85, %86 : vector<8x32xf32>
    %c217 = arith.constant 217 : index
    %c0_72 = arith.constant 0 : index
    %88 = tpu.strided_load %arg15[%c217, %c0_72] {strides = array<i32: 2, 1>} : memref<324x32xf32, #tpu.memory_space<vmem>>, vector<8x32xf32>
    %c218 = arith.constant 218 : index
    %c0_73 = arith.constant 0 : index
    %89 = tpu.strided_load %arg15[%c218, %c0_73] {strides = array<i32: 2, 1>} : memref<324x32xf32, #tpu.memory_space<vmem>>, vector<8x32xf32>
    %90 = arith.maximumf %88, %89 : vector<8x32xf32>
    %91 = arith.maximumf %87, %90 : vector<8x32xf32>
    %92 = arith.truncf %91 : vector<8x32xf32> to vector<8x32xbf16>
    %c77 = arith.constant 77 : index
    %c0_74 = arith.constant 0 : index
    %93 = vector.load %arg16[%c77, %c0_74] : memref<132x32xbf16, #tpu.memory_space<vmem>>, vector<8x32xbf16>
    tpu.vector_store %arg16[%c77, %c0_74], %92 {strides = array<i32>} : memref<132x32xbf16, #tpu.memory_space<vmem>>, vector<8x32xbf16>,
    %c235 = arith.constant 235 : index
    %c0_75 = arith.constant 0 : index
    %94 = tpu.strided_load %arg15[%c235, %c0_75] {strides = array<i32: 2, 1>} : memref<324x32xf32, #tpu.memory_space<vmem>>, vector<8x32xf32>
    %c236 = arith.constant 236 : index
    %c0_76 = arith.constant 0 : index
    %95 = tpu.strided_load %arg15[%c236, %c0_76] {strides = array<i32: 2, 1>} : memref<324x32xf32, #tpu.memory_space<vmem>>, vector<8x32xf32>
    %96 = arith.maximumf %94, %95 : vector<8x32xf32>
    %c253 = arith.constant 253 : index
    %c0_77 = arith.constant 0 : index
    %97 = tpu.strided_load %arg15[%c253, %c0_77] {strides = array<i32: 2, 1>} : memref<324x32xf32, #tpu.memory_space<vmem>>, vector<8x32xf32>
    %c254 = arith.constant 254 : index
    %c0_78 = arith.constant 0 : index
    %98 = tpu.strided_load %arg15[%c254, %c0_78] {strides = array<i32: 2, 1>} : memref<324x32xf32, #tpu.memory_space<vmem>>, vector<8x32xf32>
    %99 = arith.maximumf %97, %98 : vector<8x32xf32>
    %100 = arith.maximumf %96, %99 : vector<8x32xf32>
    %101 = arith.truncf %100 : vector<8x32xf32> to vector<8x32xbf16>
    %c87 = arith.constant 87 : index
    %c0_79 = arith.constant 0 : index
    %102 = vector.load %arg16[%c87, %c0_79] : memref<132x32xbf16, #tpu.memory_space<vmem>>, vector<8x32xbf16>
    tpu.vector_store %arg16[%c87, %c0_79], %101 {strides = array<i32>} : memref<132x32xbf16, #tpu.memory_space<vmem>>, vector<8x32xbf16>,
    %c271 = arith.constant 271 : index
    %c0_80 = arith.constant 0 : index
    %103 = tpu.strided_load %arg15[%c271, %c0_80] {strides = array<i32: 2, 1>} : memref<324x32xf32, #tpu.memory_space<vmem>>, vector<8x32xf32>
    %c272 = arith.constant 272 : index
    %c0_81 = arith.constant 0 : index
    %104 = tpu.strided_load %arg15[%c272, %c0_81] {strides = array<i32: 2, 1>} : memref<324x32xf32, #tpu.memory_space<vmem>>, vector<8x32xf32>
    %105 = arith.maximumf %103, %104 : vector<8x32xf32>
    %c289 = arith.constant 289 : index
    %c0_82 = arith.constant 0 : index
    %106 = tpu.strided_load %arg15[%c289, %c0_82] {strides = array<i32: 2, 1>} : memref<324x32xf32, #tpu.memory_space<vmem>>, vector<8x32xf32>
    %c290 = arith.constant 290 : index
    %c0_83 = arith.constant 0 : index
    %107 = tpu.strided_load %arg15[%c290, %c0_83] {strides = array<i32: 2, 1>} : memref<324x32xf32, #tpu.memory_space<vmem>>, vector<8x32xf32>
    %108 = arith.maximumf %106, %107 : vector<8x32xf32>
    %109 = arith.maximumf %105, %108 : vector<8x32xf32>
    %110 = arith.truncf %109 : vector<8x32xf32> to vector<8x32xbf16>
    %c97 = arith.constant 97 : index
    %c0_84 = arith.constant 0 : index
    %111 = vector.load %arg16[%c97, %c0_84] : memref<132x32xbf16, #tpu.memory_space<vmem>>, vector<8x32xbf16>
    tpu.vector_store %arg16[%c97, %c0_84], %110 {strides = array<i32>} : memref<132x32xbf16, #tpu.memory_space<vmem>>, vector<8x32xbf16>,
    %c5_85 = arith.constant 5 : index
    %c0_86 = arith.constant 0 : index
    %112 = vector.load %arg16[%c5_85, %c0_86] : memref<132x32xbf16, #tpu.memory_space<vmem>>, vector<100x32xbf16>
    %c0_87 = arith.constant 0 : index
    %c0_88 = arith.constant 0 : index
    %113 = vector.load %arg17[%c0_87, %c0_88] : memref<100x288xbf16, #tpu.memory_space<vmem>>, vector<100x32xbf16>
    tpu.vector_store %arg17[%c0_87, %c0_88], %112 {strides = array<i32>} : memref<100x288xbf16, #tpu.memory_space<vmem>>, vector<100x32xbf16>,
    %c6_89 = arith.constant 6 : index
    %c0_90 = arith.constant 0 : index
    %114 = vector.load %arg16[%c6_89, %c0_90] : memref<132x32xbf16, #tpu.memory_space<vmem>>, vector<100x32xbf16>
    %c0_91 = arith.constant 0 : index
    %c32_92 = arith.constant 32 : index
    %115 = vector.load %arg17[%c0_91, %c32_92] : memref<100x288xbf16, #tpu.memory_space<vmem>>, vector<100x32xbf16>
    tpu.vector_store %arg17[%c0_91, %c32_92], %114 {strides = array<i32>} : memref<100x288xbf16, #tpu.memory_space<vmem>>, vector<100x32xbf16>,
    %c7_93 = arith.constant 7 : index
    %c0_94 = arith.constant 0 : index
    %116 = vector.load %arg16[%c7_93, %c0_94] : memref<132x32xbf16, #tpu.memory_space<vmem>>, vector<100x32xbf16>
    %c0_95 = arith.constant 0 : index
    %c64_96 = arith.constant 64 : index
    %117 = vector.load %arg17[%c0_95, %c64_96] : memref<100x288xbf16, #tpu.memory_space<vmem>>, vector<100x32xbf16>
    tpu.vector_store %arg17[%c0_95, %c64_96], %116 {strides = array<i32>} : memref<100x288xbf16, #tpu.memory_space<vmem>>, vector<100x32xbf16>,
    %c15 = arith.constant 15 : index
    %c0_97 = arith.constant 0 : index
    %118 = vector.load %arg16[%c15, %c0_97] : memref<132x32xbf16, #tpu.memory_space<vmem>>, vector<100x32xbf16>
    %c0_98 = arith.constant 0 : index
    %c96 = arith.constant 96 : index
    %119 = vector.load %arg17[%c0_98, %c96] : memref<100x288xbf16, #tpu.memory_space<vmem>>, vector<100x32xbf16>
    tpu.vector_store %arg17[%c0_98, %c96], %118 {strides = array<i32>} : memref<100x288xbf16, #tpu.memory_space<vmem>>, vector<100x32xbf16>,
    %c16_99 = arith.constant 16 : index
    %c0_100 = arith.constant 0 : index
    %120 = vector.load %arg16[%c16_99, %c0_100] : memref<132x32xbf16, #tpu.memory_space<vmem>>, vector<100x32xbf16>
    %c0_101 = arith.constant 0 : index
    %c128_102 = arith.constant 128 : index
    %121 = vector.load %arg17[%c0_101, %c128_102] : memref<100x288xbf16, #tpu.memory_space<vmem>>, vector<100x32xbf16>
    tpu.vector_store %arg17[%c0_101, %c128_102], %120 {strides = array<i32>} : memref<100x288xbf16, #tpu.memory_space<vmem>>, vector<100x32xbf16>,
    %c17 = arith.constant 17 : index
    %c0_103 = arith.constant 0 : index
    %122 = vector.load %arg16[%c17, %c0_103] : memref<132x32xbf16, #tpu.memory_space<vmem>>, vector<100x32xbf16>
    %c0_104 = arith.constant 0 : index
    %c160 = arith.constant 160 : index
    %123 = vector.load %arg17[%c0_104, %c160] : memref<100x288xbf16, #tpu.memory_space<vmem>>, vector<100x32xbf16>
    tpu.vector_store %arg17[%c0_104, %c160], %122 {strides = array<i32>} : memref<100x288xbf16, #tpu.memory_space<vmem>>, vector<100x32xbf16>,
    %c25_105 = arith.constant 25 : index
    %c0_106 = arith.constant 0 : index
    %124 = vector.load %arg16[%c25_105, %c0_106] : memref<132x32xbf16, #tpu.memory_space<vmem>>, vector<100x32xbf16>
    %c0_107 = arith.constant 0 : index
    %c192 = arith.constant 192 : index
    %125 = vector.load %arg17[%c0_107, %c192] : memref<100x288xbf16, #tpu.memory_space<vmem>>, vector<100x32xbf16>
    tpu.vector_store %arg17[%c0_107, %c192], %124 {strides = array<i32>} : memref<100x288xbf16, #tpu.memory_space<vmem>>, vector<100x32xbf16>,
    %c26 = arith.constant 26 : index
    %c0_108 = arith.constant 0 : index
    %126 = vector.load %arg16[%c26, %c0_108] : memref<132x32xbf16, #tpu.memory_space<vmem>>, vector<100x32xbf16>
    %c0_109 = arith.constant 0 : index
    %c224 = arith.constant 224 : index
    %127 = vector.load %arg17[%c0_109, %c224] : memref<100x288xbf16, #tpu.memory_space<vmem>>, vector<100x32xbf16>
    tpu.vector_store %arg17[%c0_109, %c224], %126 {strides = array<i32>} : memref<100x288xbf16, #tpu.memory_space<vmem>>, vector<100x32xbf16>,
    %c27_110 = arith.constant 27 : index
    %c0_111 = arith.constant 0 : index
    %128 = vector.load %arg16[%c27_110, %c0_111] : memref<132x32xbf16, #tpu.memory_space<vmem>>, vector<100x32xbf16>
    %c0_112 = arith.constant 0 : index
    %c256 = arith.constant 256 : index
    %129 = vector.load %arg17[%c0_112, %c256] : memref<100x288xbf16, #tpu.memory_space<vmem>>, vector<100x32xbf16>
    tpu.vector_store %arg17[%c0_112, %c256], %128 {strides = array<i32>} : memref<100x288xbf16, #tpu.memory_space<vmem>>, vector<100x32xbf16>,
    %c0_113 = arith.constant 0 : index
    %c0_114 = arith.constant 0 : index
    %130 = vector.load %arg17[%c0_113, %c0_114] : memref<100x288xbf16, #tpu.memory_space<vmem>>, vector<100x288xbf16>
    %c0_115 = arith.constant 0 : index
    %c0_116 = arith.constant 0 : index
    %131 = vector.load %arg4[%c0_115, %c0_116] : memref<288x64xbf16, #tpu.memory_space<vmem>>, vector<288x64xbf16>
    %cst_117 = arith.constant dense<0.000000e+00> : vector<100x64xf32>
    %132 = tpu.matmul %130, %131, %cst_117 {dimension_numbers = #tpu.dot_dimension_numbers<[1], [0], [0], [1], [0, 0, 1, 1], [], []>} : vector<100x288xbf16>, vector<288x64xbf16>, vector<100x64xf32> -> vector<100x64xf32>
    %c0_118 = arith.constant 0 : index
    %c0_119 = arith.constant 0 : index
    %133 = vector.load %arg5[%c0_118, %c0_119] : memref<1x64xf32, #tpu.memory_space<vmem>>, vector<1x64xf32>
    %134 = vector.broadcast %133 : vector<1x64xf32> to vector<100x64xf32>
    %135 = arith.addf %132, %134 : vector<100x64xf32>
    %cst_120 = arith.constant 0.000000e+00 : f32
    %136 = vector.broadcast %cst_120 : f32 to vector<100x64xf32>
    %137 = arith.maximumf %135, %136 : vector<100x64xf32>
    %c0_121 = arith.constant 0 : index
    %c0_122 = arith.constant 0 : index
    %138 = vector.load %arg18[%c0_121, %c0_122] : memref<100x64xf32, #tpu.memory_space<vmem>>, vector<100x64xf32>
    tpu.vector_store %arg18[%c0_121, %c0_122], %137 {strides = array<i32>} : memref<100x64xf32, #tpu.memory_space<vmem>>, vector<100x64xf32>,
    %c11 = arith.constant 11 : index
    %c0_123 = arith.constant 0 : index
    %139 = tpu.strided_load %arg18[%c11, %c0_123] {strides = array<i32: 2, 1>} : memref<100x64xf32, #tpu.memory_space<vmem>>, vector<4x64xf32>
    %c12 = arith.constant 12 : index
    %c0_124 = arith.constant 0 : index
    %140 = tpu.strided_load %arg18[%c12, %c0_124] {strides = array<i32: 2, 1>} : memref<100x64xf32, #tpu.memory_space<vmem>>, vector<4x64xf32>
    %141 = arith.maximumf %139, %140 : vector<4x64xf32>
    %c21 = arith.constant 21 : index
    %c0_125 = arith.constant 0 : index
    %142 = tpu.strided_load %arg18[%c21, %c0_125] {strides = array<i32: 2, 1>} : memref<100x64xf32, #tpu.memory_space<vmem>>, vector<4x64xf32>
    %c22 = arith.constant 22 : index
    %c0_126 = arith.constant 0 : index
    %143 = tpu.strided_load %arg18[%c22, %c0_126] {strides = array<i32: 2, 1>} : memref<100x64xf32, #tpu.memory_space<vmem>>, vector<4x64xf32>
    %144 = arith.maximumf %142, %143 : vector<4x64xf32>
    %145 = arith.maximumf %141, %144 : vector<4x64xf32>
    %146 = arith.truncf %145 : vector<4x64xf32> to vector<4x64xbf16>
    %c15_127 = arith.constant 15 : index
    %c0_128 = arith.constant 0 : index
    %147 = vector.load %arg19[%c15_127, %c0_128] : memref<52x64xbf16, #tpu.memory_space<vmem>>, vector<4x64xbf16>
    tpu.vector_store %arg19[%c15_127, %c0_128], %146 {strides = array<i32>} : memref<52x64xbf16, #tpu.memory_space<vmem>>, vector<4x64xbf16>,
    %c31 = arith.constant 31 : index
    %c0_129 = arith.constant 0 : index
    %148 = tpu.strided_load %arg18[%c31, %c0_129] {strides = array<i32: 2, 1>} : memref<100x64xf32, #tpu.memory_space<vmem>>, vector<4x64xf32>
    %c32_130 = arith.constant 32 : index
    %c0_131 = arith.constant 0 : index
    %149 = tpu.strided_load %arg18[%c32_130, %c0_131] {strides = array<i32: 2, 1>} : memref<100x64xf32, #tpu.memory_space<vmem>>, vector<4x64xf32>
    %150 = arith.maximumf %148, %149 : vector<4x64xf32>
    %c41_132 = arith.constant 41 : index
    %c0_133 = arith.constant 0 : index
    %151 = tpu.strided_load %arg18[%c41_132, %c0_133] {strides = array<i32: 2, 1>} : memref<100x64xf32, #tpu.memory_space<vmem>>, vector<4x64xf32>
    %c42_134 = arith.constant 42 : index
    %c0_135 = arith.constant 0 : index
    %152 = tpu.strided_load %arg18[%c42_134, %c0_135] {strides = array<i32: 2, 1>} : memref<100x64xf32, #tpu.memory_space<vmem>>, vector<4x64xf32>
    %153 = arith.maximumf %151, %152 : vector<4x64xf32>
    %154 = arith.maximumf %150, %153 : vector<4x64xf32>
    %155 = arith.truncf %154 : vector<4x64xf32> to vector<4x64xbf16>
    %c21_136 = arith.constant 21 : index
    %c0_137 = arith.constant 0 : index
    %156 = vector.load %arg19[%c21_136, %c0_137] : memref<52x64xbf16, #tpu.memory_space<vmem>>, vector<4x64xbf16>
    tpu.vector_store %arg19[%c21_136, %c0_137], %155 {strides = array<i32>} : memref<52x64xbf16, #tpu.memory_space<vmem>>, vector<4x64xbf16>,
    %c51 = arith.constant 51 : index
    %c0_138 = arith.constant 0 : index
    %157 = tpu.strided_load %arg18[%c51, %c0_138] {strides = array<i32: 2, 1>} : memref<100x64xf32, #tpu.memory_space<vmem>>, vector<4x64xf32>
    %c52 = arith.constant 52 : index
    %c0_139 = arith.constant 0 : index
    %158 = tpu.strided_load %arg18[%c52, %c0_139] {strides = array<i32: 2, 1>} : memref<100x64xf32, #tpu.memory_space<vmem>>, vector<4x64xf32>
    %159 = arith.maximumf %157, %158 : vector<4x64xf32>
    %c61 = arith.constant 61 : index
    %c0_140 = arith.constant 0 : index
    %160 = tpu.strided_load %arg18[%c61, %c0_140] {strides = array<i32: 2, 1>} : memref<100x64xf32, #tpu.memory_space<vmem>>, vector<4x64xf32>
    %c62 = arith.constant 62 : index
    %c0_141 = arith.constant 0 : index
    %161 = tpu.strided_load %arg18[%c62, %c0_141] {strides = array<i32: 2, 1>} : memref<100x64xf32, #tpu.memory_space<vmem>>, vector<4x64xf32>
    %162 = arith.maximumf %160, %161 : vector<4x64xf32>
    %163 = arith.maximumf %159, %162 : vector<4x64xf32>
    %164 = arith.truncf %163 : vector<4x64xf32> to vector<4x64xbf16>
    %c27_142 = arith.constant 27 : index
    %c0_143 = arith.constant 0 : index
    %165 = vector.load %arg19[%c27_142, %c0_143] : memref<52x64xbf16, #tpu.memory_space<vmem>>, vector<4x64xbf16>
    tpu.vector_store %arg19[%c27_142, %c0_143], %164 {strides = array<i32>} : memref<52x64xbf16, #tpu.memory_space<vmem>>, vector<4x64xbf16>,
    %c71 = arith.constant 71 : index
    %c0_144 = arith.constant 0 : index
    %166 = tpu.strided_load %arg18[%c71, %c0_144] {strides = array<i32: 2, 1>} : memref<100x64xf32, #tpu.memory_space<vmem>>, vector<4x64xf32>
    %c72 = arith.constant 72 : index
    %c0_145 = arith.constant 0 : index
    %167 = tpu.strided_load %arg18[%c72, %c0_145] {strides = array<i32: 2, 1>} : memref<100x64xf32, #tpu.memory_space<vmem>>, vector<4x64xf32>
    %168 = arith.maximumf %166, %167 : vector<4x64xf32>
    %c81 = arith.constant 81 : index
    %c0_146 = arith.constant 0 : index
    %169 = tpu.strided_load %arg18[%c81, %c0_146] {strides = array<i32: 2, 1>} : memref<100x64xf32, #tpu.memory_space<vmem>>, vector<4x64xf32>
    %c82 = arith.constant 82 : index
    %c0_147 = arith.constant 0 : index
    %170 = tpu.strided_load %arg18[%c82, %c0_147] {strides = array<i32: 2, 1>} : memref<100x64xf32, #tpu.memory_space<vmem>>, vector<4x64xf32>
    %171 = arith.maximumf %169, %170 : vector<4x64xf32>
    %172 = arith.maximumf %168, %171 : vector<4x64xf32>
    %173 = arith.truncf %172 : vector<4x64xf32> to vector<4x64xbf16>
    %c33 = arith.constant 33 : index
    %c0_148 = arith.constant 0 : index
    %174 = vector.load %arg19[%c33, %c0_148] : memref<52x64xbf16, #tpu.memory_space<vmem>>, vector<4x64xbf16>
    tpu.vector_store %arg19[%c33, %c0_148], %173 {strides = array<i32>} : memref<52x64xbf16, #tpu.memory_space<vmem>>, vector<4x64xbf16>,
    %c1 = arith.constant 1 : index
    %c0_149 = arith.constant 0 : index
    %175 = vector.load %arg19[%c1, %c0_149] : memref<52x64xbf16, #tpu.memory_space<vmem>>, vector<36x64xbf16>
    %c0_150 = arith.constant 0 : index
    %c0_151 = arith.constant 0 : index
    %176 = vector.load %arg20[%c0_150, %c0_151] : memref<36x576xbf16, #tpu.memory_space<vmem>>, vector<36x64xbf16>
    tpu.vector_store %arg20[%c0_150, %c0_151], %175 {strides = array<i32>} : memref<36x576xbf16, #tpu.memory_space<vmem>>, vector<36x64xbf16>,
    %c2 = arith.constant 2 : index
    %c0_152 = arith.constant 0 : index
    %177 = vector.load %arg19[%c2, %c0_152] : memref<52x64xbf16, #tpu.memory_space<vmem>>, vector<36x64xbf16>
    %c0_153 = arith.constant 0 : index
    %c64_154 = arith.constant 64 : index
    %178 = vector.load %arg20[%c0_153, %c64_154] : memref<36x576xbf16, #tpu.memory_space<vmem>>, vector<36x64xbf16>
    tpu.vector_store %arg20[%c0_153, %c64_154], %177 {strides = array<i32>} : memref<36x576xbf16, #tpu.memory_space<vmem>>, vector<36x64xbf16>,
    %c3 = arith.constant 3 : index
    %c0_155 = arith.constant 0 : index
    %179 = vector.load %arg19[%c3, %c0_155] : memref<52x64xbf16, #tpu.memory_space<vmem>>, vector<36x64xbf16>
    %c0_156 = arith.constant 0 : index
    %c128_157 = arith.constant 128 : index
    %180 = vector.load %arg20[%c0_156, %c128_157] : memref<36x576xbf16, #tpu.memory_space<vmem>>, vector<36x64xbf16>
    tpu.vector_store %arg20[%c0_156, %c128_157], %179 {strides = array<i32>} : memref<36x576xbf16, #tpu.memory_space<vmem>>, vector<36x64xbf16>,
    %c7_158 = arith.constant 7 : index
    %c0_159 = arith.constant 0 : index
    %181 = vector.load %arg19[%c7_158, %c0_159] : memref<52x64xbf16, #tpu.memory_space<vmem>>, vector<36x64xbf16>
    %c0_160 = arith.constant 0 : index
    %c192_161 = arith.constant 192 : index
    %182 = vector.load %arg20[%c0_160, %c192_161] : memref<36x576xbf16, #tpu.memory_space<vmem>>, vector<36x64xbf16>
    tpu.vector_store %arg20[%c0_160, %c192_161], %181 {strides = array<i32>} : memref<36x576xbf16, #tpu.memory_space<vmem>>, vector<36x64xbf16>,
    %c8_162 = arith.constant 8 : index
    %c0_163 = arith.constant 0 : index
    %183 = vector.load %arg19[%c8_162, %c0_163] : memref<52x64xbf16, #tpu.memory_space<vmem>>, vector<36x64xbf16>
    %c0_164 = arith.constant 0 : index
    %c256_165 = arith.constant 256 : index
    %184 = vector.load %arg20[%c0_164, %c256_165] : memref<36x576xbf16, #tpu.memory_space<vmem>>, vector<36x64xbf16>
    tpu.vector_store %arg20[%c0_164, %c256_165], %183 {strides = array<i32>} : memref<36x576xbf16, #tpu.memory_space<vmem>>, vector<36x64xbf16>,
    %c9 = arith.constant 9 : index
    %c0_166 = arith.constant 0 : index
    %185 = vector.load %arg19[%c9, %c0_166] : memref<52x64xbf16, #tpu.memory_space<vmem>>, vector<36x64xbf16>
    %c0_167 = arith.constant 0 : index
    %c320 = arith.constant 320 : index
    %186 = vector.load %arg20[%c0_167, %c320] : memref<36x576xbf16, #tpu.memory_space<vmem>>, vector<36x64xbf16>
    tpu.vector_store %arg20[%c0_167, %c320], %185 {strides = array<i32>} : memref<36x576xbf16, #tpu.memory_space<vmem>>, vector<36x64xbf16>,
    %c13 = arith.constant 13 : index
    %c0_168 = arith.constant 0 : index
    %187 = vector.load %arg19[%c13, %c0_168] : memref<52x64xbf16, #tpu.memory_space<vmem>>, vector<36x64xbf16>
    %c0_169 = arith.constant 0 : index
    %c384 = arith.constant 384 : index
    %188 = vector.load %arg20[%c0_169, %c384] : memref<36x576xbf16, #tpu.memory_space<vmem>>, vector<36x64xbf16>
    tpu.vector_store %arg20[%c0_169, %c384], %187 {strides = array<i32>} : memref<36x576xbf16, #tpu.memory_space<vmem>>, vector<36x64xbf16>,
    %c14 = arith.constant 14 : index
    %c0_170 = arith.constant 0 : index
    %189 = vector.load %arg19[%c14, %c0_170] : memref<52x64xbf16, #tpu.memory_space<vmem>>, vector<36x64xbf16>
    %c0_171 = arith.constant 0 : index
    %c448 = arith.constant 448 : index
    %190 = vector.load %arg20[%c0_171, %c448] : memref<36x576xbf16, #tpu.memory_space<vmem>>, vector<36x64xbf16>
    tpu.vector_store %arg20[%c0_171, %c448], %189 {strides = array<i32>} : memref<36x576xbf16, #tpu.memory_space<vmem>>, vector<36x64xbf16>,
    %c15_172 = arith.constant 15 : index
    %c0_173 = arith.constant 0 : index
    %191 = vector.load %arg19[%c15_172, %c0_173] : memref<52x64xbf16, #tpu.memory_space<vmem>>, vector<36x64xbf16>
    %c0_174 = arith.constant 0 : index
    %c512 = arith.constant 512 : index
    %192 = vector.load %arg20[%c0_174, %c512] : memref<36x576xbf16, #tpu.memory_space<vmem>>, vector<36x64xbf16>
    tpu.vector_store %arg20[%c0_174, %c512], %191 {strides = array<i32>} : memref<36x576xbf16, #tpu.memory_space<vmem>>, vector<36x64xbf16>,
    %c0_175 = arith.constant 0 : index
    %c0_176 = arith.constant 0 : index
    %193 = vector.load %arg20[%c0_175, %c0_176] : memref<36x576xbf16, #tpu.memory_space<vmem>>, vector<36x576xbf16>
    %c0_177 = arith.constant 0 : index
    %c0_178 = arith.constant 0 : index
    %194 = vector.load %arg6[%c0_177, %c0_178] : memref<576x128xbf16, #tpu.memory_space<vmem>>, vector<576x128xbf16>
    %cst_179 = arith.constant dense<0.000000e+00> : vector<36x128xf32>
    %195 = tpu.matmul %193, %194, %cst_179 {dimension_numbers = #tpu.dot_dimension_numbers<[1], [0], [0], [1], [0, 0, 1, 1], [], []>} : vector<36x576xbf16>, vector<576x128xbf16>, vector<36x128xf32> -> vector<36x128xf32>
    %c0_180 = arith.constant 0 : index
    %c0_181 = arith.constant 0 : index
    %196 = vector.load %arg7[%c0_180, %c0_181] : memref<1x128xf32, #tpu.memory_space<vmem>>, vector<1x128xf32>
    %197 = vector.broadcast %196 : vector<1x128xf32> to vector<36x128xf32>
    %198 = arith.addf %195, %197 : vector<36x128xf32>
    %cst_182 = arith.constant 0.000000e+00 : f32
    %199 = vector.broadcast %cst_182 : f32 to vector<36x128xf32>
    %200 = arith.maximumf %198, %199 : vector<36x128xf32>
    %c0_183 = arith.constant 0 : index
    %c0_184 = arith.constant 0 : index
    %201 = vector.load %arg8[%c0_183, %c0_184] : memref<1x36xbf16, #tpu.memory_space<vmem>>, vector<1x36xbf16>
    %202 = arith.truncf %200 : vector<36x128xf32> to vector<36x128xbf16>
    %cst_185 = arith.constant dense<0.000000e+00> : vector<1x128xf32>
    %203 = tpu.matmul %201, %202, %cst_185 {dimension_numbers = #tpu.dot_dimension_numbers<[1], [0], [0], [1], [0, 0, 1, 1], [], []>} : vector<1x36xbf16>, vector<36x128xbf16>, vector<1x128xf32> -> vector<1x128xf32>
    %cst_186 = arith.constant 6.250000e-02 : f32
    %204 = vector.broadcast %cst_186 : f32 to vector<1x128xf32>
    %205 = arith.mulf %203, %204 : vector<1x128xf32>
    %206 = arith.truncf %205 : vector<1x128xf32> to vector<1x128xbf16>
    %c0_187 = arith.constant 0 : index
    %c0_188 = arith.constant 0 : index
    %207 = vector.load %arg9[%c0_187, %c0_188] : memref<128x64xbf16, #tpu.memory_space<vmem>>, vector<128x64xbf16>
    %cst_189 = arith.constant dense<0.000000e+00> : vector<1x64xf32>
    %208 = tpu.matmul %206, %207, %cst_189 {dimension_numbers = #tpu.dot_dimension_numbers<[1], [0], [0], [1], [0, 0, 1, 1], [], []>} : vector<1x128xbf16>, vector<128x64xbf16>, vector<1x64xf32> -> vector<1x64xf32>
    %c0_190 = arith.constant 0 : index
    %c0_191 = arith.constant 0 : index
    %209 = vector.load %arg10[%c0_190, %c0_191] : memref<1x64xf32, #tpu.memory_space<vmem>>, vector<1x64xf32>
    %210 = arith.addf %208, %209 : vector<1x64xf32>
    %cst_192 = arith.constant 0.000000e+00 : f32
    %211 = vector.broadcast %cst_192 : f32 to vector<1x64xf32>
    %212 = arith.maximumf %210, %211 : vector<1x64xf32>
    %213 = arith.truncf %212 : vector<1x64xf32> to vector<1x64xbf16>
    %c0_193 = arith.constant 0 : index
    %c0_194 = arith.constant 0 : index
    %214 = vector.load %arg11[%c0_193, %c0_194] : memref<64x128xbf16, #tpu.memory_space<vmem>>, vector<64x128xbf16>
    %cst_195 = arith.constant dense<0.000000e+00> : vector<1x128xf32>
    %215 = tpu.matmul %213, %214, %cst_195 {dimension_numbers = #tpu.dot_dimension_numbers<[1], [0], [0], [1], [0, 0, 1, 1], [], []>} : vector<1x64xbf16>, vector<64x128xbf16>, vector<1x128xf32> -> vector<1x128xf32>
    %c0_196 = arith.constant 0 : index
    %c0_197 = arith.constant 0 : index
    %216 = vector.load %arg12[%c0_196, %c0_197] : memref<1x128xf32, #tpu.memory_space<vmem>>, vector<1x128xf32>
    %217 = arith.addf %215, %216 : vector<1x128xf32>
    %c0_198 = arith.constant 0 : index
    %c0_199 = arith.constant 0 : index
    %c0_200 = arith.constant 0 : index
    %218 = vector.load %arg13[%c0_198, %c0_199, %c0_200] : memref<1x1x128xf32, #tpu.memory_space<vmem>>, vector<1x1x128xf32>
    %219 = vector.shape_cast %218 : vector<1x1x128xf32> to vector<1x128xf32>
    %220 = vector.shape_cast %217 : vector<1x128xf32> to vector<1x1x128xf32>
    tpu.vector_store %arg13[%c0_198, %c0_199, %c0_200], %220 {strides = array<i32>} : memref<1x1x128xf32, #tpu.memory_space<vmem>>, vector<1x1x128xf32>,
    return
  }
  func.func @transform_0(%arg0: i32) -> (i32, i32, i32) {
    %c0_i32 = arith.constant 0 : i32
    %c0_i32_0 = arith.constant 0 : i32
    %c0_i32_1 = arith.constant 0 : i32
    return %arg0, %c0_i32, %c0_i32_0 : i32, i32, i32
  }
  func.func @transform_1(%arg0: i32) -> (i32, i32) {
    %c0_i32 = arith.constant 0 : i32
    %c0_i32_0 = arith.constant 0 : i32
    %c0_i32_1 = arith.constant 0 : i32
    return %c0_i32, %c0_i32_0 : i32, i32
  }
  func.func @transform_2(%arg0: i32) -> (i32, i32) {
    %c0_i32 = arith.constant 0 : i32
    %c0_i32_0 = arith.constant 0 : i32
    %c0_i32_1 = arith.constant 0 : i32
    return %c0_i32, %c0_i32_0 : i32, i32
  }
  func.func @transform_3(%arg0: i32) -> (i32, i32) {
    %c0_i32 = arith.constant 0 : i32
    %c0_i32_0 = arith.constant 0 : i32
    %c0_i32_1 = arith.constant 0 : i32
    return %c0_i32, %c0_i32_0 : i32, i32
  }
  func.func @transform_4(%arg0: i32) -> (i32, i32) {
    %c0_i32 = arith.constant 0 : i32
    %c0_i32_0 = arith.constant 0 : i32
    %c0_i32_1 = arith.constant 0 : i32
    return %c0_i32, %c0_i32_0 : i32, i32
  }
  func.func @transform_5(%arg0: i32) -> (i32, i32) {
    %c0_i32 = arith.constant 0 : i32
    %c0_i32_0 = arith.constant 0 : i32
    %c0_i32_1 = arith.constant 0 : i32
    return %c0_i32, %c0_i32_0 : i32, i32
  }
  func.func @transform_6(%arg0: i32) -> (i32, i32) {
    %c0_i32 = arith.constant 0 : i32
    %c0_i32_0 = arith.constant 0 : i32
    %c0_i32_1 = arith.constant 0 : i32
    return %c0_i32, %c0_i32_0 : i32, i32
  }
  func.func @transform_7(%arg0: i32) -> (i32, i32) {
    %c0_i32 = arith.constant 0 : i32
    %c0_i32_0 = arith.constant 0 : i32
    %c0_i32_1 = arith.constant 0 : i32
    return %c0_i32, %c0_i32_0 : i32, i32
  }
  func.func @transform_8(%arg0: i32) -> (i32, i32) {
    %c0_i32 = arith.constant 0 : i32
    %c0_i32_0 = arith.constant 0 : i32
    %c0_i32_1 = arith.constant 0 : i32
    return %c0_i32, %c0_i32_0 : i32, i32
  }
  func.func @transform_9(%arg0: i32) -> (i32, i32) {
    %c0_i32 = arith.constant 0 : i32
    %c0_i32_0 = arith.constant 0 : i32
    %c0_i32_1 = arith.constant 0 : i32
    return %c0_i32, %c0_i32_0 : i32, i32
  }
  func.func @transform_10(%arg0: i32) -> (i32, i32) {
    %c0_i32 = arith.constant 0 : i32
    %c0_i32_0 = arith.constant 0 : i32
    %c0_i32_1 = arith.constant 0 : i32
    return %c0_i32, %c0_i32_0 : i32, i32
  }
  func.func @transform_11(%arg0: i32) -> (i32, i32) {
    %c0_i32 = arith.constant 0 : i32
    %c0_i32_0 = arith.constant 0 : i32
    %c0_i32_1 = arith.constant 0 : i32
    return %c0_i32, %c0_i32_0 : i32, i32
  }
  func.func @transform_12(%arg0: i32) -> (i32, i32, i32) {
    %c0_i32 = arith.constant 0 : i32
    %c0_i32_0 = arith.constant 0 : i32
    %c0_i32_1 = arith.constant 0 : i32
    return %arg0, %c0_i32, %c0_i32_0 : i32, i32, i32
  }
}

</mosaic_0001>

<bundles_post_ra>
// kernel: cnn_forward.1
= control target key start
LH: loop header
LB: loop body
LE: loop exit
PB: predicated region body
PF: predicated region fallthrough
CT: control target
= control target key end

     0   :  { %s15183_s0 = inlined_call_operand.vmem [shape: bf16[2,376,8], index: 0, kind: input, shape index: {}]   ;;  %s15184_s1 = inlined_call_operand.vmem [shape: bf16[72,32], index: 1, kind: input, shape index: {}]   ;;  %s15185_s2 = inlined_call_operand.vmem [shape: f32[1,32], index: 2, kind: input, shape index: {}]   ;;  %s15186_s3 = inlined_call_operand.vmem [shape: bf16[288,64], index: 3, kind: input, shape index: {}]   ;;  %s15187_s4 = inlined_call_operand.vmem [shape: f32[1,64], index: 4, kind: input, shape index: {}]   ;;  %s15188_s5 = inlined_call_operand.vmem [shape: bf16[576,128], index: 5, kind: input, shape index: {}]   ;;  %s15189_s6 = inlined_call_operand.vmem [shape: f32[1,128], index: 6, kind: input, shape index: {}]   ;;  %s15190_s7 = inlined_call_operand.vmem [shape: bf16[1,36], index: 7, kind: input, shape index: {}]   ;;  %s15191_s8 = inlined_call_operand.vmem [shape: bf16[128,64], index: 8, kind: input, shape index: {}]   ;;  %s15192_s9 = inlined_call_operand.vmem [shape: f32[1,64], index: 9, kind: input, shape index: {}]   ;;  %s15193_s10 = inlined_call_operand.vmem [shape: bf16[64,128], index: 10, kind: input, shape index: {}]   ;;  %s15194_s11 = inlined_call_operand.vmem [shape: f32[1,128], index: 11, kind: input, shape index: {}]   ;;  %s15195_s12 = inlined_call_operand.hbm [shape: f32[2,1,128], index: 12, kind: output, shape index: {}]  }
   0x1   :  { %15250 = sst [smem:[#allocation15_spill]] %s15183_s0 }
   0x2   :  { %15251 = sst [smem:[#allocation16_spill]] %s15184_s1 }
   0x3   :  { %15252 = sst [smem:[#allocation17_spill]] %s15185_s2 }
   0x4   :  { %17 = vsyncpa [#allocation10], 0 }
   0x5   :  { %19 = vsyncpa [#allocation10 + $0x1], 0  ;;  %s10114_s21 = smov 0   ;;  %s10116_s22 = smov 0  }
   0x6   :  { %s10118_s23 = smov 0   ;;  %s10120_s24 = smov 0  }
   0x7 LB: > { %15253 = sst [smem:[#allocation12_spill]] %s10030_s23  ;;  %s10135_s25 = sadd.s32 4294967295, %s10034_s24   ;;  %s10034_s24 = sphi %s10120_s24, %s15569_s24   ;;  %s10030_s23 = sphi %s10118_s23, %s15571_s23   ;;  %s10026_s22 = sphi %s10116_s22, %s15573_s22   ;;  %s10022_s21 = sphi %s10114_s21, %s15572_s21  }
   0x8   : > { %s9196_s26 = sadd.s32 4294967294, %s10034_s24   ;;  %s10139_s27 = sadd.s32 1, %s10034_s24  }
   0x9   : > { %15254 = sst [smem:[#allocation13_spill]] %s10139_s27  ;;  %s289_s28 = sadd.s32 1, %s10030_s23 }
   0xa   : > { %s286_s29 = ssub.s32 %s10034_s24, %s10139_s27  ;;  %p299_p0 = scmp.ne.s32.totalorder %s10030_s23, %s10026_s22 }
   0xb   : > { %p287_p1 = scmp.eq.s32.totalorder %s286_s29, 0  ;;  %p300_p2 = scmp.eq.s32.totalorder %s10135_s25, 1 }
   0xc   : > { %p305_p3 = scmp.ne.s32.totalorder %s10026_s22, %s10022_s21  ;;  %p306_p4 = scmp.eq.s32.totalorder %s9196_s26, 1 }
   0xd   : > { %s10150_s30 = scalar_select %p287_p1, %s10030_s23, %s289_s28  }
   0xe   : > { %p10152_p5 = por %p300_p2, %p299_p0  ;;  %p10156_p6 = por %p306_p4, %p305_p3 }
   0xf   : > { %15255 = sst [smem:[#allocation14_spill]] %s10150_s30  ;;  %p9199_p7 = scmp.ge.s32.totalorder %s10034_s24, 1 }
  0x10   : > { %p365_p8 = scmp.lt.s32.totalorder %s10034_s24, 3 }
  0x12   : > { %p366_p9 = pnand %p9199_p7, %p365_p8 }
  0x13   : > { %p406_p10 = scmp.lt.s32.totalorder (!%p366_p9), %s10135_s25, 1  ;;  %vm1067_vm0 = vcmask (!%p366_p9), 1040384   ;;  %vm1068_vm1 = vcmask (!%p366_p9), 1044484   ;;  %vm15200_vm2 = vsmask.f32 (!%p366_p9), 256  ;;  %s15258_s0 = sld [smem:[#allocation15_spill]] (!%p366_p9) }
  0x14   : > { %369 = sbr.rel (%p366_p9) target bundleno = 2578 (0xa12), region = 68  ;;  %vm1403_vm3 = vsmask.f32 (!%p366_p9), 4368  ;;  %s15198_s20 = smov (!%p366_p9), 32   ;;  %vm10175_vm4 = vmor (!%p366_p9), %vm1067_vm0, %vm1068_vm1  ;;  %vm15201_vm5 = vsmask.f32 (!%p366_p9), 3328 }
  0x15   : > { %vm2815_vm6 = vsmask.f32 (!%p366_p9), 7440  ;;  %s15209_s26 = smov (!%p366_p9), 8   ;;  %vm10193_vm7 = vmor (!%p366_p9), %vm15200_vm2, %vm1403_vm3  ;;  %s15207_s28 = smov (!%p366_p9), 16   ;;  %vm4090_vm9 = vcmask (!%p366_p9), 1042432   ;;  %vm4091_vm10 = vcmask (!%p366_p9), 1046532  }
  0x16   : > { %s15213_s29 = smov (!%p366_p9), 24   ;;  %vm10234_vm8 = vmor (!%p366_p9), %vm15201_vm5, %vm2815_vm6  ;;  %vm15202_vm12 = vsmask.f32 (!%p366_p9), 2304  ;;  %vm4423_vm13 = vsmask.f32 (!%p366_p9), 6416  ;;  %s15226_s17 = smov (!%p366_p9), 56  }
  0x17   : > { %vm10259_vm11 = vmor (!%p366_p9), %vm4090_vm9, %vm4091_vm10  ;;  %s15215_s18 = smov (!%p366_p9), 64   ;;  %vm15203_vm15 = vsmask.f32 (!%p366_p9), 1280  ;;  %vm483_vm0 = vsmask.f32 (!%p366_p9), 5392  ;;  %vm15224_vm1 = vcmask (!%p366_p9), 60416  }
  0x18   : > { %vm10278_vm14 = vmor (!%p366_p9), %vm15202_vm12, %vm4423_vm13  ;;  %s15271_s1 = sld [smem:[#allocation16_spill]] (!%p366_p9)  ;;  %vm5251_vm6 = vcmask (!%p366_p9), 1043456   ;;  %vm15217_vm9 = vmmov (!%p366_p9), 0   ;;  %vm15204_vm10 = vcmask (!%p366_p9), 126016   ;;  %vm15222_vm13 = vcmask (!%p366_p9), 191616   ;;  %s15286_s2 = sld [smem:[#allocation17_spill]] (!%p366_p9) }
  0x19   : > { %vm10478_vm3 = vmor (!%p366_p9), %vm15203_vm15, %vm483_vm0  ;;  %vm15221_vm0 = vcmask (!%p366_p9), 257216   ;;  %vm15212_vm2 = vcmask (!%p366_p9), 388416   ;;  %vm15211_vm5 = vcmask (!%p366_p9), 454016   ;;  %vm15205_vm12 = vcmask (!%p366_p9), 519616   ;;  %s15235_s23 = smov (!%p366_p9), 96  }
  0x1a   : > { %vm15230_vm15 = vcmask (!%p366_p9), 585216  }
  0x1b   : > { %s407_s15 = scalar_select %p406_p10, %s10135_s25, 1 }
  0x1d   : > { %s9778_s16 = smul.u32 188, %s407_s15  ;;  %s15196_s15 = smov 40  }
  0x1f   : > { %s10167_s19 = scalar_lea.vmem %s15258_s0, %s9778_s16  ;;  %s15228_s16 = smov 48  }
  0x20   : > { %v2525_v0 = vld [vmem:[%s10167_s19 + $0xc] sm:$0xf]  ;;  %v2526_v1 = vld [vmem:[%s10167_s19 + $0x10] sm:$0xf]  ;;  %v983_v2 = vld [vmem:[%s10167_s19] sm:$0x8] }
  0x21   : > { %2607 = vrot.lane.b32.xlu0 %v2525_v0, %s15198_s20  ;;  %2609 = vrot.lane.b32.xlu1 %v2526_v1, %s15198_s20  ;;  %v984_v3 = vld [vmem:[%s10167_s19 + $0x4] sm:$0xf]  ;;  %v9201_v5 = vrot.slane %v983_v2, 11  ;;  %v1360_v6 = vld [vmem:[%s10167_s19] sm:$0x8] }
  0x22   : > { %v1072_v7 = vrot.slane %v984_v3, 7  ;;  %v1361_v8 = vld [vmem:[%s10167_s19 + $0x4] sm:$0xf]  ;;  %v1406_v9 = vshrl.u32 %v1360_v6, 16  ;;  %v10182_v10 = vld [vmem:[%s10167_s19 + $0x8] sm:$0xf] }
  0x23   : > { %v1411_v11 = vshrl.u32 %v1361_v8, 16  ;;  %v1414_v12 = vshll.u32 %v1361_v8, 16  ;;  %v1075_v13 = vrot.slane %v10182_v10, 7  ;;  %v1362_v14 = vld [vmem:[%s10167_s19 + $0x8] sm:$0xf] }
  0x24   : > { %v1073_v15 = vsel %vm10175_vm4, %v9201_v5, %v1072_v7  ;;  %v1074_v16 = vrot.slane %v1072_v7, 4  ;;  %v1420_v17 = vshrl.u32 %v1362_v14, 16  ;;  %v1944_v18 = vld [vmem:[%s10167_s19 + $0x8] sm:$0x8]  ;;  %v9202_v19 = vrot.slane %v1406_v9, 11 }
  0x25   : > { %1194 = vrot.lane.b32.xlu0 %v1073_v15, %s15209_s26  ;;  %v1413_v20 = vrot.slane %v1411_v11, 7  ;;  %v1423_v21 = vshll.u32 %v1362_v14, 16  ;;  %v1945_v22 = vld [vmem:[%s10167_s19 + $0xc] sm:$0xf]  ;;  %v1987_v23 = vshrl.u32 %v1944_v18, 16 }
  0x26   : > { %v1076_v25 = vsel %vm10175_vm4, %v1074_v16, %v1075_v13  ;;  %v10201_v26 = vrot.slane %v1420_v17, 7  ;;  %v1992_v27 = vshrl.u32 %v1945_v22, 16  ;;  %v1995_v28 = vshll.u32 %v1945_v22, 16  ;;  %v1946_v29 = vld [vmem:[%s10167_s19 + $0x10] sm:$0xf] }
  0x27   : > { %v1416_v30 = vor.u32 %v1414_v12, %v1413_v20  ;;  %v1418_v31 = vrot.slane %v1413_v20, 4  ;;  %v9203_v32 = vrot.slane %v1987_v23, 11  ;;  %v2001_v33 = vshrl.u32 %v1946_v29, 16  ;;  %v2773_v34 = vld [vmem:[%s10167_s19 + $0xc] sm:$0xf] }
  0x28   : > { %v1425_v35 = vor.u32 %v1423_v21, %v10201_v26  ;;  %v1994_v36 = vrot.slane %v1992_v27, 7  ;;  %v2004_v37 = vshll.u32 %v1946_v29, 16  ;;  %v2774_v38 = vld [vmem:[%s10167_s19 + $0x10] sm:$0xf]  ;;  %v2818_v39 = vshrl.u32 %v2773_v34, 16 }
  0x29   : > { %v1417_v40 = vsel %vm10193_vm7, %v9202_v19, %v1416_v30  ;;  %1196 = vrot.lane.b32.xlu0 %v1076_v25, %s15209_s26  ;;  %v10210_v41 = vrot.slane %v2001_v33, 7  ;;  %v2821_v42 = vshll.u32 %v2773_v34, 16  ;;  %v2827_v43 = vshll.u32 %v2774_v38, 16  ;;  %v10213_v44 = vld [vmem:[%s10167_s19 + $0x14] sm:$0xf] }
  0x2a   : > { %1778 = vrot.lane.b32.xlu1 %v1417_v40, %s15207_s28  ;;  %v1426_v45 = vsel %vm10193_vm7, %v1418_v31, %v1425_v35  ;;  %v1997_v46 = vor.u32 %v1995_v28, %v1994_v36  ;;  %v1999_v47 = vrot.slane %v1994_v36, 4  ;;  %v2820_v48 = vrot.slane %v2818_v39, 4  ;;  %v3392_v49 = vld [vmem:[%s10167_s19 + $0x14] sm:$0xf]  ;;  %v3393_v54 = vld [vmem:[%s10167_s19 + $0x18] sm:$0xf] }
  0x2b   : > { %v2006_v50 = vor.u32 %v2004_v37, %v10210_v41  ;;  %v2823_v51 = vrot.slane %v2821_v42, 5  ;;  %v2829_v52 = vrot.slane %v2827_v43, 5  ;;  %v2831_v53 = vshrl.u32 %v2774_v38, 16  ;;  %v10225_v58 = vld [vmem:[%s10167_s19 + $0x1c] sm:$0xf] }
  0x2c   : > { %v1998_v55 = vsel %vm10193_vm7, %v9203_v32, %v1997_v46  ;;  %v2837_v56 = vshll.u32 %v10213_v44, 16  ;;  %v3434_v57 = vshrl.u32 %v3392_v49, 16  ;;  %v3437_v62 = vshll.u32 %v3392_v49, 16  ;;  %v4008_v63 = vld [vmem:[%s10167_s19 + $0x14] sm:$0xe] }
  0x2d   : > { %2359 = vrot.lane.b32.xlu0 %v1998_v55, %s15213_s29  ;;  %v2007_v59 = vsel %vm10193_vm7, %v1999_v47, %v2006_v50  ;;  %v2824_v60 = vor.u32 %v2823_v51, %v2820_v48  ;;  %v2833_v61 = vrot.slane %v2831_v53, 4  ;;  %v3443_v3 = vshll.u32 %v3393_v54, 16  ;;  %v4009_v6 = vld [vmem:[%s10167_s19 + $0x18] sm:$0xf]  ;;  %v4381_v12 = vld [vmem:[%s10167_s19 + $0x14] sm:$0xe] }
  0x2e   : > { %1780 = vrot.lane.b32.xlu1 %v1426_v45, %s15207_s28  ;;  %v10238_v1 = vrot.slane %v2837_v56, 5  ;;  %v3436_v2 = vrot.slane %v3434_v57, 4  ;;  %v3447_v5 = vshrl.u32 %v3393_v54, 16  ;;  %v3439_v9 = vrot.slane %v3437_v62, 5  ;;  %v4382_v16 = vld [vmem:[%s10167_s19 + $0x18] sm:$0xf] }
  0x2f   : > { %v2825_v7 = vrot.slane %v2824_v60, 4  ;;  %v2834_v8 = vor.u32 %v2833_v61, %v2829_v52  ;;  %v3453_v11 = vshll.u32 %v10225_v58, 16  ;;  %v3445_v14 = vrot.slane %v3443_v3, 5  ;;  %v10251_v25 = vld [vmem:[%s10167_s19 + $0x1c] sm:$0xf] }
  0x30   : > { %v3449_v15 = vrot.slane %v3447_v5, 4  ;;  %v3440_v19 = vor.u32 %v3439_v9, %v3436_v2  ;;  %v9204_v20 = vrot.slane %v4008_v63, 9  ;;  %v4095_v23 = vrot.slane %v4009_v6, 5  ;;  %v4383_v32 = vld [vmem:[%s10167_s19 + $0x1c] sm:$0xf] }
  0x31   : > { %v2830_v17 = vsel %vm10234_vm8, %v2825_v7, %v2829_v52  ;;  %v2835_v18 = vrot.slane %v2834_v8, 4  ;;  %v10248_v22 = vrot.slane %v3453_v11, 5  ;;  %v4426_v27 = vshrl.u32 %v4381_v12, 16  ;;  %v1363_v40 = vld [vmem:[%s10167_s19 + $0xc] sm:$0xf] }
  0x32   : > { %2361 = vrot.lane.b32.xlu1 %v2007_v59, %s15213_s29  ;;  %3226 = vrot.lane.b32.xlu0 %v2830_v17, %s15196_s15  ;;  %v3450_v21 = vor.u32 %v3449_v15, %v3445_v14  ;;  %v3441_v29 = vrot.slane %v3440_v19, 4  ;;  %v4429_v30 = vshll.u32 %v4381_v12, 16  ;;  %v4435_v31 = vshrl.u32 %v4382_v16, 16  ;;  %v986_v51 = vld [vmem:[%s10167_s19 + $0xc] sm:$0xf] }
  0x33   : > { %v2840_v28 = vsel %vm10234_vm8, %v2835_v18, %v10238_v1  ;;  %v4428_v35 = vrot.slane %v4426_v27, 5  ;;  %v4438_v39 = vshll.u32 %v4382_v16, 16  ;;  %v4097_v42 = vrot.slane %v4095_v23, 4  ;;  %v1364_v52 = vld [vmem:[%s10167_s19 + $0x10] sm:$0xf] }
  0x34   : > { %v3451_v33 = vrot.slane %v3450_v21, 4  ;;  %v3446_v36 = vsel %vm10234_vm8, %v3441_v29, %v3445_v14  ;;  %v4431_v37 = vrot.slane %v4429_v30, 6  ;;  %v4437_v38 = vrot.slane %v4435_v31, 5  ;;  %v10293_v2 = vld [vmem:[%s10167_s19 + $0x10] sm:$0xf] }
  0x35   : > { %v4098_v43 = vrot.slane %v10251_v25, 5  ;;  %v4445_v45 = vshrl.u32 %v4383_v32, 16  ;;  %v4448_v46 = vshll.u32 %v4383_v32, 16  ;;  %v4096_v48 = vsel %vm10259_vm11, %v9204_v20, %v4095_v23  ;;  %v1947_v5 = vld [vmem:[%s10167_s19 + $0x14] sm:$0xf] }
  0x36   : > { %3228 = vrot.lane.b32.xlu1 %v2840_v28, %s15196_s15  ;;  %3842 = vrot.lane.b32.xlu0 %v3446_v36, %s15228_s16  ;;  %v3456_v47 = vsel %vm10234_vm8, %v3451_v33, %v10248_v22  ;;  %v4432_v49 = vor.u32 %v4431_v37, %v4428_v35  ;;  %v4440_v50 = vrot.slane %v4438_v39, 6  ;;  %v1429_v56 = vshrl.u32 %v1363_v40, 16  ;;  %v1948_v8 = vld [vmem:[%s10167_s19 + $0x18] sm:$0xf]  ;;  %v3395_v39 = vld [vmem:[%s10167_s19 + $0x20] sm:$0xf] }
  0x37   : > { %v4447_v54 = vrot.slane %v4445_v45, 5  ;;  %v4450_v55 = vrot.slane %v4448_v46, 6  ;;  %v1077_v60 = vrot.slane %v1075_v13, 4  ;;  %v4099_v61 = vsel %vm10259_vm11, %v4097_v42, %v4098_v43  ;;  %v2776_v27 = vld [vmem:[%s10167_s19 + $0x18] sm:$0xf] }
  0x38   : > { %v4433_v57 = vrot.slane %v4432_v49, 4  ;;  %v4441_v59 = vor.u32 %v4440_v50, %v4437_v38  ;;  %v1078_v63 = vrot.slane %v986_v51, 7  ;;  %v1438_v3 = vshrl.u32 %v1364_v52, 16  ;;  %v10335_v49 = vld [vmem:[%s10167_s19 + $0x1c] sm:$0xf] }
  0x39   : > { %v10290_v62 = vor.u32 %v4450_v55, %v4447_v54  ;;  %v1431_v6 = vrot.slane %v1429_v56, 7  ;;  %v1432_v7 = vshll.u32 %v1363_v40, 16  ;;  %v2841_v9 = vshrl.u32 %v10213_v44, 16  ;;  %v10341_v56 = vld [vmem:[%s10167_s19 + $0x24] sm:$0xf] }
  0x3a   : > { %3844 = vrot.lane.b32.xlu1 %v3456_v47, %s15228_s16  ;;  %4215 = vrot.lane.b32.xlu0 %v4096_v48, %s15226_s17  ;;  %v4442_v10 = vsel %vm10278_vm14, %v4433_v57, %v4441_v59  ;;  %v4443_v13 = vrot.slane %v4441_v59, 4  ;;  %v1081_v11 = vrot.slane %v10293_v2, 7  ;;  %v10301_v12 = vrot.slane %v1438_v3, 7  ;;  %v2527_v59 = vld [vmem:[%s10167_s19 + $0x14] sm:$0xf] }
  0x3b   : > { %v1441_v14 = vshll.u32 %v1364_v52, 16  ;;  %v2010_v15 = vshrl.u32 %v1947_v5, 16  ;;  %v1079_v16 = vsel %vm10175_vm4, %v1077_v60, %v1078_v63  ;;  %v1080_v17 = vrot.slane %v1078_v63, 4  ;;  %v4384_v3 = vld [vmem:[%s10167_s19 + $0x20] sm:$0xf] }
  0x3c   : > { %v1427_v18 = vrot.slane %v10201_v26, 4  ;;  %v2019_v19 = vshrl.u32 %v1948_v8, 16  ;;  %v4452_v44 = vsel %vm10278_vm14, %v4443_v13, %v10290_v62  ;;  %v1434_v20 = vor.u32 %v1432_v7, %v1431_v6 }
  0x3d   : > { %v2012_v21 = vrot.slane %v2010_v15, 7  ;;  %v2013_v23 = vshll.u32 %v1947_v5, 16  ;;  %v3457_v28 = vshrl.u32 %v10225_v58, 16  ;;  %v1436_v29 = vrot.slane %v1431_v6, 4 }
  0x3e   : > { %4217 = vrot.lane.b32.xlu1 %v4099_v61, %s15226_s17  ;;  %4834 = vrot.lane.b32.xlu0 %v4442_v10, %s15215_s18  ;;  %v1443_v30 = vor.u32 %v1441_v14, %v10301_v12  ;;  %v2843_v31 = vrot.slane %v2841_v9, 4  ;;  %v10316_v26 = vrot.slane %v2019_v19, 7  ;;  %v2022_v32 = vshll.u32 %v1948_v8, 16  ;;  %v2528_v10 = vld [vmem:[%s10167_s19 + $0x18] sm:$0xf] }
  0x3f   : > { %v2847_v33 = vshll.u32 %v2776_v27, 16  ;;  %v2851_v35 = vshrl.u32 %v2776_v27, 16  ;;  %v1082_v36 = vsel %vm10175_vm4, %v1080_v17, %v1081_v11  ;;  %v1435_v58 = vsel %vm10193_vm7, %v1427_v18, %v1434_v20  ;;  %v4011_v8 = vld [vmem:[%s10167_s19 + $0x20] sm:$0xf]  ;;  %v10368_v20 = vld [vmem:[%s10167_s19 + $0x24] sm:$0xf] }
  0x40   : > { %v2008_v37 = vrot.slane %v10210_v41, 4  ;;  %v2015_v38 = vor.u32 %v2013_v23, %v2012_v21  ;;  %v1444_v40 = vsel %vm10193_vm7, %v1436_v29, %v1443_v30  ;;  %v2844_v42 = vor.u32 %v2843_v31, %v10238_v1  ;;  %v1365_v29 = vld [vmem:[%s10167_s19 + $0x14] sm:$0xf] }
  0x41   : > { %v2017_v45 = vrot.slane %v2012_v21, 4  ;;  %v2024_v46 = vor.u32 %v2022_v32, %v10316_v26  ;;  %v2849_v47 = vrot.slane %v2847_v33, 5  ;;  %v2853_v48 = vrot.slane %v2851_v35, 4 }
  0x42   : > { %4836 = vrot.lane.b32.xlu1 %v4452_v44, %s15215_s18  ;;  %1198 = vrot.lane.b32.xlu0 %v1079_v16, %s15209_s26  ;;  %v2016_v41 = vsel %vm10193_vm7, %v2008_v37, %v2015_v38  ;;  %v3459_v50 = vrot.slane %v3457_v28, 4  ;;  %v3463_v51 = vshll.u32 %v3395_v39, 16  ;;  %v3467_v1 = vshrl.u32 %v3395_v39, 16  ;;  %v4385_v16 = vld [vmem:[%s10167_s19 + $0x24] sm:$0xf] }
  0x43   : > { %v2845_v52 = vrot.slane %v2844_v42, 4  ;;  %v2854_v54 = vor.u32 %v2853_v48, %v2849_v47  ;;  %v2857_v55 = vshll.u32 %v10335_v49, 16  ;;  %v2025_v57 = vsel %vm10193_vm7, %v2017_v45, %v2024_v46  ;;  %v1949_v42 = vld [vmem:[%s10167_s19 + $0x1c] sm:$0xf]  ;;  %v10396_v48 = vld [vmem:[%s10167_s19 + $0x18] sm:$0xf] }
  0x44   : > { %v3460_v60 = vor.u32 %v3459_v50, %v10248_v22  ;;  %v3465_v61 = vrot.slane %v3463_v51, 5  ;;  %v3469_v63 = vrot.slane %v3467_v1, 4  ;;  %v3473_v5 = vshll.u32 %v10341_v56, 16  ;;  %v1950_v51 = vld [vmem:[%s10167_s19 + $0x20] sm:$0xf] }
  0x45   : > { %v2850_v13 = vsel %vm10234_vm8, %v2845_v52, %v2849_v47  ;;  %v2855_v6 = vrot.slane %v2854_v54, 4  ;;  %v10354_v7 = vrot.slane %v2857_v55, 5  ;;  %v4455_v14 = vshrl.u32 %v4384_v3, 16 }
  0x46   : > { %1200 = vrot.lane.b32.xlu1 %v1082_v36, %s15209_s26  ;;  %1782 = vrot.lane.b32.xlu0 %v1435_v58, %s15207_s28  ;;  %v3461_v22 = vrot.slane %v3460_v60, 4  ;;  %v3470_v9 = vor.u32 %v3469_v63, %v3465_v61  ;;  %v4458_v15 = vshll.u32 %v4384_v3, 16  ;;  %v10358_v17 = vrot.slane %v3473_v5, 5  ;;  %v988_v36 = vld [vmem:[%s10167_s19 + $0x14] sm:$0xf] }
  0x47   : > { %v4100_v18 = vrot.slane %v4098_v43, 4  ;;  %v2860_v19 = vsel %vm10234_vm8, %v2855_v6, %v10354_v7  ;;  %v4101_v44 = vrot.slane %v4011_v8, 5  ;;  %v4465_v21 = vshrl.u32 %v4385_v16, 16  ;;  %v2778_v60 = vld [vmem:[%s10167_s19 + $0x20] sm:$0xf] }
  0x48   : > { %v4468_v23 = vshll.u32 %v4385_v16, 16  ;;  %v3466_v27 = vsel %vm10234_vm8, %v3461_v22, %v3465_v61  ;;  %v3471_v28 = vrot.slane %v3470_v9, 4  ;;  %v4457_v25 = vrot.slane %v4455_v14, 5 }
  0x49   : > { %v4460_v43 = vrot.slane %v4458_v15, 6  ;;  %v4104_v30 = vrot.slane %v10368_v20, 5  ;;  %v4103_v31 = vrot.slane %v4101_v44, 4  ;;  %v4453_v32 = vrot.slane %v10290_v62, 4 }
  0x4a   : > { %1784 = vrot.lane.b32.xlu1 %v1444_v40, %s15207_s28  ;;  %2363 = vrot.lane.b32.xlu0 %v2016_v41, %s15213_s29  ;;  %v4467_v33 = vrot.slane %v4465_v21, 5  ;;  %v4470_v35 = vrot.slane %v4468_v23, 6  ;;  %v3476_v58 = vsel %vm10234_vm8, %v3471_v28, %v10358_v17  ;;  %v4102_v37 = vsel %vm10259_vm11, %v4100_v18, %v4101_v44  ;;  %v1366_v40 = vld [vmem:[%s10167_s19 + $0x18] sm:$0xf]  ;;  %v10428_v23 = vld [vmem:[%s10167_s19 + $0x24] sm:$0xf] }
  0x4b   : > { %v4461_v38 = vor.u32 %v4460_v43, %v4457_v25  ;;  %v1447_v39 = vshrl.u32 %v1365_v29, 16  ;;  %v1083_v45 = vrot.slane %v1081_v11, 4  ;;  %v1084_v62 = vrot.slane %v988_v36, 7 }
  0x4c   : > { %v4105_v46 = vsel %vm10259_vm11, %v4103_v31, %v4104_v30  ;;  %v10393_v47 = vor.u32 %v4470_v35, %v4467_v33  ;;  %v1450_v41 = vshll.u32 %v1365_v29, 16  ;;  %v1456_v50 = vshrl.u32 %v1366_v40, 16 }
  0x4d   : > { %v4462_v2 = vsel %vm10278_vm14, %v4453_v32, %v4461_v38  ;;  %v4463_v11 = vrot.slane %v4461_v38, 4  ;;  %v1449_v1 = vrot.slane %v1447_v39, 7  ;;  %v2028_v52 = vshrl.u32 %v1949_v42, 16  ;;  %v10445_v38 = vld [vmem:[%s10167_s19 + $0x2c] sm:$0xf] }
  0x4e   : > { %2365 = vrot.lane.b32.xlu1 %v2025_v57, %s15213_s29  ;;  %2611 = vrot.lane.b32.xlu0 %v2527_v59, %s15198_s20  ;;  %v2861_v54 = vshrl.u32 %v10335_v49, 16  ;;  %v1085_v55 = vsel %vm10175_vm4, %v1083_v45, %v1084_v62  ;;  %v1086_v57 = vrot.slane %v1084_v62, 4  ;;  %v1087_v59 = vrot.slane %v10396_v48, 7  ;;  %v440_v39 = vld [vmem:[%s10167_s19] sm:$0xc] }
  0x4f   : > { %v1445_v61 = vrot.slane %v10301_v12, 4  ;;  %v10409_v63 = vrot.slane %v1456_v50, 7  ;;  %v1459_v3 = vshll.u32 %v1366_v40, 16  ;;  %v2037_v5 = vshrl.u32 %v1950_v51, 16  ;;  %v2529_v62 = vld [vmem:[%s10167_s19 + $0x1c] sm:$0xf] }
  0x50   : > { %v4472_v49 = vsel %vm10278_vm14, %v4463_v11, %v10393_v47  ;;  %v2031_v6 = vshll.u32 %v1949_v42, 16  ;;  %v3477_v8 = vshrl.u32 %v10341_v56, 16  ;;  %v2867_v22 = vshll.u32 %v2778_v60, 16  ;;  %v441_v42 = vld [vmem:[%s10167_s19 + $0x4] sm:$0xf] }
  0x51   : > { %v2871_v9 = vshrl.u32 %v2778_v60, 16  ;;  %v2863_v14 = vrot.slane %v2861_v54, 4  ;;  %v1088_v12 = vsel %vm10175_vm4, %v1086_v57, %v1087_v59  ;;  %v2026_v15 = vrot.slane %v10316_v26, 4  ;;  %v4013_v57 = vld [vmem:[%s10167_s19 + $0x28] sm:$0xf] }
  0x52   : > { %2613 = vrot.lane.b32.xlu1 %v2528_v10, %s15198_s20  ;;  %3230 = vrot.lane.b32.xlu0 %v2850_v13, %s15196_s15  ;;  %v1452_v10 = vor.u32 %v1450_v41, %v1449_v1  ;;  %v2030_v13 = vrot.slane %v2028_v52, 7  ;;  %v10422_v16 = vrot.slane %v2037_v5, 7  ;;  %v2040_v18 = vshll.u32 %v1950_v51, 16  ;;  %v4386_v51 = vld [vmem:[%s10167_s19 + $0x28] sm:$0xf] }
  0x53   : > { %v1461_v44 = vor.u32 %v1459_v3, %v10409_v63  ;;  %v10431_v28 = vrot.slane %v2867_v22, 5  ;;  %v2873_v25 = vrot.slane %v2871_v9, 4  ;;  %v3479_v43 = vrot.slane %v3477_v8, 4  ;;  %v4387_v60 = vld [vmem:[%s10167_s19 + $0x2c] sm:$0xf] }
  0x54   : > { %v1453_v56 = vsel %vm10193_vm7, %v1445_v61, %v1452_v10  ;;  %v2033_v21 = vor.u32 %v2031_v6, %v2030_v13  ;;  %v2864_v26 = vor.u32 %v2863_v14, %v10354_v7  ;;  %v2035_v29 = vrot.slane %v2030_v13, 4  ;;  %v442_v6 = vld [vmem:[%s10167_s19 + $0x8] sm:$0xf]  ;;  %v2530_v8 = vld [vmem:[%s10167_s19 + $0x20] sm:$0xf] }
  0x55   : > { %v2042_v31 = vor.u32 %v2040_v18, %v10422_v16  ;;  %v2877_v32 = vshll.u32 %v10428_v23, 16  ;;  %v2874_v7 = vor.u32 %v2873_v25, %v10431_v28  ;;  %v3493_v50 = vshll.u32 %v10445_v38, 16 }
  0x56   : > { %3232 = vrot.lane.b32.xlu1 %v2860_v19, %s15196_s15  ;;  %3846 = vrot.lane.b32.xlu0 %v3466_v27, %s15228_s16  ;;  %v1454_v19 = vrot.slane %v1449_v1, 4  ;;  %v3397_v27 = vld [vmem:[%s10167_s19 + $0x28] sm:$0xf]  ;;  %v2034_v35 = vsel %vm10193_vm7, %v2026_v15, %v2033_v21  ;;  %v2865_v40 = vrot.slane %v2864_v26, 4  ;;  %v489_v52 = vshll.u32 %v440_v39, 16 }
  0x57   : > { %v3483_v36 = vshll.u32 %v3397_v27, 16  ;;  %v2043_v45 = vsel %vm10193_vm7, %v2035_v29, %v2042_v31  ;;  %v2875_v11 = vrot.slane %v2874_v7, 4  ;;  %v495_v54 = vshrl.u32 %v441_v42, 16 }
  0x58   : > { %v1462_v33 = vsel %vm10193_vm7, %v1454_v19, %v1461_v44  ;;  %v498_v3 = vshll.u32 %v441_v42, 16  ;;  %v4475_v5 = vshrl.u32 %v4386_v51, 16  ;;  %v491_v10 = vrot.slane %v489_v52, 7  ;;  %v1951_v52 = vld [vmem:[%s10167_s19 + $0x24] sm:$0xf] }
  0x59   : > { %v497_v13 = vrot.slane %v495_v54, 6  ;;  %v10467_v9 = vrot.slane %v3493_v50, 5  ;;  %v4106_v14 = vrot.slane %v4104_v30, 4  ;;  %v4485_v44 = vshrl.u32 %v4387_v60, 16 }
  0x5a   : > { %3848 = vrot.lane.b32.xlu1 %v3476_v58, %s15228_s16  ;;  %4219 = vrot.lane.b32.xlu0 %v4102_v37, %s15226_s17  ;;  %v3487_v58 = vshrl.u32 %v3397_v27, 16  ;;  %v3480_v37 = vor.u32 %v3479_v43, %v10358_v17  ;;  %v3485_v17 = vrot.slane %v3483_v36, 5  ;;  %v505_v30 = vshrl.u32 %v442_v6, 16  ;;  %v1367_v36 = vld [vmem:[%s10167_s19 + $0x1c] sm:$0xf] }
  0x5b   : > { %v508_v27 = vshll.u32 %v442_v6, 16  ;;  %v4477_v25 = vrot.slane %v4475_v5, 5  ;;  %v4488_v26 = vshll.u32 %v4387_v60, 16  ;;  %v4473_v42 = vrot.slane %v10393_v47, 4  ;;  %v1952_v6 = vld [vmem:[%s10167_s19 + $0x28] sm:$0xf] }
  0x5c   : > { %v3489_v41 = vrot.slane %v3487_v58, 4  ;;  %v3481_v1 = vrot.slane %v3480_v37, 4  ;;  %v1089_v54 = vrot.slane %v1087_v59, 4  ;;  %v1468_v5 = vshll.u32 %v1367_v36, 16 }
  0x5d   : > { %v2046_v59 = vshrl.u32 %v1951_v52, 16 }
  0x5e   : > { %4221 = vrot.lane.b32.xlu1 %v4105_v46, %s15226_s17  ;;  %4838 = vrot.lane.b32.xlu0 %v4462_v2, %s15215_s18  ;;  %v10454_v46 = vrot.slane %v2877_v32, 5  ;;  %v486_v2 = vshrl.u32 %v440_v39, 16  ;;  %v3490_v22 = vor.u32 %v3489_v41, %v3485_v17  ;;  %v3486_v18 = vsel %vm10234_vm8, %v3481_v1, %v3485_v17  ;;  %v990_v39 = vld [vmem:[%s10167_s19 + $0x1c] sm:$0xf]  ;;  %v1368_v1 = vld [vmem:[%s10167_s19 + $0x20] sm:$0xf] }
  0x5f   : > { %v4490_v17 = vrot.slane %v4488_v26, 6  ;;  %v1474_v48 = vshrl.u32 %v1368_v1, 16 }
  0x60   : > { %v488_v61 = vrot.slane %v486_v2, 6  ;;  %v2880_v15 = vsel %vm10234_vm8, %v2875_v11, %v10454_v46  ;;  %v3491_v31 = vrot.slane %v3490_v22, 4  ;;  %v1090_v11 = vrot.slane %v990_v39, 7 }
  0x61   : > { %v2881_v22 = vshrl.u32 %v10428_v23, 16  ;;  %v1477_v23 = vshll.u32 %v1368_v1, 16  ;;  %v10581_v1 = vld [vmem:[%s10167_s19 + $0x2c] sm:$0xf] }
  0x62   : > { %4840 = vrot.lane.b32.xlu1 %v4472_v49, %s15215_s18  ;;  %1202 = vrot.lane.b32.xlu0 %v1085_v55, %s15209_s26  ;;  %v2870_v55 = vsel %vm10234_vm8, %v2865_v40, %v10431_v28  ;;  %v4478_v49 = vshll.u32 %v4386_v51, 16  ;;  %v492_v19 = vor.u32 %v491_v10, %v488_v61  ;;  %v10485_v28 = vld [vmem:[%s10167_s19 + $0x2c] sm:$0xf]  ;;  %v3496_v41 = vsel %vm10234_vm8, %v3491_v31, %v10467_v9 }
  0x63   : > { %v4110_v37 = vrot.slane %v10485_v28, 5  ;;  %v1465_v51 = vshrl.u32 %v1367_v36, 16  ;;  %v1092_v10 = vrot.slane %v1090_v11, 4  ;;  %v3399_v36 = vld [vmem:[%s10167_s19 + $0x30] sm:$0xf] }
  0x64   : > { %v4480_v43 = vrot.slane %v4478_v49, 6  ;;  %v493_v29 = vrot.slane %v492_v19, 4  ;;  %v2780_v19 = vld [vmem:[%s10167_s19 + $0x28] sm:$0xf] }
  0x65   : > { %v10527_v49 = vrot.slane %v1465_v51, 7  ;;  %v2887_v31 = vshll.u32 %v2780_v19, 16 }
  0x66   : > { %1204 = vrot.lane.b32.xlu1 %v1088_v12, %s15209_s26  ;;  %1786 = vrot.lane.b32.xlu0 %v1453_v56, %s15207_s28  ;;  %v500_v12 = vrot.slane %v498_v3, 7  ;;  %v4107_v56 = vrot.slane %v4013_v57, 5  ;;  %v9830_v57 = vld [vmem:[%s15271_s1] sm:$0xff]  }
  0x67   : > { %v1472_v26 = vrot.slane %v10527_v49, 4 }
  0x68   : > { %v501_v20 = vor.u32 %v500_v12, %v497_v13  ;;  %v4109_v7 = vrot.slane %v4107_v56, 4  ;;  %v4108_v50 = vsel %vm10259_vm11, %v4106_v14, %v4107_v56  ;;  %v1091_v14 = vsel %vm10175_vm4, %v1089_v54, %v1090_v11  ;;  %v9831_v12 = vld [vmem:[%s15271_s1 + $0x8] sm:$0xff]  }
  0x69   : > { %v2049_v56 = vshll.u32 %v1951_v52, 16  ;;  %v10578_v11 = vrot.slane %v2887_v31, 5  ;;  %v3503_v54 = vshll.u32 %v3399_v36, 16 }
  0x6a   : > { %1788 = vrot.lane.b32.xlu1 %v1462_v33, %s15207_s28  ;;  %2367 = vrot.lane.b32.xlu0 %v2034_v35, %s15213_s29  ;;  %v503_v32 = vrot.slane %v501_v20, 4  ;;  %v507_v33 = vrot.slane %v505_v30, 6  ;;  %v510_v35 = vrot.slane %v508_v27, 7  ;;  %v502_v58 = vsel %vm10478_vm3, %v493_v29, %v501_v20 }
  0x6b   : > { %941 = vst.msk [vmem:[#allocation2] sm:$0xf] %vm15224_vm1, %v502_v58  ;;  %v4111_v47 = vsel %vm10259_vm11, %v4109_v7, %v4110_v37  ;;  %v10546_v20 = vrot.slane %v1474_v48, 7  ;;  %v10548_v30 = vrot.slane %v2046_v59, 7  ;;  %v2055_v27 = vshrl.u32 %v1952_v6, 16 }
  0x6c   : > { %v10493_v40 = vor.u32 %v510_v35, %v507_v33  ;;  %v2044_v29 = vrot.slane %v10422_v16, 4  ;;  %v9832_v33 = vld [vmem:[%s15271_s1 + $0x10] sm:$0xff]   ;;  %v2883_v35 = vrot.slane %v2881_v22, 4  ;;  %v2531_v22 = vld [vmem:[%s10167_s19 + $0x24] sm:$0xf] }
  0x6d   : > { %v1479_v39 = vor.u32 %v1477_v23, %v10546_v20 }
  0x6e   : > { %2369 = vrot.lane.b32.xlu1 %v2043_v45, %s15213_s29  ;;  %2615 = vrot.lane.b32.xlu0 %v2529_v62, %s15198_s20  ;;  %v4481_v45 = vor.u32 %v4480_v43, %v4477_v25  ;;  %v4487_v62 = vrot.slane %v4485_v44, 5  ;;  %v512_v2 = vsel %vm10478_vm3, %v503_v32, %v10493_v40  ;;  %v1470_v44 = vor.u32 %v1468_v5, %v10527_v49  ;;  %v443_v25 = vld [vmem:[%s10167_s19 + $0xc] sm:$0xf] }
  0x6f   : > { %942 = vst.msk [vmem:[#allocation2 + $0x4] sm:$0xf] %vm15224_vm1, %v512_v2  ;;  %v3497_v43 = vshrl.u32 %v10445_v38, 16  ;;  %v2891_v32 = vshrl.u32 %v2780_v19, 16  ;;  %v2058_v38 = vshll.u32 %v1952_v6, 16  ;;  %v515_v58 = vshrl.u32 %v443_v25, 16 }
  0x70   : > { %v4482_v60 = vsel %vm10278_vm14, %v4473_v42, %v4481_v45  ;;  %v4483_v61 = vrot.slane %v4481_v45, 4  ;;  %v10525_v3 = vor.u32 %v4490_v17, %v4487_v62  ;;  %v518_v7 = vshll.u32 %v443_v25, 16  ;;  %v444_v62 = vld [vmem:[%s10167_s19 + $0x10] sm:$0xf]  ;;  %v9833_v2 = vld [vmem:[%s15271_s1 + $0x18] sm:$0xff]  }
  0x71   : > { %v2051_v42 = vor.u32 %v2049_v56, %v10548_v30  ;;  %v10569_v45 = vrot.slane %v2055_v27, 7  ;;  %v2053_v17 = vrot.slane %v10548_v30, 4  ;;  %v2893_v52 = vrot.slane %v2891_v32, 4 }
  0x72   : > { %2617 = vrot.lane.b32.xlu1 %v2530_v8, %s15198_s20  ;;  %3234 = vrot.lane.b32.xlu0 %v2870_v55, %s15196_s15  ;;  %v10516_v55 = vld [vmem:[%s10167_s19 + $0x20] sm:$0xf]  ;;  %v15247_v8 = vmov 0.0   ;;  %v520_v51 = vrot.slane %v518_v7, 7  ;;  %v1480_v5 = vsel %vm10193_vm7, %v1472_v26, %v1479_v39  ;;  %v528_v59 = vshll.u32 %v444_v62, 16  ;;  %s15272_s20 = smov 32  }
  0x73   : > { %v1093_v13 = vrot.slane %v10516_v55, 7  ;;  %9590 = vmatprep.subr.bf16.mxu0 %v15247_v8  ;;  %v2052_v49 = vsel %vm10193_vm7, %v2044_v29, %v2051_v42  ;;  %v2060_v48 = vor.u32 %v2058_v38, %v10569_v45  ;;  %9600 = vmatprep.mubr.msk.bf16.mxu0 %vm15217_vm9, %v15247_v8  ;;  %v4015_v38 = vld [vmem:[%s10167_s19 + $0x30] sm:$0xf] }
  0x74   : > { %9591 = vmatpush3.bf16.msra.mxu0 %v9830_v57  ;;  %v3507_v57 = vshrl.u32 %v3399_v36, 16  ;;  %v530_v23 = vrot.slane %v528_v59, 7  ;;  %v4113_v42 = vrot.slane %v4015_v38, 5 }
  0x75   : > { %9592 = vmatprep.subr.bf16.mxu0 %v15247_v8  ;;  %v2061_v27 = vsel %vm10193_vm7, %v2053_v17, %v2060_v48  ;;  %v445_v48 = vld [vmem:[%s10167_s19 + $0x14] sm:$0xf] }
  0x76   : > { %3236 = vrot.lane.b32.xlu1 %v2880_v15, %s15196_s15  ;;  %3850 = vrot.lane.b32.xlu0 %v3486_v18, %s15228_s16  ;;  %v4492_v15 = vsel %vm10278_vm14, %v4483_v61, %v10525_v3  ;;  %v1463_v18 = vrot.slane %v10409_v63, 4  ;;  %v1094_v63 = vsel %vm10175_vm4, %v1092_v10, %v1093_v13  ;;  %v525_v61 = vshrl.u32 %v444_v62, 16  ;;  %v10635_v62 = vld [vmem:[%s10167_s19 + $0x34] sm:$0xf]  ;;  %s15273_s15 = smov 40  }
  0x77   : > { %v3509_v30 = vrot.slane %v3507_v57, 4  ;;  %v1369_v57 = vld [vmem:[%s10167_s19 + $0x24] sm:$0xf] }
  0x78   : > { %9593 = vmatpush3.bf16.msra.mxu0 %v9831_v12  ;;  %v1471_v16 = vsel %vm10193_vm7, %v1463_v18, %v1470_v44  ;;  %v527_v6 = vrot.slane %v525_v61, 6  ;;  %v2897_v12 = vshll.u32 %v10581_v1, 16  ;;  %v3505_v44 = vrot.slane %v3503_v54, 5 }
  0x79   : > { %9594 = vmatprep.subr.bf16.mxu0 %v15247_v8  ;;  %v4115_v61 = vrot.slane %v4113_v42, 4 }
  0x7a   : > { %3852 = vrot.lane.b32.xlu1 %v3496_v41, %s15228_s16  ;;  %4223 = vrot.lane.b32.xlu0 %v4108_v50, %s15226_s17  ;;  %v513_v41 = vrot.slane %v10493_v40, 4  ;;  %v517_v50 = vrot.slane %v515_v58, 6  ;;  %v2884_v40 = vor.u32 %v2883_v35, %v10454_v46  ;;  %v9834_v46 = vld [vmem:[%s15271_s1 + $0x20] ss:$0 sps:$4 sm:$0xff]   ;;  %v10609_v25 = vor.u32 %v530_v23, %v527_v6  ;;  %v2532_v35 = vld [vmem:[%s10167_s19 + $0x28] sm:$0xf] }
  0x7b   : > { %v3510_v32 = vor.u32 %v3509_v30, %v3505_v44  ;;  %v1483_v6 = vshrl.u32 %v1369_v57, 16  ;;  %v2901_v23 = vshrl.u32 %v10581_v1, 16  ;;  %v1486_v30 = vshll.u32 %v1369_v57, 16  ;;  %s15428_s1 = smov 96  }
  0x7c   : > { %9595 = vmatpush3.bf16.msra.mxu0 %v9832_v33  ;;  %v2885_v56 = vrot.slane %v2884_v40, 4 }
  0x7d   : > { %9596 = vmatprep.subr.bf16.mxu0 %v15247_v8 }
  0x7e   : > { %4225 = vrot.lane.b32.xlu1 %v4111_v47, %s15226_s17  ;;  %4842 = vrot.lane.b32.xlu0 %v4482_v60, %s15215_s18  ;;  %v3499_v47 = vrot.slane %v3497_v43, 4  ;;  %v521_v60 = vor.u32 %v520_v51, %v517_v50  ;;  %v4388_v43 = vld [vmem:[%s10167_s19 + $0x30] sm:$0xf]  ;;  %v2890_v36 = vsel %vm10234_vm8, %v2885_v56, %v10578_v11  ;;  %v4112_v51 = vrot.slane %v4110_v37, 4 }
  0x7f   : > { %v4495_v58 = vshrl.u32 %v4388_v43, 16  ;;  %v4498_v7 = vshll.u32 %v4388_v43, 16  ;;  %v10684_v43 = vld [vmem:[%s10167_s19 + $0x30] sm:$0xf] }
  0x80   : > { %v522_v10 = vsel %vm10478_vm3, %v513_v41, %v521_v60  ;;  %9597 = vmatpush3.bf16.msra.mxu0 %v9833_v2  ;;  %v523_v18 = vrot.slane %v521_v60, 4  ;;  %v3500_v19 = vor.u32 %v3499_v47, %v10467_v9  ;;  %v10615_v9 = vrot.slane %v2897_v12, 5  ;;  %v10646_v2 = vld [vmem:[%s10167_s19 + $0x24] sm:$0xf]  ;;  %v10652_v60 = vld [vmem:[%s10167_s19 + $0x28] sm:$0xf] }
  0x81   : > { %943 = vst.msk [vmem:[#allocation2 + $0x8] sm:$0xf] %vm15224_vm1, %v522_v10  ;;  %9598 = vmatprep.subr.bf16.mxu0 %v15247_v8  ;;  %v3511_v41 = vrot.slane %v3510_v32, 4  ;;  %v4500_v47 = vrot.slane %v4498_v7, 6  ;;  %v4114_v59 = vsel %vm10259_vm11, %v4112_v51, %v4113_v42  ;;  %v4493_v10 = vrot.slane %v10525_v3, 4 }
  0x82   : > { %4844 = vrot.lane.b32.xlu1 %v4492_v15, %s15215_s18  ;;  %1206 = vrot.lane.b32.xlu0 %v1091_v14, %s15209_s26  ;;  %v2894_v14 = vor.u32 %v2893_v52, %v10578_v11  ;;  %v10601_v15 = vld [vmem:[%s10167_s19 + $0x34] sm:$0xf]  ;;  %v532_v29 = vsel %vm10478_vm3, %v523_v18, %v10609_v25  ;;  %v3501_v31 = vrot.slane %v3500_v19, 4  ;;  %v4497_v52 = vrot.slane %v4495_v58, 5  ;;  %v10674_v19 = vld [vmem:[%s10167_s19 + $0x28] sm:$0xf] }
  0x83   : > { %v3513_v33 = vshll.u32 %v10601_v15, 16  ;;  %944 = vst.msk [vmem:[#allocation2 + $0xc] sm:$0xf] %vm15224_vm1, %v532_v29  ;;  %v1096_v18 = vrot.slane %v10646_v2, 7  ;;  %v3517_v56 = vshrl.u32 %v10601_v15, 16  ;;  %v535_v29 = vshrl.u32 %v445_v48, 16 }
  0x84   : > { %v2895_v26 = vrot.slane %v2894_v14, 4  ;;  %v3506_v17 = vsel %vm10234_vm8, %v3501_v31, %v3505_v44  ;;  %v1095_v44 = vrot.slane %v1093_v13, 4  ;;  %v538_v31 = vshll.u32 %v445_v48, 16 }
  0x85   : > { %v10641_v50 = vrot.slane %v3513_v33, 5  ;;  %v1098_v38 = vrot.slane %v1096_v18, 4  ;;  %v1099_v7 = vrot.slane %v10674_v19, 7  ;;  %v1495_v51 = vshll.u32 %v10652_v60, 16 }
  0x86   : > { %1208 = vrot.lane.b32.xlu1 %v1094_v63, %s15209_s26  ;;  %1790 = vrot.lane.b32.xlu0 %v1471_v16, %s15207_s28  ;;  %v5253_v63 = vsel %vm5251_vm6, %v9834_v46, 0  ;;  %v4389_v16 = vld [vmem:[%s10167_s19 + $0x34] sm:$0xf]  ;;  %v2900_v39 = vsel %vm10234_vm8, %v2895_v26, %v10615_v9  ;;  %vm15219_vm6 = vcmask 322816   ;;  %v540_v42 = vrot.slane %v538_v31, 7 }
  0x87   : > { %9599 = vmatpush3.bf16.msra.mxu0 %v5253_v63  ;;  %v4505_v54 = vshrl.u32 %v4389_v16, 16  ;;  %v4508_v40 = vshll.u32 %v4389_v16, 16  ;;  %v3516_v37 = vsel %vm10234_vm8, %v3511_v41, %v10641_v50  ;;  %v10688_v63 = vrot.slane %v1483_v6, 7 }
  0x88   : > { %9716 = vmatprep.subr.bf16.mxu0 %v15247_v8  ;;  %v533_v16 = vrot.slane %v10609_v25, 4  ;;  %v2073_v25 = vshrl.u32 %v10684_v43, 16  ;;  %v1097_v57 = vsel %vm10175_vm4, %v1095_v44, %v1096_v18  ;;  %v1100_v48 = vsel %vm10175_vm4, %v1098_v38, %v1099_v7 }
  0x89   : > { %v4507_v14 = vrot.slane %v4505_v54, 5  ;;  %v4510_v12 = vrot.slane %v4508_v40, 6 }
  0x8a   : > { %1792 = vrot.lane.b32.xlu1 %v1480_v5, %s15207_s28  ;;  %2371 = vrot.lane.b32.xlu0 %v2052_v49, %s15213_s29  ;;  %v4116_v5 = vrot.slane %v10635_v62, 5  ;;  %v10656_v49 = vld [vmem:[%s10167_s19 + $0x2c] sm:$0xf]  ;;  %v10737_v44 = vrot.slane %v2073_v25, 7 }
  0x8b   : > { %v2064_v26 = vshrl.u32 %v10656_v49, 16  ;;  %v10693_v33 = vor.u32 %v4510_v12, %v4507_v14  ;;  %v2067_v2 = vshll.u32 %v10656_v49, 16  ;;  %v1490_v12 = vrot.slane %v10688_v63, 4 }
  0x8c   : > { %v4117_v3 = vsel %vm10259_vm11, %v4115_v61, %v4116_v5 }
  0x8e   : > { %2373 = vrot.lane.b32.xlu1 %v2061_v27, %s15213_s29  ;;  %2619 = vrot.lane.b32.xlu0 %v2531_v22, %s15272_s20  ;;  %v4501_v22 = vor.u32 %v4500_v47, %v4497_v52  ;;  %v1492_v27 = vshrl.u32 %v10652_v60, 16  ;;  %v1488_v52 = vor.u32 %v1486_v30, %v10688_v63  ;;  %v10709_v47 = vrot.slane %v2064_v26, 7 }
  0x8f   : > { %v2903_v30 = vrot.slane %v2901_v23, 4 }
  0x90   : > { %v4502_v13 = vsel %vm10278_vm14, %v4493_v10, %v4501_v22  ;;  %v4503_v32 = vrot.slane %v4501_v22, 4  ;;  %v10702_v41 = vrot.slane %v1492_v27, 7  ;;  %v3401_v27 = vld [vmem:[%s10167_s19 + $0x38] sm:$0xf] }
  0x91   : > { %v3527_v38 = vshrl.u32 %v3401_v27, 16 }
  0x92   : > { %2621 = vrot.lane.b32.xlu1 %v2532_v35, %s15272_s20  ;;  %3238 = vrot.lane.b32.xlu0 %v2890_v36, %s15273_s15  ;;  %v2782_v35 = vld [vmem:[%s10167_s19 + $0x30] sm:$0xf]  ;;  %v446_v36 = vld [vmem:[%s10167_s19 + $0x18] sm:$0xf]  ;;  %v1497_v18 = vor.u32 %v1495_v51, %v10702_v41 }
  0x93   : > { %v10648_v11 = vpop.permute.xlu0 %2607  ;;  %v10661_v28 = vpop.permute.xlu1 %2609  ;;  %v545_v60 = vshrl.u32 %v446_v36, 16  ;;  %v548_v61 = vshll.u32 %v446_v36, 16  ;;  %v2911_v6 = vshrl.u32 %v2782_v35, 16  ;;  %v3529_v51 = vrot.slane %v3527_v38, 4 }
  0x94   : > { %v1498_v23 = vsel %vm10193_vm7, %v1490_v12, %v1497_v18 }
  0x95   : > { %v547_v22 = vrot.slane %v545_v60, 6  ;;  %v550_v14 = vrot.slane %v548_v61, 7  ;;  %v2913_v63 = vrot.slane %v2911_v6, 4  ;;  %v4017_v60 = vld [vmem:[%s10167_s19 + $0x38] sm:$0xf] }
  0x96   : > { %3240 = vrot.lane.b32.xlu1 %v2900_v39, %s15273_s15  ;;  %3854 = vrot.lane.b32.xlu0 %v3506_v17, %s15228_s16  ;;  %v537_v39 = vrot.slane %v535_v29, 6  ;;  %v1481_v17 = vrot.slane %v10546_v20, 4  ;;  %v4512_v20 = vsel %vm10278_vm14, %v4503_v32, %v10693_v33  ;;  %v3523_v32 = vshll.u32 %v3401_v27, 16 }
  0x97   : > { %v1195_v46 = vpop.permute.xlu0 %1194  ;;  %v10742_v26 = vor.u32 %v550_v14, %v547_v22  ;;  %v4119_v12 = vrot.slane %v4017_v60, 5 }
  0x98   : > { %1318 = vst.msk [vmem:[#allocation2] sm:$0xf] %vm15204_vm10, %v1195_v46  ;;  %v541_v54 = vor.u32 %v540_v42, %v537_v39  ;;  %v10770_v42 = vld [vmem:[%s10167_s19 + $0x3c] sm:$0xf] }
  0x9a   : > { %3856 = vrot.lane.b32.xlu1 %v3516_v37, %s15228_s16  ;;  %4227 = vrot.lane.b32.xlu0 %v4114_v59, %s15226_s17  ;;  %v2062_v37 = vrot.slane %v10569_v45, 4  ;;  %v2907_v59 = vshll.u32 %v2782_v35, 16  ;;  %v542_v10 = vsel %vm10478_vm3, %v533_v16, %v541_v54  ;;  %v543_v46 = vrot.slane %v541_v54, 4 }
  0x9b   : > { %v1197_v55 = vpop.permute.xlu0 %1196  ;;  %945 = vst.msk [vmem:[#allocation2 + $0x10] sm:$0xf] %vm15224_vm1, %v542_v10  ;;  %v1489_v45 = vsel %vm10193_vm7, %v1481_v17, %v1488_v52  ;;  %v3525_v17 = vrot.slane %v3523_v32, 5  ;;  %v2533_v52 = vld [vmem:[%s10167_s19 + $0x2c] sm:$0xf] }
  0x9c   : > { %v1779_v58 = vpop.permute.xlu1 %1778  ;;  %1319 = vst.msk [vmem:[#allocation2 + $0x4] sm:$0xf] %vm15204_vm10, %v1197_v55  ;;  %v10745_v55 = vld [vmem:[%s10167_s19 + $0x34] sm:$0xf]  ;;  %v552_v1 = vsel %vm10478_vm3, %v543_v46, %v10742_v26  ;;  %v4391_v46 = vld [vmem:[%s10167_s19 + $0x3c] sm:$0xf] }
  0x9d   : > { %1902 = vst.msk [vmem:[#allocation2] sm:$0xf] %vm15222_vm13, %v1779_v58  ;;  %v2917_v39 = vshll.u32 %v10745_v55, 16  ;;  %v4525_v27 = vshrl.u32 %v4391_v46, 16 }
  0x9e   : > { %4229 = vrot.lane.b32.xlu1 %v4117_v3, %s15226_s17  ;;  %4846 = vrot.lane.b32.xlu0 %v4502_v13, %s15215_s18  ;;  %v2069_v3 = vor.u32 %v2067_v2, %v10709_v47  ;;  %v3519_v13 = vrot.slane %v3517_v56, 4  ;;  %946 = vst.msk [vmem:[#allocation2 + $0x14] sm:$0xf] %vm15224_vm1, %v552_v1  ;;  %v2071_v56 = vrot.slane %v10709_v47, 4  ;;  %v10810_v1 = vld [vmem:[%s10167_s19 + $0x2c] sm:$0xf] }
  0x9f   : > { %v2360_v40 = vpop.permute.xlu0 %2359 }
  0xa0   : > { %v1781_v49 = vpop.permute.xlu1 %1780  ;;  %2483 = vst.msk [vmem:[#allocation2] sm:$0xf] %vm15221_vm0, %v2360_v40  ;;  %v2070_v15 = vsel %vm10193_vm7, %v2062_v37, %v2069_v3  ;;  %v4390_v40 = vld [vmem:[%s10167_s19 + $0x38] sm:$0xf]  ;;  %v2534_v37 = vld [vmem:[%s10167_s19 + $0x30] sm:$0xf] }
  0xa1   : > { %1903 = vst.msk [vmem:[#allocation2 + $0x4] sm:$0xf] %vm15222_vm13, %v1781_v49  ;;  %v3530_v49 = vor.u32 %v3529_v51, %v3525_v17  ;;  %v4515_v10 = vshrl.u32 %v4390_v40, 16  ;;  %v4518_v6 = vshll.u32 %v4390_v40, 16  ;;  %v10802_v3 = vld [vmem:[%s10167_s19 + $0x3c] sm:$0xf] }
  0xa2   : > { %2731 = vst.msk [vmem:[#allocation2] sm:$0xf] %vm15219_vm6, %v10648_v11  ;;  %4848 = vrot.lane.b32.xlu1 %v4512_v20, %s15215_s18  ;;  %1210 = vrot.lane.b32.xlu0 %v1097_v57, %s15209_s26  ;;  %v2076_v11 = vshll.u32 %v10684_v43, 16  ;;  %v2909_v43 = vrot.slane %v2907_v59, 5  ;;  %v10781_v57 = vrot.slane %v2917_v39, 5 }
  0xa4   : > { %v2362_v29 = vpop.permute.xlu1 %2361  ;;  %v3227_v31 = vpop.permute.xlu0 %3226  ;;  %v2078_v35 = vor.u32 %v2076_v11, %v10737_v44  ;;  %v2914_v16 = vor.u32 %v2913_v63, %v2909_v43  ;;  %v4520_v63 = vrot.slane %v4518_v6, 6  ;;  %v1504_v6 = vshll.u32 %v10810_v1, 16 }
  0xa5   : > { %2484 = vst.msk [vmem:[#allocation2 + $0x4] sm:$0xf] %vm15221_vm0, %v2362_v29 }
  0xa6   : > { %3350 = vst.msk [vmem:[#allocation2] sm:$0xf] %vm15212_vm2, %v3227_v31  ;;  %1212 = vrot.lane.b32.xlu1 %v1100_v48, %s15209_s26  ;;  %1794 = vrot.lane.b32.xlu0 %v1489_v45, %s15207_s28  ;;  %v2079_v2 = vsel %vm10193_vm7, %v2071_v56, %v2078_v35  ;;  %v2915_v20 = vrot.slane %v2914_v16, 4  ;;  %v447_v48 = vld [vmem:[%s10167_s19 + $0x1c] sm:$0xf]  ;;  %v4118_v45 = vrot.slane %v4116_v5, 4 }
  0xa7   : > { %2732 = vst.msk [vmem:[#allocation2 + $0x4] sm:$0xf] %vm15219_vm6, %v10661_v28  ;;  %v2904_v28 = vor.u32 %v2903_v30, %v10615_v9  ;;  %v3520_v9 = vor.u32 %v3519_v13, %v10641_v50  ;;  %v3533_v50 = vshll.u32 %v10770_v42, 16  ;;  %v555_v30 = vshrl.u32 %v447_v48, 16  ;;  %v448_v31 = vld [vmem:[%s10167_s19 + $0x20] sm:$0xf] }
  0xa8   : > { %v3229_v36 = vpop.permute.xlu1 %3228  ;;  %v3843_v58 = vpop.permute.xlu0 %3842  ;;  %v2920_v18 = vsel %vm10234_vm8, %v2915_v20, %v10781_v57  ;;  %v3531_v5 = vrot.slane %v3530_v49, 4  ;;  %v558_v29 = vshll.u32 %v447_v48, 16  ;;  %v4528_v13 = vshll.u32 %v4391_v46, 16  ;;  %v994_v16 = vld [vmem:[%s10167_s19 + $0x2c] sm:$0xf] }
  0xa9   : > { %3351 = vst.msk [vmem:[#allocation2 + $0x4] sm:$0xf] %vm15212_vm2, %v3229_v36  ;;  %v2905_v47 = vrot.slane %v2904_v28, 4  ;;  %v3521_v61 = vrot.slane %v3520_v9, 4  ;;  %v10799_v11 = vrot.slane %v3533_v50, 5  ;;  %v553_v56 = vrot.slane %v10742_v26, 4 }
  0xaa   : > { %3966 = vst.msk [vmem:[#allocation2] sm:$0xf] %vm15211_vm5, %v3843_v58  ;;  %1796 = vrot.lane.b32.xlu1 %v1498_v23, %s15207_s28  ;;  %2375 = vrot.lane.b32.xlu0 %v2070_v15, %s15213_s29  ;;  %v557_v23 = vrot.slane %v555_v30, 6  ;;  %v4120_v15 = vsel %vm10259_vm11, %v4118_v45, %v4119_v12  ;;  %v560_v35 = vrot.slane %v558_v29, 7  ;;  %v4121_v28 = vrot.slane %v4119_v12, 4 }
  0xab   : > { %v2910_v59 = vsel %vm10234_vm8, %v2905_v47, %v2909_v43  ;;  %v3526_v62 = vsel %vm10234_vm8, %v3521_v61, %v3525_v17  ;;  %v4517_v43 = vrot.slane %v4515_v10, 5  ;;  %v4122_v36 = vrot.slane %v10802_v3, 5  ;;  %v10827_v17 = vld [vmem:[%s10167_s19 + $0x30] sm:$0xf]  ;;  %v10833_v50 = vld [vmem:[%s10167_s19 + $0x34] sm:$0xf] }
  0xac   : > { %v3845_v25 = vpop.permute.xlu1 %3844  ;;  %v4216_v54 = vpop.permute.xlu0 %4215  ;;  %v4513_v58 = vrot.slane %v10693_v33, 4  ;;  %v565_v39 = vshrl.u32 %v448_v31, 16  ;;  %v3536_v26 = vsel %vm10234_vm8, %v3531_v5, %v10799_v11  ;;  %v1501_v9 = vshrl.u32 %v10810_v1, 16  ;;  %v10830_v20 = vld [vmem:[%s10167_s19 + $0x30] sm:$0xf] }
  0xad   : > { %3967 = vst.msk [vmem:[#allocation2 + $0x4] sm:$0xf] %vm15211_vm5, %v3845_v25  ;;  %v561_v51 = vor.u32 %v560_v35, %v557_v23  ;;  %v4527_v33 = vrot.slane %v4525_v27, 5  ;;  %v4530_v47 = vrot.slane %v4528_v13, 6  ;;  %v2921_v48 = vshrl.u32 %v10745_v55, 16 }
  0xae   : > { %4339 = vst.msk [vmem:[#allocation2] sm:$0xf] %vm15205_vm12, %v4216_v54  ;;  %2377 = vrot.lane.b32.xlu1 %v2079_v2, %s15213_s29  ;;  %2623 = vrot.lane.b32.xlu0 %v2533_v52, %s15272_s20  ;;  %v568_v2 = vshll.u32 %v448_v31, 16  ;;  %v4521_v52 = vor.u32 %v4520_v63, %v4517_v43  ;;  %v567_v25 = vrot.slane %v565_v39, 6  ;;  %v1102_v10 = vrot.slane %v994_v16, 7 }
  0xaf   : > { %v562_v60 = vsel %vm10478_vm3, %v553_v56, %v561_v51  ;;  %v563_v61 = vrot.slane %v561_v51, 4  ;;  %v10849_v55 = vrot.slane %v1501_v9, 7  ;;  %v1510_v46 = vshrl.u32 %v10827_v17, 16  ;;  %v2784_v63 = vld [vmem:[%s10167_s19 + $0x38] sm:$0xf] }
  0xb0   : > { %v4218_v22 = vpop.permute.xlu1 %4217  ;;  %v4835_v14 = vpop.permute.xlu0 %4834  ;;  %v570_v49 = vrot.slane %v568_v2, 7  ;;  %947 = vst.msk [vmem:[#allocation2 + $0x18] sm:$0xf] %vm15224_vm1, %v562_v60  ;;  %v4522_v19 = vsel %vm10278_vm14, %v4513_v58, %v4521_v52  ;;  %v2082_v45 = vshrl.u32 %v10833_v50, 16  ;;  %v1104_v29 = vrot.slane %v1102_v10, 4 }
  0xb1   : > { %4340 = vst.msk [vmem:[#allocation2 + $0x4] sm:$0xf] %vm15205_vm12, %v4218_v22  ;;  %v1105_v31 = vrot.slane %v10830_v20, 7  ;;  %v1499_v43 = vrot.slane %v10702_v41, 4  ;;  %v1506_v13 = vor.u32 %v1504_v6, %v10849_v55  ;;  %v10875_v1 = vrot.slane %v1510_v46, 7 }
  0xb2   : > { %4958 = vst.msk [vmem:[#allocation2] sm:$0xf] %vm15230_vm15, %v4835_v14  ;;  %2625 = vrot.lane.b32.xlu1 %v2534_v37, %s15272_s20  ;;  %3242 = vrot.lane.b32.xlu0 %v2910_v59, %s15273_s15  ;;  %v4123_v37 = vsel %vm10259_vm11, %v4121_v28, %v4122_v36  ;;  %v1101_v59 = vrot.slane %v1099_v7, 4  ;;  %v10853_v22 = vor.u32 %v570_v49, %v567_v25  ;;  %v4523_v7 = vrot.slane %v4521_v52, 4  ;;  %v3403_v2 = vld [vmem:[%s10167_s19 + $0x40] sm:$0xf] }
  0xb3   : > { %v10857_v14 = vor.u32 %v4530_v47, %v4527_v33  ;;  %v1513_v23 = vshll.u32 %v10827_v17, 16  ;;  %v2923_v56 = vrot.slane %v2921_v48, 4  ;;  %v2927_v58 = vshll.u32 %v2784_v63, 16  ;;  %v449_v60 = vld [vmem:[%s10167_s19 + $0x24] sm:$0xf] }
  0xb4   : > { %v4837_v32 = vpop.permute.xlu1 %4836  ;;  %v1199_v38 = vpop.permute.xlu0 %1198  ;;  %v572_v5 = vsel %vm10478_vm3, %v563_v61, %v10853_v22  ;;  %v1103_v27 = vsel %vm10175_vm4, %v1101_v59, %v1102_v10  ;;  %v2931_v16 = vshrl.u32 %v2784_v63, 16  ;;  %v3537_v39 = vshrl.u32 %v10770_v42, 16  ;;  %v10913_v48 = vld [vmem:[%s10167_s19 + $0x3c] sm:$0xf] }
  0xb5   : > { %4959 = vst.msk [vmem:[#allocation2 + $0x4] sm:$0xf] %vm15230_vm15, %v4837_v32  ;;  %v2085_v32 = vshll.u32 %v10833_v50, 16  ;;  %v4532_v41 = vsel %vm10278_vm14, %v4523_v7, %v10857_v14  ;;  %v1106_v9 = vsel %vm10175_vm4, %v1104_v29, %v1105_v31  ;;  %v1508_v17 = vrot.slane %v10849_v55, 4  ;;  %v450_v29 = vld [vmem:[%s10167_s19 + $0x28] sm:$0xf] }
  0xb6   : > { %1320 = vst.msk [vmem:[#allocation2 + $0x8] sm:$0xf] %vm15204_vm10, %v1199_v38  ;;  %3244 = vrot.lane.b32.xlu1 %v2920_v18, %s15273_s15  ;;  %3858 = vrot.lane.b32.xlu0 %v3526_v62, %s15228_s16  ;;  %v1956_v62 = vld [vmem:[%s10167_s19 + $0x38] sm:$0xf]  ;;  %v2084_v38 = vrot.slane %v2082_v45, 7  ;;  %v1515_v42 = vor.u32 %v1513_v23, %v10875_v1  ;;  %v1507_v52 = vsel %vm10193_vm7, %v1499_v43, %v1506_v13  ;;  %v2933_v50 = vrot.slane %v2931_v16, 4 }
  0xb7   : > { %948 = vst.msk [vmem:[#allocation2 + $0x1c] sm:$0xf] %vm15224_vm1, %v572_v5  ;;  %v2094_v51 = vshll.u32 %v1956_v62, 16  ;;  %v2924_v47 = vor.u32 %v2923_v56, %v10781_v57  ;;  %v3539_v61 = vrot.slane %v3537_v39, 4  ;;  %v3543_v49 = vshll.u32 %v3403_v2, 16 }
  0xb8   : > { %v1201_v54 = vpop.permute.xlu1 %1200  ;;  %v1783_v40 = vpop.permute.xlu0 %1782  ;;  %v1516_v57 = vsel %vm10193_vm7, %v1508_v17, %v1515_v42  ;;  %v2089_v10 = vrot.slane %v2084_v38, 4  ;;  %v575_v7 = vshrl.u32 %v449_v60, 16  ;;  %v578_v45 = vshll.u32 %v449_v60, 16  ;;  %v2536_v39 = vld [vmem:[%s10167_s19 + $0x38] sm:$0xf] }
  0xb9   : > { %1321 = vst.msk [vmem:[#allocation2 + $0xc] sm:$0xf] %vm15204_vm10, %v1201_v54  ;;  %vm15220_vm10 = vcmask 588800   ;;  %v2925_v6 = vrot.slane %v2924_v47, 4  ;;  %v10924_v5 = vrot.slane %v3543_v49, 5  ;;  %v573_v63 = vrot.slane %v10853_v22, 4 }
  0xba   : > { %1904 = vst.msk [vmem:[#allocation2 + $0x8] sm:$0xf] %vm15222_vm13, %v1783_v40  ;;  %3860 = vrot.lane.b32.xlu1 %v3536_v26, %s15228_s16  ;;  %4231 = vrot.lane.b32.xlu0 %v4120_v15, %s15226_s17  ;;  %v2091_v15 = vshrl.u32 %v1956_v62, 16  ;;  %v2080_v26 = vrot.slane %v10737_v44, 4  ;;  %v2087_v44 = vor.u32 %v2085_v32, %v2084_v38  ;;  %v10903_v40 = vrot.slane %v2927_v58, 5 }
  0xbb   : > { %v3540_v62 = vor.u32 %v3539_v61, %v10799_v11  ;;  %v577_v13 = vrot.slane %v575_v7, 6  ;;  %v580_v23 = vrot.slane %v578_v45, 7  ;;  %v588_v16 = vshll.u32 %v450_v29, 16  ;;  %v4019_v17 = vld [vmem:[%s10167_s19 + $0x40] sm:$0xf] }
  0xbc   : > { %v1785_v12 = vpop.permute.xlu1 %1784  ;;  %v2364_v18 = vpop.permute.xlu0 %2363  ;;  %v9835_v30 = vld [vmem:[#allocation2] sm:$0xff]   ;;  %v10900_v33 = vrot.slane %v2091_v15, 7  ;;  %v2088_v59 = vsel %vm10193_vm7, %v2080_v26, %v2087_v44  ;;  %v2930_v15 = vsel %vm10234_vm8, %v2925_v6, %v10903_v40  ;;  %v4124_v60 = vrot.slane %v4122_v36, 4 }
  0xbd   : > { %1905 = vst.msk [vmem:[#allocation2 + $0xc] sm:$0xf] %vm15222_vm13, %v1785_v12  ;;  %9601 = vmatmul.mubr.msk.bf16.vlgmr.msra.gmra.mrb[0].mxu0 %vm15220_vm10, %v9835_v30  ;;  %v2535_v12 = vld [vmem:[%s10167_s19 + $0x34] sm:$0xf]  ;;  %v2937_v30 = vshll.u32 %v10913_v48, 16  ;;  %v581_v56 = vor.u32 %v580_v23, %v577_v13  ;;  %v3541_v58 = vrot.slane %v3540_v62, 4 }
  0xbe   : > { %2485 = vst.msk [vmem:[#allocation2 + $0x8] sm:$0xf] %vm15221_vm0, %v2364_v18  ;;  %4233 = vrot.lane.b32.xlu1 %v4123_v37, %s15226_s17  ;;  %4850 = vrot.lane.b32.xlu0 %v4522_v19, %s15215_s18  ;;  %v3547_v37 = vshrl.u32 %v3403_v2, 16  ;;  %v2096_v55 = vor.u32 %v2094_v51, %v10900_v33  ;;  %v2934_v18 = vor.u32 %v2933_v50, %v10903_v40  ;;  %v4393_v44 = vld [vmem:[%s10167_s19 + $0x44] sm:$0xf]  ;;  %v4125_v61 = vrot.slane %v4019_v17, 5 }
  0xbf   : > { %9604 = vmatprep.mubr.msk.bf16.mxu0 %vm15217_vm9, %v15247_v8  ;;  %v582_v42 = vsel %vm10478_vm3, %v573_v63, %v581_v56  ;;  %v583_v47 = vrot.slane %v581_v56, 4  ;;  %v4545_v3 = vshrl.u32 %v4393_v44, 16  ;;  %v4548_v6 = vshll.u32 %v4393_v44, 16  ;;  %v10989_v13 = vld [vmem:[%s10167_s19 + $0x3c] sm:$0xf] }
  0xc0   : > { %v2366_v35 = vpop.permute.xlu1 %2365  ;;  %v2612_v28 = vpop.permute.xlu0 %2611  ;;  %v3549_v43 = vrot.slane %v3547_v37, 4  ;;  %v2097_v32 = vsel %vm10193_vm7, %v2089_v10, %v2096_v55  ;;  %v2935_v22 = vrot.slane %v2934_v18, 4  ;;  %949 = vst.msk [vmem:[#allocation2 + $0x20] sm:$0xf] %vm15224_vm1, %v582_v42  ;;  %v10970_v10 = vld [vmem:[%s10167_s19 + $0x44] sm:$0xf] }
  0xc1   : > { %2486 = vst.msk [vmem:[#allocation2 + $0xc] sm:$0xf] %vm15221_vm0, %v2366_v35  ;;  %v585_v35 = vshrl.u32 %v450_v29, 16  ;;  %v2941_v18 = vshrl.u32 %v10913_v48, 16  ;;  %v4128_v62 = vrot.slane %v10970_v10, 5  ;;  %v4126_v29 = vsel %vm10259_vm11, %v4124_v60, %v4125_v61 }
  0xc2   : > { %2733 = vst.msk [vmem:[#allocation2 + $0x8] sm:$0xf] %vm15219_vm6, %v2612_v28  ;;  %4852 = vrot.lane.b32.xlu1 %v4532_v41, %s15215_s18  ;;  %1214 = vrot.lane.b32.xlu0 %v1103_v27, %s15209_s26  ;;  %v10927_v27 = vld [vmem:[%s10167_s19 + $0x44] sm:$0xf]  ;;  %v4392_v41 = vld [vmem:[%s10167_s19 + $0x40] sm:$0xf]  ;;  %v3550_v26 = vor.u32 %v3549_v43, %v10924_v5 }
  0xc3   : > { %v10941_v28 = vrot.slane %v2937_v30, 5  ;;  %v587_v51 = vrot.slane %v585_v35, 6  ;;  %v4535_v2 = vshrl.u32 %v4392_v41, 16  ;;  %v4127_v30 = vrot.slane %v4125_v61, 4  ;;  %v2786_v60 = vld [vmem:[%s10167_s19 + $0x40] sm:$0xf] }
  0xc4   : > { %v2614_v25 = vpop.permute.xlu1 %2613  ;;  %v3231_v54 = vpop.permute.xlu0 %3230  ;;  %v3551_v37 = vrot.slane %v3550_v26, 4  ;;  %v4533_v43 = vrot.slane %v10857_v14, 4  ;;  %v10994_v56 = vrot.slane %v2941_v18, 4  ;;  %v2100_v26 = vshrl.u32 %v10989_v13, 16  ;;  %v452_v18 = vld [vmem:[%s10167_s19 + $0x30] sm:$0xf] }
  0xc5   : > { %2734 = vst.msk [vmem:[#allocation2 + $0xc] sm:$0xf] %vm15219_vm6, %v2614_v25  ;;  %v590_v25 = vrot.slane %v588_v16, 7  ;;  %v2940_v50 = vsel %vm10234_vm8, %v2935_v22, %v10941_v28  ;;  %v4537_v36 = vrot.slane %v4535_v2, 5  ;;  %v4129_v14 = vsel %vm10259_vm11, %v4127_v30, %v4128_v62  ;;  %v11003_v22 = vld [vmem:[%s10167_s19 + $0x38] sm:$0xf] }
  0xc6   : > { %3352 = vst.msk [vmem:[#allocation2 + $0x8] sm:$0xf] %vm15212_vm2, %v3231_v54  ;;  %1216 = vrot.lane.b32.xlu1 %v1106_v9, %s15209_s26  ;;  %1798 = vrot.lane.b32.xlu0 %v1507_v52, %s15207_s28  ;;  %v3553_v9 = vshll.u32 %v10927_v27, 16  ;;  %v4538_v52 = vshll.u32 %v4392_v41, 16  ;;  %v4550_v41 = vrot.slane %v4548_v6, 6  ;;  %v3557_v6 = vshrl.u32 %v10927_v27, 16 }
  0xc7   : > { %v10960_v49 = vor.u32 %v590_v25, %v587_v51  ;;  %v11017_v2 = vld [vmem:[%s10167_s19 + $0x40] sm:$0xf] }
  0xc8   : > { %v3233_v46 = vpop.permute.xlu1 %3232  ;;  %v3847_v19 = vpop.permute.xlu0 %3846  ;;  %v4540_v55 = vrot.slane %v4538_v52, 6  ;;  %v2112_v30 = vshll.u32 %v11017_v2, 16 }
  0xc9   : > { %3353 = vst.msk [vmem:[#allocation2 + $0xc] sm:$0xf] %vm15212_vm2, %v3233_v46  ;;  %v1373_v46 = vld [vmem:[%s10167_s19 + $0x34] sm:$0xf]  ;;  %v593_v27 = vrot.slane %v10960_v49, 4 }
  0xca   : > { %3968 = vst.msk [vmem:[#allocation2 + $0x8] sm:$0xf] %vm15211_vm5, %v3847_v19  ;;  %1800 = vrot.lane.b32.xlu1 %v1516_v57, %s15207_s28  ;;  %2379 = vrot.lane.b32.xlu0 %v2088_v59, %s15213_s29  ;;  %v3546_v57 = vsel %vm10234_vm8, %v3541_v58, %v10924_v5  ;;  %v10967_v59 = vrot.slane %v3553_v9, 5  ;;  %v592_v19 = vsel %vm10478_vm3, %v583_v47, %v10960_v49  ;;  %v1374_v5 = vld [vmem:[%s10167_s19 + $0x38] sm:$0xf]  ;;  %v1519_v63 = vshrl.u32 %v1373_v46, 16 }
  0xcb   : > { %950 = vst.msk [vmem:[#allocation2 + $0x24] sm:$0xf] %vm15224_vm1, %v592_v19  ;;  %v4541_v23 = vor.u32 %v4540_v55, %v4537_v36  ;;  %v1107_v58 = vrot.slane %v1105_v31, 4  ;;  %v1531_v51 = vshll.u32 %v1374_v5, 16  ;;  %v451_v31 = vld [vmem:[%s10167_s19 + $0x2c] sm:$0xf] }
  0xcc   : > { %v3849_v11 = vpop.permute.xlu1 %3848  ;;  %v4220_v38 = vpop.permute.xlu0 %4219  ;;  %v3556_v48 = vsel %vm10234_vm8, %v3551_v37, %v10967_v59  ;;  %v11009_v16 = vrot.slane %v1519_v63, 7  ;;  %v2109_v37 = vshrl.u32 %v11017_v2, 16  ;;  %v595_v36 = vshrl.u32 %v451_v31, 16 }
  0xcd   : > { %3969 = vst.msk [vmem:[#allocation2 + $0xc] sm:$0xf] %vm15211_vm5, %v3849_v11  ;;  %v4542_v9 = vsel %vm10278_vm14, %v4533_v43, %v4541_v23  ;;  %v4543_v17 = vrot.slane %v4541_v23, 4  ;;  %v598_v55 = vshll.u32 %v451_v31, 16  ;;  %v2951_v49 = vshrl.u32 %v2786_v60, 16 }
  0xce   : > { %4341 = vst.msk [vmem:[#allocation2 + $0x8] sm:$0xf] %vm15205_vm12, %v4220_v38  ;;  %2381 = vrot.lane.b32.xlu1 %v2097_v32, %s15213_s29  ;;  %2627 = vrot.lane.b32.xlu0 %v2535_v12, %s15272_s20  ;;  %v996_v12 = vld [vmem:[%s10167_s19 + $0x34] sm:$0xf]  ;;  %v4547_v32 = vrot.slane %v4545_v3, 5  ;;  %v11059_v63 = vrot.slane %v2109_v37, 7 }
  0xcf   : > { %v1108_v35 = vrot.slane %v996_v12, 7  ;;  %v2098_v12 = vrot.slane %v10900_v33, 4  ;;  %v3405_v23 = vld [vmem:[%s10167_s19 + $0x48] sm:$0xf] }
  0xd0   : > { %v4222_v54 = vpop.permute.xlu1 %4221  ;;  %v4839_v40 = vpop.permute.xlu0 %4838  ;;  %v11014_v42 = vor.u32 %v4550_v41, %v4547_v32  ;;  %v605_v41 = vshrl.u32 %v452_v18, 16  ;;  %v2114_v2 = vor.u32 %v2112_v30, %v11059_v63 }
  0xd1   : > { %4342 = vst.msk [vmem:[#allocation2 + $0xc] sm:$0xf] %vm15205_vm12, %v4222_v54  ;;  %vm15274_vm12 = vcmask 126016   ;;  %v1110_v25 = vrot.slane %v1108_v35, 4  ;;  %v1111_v54 = vrot.slane %v11003_v22, 7  ;;  %v1109_v3 = vsel %vm10175_vm4, %v1107_v58, %v1108_v35 }
  0xd2   : > { %4960 = vst.msk [vmem:[#allocation2 + $0x8] sm:$0xf] %vm15230_vm15, %v4839_v40  ;;  %2629 = vrot.lane.b32.xlu1 %v2536_v39, %s15272_s20  ;;  %3246 = vrot.lane.b32.xlu0 %v2930_v15, %s15273_s15  ;;  %v1528_v15 = vshrl.u32 %v1374_v5, 16  ;;  %v1522_v39 = vshll.u32 %v1373_v46, 16  ;;  %v1517_v40 = vrot.slane %v10875_v1, 4  ;;  %v4552_v1 = vsel %vm10278_vm14, %v4543_v17, %v11014_v42 }
  0xd3   : > { %v597_v5 = vrot.slane %v595_v36, 6  ;;  %v1112_v33 = vsel %vm10175_vm4, %v1110_v25, %v1111_v54  ;;  %v608_v35 = vshll.u32 %v452_v18, 16  ;;  %v2537_v36 = vld [vmem:[%s10167_s19 + $0x3c] sm:$0xf] }
  0xd4   : > { %v4841_v7 = vpop.permute.xlu1 %4840  ;;  %v1203_v45 = vpop.permute.xlu0 %1202  ;;  %v11019_v20 = vrot.slane %v1528_v15, 7  ;;  %v1524_v61 = vor.u32 %v1522_v39, %v11009_v16 }
  0xd5   : > { %4961 = vst.msk [vmem:[#allocation2 + $0xc] sm:$0xf] %vm15230_vm15, %v4841_v7  ;;  %v1526_v7 = vrot.slane %v11009_v16, 4  ;;  %v610_v17 = vrot.slane %v608_v35, 7  ;;  %v998_v35 = vld [vmem:[%s10167_s19 + $0x3c] sm:$0xf] }
  0xd6   : > { %1322 = vst.msk [vmem:[#allocation2 + $0x10] sm:$0xf] %vm15274_vm12, %v1203_v45  ;;  %3248 = vrot.lane.b32.xlu1 %v2940_v50, %s15273_s15  ;;  %3862 = vrot.lane.b32.xlu0 %v3546_v57, %s15228_s16  ;;  %v2103_v50 = vshll.u32 %v10989_v13, 16  ;;  %v11031_v57 = vrot.slane %v2100_v26, 7  ;;  %v1533_v45 = vor.u32 %v1531_v51, %v11019_v20  ;;  %v1525_v43 = vsel %vm10193_vm7, %v1517_v40, %v1524_v61 }
  0xd7   : > { %v2947_v13 = vshll.u32 %v2786_v60, 16  ;;  %v607_v26 = vrot.slane %v605_v41, 6 }
  0xd8   : > { %v1205_v11 = vpop.permute.xlu1 %1204  ;;  %v1787_v38 = vpop.permute.xlu0 %1786  ;;  %v1534_v58 = vsel %vm10193_vm7, %v1526_v7, %v1533_v45  ;;  %v2107_v16 = vrot.slane %v11031_v57, 4  ;;  %v4394_v7 = vld [vmem:[%s10167_s19 + $0x48] sm:$0xf] }
  0xd9   : > { %1323 = vst.msk [vmem:[#allocation2 + $0x14] sm:$0xf] %vm15274_vm12, %v1205_v11  ;;  %v2944_v11 = vor.u32 %v10994_v56, %v10941_v28  ;;  %v3563_v28 = vshll.u32 %v3405_v23, 16  ;;  %v3567_v56 = vshrl.u32 %v3405_v23, 16  ;;  %v11081_v40 = vor.u32 %v610_v17, %v607_v26  ;;  %v4021_v45 = vld [vmem:[%s10167_s19 + $0x48] sm:$0xf] }
  0xda   : > { %1906 = vst.msk [vmem:[#allocation2 + $0x10] sm:$0xf] %vm15222_vm13, %v1787_v38  ;;  %3864 = vrot.lane.b32.xlu1 %v3556_v48, %s15228_s16  ;;  %4235 = vrot.lane.b32.xlu0 %v4126_v29, %s15226_s17  ;;  %v600_v29 = vrot.slane %v598_v55, 7  ;;  %v2105_v48 = vor.u32 %v2103_v50, %v11031_v57  ;;  %v3559_v38 = vrot.slane %v3557_v6, 4  ;;  %v11096_v6 = vld [vmem:[%s10167_s19 + $0x4c] sm:$0xf] }
  0xdb   : > { %v2945_v50 = vrot.slane %v2944_v11, 4  ;;  %v3565_v61 = vrot.slane %v3563_v28, 5  ;;  %v3569_v57 = vrot.slane %v3567_v56, 4  ;;  %vm15275_vm12 = vcmask 519616   ;;  %v11133_v56 = vld [vmem:[%s10167_s19 + $0x40] sm:$0xf] }
  0xdc   : > { %v1789_v52 = vpop.permute.xlu1 %1788  ;;  %v2368_v44 = vpop.permute.xlu0 %2367  ;;  %v9836_v47 = vld [vmem:[#allocation2 + $0x8] sm:$0xff]   ;;  %v601_v32 = vor.u32 %v600_v29, %v597_v5  ;;  %v2106_v51 = vsel %vm10193_vm7, %v2098_v12, %v2105_v48  ;;  %v3573_v30 = vshll.u32 %v11096_v6, 16  ;;  %v2538_v5 = vld [vmem:[%s10167_s19 + $0x40] sm:$0xf]  ;;  %v4131_v23 = vrot.slane %v4021_v45, 5 }
  0xdd   : > { %1907 = vst.msk [vmem:[#allocation2 + $0x14] sm:$0xf] %vm15222_vm13, %v1789_v52  ;;  %9605 = vmatmul.mubr.msk.bf16.gmra.mrb[4].mxu0 %vm15220_vm10, %v9836_v47  ;;  %v2949_v52 = vrot.slane %v2947_v13, 5  ;;  %v2953_v47 = vrot.slane %v2951_v49, 4  ;;  %v3570_v18 = vor.u32 %v3569_v57, %v3565_v61  ;;  %v4558_v13 = vshll.u32 %v4394_v7, 16 }
  0xde   : > { %2487 = vst.msk [vmem:[#allocation2 + $0x10] sm:$0xf] %vm15221_vm0, %v2368_v44  ;;  %4237 = vrot.lane.b32.xlu1 %v4129_v14, %s15226_s17  ;;  %4854 = vrot.lane.b32.xlu0 %v4542_v9, %s15215_s18  ;;  %v602_v39 = vsel %vm10478_vm3, %v593_v27, %v601_v32  ;;  %v603_v9 = vrot.slane %v601_v32, 4  ;;  %v11079_v44 = vld [vmem:[%s10167_s19 + $0x44] sm:$0xf]  ;;  %v613_v45 = vrot.slane %v11081_v40, 4 }
  0xdf   : > { %9608 = vmatprep.mubr.msk.bf16.mxu0 %vm15217_vm9, %v15247_v8  ;;  %951 = vst.msk [vmem:[#allocation2 + $0x28] sm:$0xf] %vm15224_vm1, %v602_v39  ;;  %v2957_v60 = vshll.u32 %v11079_v44, 16  ;;  %v2954_v55 = vor.u32 %v2953_v47, %v2949_v52  ;;  %v4395_v27 = vld [vmem:[%s10167_s19 + $0x4c] sm:$0xf]  ;;  %v4560_v28 = vrot.slane %v4558_v13, 6 }
  0xe0   : > { %v2370_v46 = vpop.permute.xlu1 %2369  ;;  %v2616_v19 = vpop.permute.xlu0 %2615  ;;  %v612_v37 = vsel %vm10478_vm3, %v603_v9, %v11081_v40  ;;  %v11115_v32 = vld [vmem:[%s10167_s19 + $0x4c] sm:$0xf]  ;;  %v4565_v41 = vshrl.u32 %v4395_v27, 16  ;;  %v4568_v11 = vshll.u32 %v4395_v27, 16  ;;  %v453_v9 = vld [vmem:[%s10167_s19 + $0x34] sm:$0xf] }
  0xe1   : > { %2488 = vst.msk [vmem:[#allocation2 + $0x14] sm:$0xf] %vm15221_vm0, %v2370_v46  ;;  %v11107_v12 = vrot.slane %v2957_v60, 5  ;;  %v2955_v29 = vrot.slane %v2954_v55, 4  ;;  %v2961_v10 = vshrl.u32 %v11079_v44, 16  ;;  %v4133_v47 = vrot.slane %v4131_v23, 4 }
  0xe2   : > { %2735 = vst.msk [vmem:[#allocation2 + $0x10] sm:$0xf] %vm15219_vm6, %v2616_v19  ;;  %4856 = vrot.lane.b32.xlu1 %v4552_v1, %s15215_s18  ;;  %1218 = vrot.lane.b32.xlu0 %v1109_v3, %s15209_s26  ;;  %v3560_v1 = vor.u32 %v3559_v38, %v10967_v59  ;;  %v2115_v3 = vsel %vm10193_vm7, %v2107_v16, %v2114_v2  ;;  %v3571_v38 = vrot.slane %v3570_v18, 4  ;;  %v4553_v2 = vrot.slane %v11014_v42, 4  ;;  %v11146_v60 = vld [vmem:[%s10167_s19 + $0x44] sm:$0xf] }
  0xe3   : > { %952 = vst.msk [vmem:[#allocation2 + $0x2c] sm:$0xf] %vm15224_vm1, %v612_v37  ;;  %v2950_v59 = vsel %vm10234_vm8, %v2945_v50, %v2949_v52  ;;  %v2960_v16 = vsel %vm10234_vm8, %v2955_v29, %v11107_v12  ;;  %v11140_v52 = vld [vmem:[%s10167_s19 + $0x40] sm:$0xf]  ;;  %v618_v57 = vshll.u32 %v453_v9, 16 }
  0xe4   : > { %v2618_v15 = vpop.permute.xlu1 %2617  ;;  %v3235_v14 = vpop.permute.xlu0 %3234  ;;  %v454_v55 = vld [vmem:[%s10167_s19 + $0x38] sm:$0xf]  ;;  %v1546_v27 = vshrl.u32 %v11140_v52, 16 }
  0xe5   : > { %2736 = vst.msk [vmem:[#allocation2 + $0x14] sm:$0xf] %vm15219_vm6, %v2618_v15  ;;  %v11119_v15 = vrot.slane %v3573_v30, 5  ;;  %v620_v18 = vrot.slane %v618_v57, 7  ;;  %v1535_v30 = vrot.slane %v11019_v20, 4 }
  0xe6   : > { %3354 = vst.msk [vmem:[#allocation2 + $0x10] sm:$0xf] %vm15212_vm2, %v3235_v14  ;;  %1220 = vrot.lane.b32.xlu1 %v1112_v33, %s15209_s26  ;;  %1802 = vrot.lane.b32.xlu0 %v1525_v43, %s15207_s28  ;;  %v3561_v33 = vrot.slane %v3560_v1, 4  ;;  %v4555_v43 = vshrl.u32 %v4394_v7, 16  ;;  %v4130_v14 = vrot.slane %v4128_v62, 4  ;;  %v4134_v62 = vrot.slane %v11115_v32, 5 }
  0xe7   : > { %v3576_v37 = vsel %vm10234_vm8, %v3571_v38, %v11119_v15  ;;  %v1117_v7 = vrot.slane %v11133_v56, 7 }
  0xe8   : > { %v3237_v31 = vpop.permute.xlu1 %3236  ;;  %v3851_v25 = vpop.permute.xlu0 %3850  ;;  %v3566_v39 = vsel %vm10234_vm8, %v3561_v33, %v3565_v61  ;;  %v4557_v26 = vrot.slane %v4555_v43, 5  ;;  %v4132_v42 = vsel %vm10259_vm11, %v4130_v14, %v4131_v23  ;;  %v615_v61 = vshrl.u32 %v453_v9, 16 }
  0xe9   : > { %3355 = vst.msk [vmem:[#allocation2 + $0x14] sm:$0xf] %vm15212_vm2, %v3237_v31  ;;  %v4567_v31 = vrot.slane %v4565_v41, 5  ;;  %v4135_v40 = vsel %vm10259_vm11, %v4133_v47, %v4134_v62  ;;  %v625_v33 = vshrl.u32 %v454_v55, 16  ;;  %v628_v23 = vshll.u32 %v454_v55, 16 }
  0xea   : > { %3970 = vst.msk [vmem:[#allocation2 + $0x10] sm:$0xf] %vm15211_vm5, %v3851_v25  ;;  %1804 = vrot.lane.b32.xlu1 %v1534_v58, %s15207_s28  ;;  %2383 = vrot.lane.b32.xlu0 %v2106_v51, %s15213_s29  ;;  %v11125_v58 = vld [vmem:[%s10167_s19 + $0x3c] sm:$0xf]  ;;  %v4570_v25 = vrot.slane %v4568_v11, 6  ;;  %v4561_v1 = vor.u32 %v4560_v28, %v4557_v26  ;;  %v1549_v26 = vshll.u32 %v11140_v52, 16 }
  0xeb   : > { %v1537_v50 = vshrl.u32 %v11125_v58, 16  ;;  %v630_v9 = vrot.slane %v628_v23, 7 }
  0xec   : > { %v3853_v46 = vpop.permute.xlu1 %3852  ;;  %v4224_v19 = vpop.permute.xlu0 %4223  ;;  %v4562_v20 = vsel %vm10278_vm14, %v4553_v2, %v4561_v1  ;;  %v4563_v43 = vrot.slane %v4561_v1, 4  ;;  %v11176_v13 = vor.u32 %v4570_v25, %v4567_v31  ;;  %v2121_v2 = vshll.u32 %v11146_v60, 16 }
  0xed   : > { %3971 = vst.msk [vmem:[#allocation2 + $0x14] sm:$0xf] %vm15211_vm5, %v3853_v46  ;;  %v11163_v22 = vrot.slane %v1537_v50, 7 }
  0xee   : > { %4343 = vst.msk [vmem:[#allocation2 + $0x10] sm:$0xf] %vm15275_vm12, %v4224_v19  ;;  %2385 = vrot.lane.b32.xlu1 %v2115_v3, %s15213_s29  ;;  %2631 = vrot.lane.b32.xlu0 %v2537_v36, %s15272_s20  ;;  %v1113_v3 = vrot.slane %v1111_v54, 4  ;;  %v1114_v36 = vrot.slane %v998_v35, 7  ;;  %v1540_v54 = vshll.u32 %v11125_v58, 16  ;;  %v4572_v52 = vsel %vm10278_vm14, %v4563_v43, %v11176_v13 }
  0xf0   : > { %v4226_v48 = vpop.permute.xlu1 %4225  ;;  %v4843_v49 = vpop.permute.xlu0 %4842  ;;  %v1115_v14 = vsel %vm10175_vm4, %v1113_v3, %v1114_v36  ;;  %v1116_v35 = vrot.slane %v1114_v36, 4  ;;  %v1544_v36 = vrot.slane %v11163_v22, 4 }
  0xf1   : > { %4344 = vst.msk [vmem:[#allocation2 + $0x14] sm:$0xf] %vm15275_vm12, %v4226_v48  ;;  %vm15276_vm12 = vcmask 126016   ;;  %v11179_v48 = vld [vmem:[%s10167_s19 + $0x48] sm:$0xf] }
  0xf2   : > { %4962 = vst.msk [vmem:[#allocation2 + $0x10] sm:$0xf] %vm15230_vm15, %v4843_v49  ;;  %2633 = vrot.lane.b32.xlu1 %v2538_v5, %s15272_s20  ;;  %3250 = vrot.lane.b32.xlu0 %v2950_v59, %s15273_s15  ;;  %v617_v59 = vrot.slane %v615_v61, 6  ;;  %v2118_v5 = vshrl.u32 %v11146_v60, 16  ;;  %v2788_v49 = vld [vmem:[%s10167_s19 + $0x48] sm:$0xf]  ;;  %v1118_v60 = vsel %vm10175_vm4, %v1116_v35, %v1117_v7 }
  0xf3   : > { %v2127_v47 = vshrl.u32 %v11179_v48, 16  ;;  %v2967_v31 = vshll.u32 %v2788_v49, 16  ;;  %v2971_v25 = vshrl.u32 %v2788_v49, 16 }
  0xf4   : > { %v4845_v17 = vpop.permute.xlu1 %4844  ;;  %v1207_v51 = vpop.permute.xlu0 %1206  ;;  %v621_v29 = vor.u32 %v620_v18, %v617_v59 }
  0xf5   : > { %4963 = vst.msk [vmem:[#allocation2 + $0x14] sm:$0xf] %vm15230_vm15, %v4845_v17  ;;  %v11193_v17 = vrot.slane %v1546_v27, 7 }
  0xf6   : > { %1324 = vst.msk [vmem:[#allocation2 + $0x18] sm:$0xf] %vm15276_vm12, %v1207_v51  ;;  %3252 = vrot.lane.b32.xlu1 %v2960_v16, %s15273_s15  ;;  %3866 = vrot.lane.b32.xlu0 %v3566_v39, %s15228_s16  ;;  %v622_v58 = vsel %vm10478_vm3, %v613_v45, %v621_v29  ;;  %v627_v16 = vrot.slane %v625_v33, 6  ;;  %v1542_v39 = vor.u32 %v1540_v54, %v11163_v22  ;;  %v623_v28 = vrot.slane %v621_v29, 4  ;;  %v3407_v45 = vld [vmem:[%s10167_s19 + $0x50] sm:$0xf] }
  0xf7   : > { %953 = vst.msk [vmem:[#allocation2 + $0x30] sm:$0xf] %vm15224_vm1, %v622_v58  ;;  %v2120_v51 = vrot.slane %v2118_v5, 7  ;;  %v1551_v55 = vor.u32 %v1549_v26, %v11193_v17  ;;  %v11232_v54 = vld [vmem:[%s10167_s19 + $0x4c] sm:$0xf]  ;;  %v3583_v5 = vshll.u32 %v3407_v45, 16 }
  0xf8   : > { %v1209_v46 = vpop.permute.xlu1 %1208  ;;  %v1791_v19 = vpop.permute.xlu0 %1790  ;;  %v11201_v50 = vor.u32 %v630_v9, %v627_v16  ;;  %v1543_v3 = vsel %vm10193_vm7, %v1535_v30, %v1542_v39  ;;  %v3587_v29 = vshrl.u32 %v3407_v45, 16  ;;  %v4396_v26 = vld [vmem:[%s10167_s19 + $0x50] sm:$0xf] }
  0xf9   : > { %1325 = vst.msk [vmem:[#allocation2 + $0x1c] sm:$0xf] %vm15276_vm12, %v1209_v46  ;;  %v2123_v44 = vor.u32 %v2121_v2, %v2120_v51  ;;  %v11228_v46 = vrot.slane %v2967_v31, 5  ;;  %v1552_v27 = vsel %vm10193_vm7, %v1544_v36, %v1551_v55  ;;  %v3585_v35 = vrot.slane %v3583_v5, 5 }
  0xfa   : > { %1908 = vst.msk [vmem:[#allocation2 + $0x18] sm:$0xf] %vm15222_vm13, %v1791_v19  ;;  %3868 = vrot.lane.b32.xlu1 %v3576_v37, %s15228_s16  ;;  %4239 = vrot.lane.b32.xlu0 %v4132_v42, %s15226_s17  ;;  %v3577_v42 = vshrl.u32 %v11096_v6, 16  ;;  %v2116_v37 = vrot.slane %v11059_v63, 4  ;;  %v2963_v6 = vrot.slane %v2961_v10, 4  ;;  %v632_v1 = vsel %vm10478_vm3, %v623_v28, %v11201_v50 }
  0xfb   : > { %v2130_v63 = vshll.u32 %v11179_v48, 16  ;;  %954 = vst.msk [vmem:[#allocation2 + $0x34] sm:$0xf] %vm15224_vm1, %v632_v1  ;;  %v11226_v10 = vrot.slane %v2127_v47, 7  ;;  %v2973_v19 = vrot.slane %v2971_v25, 4  ;;  %v3589_v58 = vrot.slane %v3587_v29, 4 }
  0xfc   : > { %v1793_v41 = vpop.permute.xlu1 %1792  ;;  %v2372_v11 = vpop.permute.xlu0 %2371  ;;  %v9837_v38 = vld [vmem:[#allocation2 + $0x10] sm:$0xff]   ;;  %v3579_v30 = vrot.slane %v3577_v42, 4  ;;  %v2964_v22 = vor.u32 %v2963_v6, %v11107_v12  ;;  %v2124_v33 = vsel %vm10193_vm7, %v2116_v37, %v2123_v44  ;;  %v2977_v12 = vshll.u32 %v11232_v54, 16  ;;  %v2540_v47 = vld [vmem:[%s10167_s19 + $0x48] sm:$0xf] }
  0xfd   : > { %1909 = vst.msk [vmem:[#allocation2 + $0x1c] sm:$0xf] %vm15222_vm13, %v1793_v41  ;;  %9609 = vmatmul.mubr.msk.bf16.gmra.mrb[8].mxu0 %vm15220_vm10, %v9837_v38  ;;  %v2974_v43 = vor.u32 %v2973_v19, %v11228_v46  ;;  %v11248_v41 = vld [vmem:[%s10167_s19 + $0x54] sm:$0xf]  ;;  %vm15277_vm12 = vcmask 519616   ;;  %v3590_v42 = vor.u32 %v3589_v58, %v3585_v35  ;;  %v4578_v37 = vshll.u32 %v4396_v26, 16 }
  0xfe   : > { %2489 = vst.msk [vmem:[#allocation2 + $0x18] sm:$0xf] %vm15221_vm0, %v2372_v11  ;;  %4241 = vrot.lane.b32.xlu1 %v4135_v40, %s15226_s17  ;;  %4858 = vrot.lane.b32.xlu0 %v4562_v20, %s15215_s18  ;;  %v2125_v40 = vrot.slane %v2120_v51, 4  ;;  %v2132_v20 = vor.u32 %v2130_v63, %v11226_v10  ;;  %v3580_v23 = vor.u32 %v3579_v30, %v11119_v15  ;;  %v2539_v11 = vld [vmem:[%s10167_s19 + $0x44] sm:$0xf]  ;;  %v2965_v38 = vrot.slane %v2964_v22, 4 }
  0xff   : > { %9612 = vmatprep.mubr.msk.bf16.mxu0 %vm15217_vm9, %v15247_v8  ;;  %v2975_v15 = vrot.slane %v2974_v43, 4  ;;  %v11258_v39 = vrot.slane %v2977_v12, 5  ;;  %v3593_v2 = vshll.u32 %v11248_v41, 16  ;;  %v4397_v6 = vld [vmem:[%s10167_s19 + $0x54] sm:$0xf]  ;;  %v633_v1 = vrot.slane %v11201_v50, 4 }
 0x100   : > { %v2374_v61 = vpop.permute.xlu1 %2373  ;;  %v2620_v57 = vpop.permute.xlu0 %2619  ;;  %v2133_v16 = vsel %vm10193_vm7, %v2125_v40, %v2132_v20  ;;  %v3581_v51 = vrot.slane %v3580_v23, 4  ;;  %v2970_v25 = vsel %vm10234_vm8, %v2965_v38, %v11228_v46  ;;  %v4136_v50 = vrot.slane %v4134_v62, 4  ;;  %v11288_v22 = vld [vmem:[%s10167_s19 + $0x54] sm:$0xf]  ;;  %v1377_v12 = vld [vmem:[%s10167_s19 + $0x44] sm:$0xf] }
 0x101   : > { %2490 = vst.msk [vmem:[#allocation2 + $0x1c] sm:$0xf] %vm15221_vm0, %v2374_v61  ;;  %v4023_v61 = vld [vmem:[%s10167_s19 + $0x50] sm:$0xf]  ;;  %v2980_v44 = vsel %vm10234_vm8, %v2975_v15, %v11258_v39  ;;  %v11279_v19 = vrot.slane %v3593_v2, 5  ;;  %v3591_v30 = vrot.slane %v3590_v42, 4 }
 0x102   : > { %2737 = vst.msk [vmem:[#allocation2 + $0x18] sm:$0xf] %vm15219_vm6, %v2620_v57  ;;  %4860 = vrot.lane.b32.xlu1 %v4572_v52, %s15215_s18  ;;  %1222 = vrot.lane.b32.xlu0 %v1115_v14, %s15209_s26  ;;  %v455_v14 = vld [vmem:[%s10167_s19 + $0x3c] sm:$0xf]  ;;  %v4575_v57 = vshrl.u32 %v4396_v26, 16  ;;  %v3586_v46 = vsel %vm10234_vm8, %v3581_v51, %v3585_v35  ;;  %v4137_v45 = vrot.slane %v4023_v61, 5 }
 0x103   : > { %v635_v52 = vshrl.u32 %v455_v14, 16  ;;  %v638_v31 = vshll.u32 %v455_v14, 16  ;;  %v4588_v40 = vshll.u32 %v4397_v6, 16  ;;  %v4573_v38 = vrot.slane %v11176_v13, 4  ;;  %v1378_v14 = vld [vmem:[%s10167_s19 + $0x48] sm:$0xf] }
 0x104   : > { %v2622_v59 = vpop.permute.xlu1 %2621  ;;  %v3239_v18 = vpop.permute.xlu0 %3238  ;;  %v4577_v29 = vrot.slane %v4575_v57, 5  ;;  %v4139_v23 = vrot.slane %v4137_v45, 4  ;;  %v3596_v15 = vsel %vm10234_vm8, %v3591_v30, %v11279_v19  ;;  %v4138_v26 = vsel %vm10259_vm11, %v4136_v50, %v4137_v45 }
 0x105   : > { %2738 = vst.msk [vmem:[#allocation2 + $0x1c] sm:$0xf] %vm15219_vm6, %v2622_v59  ;;  %v640_v36 = vrot.slane %v638_v31, 7  ;;  %v4590_v58 = vrot.slane %v4588_v40, 6  ;;  %v1555_v51 = vshrl.u32 %v1377_v12, 16  ;;  %v1119_v61 = vrot.slane %v1117_v7, 4 }
 0x106   : > { %3356 = vst.msk [vmem:[#allocation2 + $0x18] sm:$0xf] %vm15212_vm2, %v3239_v18  ;;  %1224 = vrot.lane.b32.xlu1 %v1118_v60, %s15209_s26  ;;  %1806 = vrot.lane.b32.xlu0 %v1543_v3, %s15207_s28  ;;  %v456_v60 = vld [vmem:[%s10167_s19 + $0x40] sm:$0xf]  ;;  %v637_v3 = vrot.slane %v635_v52, 6  ;;  %v1567_v7 = vshll.u32 %v1378_v14, 16 }
 0x107   : > { %v645_v18 = vshrl.u32 %v456_v60, 16  ;;  %v648_v5 = vshll.u32 %v456_v60, 16  ;;  %v1558_v60 = vshll.u32 %v1377_v12, 16 }
 0x108   : > { %v3241_v48 = vpop.permute.xlu1 %3240  ;;  %v3855_v49 = vpop.permute.xlu0 %3854  ;;  %v641_v59 = vor.u32 %v640_v36, %v637_v3  ;;  %v11330_v3 = vld [vmem:[%s10167_s19 + $0x48] sm:$0xf]  ;;  %v1557_v36 = vrot.slane %v1555_v51, 7 }
 0x109   : > { %3357 = vst.msk [vmem:[#allocation2 + $0x1c] sm:$0xf] %vm15212_vm2, %v3241_v48  ;;  %v647_v62 = vrot.slane %v645_v18, 6  ;;  %v1123_v30 = vrot.slane %v11330_v3, 7 }
 0x10a   : > { %3972 = vst.msk [vmem:[#allocation2 + $0x18] sm:$0xf] %vm15211_vm5, %v3855_v49  ;;  %1808 = vrot.lane.b32.xlu1 %v1552_v27, %s15207_s28  ;;  %2387 = vrot.lane.b32.xlu0 %v2124_v33, %s15213_s29  ;;  %v4585_v27 = vshrl.u32 %v4397_v6, 16  ;;  %v4580_v33 = vrot.slane %v4578_v37, 6  ;;  %v642_v32 = vsel %vm10478_vm3, %v633_v1, %v641_v59  ;;  %v643_v48 = vrot.slane %v641_v59, 4 }
 0x10b   : > { %955 = vst.msk [vmem:[#allocation2 + $0x38] sm:$0xf] %vm15224_vm1, %v642_v32  ;;  %v650_v49 = vrot.slane %v648_v5, 7  ;;  %v1962_v37 = vld [vmem:[%s10167_s19 + $0x50] sm:$0xf]  ;;  %v1560_v5 = vor.u32 %v1558_v60, %v1557_v36 }
 0x10c   : > { %v3857_v28 = vpop.permute.xlu1 %3856  ;;  %v4228_v9 = vpop.permute.xlu0 %4227  ;;  %v4587_v35 = vrot.slane %v4585_v27, 5  ;;  %v2145_v45 = vshrl.u32 %v1962_v37, 16  ;;  %v2790_v59 = vld [vmem:[%s10167_s19 + $0x50] sm:$0xf]  ;;  %v1553_v27 = vrot.slane %v11193_v17, 4 }
 0x10d   : > { %3973 = vst.msk [vmem:[#allocation2 + $0x1c] sm:$0xf] %vm15211_vm5, %v3857_v28  ;;  %v4581_v28 = vor.u32 %v4580_v33, %v4577_v29 }
 0x10e   : > { %4345 = vst.msk [vmem:[#allocation2 + $0x18] sm:$0xf] %vm15277_vm12, %v4228_v9  ;;  %2389 = vrot.lane.b32.xlu1 %v2133_v16, %s15213_s29  ;;  %2635 = vrot.lane.b32.xlu0 %v2539_v11, %s15272_s20  ;;  %v4140_v11 = vrot.slane %v11288_v22, 5  ;;  %v11301_v16 = vor.u32 %v650_v49, %v647_v62  ;;  %v1000_v9 = vld [vmem:[%s10167_s19 + $0x44] sm:$0xf]  ;;  %v11322_v42 = vor.u32 %v4590_v58, %v4587_v35  ;;  %v2987_v49 = vshll.u32 %v2790_v59, 16 }
 0x10f   : > { %v1120_v57 = vrot.slane %v1000_v9, 7  ;;  %v4582_v6 = vsel %vm10278_vm14, %v4573_v38, %v4581_v28  ;;  %v4583_v1 = vrot.slane %v4581_v28, 4  ;;  %v3597_v38 = vshrl.u32 %v11248_v41, 16  ;;  %v3409_v28 = vld [vmem:[%s10167_s19 + $0x58] sm:$0xf] }
 0x110   : > { %v4230_v55 = vpop.permute.xlu1 %4229  ;;  %v4847_v63 = vpop.permute.xlu0 %4846  ;;  %v652_v52 = vsel %vm10478_vm3, %v643_v48, %v11301_v16  ;;  %v4141_v31 = vsel %vm10259_vm11, %v4139_v23, %v4140_v11  ;;  %v11353_v48 = vrot.slane %v2145_v45, 7  ;;  %v457_v23 = vld [vmem:[%s10167_s19 + $0x44] sm:$0xf]  ;;  %v1561_v58 = vsel %vm10193_vm7, %v1553_v27, %v1560_v5  ;;  %v2541_v45 = vld [vmem:[%s10167_s19 + $0x4c] sm:$0xf] }
 0x111   : > { %4346 = vst.msk [vmem:[#allocation2 + $0x1c] sm:$0xf] %vm15277_vm12, %v4230_v55  ;;  %vm15278_vm12 = vcmask 126016   ;;  %v1121_v18 = vsel %vm10175_vm4, %v1119_v61, %v1120_v57  ;;  %v4592_v40 = vsel %vm10278_vm14, %v4583_v1, %v11322_v42  ;;  %v458_v61 = vld [vmem:[%s10167_s19 + $0x48] sm:$0xf]  ;;  %v3607_v60 = vshrl.u32 %v3409_v28, 16 }
 0x112   : > { %4964 = vst.msk [vmem:[#allocation2 + $0x18] sm:$0xf] %vm15230_vm15, %v4847_v63  ;;  %2637 = vrot.lane.b32.xlu1 %v2540_v47, %s15272_s20  ;;  %3254 = vrot.lane.b32.xlu0 %v2970_v25, %s15273_s15  ;;  %v1961_v47 = vld [vmem:[%s10167_s19 + $0x4c] sm:$0xf]  ;;  %v1564_v25 = vshrl.u32 %v1378_v14, 16  ;;  %v2981_v63 = vshrl.u32 %v11232_v54, 16 }
 0x113   : > { %956 = vst.msk [vmem:[#allocation2 + $0x3c] sm:$0xf] %vm15224_vm1, %v652_v52  ;;  %v2136_v55 = vshrl.u32 %v1961_v47, 16  ;;  %v1122_v54 = vrot.slane %v1120_v57, 4  ;;  %v2139_v33 = vshll.u32 %v1961_v47, 16  ;;  %v2991_v14 = vshrl.u32 %v2790_v59, 16 }
 0x114   : > { %v4849_v20 = vpop.permute.xlu1 %4848  ;;  %v1211_v43 = vpop.permute.xlu0 %1210  ;;  %v11335_v56 = vrot.slane %v1564_v25, 7  ;;  %v2983_v12 = vrot.slane %v2981_v63, 4  ;;  %v655_v47 = vshrl.u32 %v457_v23, 16  ;;  %v658_v25 = vshll.u32 %v457_v23, 16  ;;  %v1380_v22 = vld [vmem:[%s10167_s19 + $0x50] sm:$0xf] }
 0x115   : > { %4965 = vst.msk [vmem:[#allocation2 + $0x1c] sm:$0xf] %vm15230_vm15, %v4849_v20  ;;  %v2138_v29 = vrot.slane %v2136_v55, 7  ;;  %v1562_v20 = vrot.slane %v1557_v36, 4  ;;  %v1124_v35 = vsel %vm10175_vm4, %v1122_v54, %v1123_v30  ;;  %v3603_v57 = vshll.u32 %v3409_v28, 16 }
 0x116   : > { %1326 = vst.msk [vmem:[#allocation2 + $0x20] sm:$0xf] %vm15278_vm12, %v1211_v43  ;;  %3256 = vrot.lane.b32.xlu1 %v2980_v44, %s15273_s15  ;;  %3870 = vrot.lane.b32.xlu0 %v3586_v46, %s15228_s16  ;;  %v2148_v43 = vshll.u32 %v1962_v37, 16  ;;  %v1569_v17 = vor.u32 %v1567_v7, %v11335_v56  ;;  %v657_v37 = vrot.slane %v655_v47, 6  ;;  %v3599_v1 = vrot.slane %v3597_v38, 4 }
 0x117   : > { %v2143_v51 = vrot.slane %v2138_v29, 4  ;;  %v653_v36 = vrot.slane %v11301_v16, 4  ;;  %v660_v55 = vrot.slane %v658_v25, 7  ;;  %v668_v27 = vshll.u32 %v458_v61, 16 }
 0x118   : > { %v1213_v13 = vpop.permute.xlu1 %1212  ;;  %v1795_v2 = vpop.permute.xlu0 %1794  ;;  %v1570_v52 = vsel %vm10193_vm7, %v1562_v20, %v1569_v17  ;;  %v3609_v5 = vrot.slane %v3607_v60, 4  ;;  %v11398_v17 = vld [vmem:[%s10167_s19 + $0x5c] sm:$0xf]  ;;  %v11431_v60 = vld [vmem:[%s10167_s19 + $0x4c] sm:$0xf] }
 0x119   : > { %1327 = vst.msk [vmem:[#allocation2 + $0x24] sm:$0xf] %vm15278_vm12, %v1213_v13  ;;  %v2984_v13 = vor.u32 %v2983_v12, %v11258_v39  ;;  %v2993_v39 = vrot.slane %v2991_v14, 4  ;;  %v661_v54 = vor.u32 %v660_v55, %v657_v37  ;;  %v670_v20 = vrot.slane %v668_v27, 7  ;;  %v11440_v55 = vld [vmem:[%s10167_s19 + $0x4c] sm:$0xf] }
 0x11a   : > { %1910 = vst.msk [vmem:[#allocation2 + $0x20] sm:$0xf] %vm15222_vm13, %v1795_v2  ;;  %3872 = vrot.lane.b32.xlu1 %v3596_v15, %s15228_s16  ;;  %4243 = vrot.lane.b32.xlu0 %v4138_v26, %s15226_s17  ;;  %v2134_v15 = vrot.slane %v11226_v10, 4  ;;  %v2141_v26 = vor.u32 %v2139_v33, %v2138_v29  ;;  %v11369_v2 = vld [vmem:[%s10167_s19 + $0x54] sm:$0xf]  ;;  %v11376_v10 = vrot.slane %v2987_v49, 5  ;;  %v3600_v33 = vor.u32 %v3599_v1, %v11279_v19 }
 0x11b   : > { %v2997_v59 = vshll.u32 %v11369_v2, 16  ;;  %vm15279_vm12 = vcmask 519616   ;;  %v4025_v49 = vld [vmem:[%s10167_s19 + $0x58] sm:$0xf]  ;;  %v1573_v27 = vshrl.u32 %v11440_v55, 16 }
 0x11c   : > { %v1797_v44 = vpop.permute.xlu1 %1796  ;;  %v2376_v46 = vpop.permute.xlu0 %2375  ;;  %v9838_v50 = vld [vmem:[#allocation2 + $0x18] sm:$0xff]   ;;  %v2994_v16 = vor.u32 %v2993_v39, %v11376_v10  ;;  %v3601_v28 = vrot.slane %v3600_v33, 4  ;;  %v1125_v33 = vrot.slane %v1123_v30, 4  ;;  %v1571_v30 = vrot.slane %v11335_v56, 4 }
 0x11d   : > { %1911 = vst.msk [vmem:[#allocation2 + $0x24] sm:$0xf] %vm15222_vm13, %v1797_v44  ;;  %9613 = vmatmul.mubr.msk.bf16.gmra.mrb[12].mxu0 %vm15220_vm10, %v9838_v50  ;;  %v665_v50 = vshrl.u32 %v458_v61, 16  ;;  %v11411_v14 = vrot.slane %v2997_v59, 5 }
 0x11e   : > { %2491 = vst.msk [vmem:[#allocation2 + $0x20] sm:$0xf] %vm15221_vm0, %v2376_v46  ;;  %4245 = vrot.lane.b32.xlu1 %v4141_v31, %s15226_s17  ;;  %4862 = vrot.lane.b32.xlu0 %v4582_v6, %s15215_s18  ;;  %v2150_v31 = vor.u32 %v2148_v43, %v11353_v48  ;;  %v2142_v6 = vsel %vm10193_vm7, %v2134_v15, %v2141_v26  ;;  %v2985_v46 = vrot.slane %v2984_v13, 4  ;;  %v2995_v38 = vrot.slane %v2994_v16, 4  ;;  %v4399_v15 = vld [vmem:[%s10167_s19 + $0x5c] sm:$0xf] }
 0x11f   : > { %9616 = vmatprep.mubr.msk.bf16.mxu0 %vm15217_vm9, %v15247_v8  ;;  %v667_v29 = vrot.slane %v665_v50, 6  ;;  %v2542_v26 = vld [vmem:[%s10167_s19 + $0x50] sm:$0xf]  ;;  %v4608_v25 = vshll.u32 %v4399_v15, 16  ;;  %v11455_v16 = vld [vmem:[%s10167_s19 + $0x54] sm:$0xf] }
 0x120   : > { %v2378_v32 = vpop.permute.xlu1 %2377  ;;  %v2624_v62 = vpop.permute.xlu0 %2623  ;;  %v2151_v7 = vsel %vm10193_vm7, %v2143_v51, %v2150_v31  ;;  %v2990_v19 = vsel %vm10234_vm8, %v2985_v46, %v11376_v10  ;;  %v11423_v31 = vld [vmem:[%s10167_s19 + $0x5c] sm:$0xf]  ;;  %v4605_v10 = vshrl.u32 %v4399_v15, 16  ;;  %v3000_v61 = vsel %vm10234_vm8, %v2995_v38, %v11411_v14 }
 0x121   : > { %2492 = vst.msk [vmem:[#allocation2 + $0x24] sm:$0xf] %vm15221_vm0, %v2378_v32  ;;  %v662_v32 = vsel %vm10478_vm3, %v653_v36, %v661_v54  ;;  %v11407_v23 = vor.u32 %v670_v20, %v667_v29  ;;  %v4142_v36 = vrot.slane %v4140_v11, 4  ;;  %v4146_v50 = vrot.slane %v11423_v31, 5 }
 0x122   : > { %2739 = vst.msk [vmem:[#allocation2 + $0x20] sm:$0xf] %vm15219_vm6, %v2624_v62  ;;  %4864 = vrot.lane.b32.xlu1 %v4592_v40, %s15215_s18  ;;  %1226 = vrot.lane.b32.xlu0 %v1121_v18, %s15209_s26  ;;  %v4398_v18 = vld [vmem:[%s10167_s19 + $0x58] sm:$0xf]  ;;  %v3605_v40 = vrot.slane %v3603_v57, 5  ;;  %v663_v62 = vrot.slane %v661_v54, 4 }
 0x123   : > { %957 = vst.msk [vmem:[#allocation2 + $0x40] sm:$0xf] %vm15224_vm1, %v662_v32  ;;  %v4610_v59 = vrot.slane %v4608_v25, 6  ;;  %v4593_v11 = vrot.slane %v11322_v42, 4  ;;  %v1585_v15 = vshll.u32 %v1380_v22, 16 }
 0x124   : > { %v2626_v9 = vpop.permute.xlu1 %2625  ;;  %v3243_v41 = vpop.permute.xlu0 %3242  ;;  %v672_v51 = vsel %vm10478_vm3, %v663_v62, %v11407_v23  ;;  %v3606_v37 = vsel %vm10234_vm8, %v3601_v28, %v3605_v40  ;;  %v1964_v28 = vld [vmem:[%s10167_s19 + $0x58] sm:$0xf] }
 0x125   : > { %2740 = vst.msk [vmem:[#allocation2 + $0x24] sm:$0xf] %vm15219_vm6, %v2626_v9  ;;  %v3610_v9 = vor.u32 %v3609_v5, %v3605_v40  ;;  %v3001_v40 = vshrl.u32 %v11369_v2, 16  ;;  %v1582_v2 = vshrl.u32 %v1380_v22, 16  ;;  %v2792_v25 = vld [vmem:[%s10167_s19 + $0x58] sm:$0xf] }
 0x126   : > { %3358 = vst.msk [vmem:[#allocation2 + $0x20] sm:$0xf] %vm15212_vm2, %v3243_v41  ;;  %1228 = vrot.lane.b32.xlu1 %v1124_v35, %s15209_s26  ;;  %1810 = vrot.lane.b32.xlu0 %v1561_v58, %s15207_s28  ;;  %v4595_v35 = vshrl.u32 %v4398_v18, 16  ;;  %v4598_v58 = vshll.u32 %v4398_v18, 16  ;;  %v3613_v41 = vshll.u32 %v11398_v17, 16  ;;  %v1126_v18 = vrot.slane %v11431_v60, 7 }
 0x127   : > { %958 = vst.msk [vmem:[#allocation2 + $0x44] sm:$0xf] %vm15224_vm1, %v672_v51  ;;  %v2157_v60 = vshll.u32 %v11455_v16, 16  ;;  %v3003_v22 = vrot.slane %v3001_v40, 4  ;;  %v3617_v40 = vshrl.u32 %v11398_v17, 16 }
 0x128   : > { %v3245_v63 = vpop.permute.xlu1 %3244  ;;  %v3859_v44 = vpop.permute.xlu0 %3858  ;;  %v4597_v39 = vrot.slane %v4595_v35, 5  ;;  %v4600_v57 = vrot.slane %v4598_v58, 6  ;;  %v11435_v1 = vrot.slane %v3613_v41, 5  ;;  %v1128_v3 = vrot.slane %v1126_v18, 4 }
 0x129   : > { %3359 = vst.msk [vmem:[#allocation2 + $0x24] sm:$0xf] %vm15212_vm2, %v3245_v63  ;;  %v1575_v35 = vrot.slane %v1573_v27, 7  ;;  %v1576_v58 = vshll.u32 %v11440_v55, 16 }
 0x12a   : > { %3974 = vst.msk [vmem:[#allocation2 + $0x20] sm:$0xf] %vm15211_vm5, %v3859_v44  ;;  %1812 = vrot.lane.b32.xlu1 %v1570_v52, %s15207_s28  ;;  %2391 = vrot.lane.b32.xlu0 %v2142_v6, %s15213_s29  ;;  %v4143_v52 = vrot.slane %v4025_v49, 5  ;;  %v3611_v6 = vrot.slane %v3610_v9, 4  ;;  %v4601_v54 = vor.u32 %v4600_v57, %v4597_v39  ;;  %v1127_v57 = vsel %vm10175_vm4, %v1125_v33, %v1126_v18 }
 0x12c   : > { %v3861_v43 = vpop.permute.xlu1 %3860  ;;  %v4232_v12 = vpop.permute.xlu0 %4231  ;;  %v4145_v46 = vrot.slane %v4143_v52, 4  ;;  %v3616_v5 = vsel %vm10234_vm8, %v3611_v6, %v11435_v1  ;;  %v4144_v29 = vsel %vm10259_vm11, %v4142_v36, %v4143_v52  ;;  %v4602_v49 = vsel %vm10278_vm14, %v4593_v11, %v4601_v54  ;;  %v460_v52 = vld [vmem:[%s10167_s19 + $0x50] sm:$0xf] }
 0x12d   : > { %3975 = vst.msk [vmem:[#allocation2 + $0x24] sm:$0xf] %vm15211_vm5, %v3861_v43  ;;  %v459_v43 = vld [vmem:[%s10167_s19 + $0x4c] sm:$0xf]  ;;  %v4603_v38 = vrot.slane %v4601_v54, 4  ;;  %v1578_v36 = vor.u32 %v1576_v58, %v1575_v35  ;;  %v685_v55 = vshrl.u32 %v460_v52, 16 }
 0x12e   : > { %4347 = vst.msk [vmem:[#allocation2 + $0x20] sm:$0xf] %vm15279_vm12, %v4232_v12  ;;  %2393 = vrot.lane.b32.xlu1 %v2151_v7, %s15213_s29  ;;  %2639 = vrot.lane.b32.xlu0 %v2541_v45, %s15272_s20  ;;  %v11444_v7 = vld [vmem:[%s10167_s19 + $0x50] sm:$0xf]  ;;  %v4607_v45 = vrot.slane %v4605_v10, 5  ;;  %v4147_v42 = vsel %vm10259_vm11, %v4145_v46, %v4146_v50  ;;  %v675_v56 = vshrl.u32 %v459_v43, 16 }
 0x12f   : > { %v1129_v20 = vrot.slane %v11444_v7, 7  ;;  %v678_v9 = vshll.u32 %v459_v43, 16  ;;  %v1580_v46 = vrot.slane %v1575_v35, 4  ;;  %v688_v18 = vshll.u32 %v460_v52, 16 }
 0x130   : > { %v4234_v13 = vpop.permute.xlu1 %4233  ;;  %v4851_v47 = vpop.permute.xlu0 %4850  ;;  %v11473_v12 = vor.u32 %v4610_v59, %v4607_v45  ;;  %v677_v39 = vrot.slane %v675_v56, 6  ;;  %v2166_v59 = vshll.u32 %v1964_v28, 16  ;;  %v3007_v11 = vshll.u32 %v2792_v25, 16 }
 0x131   : > { %4348 = vst.msk [vmem:[#allocation2 + $0x24] sm:$0xf] %vm15279_vm12, %v4234_v13  ;;  %vm15280_vm12 = vcmask 126016   ;;  %v687_v27 = vrot.slane %v685_v55, 6  ;;  %v690_v33 = vrot.slane %v688_v18, 7 }
 0x132   : > { %4966 = vst.msk [vmem:[#allocation2 + $0x20] sm:$0xf] %vm15230_vm15, %v4851_v47  ;;  %2641 = vrot.lane.b32.xlu1 %v2542_v26, %s15272_s20  ;;  %3258 = vrot.lane.b32.xlu0 %v2990_v19, %s15273_s15  ;;  %v2154_v19 = vshrl.u32 %v11455_v16, 16  ;;  %v2152_v26 = vrot.slane %v11353_v48, 4  ;;  %v11484_v47 = vrot.slane %v1582_v2, 7  ;;  %v680_v48 = vrot.slane %v678_v9, 7 }
 0x133   : > { %v4612_v6 = vsel %vm10278_vm14, %v4603_v38, %v11473_v12  ;;  %v3009_v58 = vrot.slane %v3007_v11, 5  ;;  %v3619_v9 = vrot.slane %v3617_v40, 4  ;;  %v4027_v55 = vld [vmem:[%s10167_s19 + $0x60] sm:$0xf]  ;;  %v4148_v40 = vrot.slane %v4146_v50, 4 }
 0x134   : > { %v4853_v63 = vpop.permute.xlu1 %4852  ;;  %v1215_v44 = vpop.permute.xlu0 %1214  ;;  %v11489_v10 = vrot.slane %v2154_v19, 7  ;;  %v1587_v45 = vor.u32 %v1585_v15, %v11484_v47  ;;  %v3411_v19 = vld [vmem:[%s10167_s19 + $0x60] sm:$0xf] }
 0x135   : > { %4967 = vst.msk [vmem:[#allocation2 + $0x24] sm:$0xf] %vm15230_vm15, %v4853_v63 }
 0x136   : > { %1328 = vst.msk [vmem:[#allocation2 + $0x28] sm:$0xf] %vm15280_vm12, %v1215_v44  ;;  %3260 = vrot.lane.b32.xlu1 %v3000_v61, %s15273_s15  ;;  %3874 = vrot.lane.b32.xlu0 %v3606_v37, %s15228_s16  ;;  %v673_v61 = vrot.slane %v11407_v23, 4  ;;  %v2163_v37 = vshrl.u32 %v1964_v28, 16  ;;  %v681_v23 = vor.u32 %v680_v48, %v677_v39  ;;  %v2159_v16 = vor.u32 %v2157_v60, %v11489_v10  ;;  %v11540_v28 = vld [vmem:[%s10167_s19 + $0x5c] sm:$0xf] }
 0x137   : > { %v1588_v17 = vsel %vm10193_vm7, %v1580_v46, %v1587_v45  ;;  %v2161_v38 = vrot.slane %v11489_v10, 4  ;;  %v3017_v10 = vshll.u32 %v11540_v28, 16  ;;  %v3620_v39 = vor.u32 %v3619_v9, %v11435_v1  ;;  %v4400_v60 = vld [vmem:[%s10167_s19 + $0x60] sm:$0xf]  ;;  %v4401_v45 = vld [vmem:[%s10167_s19 + $0x64] sm:$0xf] }
 0x138   : > { %v1217_v32 = vpop.permute.xlu1 %1216  ;;  %v1799_v62 = vpop.permute.xlu0 %1798  ;;  %v682_v54 = vsel %vm10478_vm3, %v673_v61, %v681_v23  ;;  %v4618_v46 = vshll.u32 %v4400_v60, 16 }
 0x139   : > { %1329 = vst.msk [vmem:[#allocation2 + $0x2c] sm:$0xf] %vm15280_vm12, %v1217_v32  ;;  %v1130_v32 = vsel %vm10175_vm4, %v1128_v3, %v1129_v20  ;;  %v3004_v3 = vor.u32 %v3003_v22, %v11411_v14  ;;  %v3623_v14 = vshll.u32 %v3411_v19, 16  ;;  %vm15281_vm12 = vcmask 519616  }
 0x13a   : > { %1912 = vst.msk [vmem:[#allocation2 + $0x28] sm:$0xf] %vm15222_vm13, %v1799_v62  ;;  %3876 = vrot.lane.b32.xlu1 %v3616_v5, %s15228_s16  ;;  %4247 = vrot.lane.b32.xlu0 %v4144_v29, %s15226_s17  ;;  %v11512_v5 = vrot.slane %v2163_v37, 7  ;;  %v683_v29 = vrot.slane %v681_v23, 4  ;;  %v1579_v62 = vsel %vm10193_vm7, %v1571_v30, %v1578_v36  ;;  %v2160_v30 = vsel %vm10193_vm7, %v2152_v26, %v2159_v16  ;;  %v11554_v36 = vld [vmem:[%s10167_s19 + $0x64] sm:$0xf] }
 0x13b   : > { %959 = vst.msk [vmem:[#allocation2 + $0x48] sm:$0xf] %vm15224_vm1, %v682_v54  ;;  %v3005_v52 = vrot.slane %v3004_v3, 4  ;;  %v3625_v48 = vrot.slane %v3623_v14, 5  ;;  %v2544_v23 = vld [vmem:[%s10167_s19 + $0x58] sm:$0xf] }
 0x13c   : > { %v1801_v41 = vpop.permute.xlu1 %1800  ;;  %v2380_v51 = vpop.permute.xlu0 %2379  ;;  %v9839_v13 = vld [vmem:[#allocation2 + $0x20] sm:$0xff]   ;;  %v2168_v35 = vor.u32 %v2166_v59, %v11512_v5  ;;  %v3621_v18 = vrot.slane %v3620_v39, 4  ;;  %v3633_v11 = vshll.u32 %v11554_v36, 16  ;;  %v461_v54 = vld [vmem:[%s10167_s19 + $0x54] sm:$0xf] }
 0x13d   : > { %1913 = vst.msk [vmem:[#allocation2 + $0x2c] sm:$0xf] %vm15222_vm13, %v1801_v41  ;;  %9617 = vmatmul.mubr.msk.bf16.gmra.mrb[16].mxu0 %vm15220_vm10, %v9839_v13  ;;  %v3627_v41 = vshrl.u32 %v3411_v19, 16  ;;  %v3010_v1 = vsel %vm10234_vm8, %v3005_v52, %v3009_v58  ;;  %v462_v14 = vld [vmem:[%s10167_s19 + $0x58] sm:$0xf] }
 0x13e   : > { %2493 = vst.msk [vmem:[#allocation2 + $0x28] sm:$0xf] %vm15221_vm0, %v2380_v51  ;;  %4249 = vrot.lane.b32.xlu1 %v4147_v42, %s15226_s17  ;;  %4866 = vrot.lane.b32.xlu0 %v4602_v49, %s15215_s18  ;;  %v3011_v42 = vshrl.u32 %v2792_v25, 16  ;;  %v11523_v49 = vor.u32 %v690_v33, %v687_v27  ;;  %v2169_v26 = vsel %vm10193_vm7, %v2161_v38, %v2168_v35  ;;  %v2543_v25 = vld [vmem:[%s10167_s19 + $0x54] sm:$0xf]  ;;  %v695_v33 = vshrl.u32 %v461_v54, 16 }
 0x13f   : > { %9620 = vmatprep.mubr.msk.bf16.mxu0 %vm15217_vm9, %v15247_v8  ;;  %v3626_v31 = vsel %vm10234_vm8, %v3621_v18, %v3625_v48  ;;  %v11583_v3 = vrot.slane %v3633_v11, 5  ;;  %v11623_v18 = vld [vmem:[%s10167_s19 + $0x58] sm:$0xf] }
 0x140   : > { %v2382_v63 = vpop.permute.xlu1 %2381  ;;  %v2628_v44 = vpop.permute.xlu0 %2627  ;;  %v692_v15 = vsel %vm10478_vm3, %v683_v29, %v11523_v49  ;;  %v3013_v56 = vrot.slane %v3011_v42, 4  ;;  %v4149_v29 = vrot.slane %v4027_v55, 5  ;;  %v4628_v42 = vshll.u32 %v4401_v45, 16  ;;  %v1965_v55 = vld [vmem:[%s10167_s19 + $0x5c] sm:$0xf] }
 0x141   : > { %2494 = vst.msk [vmem:[#allocation2 + $0x2c] sm:$0xf] %vm15221_vm0, %v2382_v63  ;;  %v11564_v63 = vrot.slane %v3017_v10, 5  ;;  %v697_v19 = vrot.slane %v695_v33, 6  ;;  %v1004_v10 = vld [vmem:[%s10167_s19 + $0x54] sm:$0xf] }
 0x142   : > { %2741 = vst.msk [vmem:[#allocation2 + $0x28] sm:$0xf] %vm15219_vm6, %v2628_v44  ;;  %4868 = vrot.lane.b32.xlu1 %v4612_v6, %s15215_s18  ;;  %1230 = vrot.lane.b32.xlu0 %v1127_v57, %s15209_s26  ;;  %v3014_v61 = vor.u32 %v3013_v56, %v3009_v58  ;;  %v3629_v57 = vrot.slane %v3627_v41, 4  ;;  %v4615_v44 = vshrl.u32 %v4400_v60, 16  ;;  %v4150_v41 = vsel %vm10259_vm11, %v4148_v40, %v4149_v29 }
 0x143   : > { %960 = vst.msk [vmem:[#allocation2 + $0x4c] sm:$0xf] %vm15224_vm1, %v692_v15  ;;  %v4151_v15 = vrot.slane %v4149_v29, 4  ;;  %v4630_v52 = vrot.slane %v4628_v42, 6  ;;  %v708_v60 = vshll.u32 %v462_v14, 16  ;;  %v3021_v33 = vshrl.u32 %v11540_v28, 16 }
 0x144   : > { %v2630_v2 = vpop.permute.xlu1 %2629  ;;  %v3247_v43 = vpop.permute.xlu0 %3246  ;;  %v3015_v59 = vrot.slane %v3014_v61, 4  ;;  %v3630_v22 = vor.u32 %v3629_v57, %v3625_v48  ;;  %v11604_v57 = vld [vmem:[%s10167_s19 + $0x58] sm:$0xf] }
 0x145   : > { %2742 = vst.msk [vmem:[#allocation2 + $0x2c] sm:$0xf] %vm15219_vm6, %v2630_v2  ;;  %v4617_v2 = vrot.slane %v4615_v44, 5  ;;  %v1132_v44 = vrot.slane %v1004_v10, 7  ;;  %v1600_v11 = vshrl.u32 %v11604_v57, 16 }
 0x146   : > { %3360 = vst.msk [vmem:[#allocation2 + $0x28] sm:$0xf] %vm15212_vm2, %v3247_v43  ;;  %1232 = vrot.lane.b32.xlu1 %v1130_v32, %s15209_s26  ;;  %1814 = vrot.lane.b32.xlu0 %v1579_v62, %s15207_s28  ;;  %v11574_v32 = vld [vmem:[%s10167_s19 + $0x64] sm:$0xf]  ;;  %v4625_v62 = vshrl.u32 %v4401_v45, 16  ;;  %v4620_v43 = vrot.slane %v4618_v46, 6  ;;  %v3020_v38 = vsel %vm10234_vm8, %v3015_v59, %v11564_v63 }
 0x147   : > { %v3631_v50 = vrot.slane %v3630_v22, 4  ;;  %v4152_v56 = vrot.slane %v11574_v32, 5  ;;  %v710_v59 = vrot.slane %v708_v60, 7 }
 0x148   : > { %v3249_v51 = vpop.permute.xlu1 %3248  ;;  %v3863_v13 = vpop.permute.xlu0 %3862 }
 0x149   : > { %3361 = vst.msk [vmem:[#allocation2 + $0x2c] sm:$0xf] %vm15212_vm2, %v3249_v51  ;;  %v4613_v51 = vrot.slane %v11473_v12, 4  ;;  %v3636_v39 = vsel %vm10234_vm8, %v3631_v50, %v11583_v3  ;;  %v705_v12 = vshrl.u32 %v462_v14, 16  ;;  %v11647_v50 = vrot.slane %v1600_v11, 7 }
 0x14a   : > { %3976 = vst.msk [vmem:[#allocation2 + $0x28] sm:$0xf] %vm15211_vm5, %v3863_v13  ;;  %1816 = vrot.lane.b32.xlu1 %v1588_v17, %s15207_s28  ;;  %2395 = vrot.lane.b32.xlu0 %v2160_v30, %s15213_s29  ;;  %v698_v17 = vshll.u32 %v461_v54, 16  ;;  %v11586_v30 = vld [vmem:[%s10167_s19 + $0x54] sm:$0xf]  ;;  %v4627_v13 = vrot.slane %v4625_v62, 5 }
 0x14b   : > { %v1591_v48 = vshrl.u32 %v11586_v30, 16  ;;  %v707_v45 = vrot.slane %v705_v12, 6  ;;  %v1594_v22 = vshll.u32 %v11586_v30, 16  ;;  %v1603_v30 = vshll.u32 %v11604_v57, 16 }
 0x14c   : > { %v3865_v37 = vpop.permute.xlu1 %3864  ;;  %v4236_v6 = vpop.permute.xlu0 %4235  ;;  %v700_v9 = vrot.slane %v698_v17, 7  ;;  %v1589_v17 = vrot.slane %v11484_v47, 4 }
 0x14d   : > { %3977 = vst.msk [vmem:[#allocation2 + $0x2c] sm:$0xf] %vm15211_vm5, %v3865_v37  ;;  %v11629_v29 = vor.u32 %v710_v59, %v707_v45  ;;  %v1605_v10 = vor.u32 %v1603_v30, %v11647_v50  ;;  %v11682_v59 = vld [vmem:[%s10167_s19 + $0x64] sm:$0xf] }
 0x14e   : > { %4349 = vst.msk [vmem:[#allocation2 + $0x28] sm:$0xf] %vm15281_vm12, %v4236_v6  ;;  %2397 = vrot.lane.b32.xlu1 %v2169_v26, %s15213_s29  ;;  %2643 = vrot.lane.b32.xlu0 %v2543_v25, %s15272_s20  ;;  %v4621_v26 = vor.u32 %v4620_v43, %v4617_v2  ;;  %v693_v25 = vrot.slane %v11523_v49, 4  ;;  %v701_v61 = vor.u32 %v700_v9, %v697_v19  ;;  %v1131_v49 = vrot.slane %v1129_v20, 4  ;;  %v1966_v2 = vld [vmem:[%s10167_s19 + $0x60] sm:$0xf] }
 0x14f   : > { %v11620_v20 = vor.u32 %v4630_v52, %v4627_v13  ;;  %v1134_v43 = vrot.slane %v1132_v44, 4  ;;  %v1135_v19 = vrot.slane %v11623_v18, 7  ;;  %v2794_v9 = vld [vmem:[%s10167_s19 + $0x60] sm:$0xf]  ;;  %v2170_v52 = vrot.slane %v11512_v5, 4 }
 0x150   : > { %v4238_v27 = vpop.permute.xlu1 %4237  ;;  %v4855_v16 = vpop.permute.xlu0 %4854  ;;  %v703_v46 = vrot.slane %v701_v61, 4  ;;  %v4623_v7 = vrot.slane %v4621_v26, 4  ;;  %v4622_v54 = vsel %vm10278_vm14, %v4613_v51, %v4621_v26  ;;  %v3637_v51 = vshrl.u32 %v11554_v36, 16 }
 0x151   : > { %4350 = vst.msk [vmem:[#allocation2 + $0x2c] sm:$0xf] %vm15281_vm12, %v4238_v27  ;;  %vm15282_vm12 = vcmask 126016   ;;  %v1593_v27 = vrot.slane %v1591_v48, 7  ;;  %v1136_v13 = vsel %vm10175_vm4, %v1134_v43, %v1135_v19  ;;  %v3023_v36 = vrot.slane %v3021_v33, 4 }
 0x152   : > { %4968 = vst.msk [vmem:[#allocation2 + $0x28] sm:$0xf] %vm15230_vm15, %v4855_v16  ;;  %2645 = vrot.lane.b32.xlu1 %v2544_v23, %s15272_s20  ;;  %3262 = vrot.lane.b32.xlu0 %v3010_v1, %s15273_s15  ;;  %v4153_v23 = vsel %vm10259_vm11, %v4151_v15, %v4152_v56  ;;  %v702_v1 = vsel %vm10478_vm3, %v693_v25, %v701_v61  ;;  %v2172_v16 = vshrl.u32 %v1965_v55, 16  ;;  %v2181_v15 = vshrl.u32 %v1966_v2, 16 }
 0x153   : > { %961 = vst.msk [vmem:[#allocation2 + $0x50] sm:$0xf] %vm15224_vm1, %v702_v1  ;;  %v4632_v28 = vsel %vm10278_vm14, %v4623_v7, %v11620_v20  ;;  %v1596_v47 = vor.u32 %v1594_v22, %v1593_v27  ;;  %v1598_v26 = vrot.slane %v1593_v27, 4  ;;  %v2184_v25 = vshll.u32 %v1966_v2, 16 }
 0x154   : > { %v4857_v35 = vpop.permute.xlu1 %4856  ;;  %v1219_v58 = vpop.permute.xlu0 %1218  ;;  %v3027_v61 = vshll.u32 %v2794_v9, 16  ;;  %v11669_v12 = vrot.slane %v2181_v15, 7  ;;  %v3031_v60 = vshrl.u32 %v2794_v9, 16  ;;  %v3024_v1 = vor.u32 %v3023_v36, %v11564_v63  ;;  %v4403_v15 = vld [vmem:[%s10167_s19 + $0x6c] sm:$0xf] }
 0x155   : > { %4969 = vst.msk [vmem:[#allocation2 + $0x2c] sm:$0xf] %vm15230_vm15, %v4857_v35  ;;  %v2174_v35 = vrot.slane %v2172_v16, 7  ;;  %v1597_v48 = vsel %vm10193_vm7, %v1589_v17, %v1596_v47  ;;  %v3639_v22 = vrot.slane %v3637_v51, 4  ;;  %v3037_v33 = vshll.u32 %v11682_v59, 16 }
 0x156   : > { %1330 = vst.msk [vmem:[#allocation2 + $0x30] sm:$0xf] %vm15282_vm12, %v1219_v58  ;;  %3264 = vrot.lane.b32.xlu1 %v3020_v38, %s15273_s15  ;;  %3878 = vrot.lane.b32.xlu0 %v3626_v31, %s15228_s16  ;;  %v712_v38 = vsel %vm10478_vm3, %v703_v46, %v11629_v29  ;;  %v1133_v31 = vsel %vm10175_vm4, %v1131_v49, %v1132_v44  ;;  %v2175_v58 = vshll.u32 %v1965_v55, 16  ;;  %v3029_v44 = vrot.slane %v3027_v61, 5 }
 0x157   : > { %962 = vst.msk [vmem:[#allocation2 + $0x54] sm:$0xf] %vm15224_vm1, %v712_v38  ;;  %v1606_v49 = vsel %vm10193_vm7, %v1598_v26, %v1605_v10  ;;  %v2179_v55 = vrot.slane %v2174_v35, 4  ;;  %v2186_v45 = vor.u32 %v2184_v25, %v11669_v12  ;;  %v3033_v7 = vrot.slane %v3031_v60, 4 }
 0x158   : > { %v1221_v37 = vpop.permute.xlu1 %1220  ;;  %v1803_v6 = vpop.permute.xlu0 %1802  ;;  %v2177_v57 = vor.u32 %v2175_v58, %v2174_v35  ;;  %v3025_v16 = vrot.slane %v3024_v1, 4  ;;  %v3640_v43 = vor.u32 %v3639_v22, %v11583_v3  ;;  %v11708_v35 = vrot.slane %v3037_v33, 5  ;;  %v4029_v58 = vld [vmem:[%s10167_s19 + $0x68] sm:$0xf] }
 0x159   : > { %1331 = vst.msk [vmem:[#allocation2 + $0x34] sm:$0xf] %vm15282_vm12, %v1221_v37  ;;  %v3034_v2 = vor.u32 %v3033_v7, %v3029_v44  ;;  %vm15283_vm12 = vcmask 519616   ;;  %v4645_v60 = vshrl.u32 %v4403_v15, 16  ;;  %v11734_v7 = vld [vmem:[%s10167_s19 + $0x5c] sm:$0xf] }
 0x15a   : > { %1914 = vst.msk [vmem:[#allocation2 + $0x30] sm:$0xf] %vm15222_vm13, %v1803_v6  ;;  %3880 = vrot.lane.b32.xlu1 %v3636_v39, %s15228_s16  ;;  %4251 = vrot.lane.b32.xlu0 %v4150_v41, %s15226_s17  ;;  %v3413_v39 = vld [vmem:[%s10167_s19 + $0x68] sm:$0xf]  ;;  %v2178_v46 = vsel %vm10193_vm7, %v2170_v52, %v2177_v57  ;;  %v3030_v3 = vsel %vm10234_vm8, %v3025_v16, %v3029_v44  ;;  %v11720_v57 = vld [vmem:[%s10167_s19 + $0x6c] sm:$0xf] }
 0x15b   : > { %v3643_v6 = vshll.u32 %v3413_v39, 16  ;;  %v3035_v9 = vrot.slane %v3034_v2, 4  ;;  %v1006_v16 = vld [vmem:[%s10167_s19 + $0x5c] sm:$0xf]  ;;  %v713_v2 = vrot.slane %v11629_v29, 4 }
 0x15c   : > { %v1805_v40 = vpop.permute.xlu1 %1804  ;;  %v2384_v62 = vpop.permute.xlu0 %2383  ;;  %v9840_v42 = vld [vmem:[#allocation2 + $0x28] sm:$0xff]  }
 0x15d   : > { %1915 = vst.msk [vmem:[#allocation2 + $0x34] sm:$0xf] %vm15222_vm13, %v1805_v40  ;;  %9621 = vmatmul.mubr.msk.bf16.gmra.mrb[20].mxu0 %vm15220_vm10, %v9840_v42  ;;  %v11686_v63 = vrot.slane %v3643_v6, 5  ;;  %v11692_v40 = vld [vmem:[%s10167_s19 + $0x6c] sm:$0xf] }
 0x15e   : > { %2495 = vst.msk [vmem:[#allocation2 + $0x30] sm:$0xf] %vm15221_vm0, %v2384_v62  ;;  %4253 = vrot.lane.b32.xlu1 %v4153_v23, %s15226_s17  ;;  %4870 = vrot.lane.b32.xlu0 %v4622_v54, %s15215_s18  ;;  %v3647_v23 = vshrl.u32 %v3413_v39, 16  ;;  %v2187_v62 = vsel %vm10193_vm7, %v2179_v55, %v2186_v45  ;;  %v2545_v42 = vld [vmem:[%s10167_s19 + $0x5c] sm:$0xf]  ;;  %v3653_v47 = vshll.u32 %v11692_v40, 16 }
 0x15f   : > { %9624 = vmatprep.mubr.msk.bf16.mxu0 %vm15217_vm9, %v15247_v8  ;;  %v4154_v39 = vrot.slane %v4152_v56, 4  ;;  %v464_v55 = vld [vmem:[%s10167_s19 + $0x60] sm:$0xf]  ;;  %v4633_v45 = vrot.slane %v11620_v20, 4  ;;  %v4647_v20 = vrot.slane %v4645_v60, 5 }
 0x160   : > { %v2386_v14 = vpop.permute.xlu1 %2385  ;;  %v2632_v41 = vpop.permute.xlu0 %2631  ;;  %v3649_v27 = vrot.slane %v3647_v23, 4  ;;  %v11715_v61 = vrot.slane %v3653_v47, 5  ;;  %v3040_v23 = vsel %vm10234_vm8, %v3035_v9, %v11708_v35  ;;  %v728_v33 = vshll.u32 %v464_v55, 16  ;;  %v11779_v60 = vld [vmem:[%s10167_s19 + $0x68] sm:$0xf] }
 0x161   : > { %2496 = vst.msk [vmem:[#allocation2 + $0x34] sm:$0xf] %vm15221_vm0, %v2386_v14  ;;  %v3641_v14 = vrot.slane %v3640_v43, 4 }
 0x162   : > { %2743 = vst.msk [vmem:[#allocation2 + $0x30] sm:$0xf] %vm15219_vm6, %v2632_v41  ;;  %4872 = vrot.lane.b32.xlu1 %v4632_v28, %s15215_s18  ;;  %1234 = vrot.lane.b32.xlu0 %v1133_v31, %s15209_s26  ;;  %v4402_v28 = vld [vmem:[%s10167_s19 + $0x68] sm:$0xf]  ;;  %v2546_v31 = vld [vmem:[%s10167_s19 + $0x60] sm:$0xf]  ;;  %v3650_v30 = vor.u32 %v3649_v27, %v11686_v63 }
 0x163   : > { %v4635_v41 = vshrl.u32 %v4402_v28, 16  ;;  %v4638_v51 = vshll.u32 %v4402_v28, 16  ;;  %v3646_v32 = vsel %vm10234_vm8, %v3641_v14, %v11686_v63  ;;  %v1967_v28 = vld [vmem:[%s10167_s19 + $0x64] sm:$0xf] }
 0x164   : > { %v2634_v37 = vpop.permute.xlu1 %2633  ;;  %v3251_v5 = vpop.permute.xlu0 %3250  ;;  %v3651_v36 = vrot.slane %v3650_v30, 4  ;;  %v730_v30 = vrot.slane %v728_v33, 7 }
 0x165   : > { %2744 = vst.msk [vmem:[#allocation2 + $0x34] sm:$0xf] %vm15219_vm6, %v2634_v37  ;;  %v4648_v37 = vshll.u32 %v4403_v15, 16  ;;  %v4637_v56 = vrot.slane %v4635_v41, 5  ;;  %v1137_v15 = vrot.slane %v1135_v19, 4 }
 0x166   : > { %3362 = vst.msk [vmem:[#allocation2 + $0x30] sm:$0xf] %vm15212_vm2, %v3251_v5  ;;  %1236 = vrot.lane.b32.xlu1 %v1136_v13, %s15209_s26  ;;  %1818 = vrot.lane.b32.xlu0 %v1597_v48, %s15207_s28  ;;  %v463_v13 = vld [vmem:[%s10167_s19 + $0x5c] sm:$0xf]  ;;  %v4155_v48 = vrot.slane %v4029_v58, 5 }
 0x167   : > { %v715_v10 = vshrl.u32 %v463_v13, 16  ;;  %v718_v25 = vshll.u32 %v463_v13, 16  ;;  %v11768_v13 = vld [vmem:[%s10167_s19 + $0x60] sm:$0xf] }
 0x168   : > { %v3253_v11 = vpop.permute.xlu1 %3252  ;;  %v3867_v54 = vpop.permute.xlu0 %3866  ;;  %v4156_v63 = vsel %vm10259_vm11, %v4154_v39, %v4155_v48  ;;  %v4157_v27 = vrot.slane %v4155_v48, 4 }
 0x169   : > { %3363 = vst.msk [vmem:[#allocation2 + $0x34] sm:$0xf] %vm15212_vm2, %v3253_v11  ;;  %v717_v5 = vrot.slane %v715_v10, 6  ;;  %v720_v6 = vrot.slane %v718_v25, 7  ;;  %v725_v11 = vshrl.u32 %v464_v55, 16 }
 0x16a   : > { %3978 = vst.msk [vmem:[#allocation2 + $0x30] sm:$0xf] %vm15211_vm5, %v3867_v54  ;;  %1820 = vrot.lane.b32.xlu1 %v1606_v49, %s15207_s28  ;;  %2399 = vrot.lane.b32.xlu0 %v2178_v46, %s15213_s29  ;;  %v4640_v49 = vrot.slane %v4638_v51, 6  ;;  %v4158_v46 = vrot.slane %v11720_v57, 5  ;;  %v3656_v54 = vsel %vm10234_vm8, %v3651_v36, %v11715_v61  ;;  %v1138_v51 = vrot.slane %v1006_v16, 7 }
 0x16b   : > { %v721_v22 = vor.u32 %v720_v6, %v717_v5  ;;  %v727_v43 = vrot.slane %v725_v11, 6  ;;  %v1141_v5 = vrot.slane %v11768_v13, 7  ;;  %v2796_v55 = vld [vmem:[%s10167_s19 + $0x68] sm:$0xf] }
 0x16c   : > { %v3869_v17 = vpop.permute.xlu1 %3868  ;;  %v4240_v38 = vpop.permute.xlu0 %4239  ;;  %v4159_v29 = vsel %vm10259_vm11, %v4157_v27, %v4158_v46  ;;  %v3047_v16 = vshll.u32 %v2796_v55, 16  ;;  %v3051_v33 = vshrl.u32 %v2796_v55, 16 }
 0x16d   : > { %3979 = vst.msk [vmem:[#allocation2 + $0x34] sm:$0xf] %vm15211_vm5, %v3869_v17  ;;  %v4641_v17 = vor.u32 %v4640_v49, %v4637_v56  ;;  %v722_v58 = vsel %vm10478_vm3, %v713_v2, %v721_v22  ;;  %v11761_v14 = vor.u32 %v730_v30, %v727_v43  ;;  %v1607_v56 = vrot.slane %v11647_v50, 4 }
 0x16e   : > { %4351 = vst.msk [vmem:[#allocation2 + $0x30] sm:$0xf] %vm15283_vm12, %v4240_v38  ;;  %2401 = vrot.lane.b32.xlu1 %v2187_v62, %s15213_s29  ;;  %2647 = vrot.lane.b32.xlu0 %v2545_v42, %s15272_s20  ;;  %v4650_v62 = vrot.slane %v4648_v37, 6  ;;  %v1384_v42 = vld [vmem:[%s10167_s19 + $0x60] sm:$0xf]  ;;  %v1609_v38 = vshrl.u32 %v11734_v7, 16 }
 0x16f   : > { %v1618_v9 = vshrl.u32 %v1384_v42, 16  ;;  %963 = vst.msk [vmem:[#allocation2 + $0x58] sm:$0xf] %vm15224_vm1, %v722_v58  ;;  %v4642_v18 = vsel %vm10278_vm14, %v4633_v45, %v4641_v17  ;;  %v4643_v19 = vrot.slane %v4641_v17, 4  ;;  %v3041_v37 = vshrl.u32 %v11682_v59, 16 }
 0x170   : > { %v4242_v26 = vpop.permute.xlu1 %4241  ;;  %v4859_v52 = vpop.permute.xlu0 %4858  ;;  %v11765_v41 = vor.u32 %v4650_v62, %v4647_v20  ;;  %v11773_v10 = vrot.slane %v1609_v38, 7  ;;  %v2193_v59 = vshll.u32 %v1967_v28, 16  ;;  %v2188_v50 = vrot.slane %v11669_v12, 4 }
 0x171   : > { %4352 = vst.msk [vmem:[#allocation2 + $0x34] sm:$0xf] %vm15283_vm12, %v4242_v26  ;;  %vm15284_vm12 = vcmask 126016   ;;  %v1612_v26 = vshll.u32 %v11734_v7, 16  ;;  %v11786_v6 = vrot.slane %v1618_v9, 7  ;;  %v2199_v7 = vshrl.u32 %v11779_v60, 16 }
 0x172   : > { %4970 = vst.msk [vmem:[#allocation2 + $0x30] sm:$0xf] %vm15230_vm15, %v4859_v52  ;;  %2649 = vrot.lane.b32.xlu1 %v2546_v31, %s15272_s20  ;;  %3266 = vrot.lane.b32.xlu0 %v3030_v3, %s15273_s15  ;;  %v723_v31 = vrot.slane %v721_v22, 4  ;;  %v2190_v52 = vshrl.u32 %v1967_v28, 16  ;;  %v3657_v22 = vshrl.u32 %v11692_v40, 16  ;;  %v3043_v12 = vrot.slane %v3041_v37, 4 }
 0x173   : > { %v1614_v45 = vor.u32 %v1612_v26, %v11773_v10  ;;  %v2202_v2 = vshll.u32 %v11779_v60, 16  ;;  %v15245_v43 = vmov 0   ;;  %v3415_v28 = vld [vmem:[%s10167_s19 + $0x70] sm:$0xf]  ;;  %v3053_v30 = vrot.slane %v3051_v33, 4 }
 0x174   : > { %v4861_v1 = vpop.permute.xlu1 %4860  ;;  %v1223_v44 = vpop.permute.xlu0 %1222  ;;  %v732_v25 = vsel %vm10478_vm3, %v723_v31, %v11761_v14  ;;  %v11793_v49 = vrot.slane %v2190_v52, 7  ;;  %v11857_v31 = vrot.slane %v3047_v16, 5  ;;  %v3663_v26 = vshll.u32 %v3415_v28, 16  ;;  %v11902_v33 = vld [vmem:[%s15286_s2] ss:$0 sm:$0xff] }
 0x175   : > { %4971 = vst.msk [vmem:[#allocation2 + $0x34] sm:$0xf] %vm15230_vm15, %v4861_v1  ;;  %v4652_v1 = vsel %vm10278_vm14, %v4643_v19, %v11765_v41  ;;  %v1615_v62 = vsel %vm10193_vm7, %v1607_v56, %v1614_v45  ;;  %v3667_v52 = vshrl.u32 %v3415_v28, 16  ;;  %v4405_v45 = vld [vmem:[%s10167_s19 + $0x74] sm:$0xf] }
 0x176   : > { %1332 = vst.msk [vmem:[#allocation2 + $0x38] sm:$0xf] %vm15284_vm12, %v1223_v44  ;;  %3268 = vrot.lane.b32.xlu1 %v3040_v23, %s15273_s15  ;;  %3882 = vrot.lane.b32.xlu0 %v3646_v32, %s15228_s16  ;;  %v1621_v23 = vshll.u32 %v1384_v42, 16  ;;  %v1139_v32 = vsel %vm10175_vm4, %v1137_v15, %v1138_v51  ;;  %v1140_v44 = vrot.slane %v1138_v51, 4  ;;  %v2195_v40 = vor.u32 %v2193_v59, %v11793_v49  ;;  %v11868_v15 = vld [vmem:[%s10167_s19 + $0x6c] sm:$0xf] }
 0x177   : > { %964 = vst.msk [vmem:[#allocation2 + $0x5c] sm:$0xf] %vm15224_vm1, %v732_v25  ;;  %v11819_v42 = vrot.slane %v2199_v7, 7  ;;  %v2197_v58 = vrot.slane %v11793_v49, 4  ;;  %v3659_v51 = vrot.slane %v3657_v22, 4  ;;  %v3057_v25 = vshll.u32 %v11868_v15, 16 }
 0x178   : > { %v1225_v47 = vpop.permute.xlu1 %1224  ;;  %v1807_v3 = vpop.permute.xlu0 %1806  ;;  %v1623_v27 = vor.u32 %v1621_v23, %v11786_v6  ;;  %v1142_v20 = vsel %vm10175_vm4, %v1140_v44, %v1141_v5  ;;  %v3665_v37 = vrot.slane %v3663_v26, 5  ;;  %v3669_v23 = vrot.slane %v3667_v52, 4  ;;  %v11883_v49 = vld [vmem:[%s10167_s19 + $0x74] sm:$0xf]  ;;  %v2548_v7 = vld [vmem:[%s10167_s19 + $0x68] sm:$0xf] }
 0x179   : > { %1333 = vst.msk [vmem:[#allocation2 + $0x3c] sm:$0xf] %vm15284_vm12, %v1225_v47  ;;  %vm15206_vm12 = vcmask 257024   ;;  %v2204_v9 = vor.u32 %v2202_v2, %v11819_v42  ;;  %v3660_v60 = vor.u32 %v3659_v51, %v11715_v61  ;;  %v11887_v55 = vrot.slane %v3057_v25, 5  ;;  %v466_v51 = vld [vmem:[%s10167_s19 + $0x68] sm:$0xf] }
 0x17a   : > { %1916 = vst.msk [vmem:[#allocation2 + $0x38] sm:$0xf] %vm15222_vm13, %v1807_v3  ;;  %3884 = vrot.lane.b32.xlu1 %v3656_v54, %s15228_s16  ;;  %4255 = vrot.lane.b32.xlu0 %v4156_v63, %s15226_s17  ;;  %v1616_v63 = vrot.slane %v11773_v10, 4  ;;  %v2196_v3 = vsel %vm10193_vm7, %v2188_v50, %v2195_v40  ;;  %v3054_v10 = vor.u32 %v3053_v30, %v11857_v31  ;;  %v3673_v50 = vshll.u32 %v11883_v49, 16 }
 0x17b   : > { %413 = vst.msk [vmem:[#allocation4] sm:$0xf] %vm15206_vm12, %v15245_v43  ;;  %414 = vst.msk [vmem:[#allocation4 + $0x4] sm:$0xf] %vm15206_vm12, %v15245_v43  ;;  %v4160_v40 = vrot.slane %v4158_v46, 4  ;;  %v4665_v28 = vshrl.u32 %v4405_v45, 16 }
 0x17c   : > { %v1809_v36 = vpop.permute.xlu1 %1808  ;;  %v2388_v39 = vpop.permute.xlu0 %2387  ;;  %v9841_v48 = vld [vmem:[#allocation2 + $0x30] sm:$0xff]   ;;  %415 = vst.msk [vmem:[#allocation4 + $0x8] sm:$0xf] %vm15206_vm12, %v15245_v43  ;;  %416 = vst.msk [vmem:[#allocation4 + $0xc] sm:$0xf] %vm15206_vm12, %v15245_v43  ;;  %v1624_v47 = vsel %vm10193_vm7, %v1616_v63, %v1623_v27  ;;  %v3055_v59 = vrot.slane %v3054_v10, 4 }
 0x17d   : > { %1917 = vst.msk [vmem:[#allocation2 + $0x3c] sm:$0xf] %vm15222_vm13, %v1809_v36  ;;  %9625 = vmatmul.mubr.msk.bf16.gmra.mrb[24].mxu0 %vm15220_vm10, %v9841_v48  ;;  %v4404_v36 = vld [vmem:[%s10167_s19 + $0x70] sm:$0xf]  ;;  %v2547_v48 = vld [vmem:[%s10167_s19 + $0x64] sm:$0xf] }
 0x17e   : > { %2497 = vst.msk [vmem:[#allocation2 + $0x38] sm:$0xf] %vm15221_vm0, %v2388_v39  ;;  %4257 = vrot.lane.b32.xlu1 %v4159_v29, %s15226_s17  ;;  %4874 = vrot.lane.b32.xlu0 %v4642_v18, %s15215_s18  ;;  %v3044_v29 = vor.u32 %v3043_v12, %v11708_v35  ;;  %v2205_v39 = vsel %vm10193_vm7, %v2197_v58, %v2204_v9  ;;  %v4655_v44 = vshrl.u32 %v4404_v36, 16  ;;  %v4658_v61 = vshll.u32 %v4404_v36, 16  ;;  %v465_v63 = vld [vmem:[%s10167_s19 + $0x64] sm:$0xf] }
 0x17f   : > { %9628 = vmatprep.mubr.msk.bf16.mxu0 %vm15217_vm9, %v15247_v8  ;;  %417 = vst.msk [vmem:[#allocation4 + $0x10] sm:$0xf] %vm15206_vm12, %v15245_v43  ;;  %418 = vst.msk [vmem:[#allocation4 + $0x14] sm:$0xf] %vm15206_vm12, %v15245_v43  ;;  %v3060_v2 = vsel %vm10234_vm8, %v3055_v59, %v11887_v55  ;;  %v11918_v9 = vrot.slane %v3673_v50, 5  ;;  %v4653_v25 = vrot.slane %v11765_v41, 4 }
 0x180   : > { %v2390_v11 = vpop.permute.xlu1 %2389  ;;  %v2636_v54 = vpop.permute.xlu0 %2635  ;;  %419 = vst.msk [vmem:[#allocation4 + $0x18] sm:$0xf] %vm15206_vm12, %v15245_v43  ;;  %420 = vst.msk [vmem:[#allocation4 + $0x1c] sm:$0xf] %vm15206_vm12, %v15245_v43  ;;  %v3045_v35 = vrot.slane %v3044_v29, 4  ;;  %v4660_v46 = vrot.slane %v4658_v61, 6 }
 0x181   : > { %2498 = vst.msk [vmem:[#allocation2 + $0x3c] sm:$0xf] %vm15221_vm0, %v2390_v11  ;;  %v3661_v11 = vrot.slane %v3660_v60, 4  ;;  %v733_v41 = vrot.slane %v11761_v14, 4  ;;  %v748_v61 = vshll.u32 %v466_v51, 16  ;;  %v1143_v50 = vrot.slane %v1141_v5, 4 }
 0x182   : > { %2745 = vst.msk [vmem:[#allocation2 + $0x38] sm:$0xf] %vm15219_vm6, %v2636_v54  ;;  %4876 = vrot.lane.b32.xlu1 %v4652_v1, %s15215_s18  ;;  %1238 = vrot.lane.b32.xlu0 %v1139_v32, %s15209_s26  ;;  %v4031_v1 = vld [vmem:[%s10167_s19 + $0x70] sm:$0xf]  ;;  %v3050_v22 = vsel %vm10234_vm8, %v3045_v35, %v11857_v31  ;;  %v3670_v54 = vor.u32 %v3669_v23, %v3665_v37  ;;  %v4668_v31 = vshll.u32 %v4405_v45, 16 }
 0x183   : > { %421 = vst.msk [vmem:[#allocation4 + $0x20] sm:$0xf] %vm15206_vm12, %v15245_v43  ;;  %422 = vst.msk [vmem:[#allocation4 + $0x24] sm:$0xf] %vm15206_vm12, %v15245_v43  ;;  %v4161_v12 = vrot.slane %v4031_v1, 5  ;;  %v3666_v58 = vsel %vm10234_vm8, %v3661_v11, %v3665_v37 }
 0x184   : > { %423 = vst.msk [vmem:[#allocation4 + $0x28] sm:$0xf] %vm15206_vm12, %v15245_v43  ;;  %424 = vst.msk [vmem:[#allocation4 + $0x2c] sm:$0xf] %vm15206_vm12, %v15245_v43  ;;  %v2638_v17 = vpop.permute.xlu1 %2637  ;;  %v3255_v38 = vpop.permute.xlu0 %3254  ;;  %v3671_v29 = vrot.slane %v3670_v54, 4  ;;  %v4670_v23 = vrot.slane %v4668_v31, 6 }
 0x185   : > { %425 = vst.msk [vmem:[#allocation4 + $0x30] sm:$0xf] %vm15206_vm12, %v15245_v43  ;;  %426 = vst.msk [vmem:[#allocation4 + $0x34] sm:$0xf] %vm15206_vm12, %v15245_v43  ;;  %v11926_v35 = vld [vmem:[%s10167_s19 + $0x64] sm:$0xf] }
 0x186   : > { %427 = vst.msk [vmem:[#allocation4 + $0x38] sm:$0xf] %vm15206_vm12, %v15245_v43  ;;  %428 = vst.msk [vmem:[#allocation4 + $0x3c] sm:$0xf] %vm15206_vm12, %v15245_v43  ;;  %1240 = vrot.lane.b32.xlu1 %v1142_v20, %s15209_s26  ;;  %1822 = vrot.lane.b32.xlu0 %v1615_v62, %s15207_s28  ;;  %vm15285_vm12 = vcmask 519616   ;;  %v735_v20 = vshrl.u32 %v465_v63, 16  ;;  %v3676_v59 = vsel %vm10234_vm8, %v3671_v29, %v11918_v9 }
 0x187   : > { %2746 = vst.msk [vmem:[#allocation2 + $0x3c] sm:$0xf] %vm15219_vm6, %v2638_v17  ;;  %v738_v62 = vshll.u32 %v465_v63, 16  ;;  %v11912_v17 = vld [vmem:[%s10167_s19 + $0x74] sm:$0xf]  ;;  %v1627_v1 = vshrl.u32 %v11926_v35, 16 }
 0x188   : > { %3364 = vst.msk [vmem:[#allocation2 + $0x38] sm:$0xf] %vm15212_vm2, %v3255_v38  ;;  %v3257_v18 = vpop.permute.xlu1 %3256  ;;  %v3871_v19 = vpop.permute.xlu0 %3870  ;;  %v4657_v38 = vrot.slane %v4655_v44, 5  ;;  %v737_v30 = vrot.slane %v735_v20, 6  ;;  %v4164_v10 = vrot.slane %v11912_v17, 5  ;;  %v1630_v13 = vshll.u32 %v11926_v35, 16 }
 0x189   : > { %3365 = vst.msk [vmem:[#allocation2 + $0x3c] sm:$0xf] %vm15212_vm2, %v3257_v18  ;;  %v4162_v18 = vsel %vm10259_vm11, %v4160_v40, %v4161_v12  ;;  %v11939_v44 = vld [vmem:[%s10167_s19 + $0x68] sm:$0xf]  ;;  %v1625_v29 = vrot.slane %v11786_v6, 4  ;;  %s15288_s26 = smov 8  }
 0x18a   : > { %3980 = vst.msk [vmem:[#allocation2 + $0x38] sm:$0xf] %vm15211_vm5, %v3871_v19  ;;  %1824 = vrot.lane.b32.xlu1 %v1624_v47, %s15207_s28  ;;  %2403 = vrot.lane.b32.xlu0 %v2196_v3, %s15213_s29  ;;  %v740_v47 = vrot.slane %v738_v62, 7  ;;  %v4163_v19 = vrot.slane %v4161_v12, 4  ;;  %v4661_v37 = vor.u32 %v4660_v46, %v4657_v38  ;;  %v11960_v20 = vld [vmem:[%s10167_s19 + $0x68] sm:$0xf] }
 0x18b   : > { %v1636_v5 = vshrl.u32 %v11939_v44, 16  ;;  %v1639_v6 = vshll.u32 %v11939_v44, 16  ;;  %s15289_s28 = smov 16  }
 0x18c   : > { %v3873_v32 = vpop.permute.xlu1 %3872  ;;  %v4244_v56 = vpop.permute.xlu0 %4243  ;;  %v741_v60 = vor.u32 %v740_v47, %v737_v30  ;;  %v4663_v40 = vrot.slane %v4661_v37, 4  ;;  %v4662_v62 = vsel %vm10278_vm14, %v4653_v25, %v4661_v37  ;;  %v1970_v30 = vld [vmem:[%s10167_s19 + $0x70] sm:$0xf] }
 0x18d   : > { %3981 = vst.msk [vmem:[#allocation2 + $0x3c] sm:$0xf] %vm15211_vm5, %v3873_v32  ;;  %vm15223_vm5 = vcmask 261120   ;;  %v1008_v32 = vld [vmem:[%s10167_s19 + $0x64] sm:$0xf] }
 0x18e   : > { %4353 = vst.msk [vmem:[#allocation2 + $0x38] sm:$0xf] %vm15285_vm12, %v4244_v56  ;;  %2405 = vrot.lane.b32.xlu1 %v2205_v39, %s15213_s29  ;;  %2651 = vrot.lane.b32.xlu0 %v2547_v48, %s15272_s20  ;;  %v4667_v48 = vrot.slane %v4665_v28, 5  ;;  %v745_v56 = vshrl.u32 %v466_v51, 16  ;;  %v742_v14 = vsel %vm10478_vm3, %v733_v41, %v741_v60  ;;  %v1144_v63 = vrot.slane %v1008_v32, 7 }
 0x18f   : > { %965 = vst.msk [vmem:[#allocation2 + $0x60] sm:$0xf] %vm15224_vm1, %v742_v14 }
 0x190   : > { %v4246_v27 = vpop.permute.xlu1 %4245  ;;  %v4863_v16 = vpop.permute.xlu0 %4862  ;;  %v747_v11 = vrot.slane %v745_v56, 6  ;;  %v11957_v12 = vor.u32 %v4670_v23, %v4667_v48  ;;  %v2206_v23 = vrot.slane %v11819_v42, 4  ;;  %v2220_v42 = vshll.u32 %v1970_v30, 16 }
 0x191   : > { %4354 = vst.msk [vmem:[#allocation2 + $0x3c] sm:$0xf] %vm15285_vm12, %v4246_v27  ;;  %v5289_v57 = vpop.f32.mrb[0].mxu0  ;;  %vm15287_vm12 = vcmask 126016   ;;  %v743_v27 = vrot.slane %v741_v60, 4 }
 0x192   : > { %4972 = vst.msk [vmem:[#allocation2 + $0x38] sm:$0xf] %vm15230_vm15, %v4863_v16  ;;  %2653 = vrot.lane.b32.xlu1 %v2548_v7, %s15272_s20  ;;  %3270 = vrot.lane.b32.xlu0 %v3050_v22, %s15273_s15  ;;  %v9602_v3 = vpop.f32.mrb[1].mxu0  ;;  %v4165_v7 = vsel %vm10259_vm11, %v4163_v19, %v4164_v10  ;;  %v11946_v22 = vld [vmem:[%s10167_s19 + $0x6c] sm:$0xf]  ;;  %v750_v16 = vrot.slane %v748_v61, 7 }
 0x193   : > { %v5292_v52 = vpop.f32.mrb[2].mxu0  ;;  %v2208_v38 = vshrl.u32 %v11946_v22, 16  ;;  %v3061_v57 = vshrl.u32 %v11868_v15, 16  ;;  %v1146_v3 = vrot.slane %v1144_v63, 4  ;;  %v4672_v15 = vsel %vm10278_vm14, %v4663_v40, %v11957_v12 }
 0x194   : > { %v4865_v26 = vpop.permute.xlu1 %4864  ;;  %v1227_v36 = vpop.permute.xlu0 %1226  ;;  %v11967_v28 = vor.u32 %v750_v16, %v747_v11  ;;  %v11985_v52 = vrot.slane %v1636_v5, 7  ;;  %v2211_v35 = vshll.u32 %v11946_v22, 16 }
 0x195   : > { %4973 = vst.msk [vmem:[#allocation2 + $0x3c] sm:$0xf] %vm15230_vm15, %v4865_v26  ;;  %v9603_v39 = vpop.f32.mrb[3].mxu0  ;;  %v1145_v26 = vsel %vm10175_vm4, %v1143_v50, %v1144_v63  ;;  %v2210_v25 = vrot.slane %v2208_v38, 7 }
 0x196   : > { %1334 = vst.msk [vmem:[#allocation2 + $0x40] sm:$0xf] %vm15287_vm12, %v1227_v36  ;;  %3272 = vrot.lane.b32.xlu1 %v3060_v2, %s15273_s15  ;;  %3886 = vrot.lane.b32.xlu0 %v3666_v58, %s15228_s16  ;;  %v1629_v2 = vrot.slane %v1627_v1, 7  ;;  %v1147_v58 = vrot.slane %v11960_v20, 7  ;;  %v752_v51 = vsel %vm10478_vm3, %v743_v27, %v11967_v28  ;;  %v2217_v36 = vshrl.u32 %v1970_v30, 16 }
 0x197   : > { %966 = vst.msk [vmem:[#allocation2 + $0x64] sm:$0xf] %vm15224_vm1, %v752_v51  ;;  %v3677_v39 = vshrl.u32 %v11883_v49, 16  ;;  %v1641_v56 = vor.u32 %v1639_v6, %v11985_v52  ;;  %v2213_v44 = vor.u32 %v2211_v35, %v2210_v25  ;;  %v2215_v50 = vrot.slane %v2210_v25, 4  ;;  %v12018_v27 = vld [vmem:[%s10167_s19 + $0x74] sm:$0xf] }
 0x198   : > { %v1229_v45 = vpop.permute.xlu1 %1228  ;;  %v1811_v54 = vpop.permute.xlu0 %1810  ;;  %v1632_v19 = vor.u32 %v1630_v13, %v1629_v2  ;;  %v1148_v37 = vsel %vm10175_vm4, %v1146_v3, %v1147_v58  ;;  %v1634_v49 = vrot.slane %v1629_v2, 4  ;;  %v12007_v61 = vrot.slane %v2217_v36, 7  ;;  %v4033_v25 = vld [vmem:[%s10167_s19 + $0x78] sm:$0xf]  ;;  %v4407_v36 = vld [vmem:[%s10167_s19 + $0x7c] sm:$0xf] }
 0x199   : > { %1335 = vst.msk [vmem:[#allocation2 + $0x44] sm:$0xf] %vm15287_vm12, %v1229_v45  ;;  %v3679_v16 = vrot.slane %v3677_v39, 4  ;;  %v2214_v40 = vsel %vm10193_vm7, %v2206_v23, %v2213_v44  ;;  %vm15290_vm12 = vcmask 454016   ;;  %v2550_v39 = vld [vmem:[%s10167_s19 + $0x70] sm:$0xf] }
 0x19a   : > { %1918 = vst.msk [vmem:[#allocation2 + $0x40] sm:$0xf] %vm15222_vm13, %v1811_v54  ;;  %3888 = vrot.lane.b32.xlu1 %v3676_v59, %s15228_s16  ;;  %4259 = vrot.lane.b32.xlu0 %v4162_v18, %s15226_s17  ;;  %v2798_v18 = vld [vmem:[%s10167_s19 + $0x70] sm:$0xf]  ;;  %v3063_v59 = vrot.slane %v3061_v57, 4  ;;  %v1633_v1 = vsel %vm10193_vm7, %v1625_v29, %v1632_v19  ;;  %v1642_v54 = vsel %vm10193_vm7, %v1634_v49, %v1641_v56  ;;  %v4166_v49 = vrot.slane %v4164_v10, 4 }
 0x19b   : > { %v3067_v32 = vshll.u32 %v2798_v18, 16  ;;  %v3071_v41 = vshrl.u32 %v2798_v18, 16  ;;  %v2222_v13 = vor.u32 %v2220_v42, %v12007_v61  ;;  %v4167_v56 = vrot.slane %v4033_v25, 5 }
 0x19c   : > { %v1813_v46 = vpop.permute.xlu1 %1812  ;;  %v9842_v31 = vld [vmem:[#allocation2 + $0x38] sm:$0xff]   ;;  %v2392_v47 = vpop.permute.xlu0 %2391  ;;  %v3064_v63 = vor.u32 %v3063_v59, %v11887_v55  ;;  %v3077_v55 = vshll.u32 %v12018_v27, 16 }
 0x19d   : > { %1919 = vst.msk [vmem:[#allocation2 + $0x44] sm:$0xf] %vm15222_vm13, %v1813_v46  ;;  %9629 = vmatmul.mubr.msk.bf16.gmra.mrb[28].mxu0 %vm15220_vm10, %v9842_v31  ;;  %v3069_v14 = vrot.slane %v3067_v32, 5  ;;  %v3073_v11 = vrot.slane %v3071_v41, 4  ;;  %v3680_v46 = vor.u32 %v3679_v16, %v11918_v9  ;;  %v12030_v31 = vld [vmem:[%s10167_s19 + $0x7c] sm:$0xf]  ;;  %v2223_v30 = vsel %vm10193_vm7, %v2215_v50, %v2222_v13 }
 0x19e   : > { %2499 = vst.msk [vmem:[#allocation2 + $0x40] sm:$0xf] %vm15221_vm0, %v2392_v47  ;;  %4261 = vrot.lane.b32.xlu1 %v4165_v7, %s15226_s17  ;;  %4878 = vrot.lane.b32.xlu0 %v4662_v62, %s15215_s18  ;;  %v3417_v7 = vld [vmem:[%s10167_s19 + $0x78] sm:$0xf]  ;;  %v2549_v47 = vld [vmem:[%s10167_s19 + $0x6c] sm:$0xf] }
 0x19f   : > { %9632 = vmatprep.mubr.msk.bf16.mxu0 %vm15217_vm9, %v15247_v8  ;;  %v3683_v5 = vshll.u32 %v3417_v7, 16  ;;  %v3687_v62 = vshrl.u32 %v3417_v7, 16  ;;  %v3074_v57 = vor.u32 %v3073_v11, %v3069_v14  ;;  %v3065_v3 = vrot.slane %v3064_v63, 4  ;;  %v467_v32 = vld [vmem:[%s10167_s19 + $0x6c] sm:$0xf] }
 0x1a0   : > { %v2394_v48 = vpop.permute.xlu1 %2393  ;;  %v2640_v60 = vpop.permute.xlu0 %2639  ;;  %v12037_v19 = vrot.slane %v3077_v55, 5  ;;  %v3693_v9 = vshll.u32 %v12030_v31, 16  ;;  %v3681_v35 = vrot.slane %v3680_v46, 4  ;;  %v755_v59 = vshrl.u32 %v467_v32, 16  ;;  %v12058_v7 = vld [vmem:[%s10167_s19 + $0x7c] sm:$0xf] }
 0x1a1   : > { %2500 = vst.msk [vmem:[#allocation2 + $0x44] sm:$0xf] %vm15221_vm0, %v2394_v48  ;;  %v3685_v29 = vrot.slane %v3683_v5, 5  ;;  %v3689_v51 = vrot.slane %v3687_v62, 4  ;;  %v3075_v18 = vrot.slane %v3074_v57, 4  ;;  %v3070_v48 = vsel %vm10234_vm8, %v3065_v3, %v3069_v14 }
 0x1a2   : > { %2747 = vst.msk [vmem:[#allocation2 + $0x40] sm:$0xf] %vm15219_vm6, %v2640_v60  ;;  %4880 = vrot.lane.b32.xlu1 %v4672_v15, %s15215_s18  ;;  %1242 = vrot.lane.b32.xlu0 %v1145_v26, %s15288_s26  ;;  %v4406_v26 = vld [vmem:[%s10167_s19 + $0x78] sm:$0xf]  ;;  %v4688_v14 = vshll.u32 %v4407_v36, 16  ;;  %v4168_v57 = vsel %vm10259_vm11, %v4166_v49, %v4167_v56  ;;  %v4169_v55 = vrot.slane %v4167_v56, 4 }
 0x1a3   : > { %v3690_v60 = vor.u32 %v3689_v51, %v3685_v29  ;;  %v4678_v23 = vshll.u32 %v4406_v26, 16  ;;  %v3080_v42 = vsel %vm10234_vm8, %v3075_v18, %v12037_v19  ;;  %v3686_v10 = vsel %vm10234_vm8, %v3681_v35, %v3685_v29  ;;  %v12066_v11 = vld [vmem:[%s10167_s19 + $0x6c] sm:$0xf]  ;;  %v468_v62 = vld [vmem:[%s10167_s19 + $0x70] sm:$0xf] }
 0x1a4   : > { %v2642_v45 = vpop.permute.xlu1 %2641  ;;  %v3259_v22 = vpop.permute.xlu0 %3258  ;;  %v4170_v46 = vrot.slane %v12058_v7, 5  ;;  %v1010_v18 = vld [vmem:[%s10167_s19 + $0x6c] sm:$0xf]  ;;  %v765_v25 = vshrl.u32 %v468_v62, 16  ;;  %v1149_v56 = vrot.slane %v1147_v58, 4  ;;  %v1648_v20 = vshll.u32 %v12066_v11, 16 }
 0x1a5   : > { %2748 = vst.msk [vmem:[#allocation2 + $0x44] sm:$0xf] %vm15219_vm6, %v2642_v45  ;;  %v12055_v45 = vrot.slane %v3693_v9, 5  ;;  %v4680_v5 = vrot.slane %v4678_v23, 6  ;;  %v753_v9 = vrot.slane %v11967_v28, 4 }
 0x1a6   : > { %3366 = vst.msk [vmem:[#allocation2 + $0x40] sm:$0xf] %vm15212_vm2, %v3259_v22  ;;  %1244 = vrot.lane.b32.xlu1 %v1148_v37, %s15288_s26  ;;  %1826 = vrot.lane.b32.xlu0 %v1633_v1, %s15289_s28  ;;  %v4675_v37 = vshrl.u32 %v4406_v26, 16  ;;  %v758_v1 = vshll.u32 %v467_v32, 16  ;;  %v4685_v22 = vshrl.u32 %v4407_v36, 16  ;;  %v4171_v23 = vsel %vm10259_vm11, %v4169_v55, %v4170_v46 }
 0x1a7   : > { %v12094_v28 = vld [vmem:[%s10167_s19 + $0x74] sm:$0xf] }
 0x1a8   : > { %v3261_v2 = vpop.permute.xlu1 %3260  ;;  %v3875_v38 = vpop.permute.xlu0 %3874  ;;  %v760_v50 = vrot.slane %v758_v1, 7  ;;  %v4677_v13 = vrot.slane %v4675_v37, 5 }
 0x1a9   : > { %3367 = vst.msk [vmem:[#allocation2 + $0x44] sm:$0xf] %vm15212_vm2, %v3261_v2  ;;  %vm15291_vm2 = vcmask 519616  }
 0x1aa   : > { %3982 = vst.msk [vmem:[#allocation2 + $0x40] sm:$0xf] %vm15290_vm12, %v3875_v38  ;;  %1828 = vrot.lane.b32.xlu1 %v1642_v54, %s15289_s28  ;;  %2407 = vrot.lane.b32.xlu0 %v2214_v40, %s15213_s29  ;;  %v757_v54 = vrot.slane %v755_v59, 6  ;;  %v3691_v40 = vrot.slane %v3690_v60, 4  ;;  %v768_v60 = vshll.u32 %v468_v62, 16  ;;  %v1150_v59 = vrot.slane %v1010_v18, 7 }
 0x1ac   : > { %v3877_v15 = vpop.permute.xlu1 %3876  ;;  %v4248_v6 = vpop.permute.xlu0 %4247  ;;  %v761_v26 = vor.u32 %v760_v50, %v757_v54  ;;  %v3696_v36 = vsel %vm10234_vm8, %v3691_v40, %v12055_v45  ;;  %v2226_v54 = vshrl.u32 %v12094_v28, 16  ;;  %v1152_v62 = vrot.slane %v1150_v59, 4 }
 0x1ad   : > { %3983 = vst.msk [vmem:[#allocation2 + $0x44] sm:$0xf] %vm15290_vm12, %v3877_v15  ;;  %v4687_v15 = vrot.slane %v4685_v22, 5  ;;  %vm15292_vm12 = vcmask 126016   ;;  %v12109_v22 = vld [vmem:[%s10167_s19 + $0x70] sm:$0xf] }
 0x1ae   : > { %4355 = vst.msk [vmem:[#allocation2 + $0x40] sm:$0xf] %vm15291_vm2, %v4248_v6  ;;  %2409 = vrot.lane.b32.xlu1 %v2223_v30, %s15213_s29  ;;  %2655 = vrot.lane.b32.xlu0 %v2549_v47, %s15272_s20  ;;  %v4673_v30 = vrot.slane %v11957_v12, 4  ;;  %v4690_v6 = vrot.slane %v4688_v14, 6  ;;  %v1645_v12 = vshrl.u32 %v12066_v11, 16  ;;  %v762_v32 = vsel %vm10478_vm3, %v753_v9, %v761_v26 }
 0x1af   : > { %967 = vst.msk [vmem:[#allocation2 + $0x68] sm:$0xf] %vm15224_vm1, %v762_v32  ;;  %v763_v1 = vrot.slane %v761_v26, 4  ;;  %v1153_v11 = vrot.slane %v12109_v22, 7  ;;  %v3697_v26 = vshrl.u32 %v12030_v31, 16  ;;  %v2224_v9 = vrot.slane %v12007_v61, 4 }
 0x1b0   : > { %v4250_v41 = vpop.permute.xlu1 %4249  ;;  %v4867_v44 = vpop.permute.xlu0 %4866 }
 0x1b1   : > { %4356 = vst.msk [vmem:[#allocation2 + $0x44] sm:$0xf] %vm15291_vm2, %v4250_v41  ;;  %v5297_v17 = vpop.f32.mrb[4].mxu0  ;;  %v767_v41 = vrot.slane %v765_v25, 6  ;;  %vm15293_vm2 = vmmov %vm15292_vm12  ;;  %v1154_v18 = vsel %vm10175_vm4, %v1152_v62, %v1153_v11  ;;  %v3419_v25 = vld [vmem:[%s10167_s19 + $0x80] sm:$0xf] }
 0x1b2   : > { %4974 = vst.msk [vmem:[#allocation2 + $0x40] sm:$0xf] %vm15230_vm15, %v4867_v44  ;;  %2657 = vrot.lane.b32.xlu1 %v2550_v39, %s15272_s20  ;;  %3274 = vrot.lane.b32.xlu0 %v3070_v48, %s15273_s15  ;;  %v5298_v63 = vadd.f32 %v11902_v33, %v5297_v17  ;;  %v9606_v16 = vpop.f32.mrb[5].mxu0  ;;  %v4681_v39 = vor.u32 %v4680_v5, %v4677_v13  ;;  %v12087_v48 = vld [vmem:[%s10167_s19 + $0x70] sm:$0xf]  ;;  %v770_v44 = vrot.slane %v768_v60, 7 }
 0x1b3   : > { %v5300_v38 = vpop.f32.mrb[6].mxu0  ;;  %v1647_v17 = vrot.slane %v1645_v12, 7  ;;  %v1654_v58 = vshrl.u32 %v12087_v48, 16  ;;  %v1972_v13 = vld [vmem:[%s10167_s19 + $0x78] sm:$0xf]  ;;  %v3707_v32 = vshrl.u32 %v3419_v25, 16 }
 0x1b4   : > { %v4869_v2 = vpop.permute.xlu1 %4868  ;;  %v5457_v47 = vmax.f32 %v5298_v63, 0.0  ;;  %v5301_v3 = vadd.f32 %v11902_v33, %v5300_v38  ;;  %v1231_v29 = vpop.permute.xlu0 %1230  ;;  %v4683_v14 = vrot.slane %v4681_v39, 4  ;;  %v12116_v50 = vor.u32 %v770_v44, %v767_v41 }
 0x1b5   : > { %4975 = vst.msk [vmem:[#allocation2 + $0x44] sm:$0xf] %vm15230_vm15, %v4869_v2  ;;  %v9607_v51 = vpop.f32.mrb[7].mxu0  ;;  %v3081_v63 = vshrl.u32 %v12018_v27, 16  ;;  %v1643_v2 = vrot.slane %v11985_v52, 4  ;;  %v1151_v27 = vsel %vm10175_vm4, %v1149_v56, %v1150_v59  ;;  %v12131_v55 = vrot.slane %v1654_v58, 7 }
 0x1b6   : > { %1336 = vst.msk [vmem:[#allocation2 + $0x48] sm:$0xf] %vm15292_vm12, %v1231_v29  ;;  %3276 = vrot.lane.b32.xlu1 %v3080_v42, %s15273_s15  ;;  %3890 = vrot.lane.b32.xlu0 %v3686_v10, %s15228_s16  ;;  %v5458_v35 = vmax.f32 %v5301_v3, 0.0  ;;  %v12106_v42 = vor.u32 %v4690_v6, %v4687_v15  ;;  %v4682_v10 = vsel %vm10278_vm14, %v4673_v30, %v4681_v39  ;;  %v1657_v30 = vshll.u32 %v12087_v48, 16  ;;  %v2800_v51 = vld [vmem:[%s10167_s19 + $0x78] sm:$0xf] }
 0x1b7   : > { %5499 = vst.msk [vmem:[#allocation3 + $0x10] sm:$0xff] %vm15223_vm5, %v5457_v47  ;;  %v772_v38 = vsel %vm10478_vm3, %v763_v1, %v12116_v50  ;;  %v2228_v47 = vrot.slane %v2226_v54, 7  ;;  %v2229_v3 = vshll.u32 %v12094_v28, 16  ;;  %v2235_v29 = vshrl.u32 %v1972_v13, 16  ;;  %v12170_v58 = vld [vmem:[%s10167_s19 + $0x7c] sm:$0xf] }
 0x1b8   : > { %v1233_v37 = vpop.permute.xlu1 %1232  ;;  %5500 = vst.msk [vmem:[#allocation3 + $0x18] sm:$0xff] %vm15223_vm5, %v5458_v35  ;;  %v1815_v49 = vpop.permute.xlu0 %1814  ;;  %v4692_v52 = vsel %vm10278_vm14, %v4683_v14, %v12106_v42  ;;  %v1652_v12 = vrot.slane %v1647_v17, 4  ;;  %v1659_v31 = vor.u32 %v1657_v30, %v12131_v55  ;;  %v2238_v35 = vshll.u32 %v1972_v13, 16 }
 0x1b9   : > { %1337 = vst.msk [vmem:[#allocation2 + $0x4c] sm:$0xf] %vm15293_vm2, %v1233_v37  ;;  %v3091_v39 = vshrl.u32 %v2800_v51, 16  ;;  %v2231_v60 = vor.u32 %v2229_v3, %v2228_v47  ;;  %v12157_v37 = vrot.slane %v2235_v29, 7  ;;  %v3703_v28 = vshll.u32 %v3419_v25, 16 }
 0x1ba   : > { %1920 = vst.msk [vmem:[#allocation2 + $0x48] sm:$0xf] %vm15222_vm13, %v1815_v49  ;;  %3892 = vrot.lane.b32.xlu1 %v3696_v36, %s15228_s16  ;;  %4263 = vrot.lane.b32.xlu0 %v4168_v57, %s15226_s17  ;;  %v1650_v57 = vor.u32 %v1648_v20, %v1647_v17  ;;  %v3087_v36 = vshll.u32 %v2800_v51, 16  ;;  %vm15294_vm12 = vcmask 388416   ;;  %v1660_v49 = vsel %vm10193_vm7, %v1652_v12, %v1659_v31  ;;  %v4035_v3 = vld [vmem:[%s10167_s19 + $0x80] sm:$0xf] }
 0x1bb   : > { %968 = vst.msk [vmem:[#allocation2 + $0x6c] sm:$0xf] %vm15224_vm1, %v772_v38  ;;  %v2233_v56 = vrot.slane %v2228_v47, 4  ;;  %v3093_v1 = vrot.slane %v3091_v39, 4  ;;  %v2232_v44 = vsel %vm10193_vm7, %v2224_v9, %v2231_v60  ;;  %v2240_v17 = vor.u32 %v2238_v35, %v12157_v37  ;;  %vm15295_vm2 = vmmov %vm15294_vm12  ;;  %v2552_v51 = vld [vmem:[%s10167_s19 + $0x78] sm:$0xf] }
 0x1bc   : > { %v1817_v16 = vpop.permute.xlu1 %1816  ;;  %v9843_v40 = vld [vmem:[#allocation2 + $0x40] sm:$0xff]   ;;  %v2396_v5 = vpop.permute.xlu0 %2395  ;;  %v1651_v48 = vsel %vm10193_vm7, %v1643_v2, %v1650_v57  ;;  %v3089_v59 = vrot.slane %v3087_v36, 5  ;;  %v12172_v54 = vrot.slane %v3703_v28, 5  ;;  %v3097_v13 = vshll.u32 %v12170_v58, 16  ;;  %v2551_v2 = vld [vmem:[%s10167_s19 + $0x74] sm:$0xf] }
 0x1bd   : > { %1921 = vst.msk [vmem:[#allocation2 + $0x4c] sm:$0xf] %vm15222_vm13, %v1817_v16  ;;  %9633 = vmatmul.mubr.msk.bf16.gmra.mrb[32].mxu0 %vm15220_vm10, %v9843_v40  ;;  %v3709_v16 = vrot.slane %v3707_v32, 4  ;;  %v2241_v62 = vsel %vm10193_vm7, %v2233_v56, %v2240_v17  ;;  %v4172_v9 = vrot.slane %v4170_v46, 4  ;;  %v469_v25 = vld [vmem:[%s10167_s19 + $0x74] sm:$0xf] }
 0x1be   : > { %2501 = vst.msk [vmem:[#allocation2 + $0x48] sm:$0xf] %vm15221_vm0, %v2396_v5  ;;  %4265 = vrot.lane.b32.xlu1 %v4171_v23, %s15226_s17  ;;  %4882 = vrot.lane.b32.xlu0 %v4682_v10, %s15215_s18  ;;  %v3083_v23 = vrot.slane %v3081_v63, 4  ;;  %v3699_v10 = vrot.slane %v3697_v26, 4  ;;  %v12175_v63 = vld [vmem:[%s10167_s19 + $0x84] sm:$0xf] }
 0x1bf   : > { %9636 = vmatprep.mubr.msk.bf16.mxu0 %vm15217_vm9, %v15247_v8  ;;  %v4408_v5 = vld [vmem:[%s10167_s19 + $0x80] sm:$0xf]  ;;  %v3713_v57 = vshll.u32 %v12175_v63, 16  ;;  %v4173_v36 = vrot.slane %v4035_v3, 5  ;;  %v4409_v39 = vld [vmem:[%s10167_s19 + $0x84] sm:$0xf] }
 0x1c0   : > { %v2398_v15 = vpop.permute.xlu1 %2397  ;;  %v2644_v6 = vpop.permute.xlu0 %2643  ;;  %v3084_v20 = vor.u32 %v3083_v23, %v12037_v19  ;;  %v3094_v19 = vor.u32 %v3093_v1, %v3089_v59  ;;  %v4695_v29 = vshrl.u32 %v4408_v5, 16  ;;  %v4698_v26 = vshll.u32 %v4408_v5, 16 }
 0x1c1   : > { %2502 = vst.msk [vmem:[#allocation2 + $0x4c] sm:$0xf] %vm15221_vm0, %v2398_v15  ;;  %v12195_v15 = vrot.slane %v3097_v13, 5  ;;  %v12199_v12 = vrot.slane %v3713_v57, 5  ;;  %v778_v60 = vshll.u32 %v469_v25, 16  ;;  %v4705_v17 = vshrl.u32 %v4409_v39, 16 }
 0x1c2   : > { %2749 = vst.msk [vmem:[#allocation2 + $0x48] sm:$0xf] %vm15219_vm6, %v2644_v6  ;;  %4884 = vrot.lane.b32.xlu1 %v4692_v52, %s15215_s18  ;;  %1246 = vrot.lane.b32.xlu0 %v1151_v27, %s15288_s26  ;;  %v3085_v38 = vrot.slane %v3084_v20, 4  ;;  %v3700_v27 = vor.u32 %v3699_v10, %v12055_v45  ;;  %v3710_v52 = vor.u32 %v3709_v16, %v12172_v54  ;;  %v3095_v45 = vrot.slane %v3094_v19, 4  ;;  %v470_v10 = vld [vmem:[%s10167_s19 + $0x78] sm:$0xf] }
 0x1c3   : > { %v4697_v28 = vrot.slane %v4695_v29, 5  ;;  %v4700_v32 = vrot.slane %v4698_v26, 6  ;;  %v780_v56 = vrot.slane %v778_v60, 7  ;;  %v4708_v20 = vshll.u32 %v4409_v39, 16  ;;  %v12243_v26 = vld [vmem:[%s10167_s19 + $0x78] sm:$0xf] }
 0x1c4   : > { %v2646_v61 = vpop.permute.xlu1 %2645  ;;  %v3263_v41 = vpop.permute.xlu0 %3262  ;;  %v3090_v6 = vsel %vm10234_vm8, %v3085_v38, %v3089_v59  ;;  %v12204_v35 = vrot.slane %v3710_v52, 4  ;;  %v3100_v46 = vsel %vm10234_vm8, %v3095_v45, %v12195_v15  ;;  %v4174_v19 = vsel %vm10259_vm11, %v4172_v9, %v4173_v36 }
 0x1c5   : > { %2750 = vst.msk [vmem:[#allocation2 + $0x4c] sm:$0xf] %vm15219_vm6, %v2646_v61  ;;  %v12209_v61 = vld [vmem:[%s10167_s19 + $0x84] sm:$0xf]  ;;  %v4175_v13 = vrot.slane %v4173_v36, 4  ;;  %v4693_v52 = vrot.slane %v12106_v42, 4 }
 0x1c6   : > { %3368 = vst.msk [vmem:[#allocation2 + $0x48] sm:$0xf] %vm15294_vm12, %v3263_v41  ;;  %1248 = vrot.lane.b32.xlu1 %v1154_v18, %s15288_s26  ;;  %1830 = vrot.lane.b32.xlu0 %v1651_v48, %s15289_s28  ;;  %vm15296_vm12 = vcmask 454016   ;;  %v3701_v18 = vrot.slane %v3700_v27, 4  ;;  %v775_v48 = vshrl.u32 %v469_v25, 16  ;;  %v4176_v5 = vrot.slane %v12209_v61, 5 }
 0x1c7   : > { %v12218_v41 = vld [vmem:[%s10167_s19 + $0x74] sm:$0xf]  ;;  %v773_v3 = vrot.slane %v12116_v50, 4  ;;  %v4710_v45 = vrot.slane %v4708_v20, 6  ;;  %v12246_v25 = vld [vmem:[%s10167_s19 + $0x7c] sm:$0xf] }
 0x1c8   : > { %v3265_v14 = vpop.permute.xlu1 %3264  ;;  %v3879_v40 = vpop.permute.xlu0 %3878  ;;  %v1012_v27 = vld [vmem:[%s10167_s19 + $0x74] sm:$0xf]  ;;  %v1663_v57 = vshrl.u32 %v12218_v41, 16  ;;  %v1666_v36 = vshll.u32 %v12218_v41, 16  ;;  %v4177_v60 = vsel %vm10259_vm11, %v4175_v13, %v4176_v5 }
 0x1c9   : > { %3369 = vst.msk [vmem:[#allocation2 + $0x4c] sm:$0xf] %vm15295_vm2, %v3265_v14  ;;  %vm15297_vm2 = vmmov %vm15296_vm12  ;;  %v1156_v9 = vrot.slane %v1012_v27, 7  ;;  %v3717_v27 = vshrl.u32 %v12175_v63, 16 }
 0x1ca   : > { %3984 = vst.msk [vmem:[#allocation2 + $0x48] sm:$0xf] %vm15296_vm12, %v3879_v40  ;;  %1832 = vrot.lane.b32.xlu1 %v1660_v49, %s15289_s28  ;;  %2411 = vrot.lane.b32.xlu0 %v2232_v44, %s15213_s29  ;;  %vm15298_vm12 = vcmask 519616   ;;  %v777_v49 = vrot.slane %v775_v48, 6  ;;  %v3706_v44 = vsel %vm10234_vm8, %v3701_v18, %v12172_v54  ;;  %v3716_v40 = vsel %vm10234_vm8, %v12204_v35, %v12199_v12 }
 0x1cb   : > { %v12252_v35 = vrot.slane %v1663_v57, 7 }
 0x1cc   : > { %v3881_v30 = vpop.permute.xlu1 %3880  ;;  %v4252_v47 = vpop.permute.xlu0 %4251 }
 0x1cd   : > { %3985 = vst.msk [vmem:[#allocation2 + $0x4c] sm:$0xf] %vm15297_vm2, %v3881_v30  ;;  %vm15299_vm2 = vmmov %vm15298_vm12  ;;  %v781_v30 = vor.u32 %v780_v56, %v777_v49  ;;  %v2244_v49 = vshrl.u32 %v12246_v25, 16 }
 0x1ce   : > { %4357 = vst.msk [vmem:[#allocation2 + $0x48] sm:$0xf] %vm15298_vm12, %v4252_v47  ;;  %2413 = vrot.lane.b32.xlu1 %v2241_v62, %s15213_s29  ;;  %2659 = vrot.lane.b32.xlu0 %v2551_v2, %s15272_s20  ;;  %vm15300_vm12 = vcmask 126016   ;;  %v4701_v47 = vor.u32 %v4700_v32, %v4697_v28  ;;  %v1155_v28 = vrot.slane %v1153_v11, 4  ;;  %v1661_v11 = vrot.slane %v12131_v55, 4 }
 0x1cf   : > { %v783_v39 = vrot.slane %v781_v30, 4  ;;  %v1675_v55 = vshll.u32 %v12243_v26, 16  ;;  %v2246_v13 = vrot.slane %v2244_v49, 7 }
 0x1d0   : > { %v4254_v31 = vpop.permute.xlu1 %4253  ;;  %v4871_v23 = vpop.permute.xlu0 %4870  ;;  %v4703_v32 = vrot.slane %v4701_v47, 4 }
 0x1d1   : > { %4358 = vst.msk [vmem:[#allocation2 + $0x4c] sm:$0xf] %vm15299_vm2, %v4254_v31  ;;  %v5305_v7 = vpop.f32.mrb[8].mxu0  ;;  %v782_v31 = vsel %vm10478_vm3, %v773_v3, %v781_v30  ;;  %vm15301_vm2 = vmmov %vm15300_vm12 }
 0x1d2   : > { %4976 = vst.msk [vmem:[#allocation2 + $0x48] sm:$0xf] %vm15230_vm15, %v4871_v23  ;;  %2661 = vrot.lane.b32.xlu1 %v2552_v51, %s15272_s20  ;;  %3278 = vrot.lane.b32.xlu0 %v3090_v6, %s15273_s15  ;;  %v5306_v59 = vadd.f32 %v11902_v33, %v5305_v7  ;;  %v9610_v1 = vpop.f32.mrb[9].mxu0  ;;  %v4707_v51 = vrot.slane %v4705_v17, 5  ;;  %v788_v6 = vshll.u32 %v470_v10, 16  ;;  %v4702_v23 = vsel %vm10278_vm14, %v4693_v52, %v4701_v47 }
 0x1d3   : > { %v5308_v16 = vpop.f32.mrb[10].mxu0  ;;  %969 = vst.msk [vmem:[#allocation2 + $0x70] sm:$0xf] %vm15224_vm1, %v782_v31  ;;  %v12268_v7 = vld [vmem:[%s10167_s19 + $0x78] sm:$0xf]  ;;  %v1670_v47 = vrot.slane %v12252_v35, 4 }
 0x1d4   : > { %v4873_v14 = vpop.permute.xlu1 %4872  ;;  %v5459_v62 = vmax.f32 %v5306_v59, 0.0  ;;  %v5309_v54 = vadd.f32 %v11902_v33, %v5308_v16  ;;  %v1235_v2 = vpop.permute.xlu0 %1234  ;;  %v785_v33 = vshrl.u32 %v470_v10, 16  ;;  %v790_v48 = vrot.slane %v788_v6, 7  ;;  %v1974_v17 = vld [vmem:[%s10167_s19 + $0x80] sm:$0xf] }
 0x1d5   : > { %4977 = vst.msk [vmem:[#allocation2 + $0x4c] sm:$0xf] %vm15230_vm15, %v4873_v14  ;;  %v9611_v38 = vpop.f32.mrb[11].mxu0  ;;  %v12271_v41 = vor.u32 %v4710_v45, %v4707_v51  ;;  %v1159_v22 = vrot.slane %v12268_v7, 7  ;;  %v1668_v10 = vor.u32 %v1666_v36, %v12252_v35  ;;  %v3101_v16 = vshrl.u32 %v12170_v58, 16 }
 0x1d6   : > { %1338 = vst.msk [vmem:[#allocation2 + $0x50] sm:$0xf] %vm15300_vm12, %v1235_v2  ;;  %3280 = vrot.lane.b32.xlu1 %v3100_v46, %s15273_s15  ;;  %3894 = vrot.lane.b32.xlu0 %v3706_v44, %s15228_s16  ;;  %v5460_v29 = vmax.f32 %v5309_v54, 0.0  ;;  %v787_v42 = vrot.slane %v785_v33, 6  ;;  %v1672_v46 = vshrl.u32 %v12243_v26, 16  ;;  %v1158_v44 = vrot.slane %v1156_v9, 4 }
 0x1d7   : > { %5501 = vst.msk [vmem:[#allocation3 + $0x20] sm:$0xff] %vm15223_vm5, %v5459_v62  ;;  %v4712_v58 = vsel %vm10278_vm14, %v4703_v32, %v12271_v41  ;;  %v2247_v62 = vshll.u32 %v12246_v25, 16  ;;  %v2253_v54 = vshrl.u32 %v1974_v17, 16  ;;  %v2802_v2 = vld [vmem:[%s10167_s19 + $0x80] sm:$0xf]  ;;  %v1669_v52 = vsel %vm10193_vm7, %v1661_v11, %v1668_v10 }
 0x1d8   : > { %v1237_v18 = vpop.permute.xlu1 %1236  ;;  %5502 = vst.msk [vmem:[#allocation3 + $0x28] sm:$0xff] %vm15223_vm5, %v5460_v29  ;;  %v1819_v50 = vpop.permute.xlu0 %1818  ;;  %v12274_v56 = vor.u32 %v790_v48, %v787_v42  ;;  %v1160_v30 = vsel %vm10175_vm4, %v1158_v44, %v1159_v22  ;;  %v3103_v3 = vrot.slane %v3101_v16, 4  ;;  %v3107_v33 = vshll.u32 %v2802_v2, 16  ;;  %v3421_v51 = vld [vmem:[%s10167_s19 + $0x88] sm:$0xf] }
 0x1d9   : > { %1339 = vst.msk [vmem:[#allocation2 + $0x54] sm:$0xf] %vm15301_vm2, %v1237_v18  ;;  %v3111_v29 = vshrl.u32 %v2802_v2, 16  ;;  %v2242_v45 = vrot.slane %v12157_v37, 4  ;;  %v2249_v26 = vor.u32 %v2247_v62, %v2246_v13  ;;  %v12317_v6 = vrot.slane %v2253_v54, 7 }
 0x1da   : > { %1922 = vst.msk [vmem:[#allocation2 + $0x50] sm:$0xf] %vm15222_vm13, %v1819_v50  ;;  %3896 = vrot.lane.b32.xlu1 %v3716_v40, %s15228_s16  ;;  %4267 = vrot.lane.b32.xlu0 %v4174_v19, %s15226_s17  ;;  %v792_v14 = vsel %vm10478_vm3, %v783_v39, %v12274_v56  ;;  %v1157_v40 = vsel %vm10175_vm4, %v1155_v28, %v1156_v9  ;;  %v12290_v19 = vrot.slane %v1672_v46, 7  ;;  %v2256_v18 = vshll.u32 %v1974_v17, 16  ;;  %v4410_v32 = vld [vmem:[%s10167_s19 + $0x88] sm:$0xf] }
 0x1db   : > { %970 = vst.msk [vmem:[#allocation2 + $0x74] sm:$0xf] %vm15224_vm1, %v792_v14  ;;  %v3723_v31 = vshll.u32 %v3421_v51, 16  ;;  %v3727_v42 = vshrl.u32 %v3421_v51, 16  ;;  %vm15302_vm12 = vcmask 388416   ;;  %v3104_v50 = vor.u32 %v3103_v3, %v12195_v15 }
 0x1dc   : > { %v1821_v59 = vpop.permute.xlu1 %1820  ;;  %v9844_v1 = vld [vmem:[#allocation2 + $0x48] sm:$0xff]   ;;  %v2400_v20 = vpop.permute.xlu0 %2399  ;;  %v1677_v63 = vor.u32 %v1675_v55, %v12290_v19  ;;  %v3109_v35 = vrot.slane %v3107_v33, 5  ;;  %v3113_v36 = vrot.slane %v3111_v29, 4  ;;  %v2250_v39 = vsel %vm10193_vm7, %v2242_v45, %v2249_v26  ;;  %vm15303_vm2 = vmmov %vm15302_vm12  ;;  %v2553_v10 = vld [vmem:[%s10167_s19 + $0x7c] sm:$0xf] }
 0x1dd   : > { %1923 = vst.msk [vmem:[#allocation2 + $0x54] sm:$0xf] %vm15222_vm13, %v1821_v59  ;;  %9637 = vmatmul.mubr.msk.bf16.gmra.mrb[36].mxu0 %vm15220_vm10, %v9844_v1  ;;  %v2251_v48 = vrot.slane %v2246_v13, 4  ;;  %v3719_v28 = vrot.slane %v3717_v27, 4  ;;  %v12334_v15 = vrot.slane %v3723_v31, 5  ;;  %v3729_v59 = vrot.slane %v3727_v42, 4 }
 0x1de   : > { %2503 = vst.msk [vmem:[#allocation2 + $0x50] sm:$0xf] %vm15221_vm0, %v2400_v20  ;;  %4269 = vrot.lane.b32.xlu1 %v4177_v60, %s15226_s17  ;;  %4886 = vrot.lane.b32.xlu0 %v4702_v23, %s15215_s18  ;;  %v1678_v37 = vsel %vm10193_vm7, %v1670_v47, %v1677_v63  ;;  %v2258_v60 = vor.u32 %v2256_v18, %v12317_v6  ;;  %v12330_v23 = vld [vmem:[%s10167_s19 + $0x84] sm:$0xf]  ;;  %v3105_v1 = vrot.slane %v3104_v50, 4  ;;  %v4715_v16 = vshrl.u32 %v4410_v32, 16 }
 0x1df   : > { %9640 = vmatprep.mubr.msk.bf16.mxu0 %vm15217_vm9, %v15247_v8  ;;  %v3114_v44 = vor.u32 %v3113_v36, %v3109_v35  ;;  %v3117_v17 = vshll.u32 %v12330_v23, 16  ;;  %v12341_v20 = vld [vmem:[%s10167_s19 + $0x8c] sm:$0xf]  ;;  %v3720_v14 = vor.u32 %v3719_v28, %v12199_v12  ;;  %v3730_v62 = vor.u32 %v3729_v59, %v12334_v15  ;;  %v2554_v12 = vld [vmem:[%s10167_s19 + $0x80] sm:$0xf] }
 0x1e0   : > { %v2402_v38 = vpop.permute.xlu1 %2401  ;;  %v2648_v57 = vpop.permute.xlu0 %2647  ;;  %v2259_v11 = vsel %vm10193_vm7, %v2251_v48, %v2258_v60  ;;  %v3733_v54 = vshll.u32 %v12341_v20, 16  ;;  %v4411_v2 = vld [vmem:[%s10167_s19 + $0x8c] sm:$0xf]  ;;  %v4717_v47 = vrot.slane %v4715_v16, 5  ;;  %v471_v3 = vld [vmem:[%s10167_s19 + $0x7c] sm:$0xf] }
 0x1e1   : > { %2504 = vst.msk [vmem:[#allocation2 + $0x54] sm:$0xf] %vm15221_vm0, %v2402_v38  ;;  %v3110_v38 = vsel %vm10234_vm8, %v3105_v1, %v3109_v35  ;;  %v3115_v27 = vrot.slane %v3114_v44, 4  ;;  %v4725_v29 = vshrl.u32 %v4411_v2, 16  ;;  %v4728_v51 = vshll.u32 %v4411_v2, 16 }
 0x1e2   : > { %2751 = vst.msk [vmem:[#allocation2 + $0x50] sm:$0xf] %vm15219_vm6, %v2648_v57  ;;  %4888 = vrot.lane.b32.xlu1 %v4712_v58, %s15215_s18  ;;  %1250 = vrot.lane.b32.xlu0 %v1157_v40, %s15288_s26  ;;  %v4718_v40 = vshll.u32 %v4410_v32, 16  ;;  %v12348_v58 = vld [vmem:[%s10167_s19 + $0x88] sm:$0xf]  ;;  %v12360_v57 = vrot.slane %v3117_v17, 5 }
 0x1e3   : > { %v795_v45 = vshrl.u32 %v471_v3, 16  ;;  %v798_v26 = vshll.u32 %v471_v3, 16  ;;  %v12368_v31 = vld [vmem:[%s10167_s19 + $0x8c] sm:$0xf]  ;;  %v12376_v50 = vld [vmem:[%s10167_s19 + $0x7c] sm:$0xf] }
 0x1e4   : > { %v2650_v9 = vpop.permute.xlu1 %2649  ;;  %v3267_v25 = vpop.permute.xlu0 %3266  ;;  %v4720_v63 = vrot.slane %v4718_v40, 6  ;;  %v3120_v28 = vsel %vm10234_vm8, %v3115_v27, %v12360_v57  ;;  %v4182_v59 = vrot.slane %v12368_v31, 5  ;;  %v4727_v44 = vrot.slane %v4725_v29, 5  ;;  %s15316_s18 = smov 24  }
 0x1e5   : > { %2752 = vst.msk [vmem:[#allocation2 + $0x54] sm:$0xf] %vm15219_vm6, %v2650_v9  ;;  %v3731_v9 = vrot.slane %v3730_v62, 4  ;;  %v797_v35 = vrot.slane %v795_v45, 6  ;;  %v800_v36 = vrot.slane %v798_v26, 7  ;;  %v4730_v17 = vrot.slane %v4728_v51, 6 }
 0x1e6   : > { %3370 = vst.msk [vmem:[#allocation2 + $0x50] sm:$0xf] %vm15302_vm12, %v3267_v25  ;;  %1252 = vrot.lane.b32.xlu1 %v1160_v30, %s15288_s26  ;;  %1834 = vrot.lane.b32.xlu0 %v1669_v52, %s15289_s28  ;;  %vm15304_vm12 = vcmask 454016   ;;  %v3721_v30 = vrot.slane %v3720_v14, 4  ;;  %v4179_v52 = vrot.slane %v12348_v58, 5  ;;  %v12365_v25 = vrot.slane %v3733_v54, 5 }
 0x1e7   : > { %v12392_v1 = vor.u32 %v4720_v63, %v4717_v47  ;;  %v1162_v40 = vrot.slane %v12376_v50, 7  ;;  %v12409_v62 = vld [vmem:[%s10167_s19 + $0x80] sm:$0xf]  ;;  %v12412_v54 = vld [vmem:[%s10167_s19 + $0x84] sm:$0xf]  ;;  %v793_v2 = vrot.slane %v12274_v56, 4 }
 0x1e8   : > { %v3269_v46 = vpop.permute.xlu1 %3268  ;;  %v3883_v49 = vpop.permute.xlu0 %3882  ;;  %v3726_v61 = vsel %vm10234_vm8, %v3721_v30, %v12334_v15  ;;  %v3736_v58 = vsel %vm10234_vm8, %v3731_v9, %v12365_v25  ;;  %v4713_v27 = vrot.slane %v12271_v41, 4  ;;  %v1690_v51 = vshrl.u32 %v12409_v62, 16 }
 0x1e9   : > { %3371 = vst.msk [vmem:[#allocation2 + $0x54] sm:$0xf] %vm15303_vm2, %v3269_v46  ;;  %vm15305_vm2 = vmmov %vm15304_vm12  ;;  %v472_v46 = vld [vmem:[%s10167_s19 + $0x80] sm:$0xf]  ;;  %v4723_v3 = vrot.slane %v12392_v1, 4  ;;  %v2262_v45 = vshrl.u32 %v12412_v54, 16  ;;  %v12436_v9 = vor.u32 %v4730_v17, %v4727_v44 }
 0x1ea   : > { %3986 = vst.msk [vmem:[#allocation2 + $0x50] sm:$0xf] %vm15304_vm12, %v3883_v49  ;;  %1836 = vrot.lane.b32.xlu1 %v1678_v37, %s15289_s28  ;;  %2415 = vrot.lane.b32.xlu0 %v2250_v39, %s15213_s29  ;;  %vm15306_vm12 = vcmask 519616   ;;  %v4178_v37 = vrot.slane %v4176_v5, 4  ;;  %v12381_v39 = vld [vmem:[%s15286_s2] ss:$0 sm:$0xff] }
 0x1eb   : > { %v4181_v5 = vrot.slane %v4179_v52, 4  ;;  %v808_v47 = vshll.u32 %v472_v46, 16  ;;  %v12457_v44 = vrot.slane %v2262_v45, 7  ;;  %v2804_v17 = vld [vmem:[%s10167_s19 + $0x88] sm:$0xf] }
 0x1ec   : > { %v3885_v55 = vpop.permute.xlu1 %3884  ;;  %v4256_v13 = vpop.permute.xlu0 %4255 }
 0x1ed   : > { %3987 = vst.msk [vmem:[#allocation2 + $0x54] sm:$0xf] %vm15305_vm2, %v3885_v55  ;;  %vm15307_vm2 = vmmov %vm15306_vm12  ;;  %v801_v55 = vor.u32 %v800_v36, %v797_v35  ;;  %v5539_v35 = vld [vmem:[#allocation3 + $0x13] ss:$2 sm:$0xff]  ;;  %v4722_v36 = vsel %vm10278_vm14, %v4713_v27, %v12392_v1  ;;  %v1693_v1 = vshll.u32 %v12409_v62, 16  ;;  %v3121_v62 = vshrl.u32 %v12330_v23, 16 }
 0x1ee   : > { %4359 = vst.msk [vmem:[#allocation2 + $0x50] sm:$0xf] %vm15306_vm12, %v4256_v13  ;;  %2417 = vrot.lane.b32.xlu1 %v2259_v11, %s15213_s29  ;;  %2663 = vrot.lane.b32.xlu0 %v2553_v10, %s15272_s20  ;;  %v12395_v11 = vld [vmem:[%s10167_s19 + $0x7c] sm:$0xf]  ;;  %vm15308_vm12 = vcmask 126016   ;;  %v4180_v13 = vsel %vm10259_vm11, %v4178_v37, %v4179_v52  ;;  %v4183_v52 = vsel %vm10259_vm11, %v4181_v5, %v4182_v59  ;;  %v1164_v37 = vrot.slane %v1162_v40, 4 }
 0x1ef   : > { %v1681_v30 = vshrl.u32 %v12395_v11, 16  ;;  %v802_v56 = vsel %vm10478_vm3, %v793_v2, %v801_v55  ;;  %v803_v26 = vrot.slane %v801_v55, 4  ;;  %v1684_v50 = vshll.u32 %v12395_v11, 16  ;;  %v5541_v5 = vld [vmem:[#allocation3 + $0x14] ss:$2 sm:$0xff]  ;;  %s15310_s29 = smov 64  }
 0x1f0   : > { %v4258_v33 = vpop.permute.xlu1 %4257  ;;  %v4875_v18 = vpop.permute.xlu0 %4874  ;;  %971 = vst.msk [vmem:[#allocation2 + $0x78] sm:$0xf] %vm15224_vm1, %v802_v56  ;;  %v3131_v27 = vshrl.u32 %v2804_v17, 16 }
 0x1f1   : > { %4360 = vst.msk [vmem:[#allocation2 + $0x54] sm:$0xf] %vm15307_vm2, %v4258_v33  ;;  %v5313_v42 = vpop.f32.mrb[12].mxu0  ;;  %v12424_v33 = vld [vmem:[%s10167_s19 + $0x80] sm:$0xf]  ;;  %vm15309_vm2 = vmmov %vm15308_vm12 }
 0x1f2   : > { %4978 = vst.msk [vmem:[#allocation2 + $0x50] sm:$0xf] %vm15230_vm15, %v4875_v18  ;;  %2665 = vrot.lane.b32.xlu1 %v2554_v12, %s15272_s20  ;;  %3282 = vrot.lane.b32.xlu0 %v3110_v38, %s15273_s15  ;;  %v5314_v48 = vadd.f32 %v12381_v39, %v5313_v42  ;;  %v9614_v60 = vpop.f32.mrb[13].mxu0  ;;  %v805_v12 = vshrl.u32 %v472_v46, 16  ;;  %v810_v18 = vrot.slane %v808_v47, 7  ;;  %v1161_v42 = vrot.slane %v1159_v22, 4 }
 0x1f3   : > { %v5316_v49 = vpop.f32.mrb[14].mxu0  ;;  %v12445_v60 = vrot.slane %v1681_v30, 7  ;;  %v1679_v46 = vrot.slane %v12290_v19, 4  ;;  %v4732_v19 = vsel %vm10278_vm14, %v4723_v3, %v12436_v9 }
 0x1f4   : > { %v4877_v32 = vpop.permute.xlu1 %4876  ;;  %v5461_v10 = vmax.f32 %v5314_v48, 0.0  ;;  %v5317_v14 = vadd.f32 %v12381_v39, %v5316_v49  ;;  %v1239_v15 = vpop.permute.xlu0 %1238  ;;  %v807_v29 = vrot.slane %v805_v12, 6  ;;  %v1165_v48 = vrot.slane %v12424_v33, 7 }
 0x1f5   : > { %4979 = vst.msk [vmem:[#allocation2 + $0x54] sm:$0xf] %vm15230_vm15, %v4877_v32  ;;  %v9615_v16 = vpop.f32.mrb[15].mxu0  ;;  %v12454_v49 = vrot.slane %v1690_v51, 7  ;;  %v1686_v2 = vor.u32 %v1684_v50, %v12445_v60  ;;  %v1688_v30 = vrot.slane %v12445_v60, 4  ;;  %v3737_v51 = vshrl.u32 %v12341_v20, 16 }
 0x1f6   : > { %1340 = vst.msk [vmem:[#allocation2 + $0x58] sm:$0xf] %vm15308_vm12, %v1239_v15  ;;  %3284 = vrot.lane.b32.xlu1 %v3120_v28, %s15273_s15  ;;  %3898 = vrot.lane.b32.xlu0 %v3726_v61, %s15228_s16  ;;  %v5462_v38 = vmax.f32 %v5317_v14, 0.0  ;;  %v12448_v28 = vld [vmem:[%s10167_s19 + $0x88] sm:$0xf]  ;;  %v12450_v61 = vor.u32 %v810_v18, %v807_v29  ;;  %v1163_v15 = vsel %vm10175_vm4, %v1161_v42, %v1162_v40  ;;  %v2265_v16 = vshll.u32 %v12412_v54, 16 }
 0x1f7   : > { %5503 = vst.msk [vmem:[#allocation3 + $0x30] sm:$0xff] %vm15223_vm5, %v5461_v10  ;;  %v2271_v55 = vshrl.u32 %v12448_v28, 16  ;;  %v1166_v23 = vsel %vm10175_vm4, %v1164_v37, %v1165_v48  ;;  %v1695_v47 = vor.u32 %v1693_v1, %v12454_v49  ;;  %v2274_v56 = vshll.u32 %v12448_v28, 16  ;;  %v3423_v29 = vld [vmem:[%s10167_s19 + $0x90] sm:$0xf] }
 0x1f8   : > { %v1241_v63 = vpop.permute.xlu1 %1240  ;;  %5504 = vst.msk [vmem:[#allocation3 + $0x38] sm:$0xff] %vm15223_vm5, %v5462_v38  ;;  %v1823_v41 = vpop.permute.xlu0 %1822  ;;  %v812_v11 = vsel %vm10478_vm3, %v803_v26, %v12450_v61  ;;  %v3127_v38 = vshll.u32 %v2804_v17, 16  ;;  %v1687_v45 = vsel %vm10193_vm7, %v1679_v46, %v1686_v2  ;;  %v3123_v26 = vrot.slane %v3121_v62, 4  ;;  %v5572_v2 = vld [vmem:[#allocation4 + $0x10] sm:$0x3] }
 0x1f9   : > { %1341 = vst.msk [vmem:[#allocation2 + $0x5c] sm:$0xf] %vm15309_vm2, %v1241_v63  ;;  %v2260_v63 = vrot.slane %v12317_v6, 4  ;;  %v12491_v3 = vrot.slane %v2271_v55, 7  ;;  %v3133_v37 = vrot.slane %v3131_v27, 4  ;;  %vm5564_vm12 = vcmask 257025  }
 0x1fa   : > { %1924 = vst.msk [vmem:[#allocation2 + $0x58] sm:$0xf] %vm15222_vm13, %v1823_v41  ;;  %3900 = vrot.lane.b32.xlu1 %v3736_v58, %s15228_s16  ;;  %4271 = vrot.lane.b32.xlu0 %v4180_v13, %s15226_s17  ;;  %v5542_v58 = vmax.f32 %v5539_v35, %v5541_v5  ;;  %v12498_v42 = vrot.slane %v3127_v38, 5  ;;  %vm5565_vm2 = vsmask.f32 7942  ;;  %v3747_v60 = vshrl.u32 %v3423_v29, 16 }
 0x1fb   : > { %972 = vst.msk [vmem:[#allocation2 + $0x7c] sm:$0xf] %vm15224_vm1, %v812_v11  ;;  %v1696_v20 = vsel %vm10193_vm7, %v1688_v30, %v1695_v47  ;;  %v2269_v5 = vrot.slane %v12457_v44, 4  ;;  %v3124_v1 = vor.u32 %v3123_v26, %v12360_v57  ;;  %v3739_v17 = vrot.slane %v3737_v51, 4  ;;  %v2555_v38 = vld [vmem:[%s10167_s19 + $0x84] sm:$0xf] }
 0x1fc   : > { %v1825_v7 = vpop.permute.xlu1 %1824  ;;  %v9845_v22 = vld [vmem:[#allocation2 + $0x50] sm:$0xff]   ;;  %v2404_v32 = vpop.permute.xlu0 %2403  ;;  %v3749_v55 = vrot.slane %v3747_v60, 4  ;;  %v15319_v62 = vmov 0  ;;  %v4184_v60 = vrot.slane %v4182_v59, 4 }
 0x1fd   : > { %1925 = vst.msk [vmem:[#allocation2 + $0x5c] sm:$0xf] %vm15222_vm13, %v1825_v7  ;;  %9641 = vmatmul.mubr.msk.bf16.gmra.mrb[40].mxu0 %vm15220_vm10, %v9845_v22  ;;  %v2276_v7 = vor.u32 %v2274_v56, %v12491_v3  ;;  %v12511_v22 = vld [vmem:[%s10167_s19 + $0x8c] sm:$0xf]  ;;  %vm15315_vm10 = vcmask 454016   ;;  %v3125_v27 = vrot.slane %v3124_v1, 4 }
 0x1fe   : > { %v5544_v10 = vld [vmem:[#allocation3 + $0x25] ss:$2 sm:$0xff]  ;;  %v5546_v14 = vld [vmem:[#allocation3 + $0x26] ss:$2 sm:$0xff]  ;;  %2505 = vst.msk [vmem:[#allocation2 + $0x58] sm:$0xf] %vm15221_vm0, %v2404_v32  ;;  %4273 = vrot.lane.b32.xlu1 %v4183_v52, %s15226_s17  ;;  %4890 = vrot.lane.b32.xlu0 %v4722_v36, %s15310_s29  ;;  %v2267_v52 = vor.u32 %v2265_v16, %v12457_v44 }
 0x1ff   : > { %v5547_v13 = vmax.f32 %v5544_v10, %v5546_v14  ;;  %9644 = vmatprep.mubr.msk.bf16.mxu0 %vm15217_vm9, %v15247_v8  ;;  %v3743_v36 = vshll.u32 %v3423_v29, 16  ;;  %vm15311_vm9 = vcmask 388416   ;;  %v3134_v10 = vor.u32 %v3133_v37, %v12498_v42  ;;  %v5567_v44 = vld [vmem:[#allocation4 + $0xc] sm:$0xe] }
 0x200   : > { %v2406_v12 = vpop.permute.xlu1 %2405  ;;  %v2652_v54 = vpop.permute.xlu0 %2651  ;;  %v2268_v28 = vsel %vm10193_vm7, %v2260_v63, %v2267_v52  ;;  %v3137_v57 = vshll.u32 %v12511_v22, 16  ;;  %v4039_v63 = vld [vmem:[%s10167_s19 + $0x90] sm:$0xf]  ;;  %v3130_v37 = vsel %vm10234_vm8, %v3125_v27, %v12498_v42 }
 0x201   : > { %v5548_v40 = vmax.f32 %v5542_v58, %v5547_v13  ;;  %2506 = vst.msk [vmem:[#allocation2 + $0x5c] sm:$0xf] %vm15221_vm0, %v2406_v12  ;;  %v12523_v16 = vrot.slane %v3743_v36, 5  ;;  %v2277_v58 = vsel %vm10193_vm7, %v2269_v5, %v2276_v7  ;;  %v12531_v13 = vld [vmem:[%s10167_s19 + $0x94] sm:$0xf]  ;;  %v3135_v47 = vrot.slane %v3134_v10, 4 }
 0x202   : > { %2753 = vst.msk [vmem:[#allocation2 + $0x58] sm:$0xf] %vm15219_vm6, %v2652_v54  ;;  %4892 = vrot.lane.b32.xlu1 %v4732_v19, %s15310_s29  ;;  %1254 = vrot.lane.b32.xlu0 %v1163_v15, %s15288_s26  ;;  %v4412_v54 = vld [vmem:[%s10167_s19 + $0x90] sm:$0xf]  ;;  %v12546_v56 = vrot.slane %v3137_v57, 5 }
 0x203   : > { %v9392_v41 = vpack.c.bf16 %v5548_v40, %v5548_v40  ;;  %v3740_v40 = vor.u32 %v3739_v17, %v12365_v25  ;;  %v3750_v29 = vor.u32 %v3749_v55, %v12523_v16  ;;  %v4413_v25 = vld [vmem:[%s10167_s19 + $0x94] sm:$0xf]  ;;  %v4738_v26 = vshll.u32 %v4412_v54, 16 }
 0x204   : > { %v2654_v18 = vpop.permute.xlu1 %2653  ;;  %v3271_v35 = vpop.permute.xlu0 %3270  ;;  %v4748_v17 = vshll.u32 %v4413_v25, 16 }
 0x205   : > { %v5554_v6 = vshrl.u32 %v9392_v41, 16  ;;  %v5557_v50 = vshll.u32 %v9392_v41, 16  ;;  %2754 = vst.msk [vmem:[#allocation2 + $0x5c] sm:$0xf] %vm15219_vm6, %v2654_v18  ;;  %vm15314_vm6 = vcmask 388416   ;;  %v3753_v41 = vshll.u32 %v12531_v13, 16 }
 0x206   : > { %3372 = vst.msk [vmem:[#allocation2 + $0x58] sm:$0xf] %vm15311_vm9, %v3271_v35  ;;  %1256 = vrot.lane.b32.xlu1 %v1166_v23, %s15288_s26  ;;  %1838 = vrot.lane.b32.xlu0 %v1687_v45, %s15289_s28  ;;  %vm12517_vm9 = vmand %vm5564_vm12, %vm5565_vm2  ;;  %vm15318_vm12 = vcmask 254976   ;;  %v4735_v45 = vshrl.u32 %v4412_v54, 16  ;;  %v2556_v18 = vld [vmem:[%s10167_s19 + $0x88] sm:$0xf] }
 0x207   : > { %v5556_v46 = vrot.slane %v5554_v6, 6  ;;  %v5559_v32 = vrot.slane %v5557_v50, 7  ;;  %v3741_v6 = vrot.slane %v3740_v40, 4  ;;  %v4185_v50 = vrot.slane %v4039_v63, 5  ;;  %v473_v35 = vld [vmem:[%s10167_s19 + $0x84] sm:$0xf] }
 0x208   : > { %v3273_v11 = vpop.permute.xlu1 %3272  ;;  %v3887_v15 = vpop.permute.xlu0 %3886  ;;  %v815_v5 = vshrl.u32 %v473_v35, 16  ;;  %v818_v7 = vshll.u32 %v473_v35, 16  ;;  %v3751_v42 = vrot.slane %v3750_v29, 4  ;;  %v12570_v1 = vrot.slane %v3753_v41, 5  ;;  %v12590_v29 = vld [vmem:[%s10167_s19 + $0x88] sm:$0xf] }
 0x209   : > { %v5560_v19 = vor.u32 %v5559_v32, %v5556_v46  ;;  %3373 = vst.msk [vmem:[#allocation2 + $0x5c] sm:$0xf] %vm15314_vm6, %v3273_v11  ;;  %vm15317_vm6 = vsmask.f32 1280  ;;  %v3140_v32 = vsel %vm10234_vm8, %v3135_v47, %v12546_v56  ;;  %v4737_v59 = vrot.slane %v4735_v45, 5 }
 0x20a   : > { %3988 = vst.msk [vmem:[#allocation2 + $0x58] sm:$0xf] %vm15315_vm10, %v3887_v15  ;;  %1840 = vrot.lane.b32.xlu1 %v1696_v20, %s15289_s28  ;;  %2419 = vrot.lane.b32.xlu0 %v2268_v28, %s15316_s18  ;;  %vm12535_vm2 = vmand %vm15318_vm12, %vm15317_vm6  ;;  %vm15321_vm6 = vcmask 519616   ;;  %v12564_v20 = vld [vmem:[%s10167_s19 + $0x94] sm:$0xf]  ;;  %v4745_v28 = vshrl.u32 %v4413_v25, 16  ;;  %v3746_v57 = vsel %vm10234_vm8, %v3741_v6, %v12523_v16  ;;  %v4186_v27 = vsel %vm10259_vm11, %v4184_v60, %v4185_v50 }
 0x20b   : > { %v15320_v62 = vsel %vm12535_vm2, 4294967295, %v15319_v62  ;;  %v5561_v12 = vrot.slane %v5560_v19, 4  ;;  %v5568_v23 = vsel %vm12517_vm9, %v5560_v19, %v5567_v44  ;;  %vm15322_vm12 = vmmov %vm15321_vm6  ;;  %v4740_v11 = vrot.slane %v4738_v26, 6  ;;  %v12600_v45 = vld [vmem:[%s10167_s19 + $0x8c] sm:$0xf] }
 0x20c   : > { %v3889_v30 = vpop.permute.xlu1 %3888  ;;  %5569 = vst [vmem:[#allocation4 + $0xc] sm:$0xe] %v5568_v23  ;;  %v4260_v52 = vpop.permute.xlu0 %4259  ;;  %v817_v10 = vrot.slane %v815_v5, 6  ;;  %v820_v44 = vrot.slane %v818_v7, 7  ;;  %v4187_v55 = vrot.slane %v4185_v50, 4  ;;  %v4733_v40 = vrot.slane %v12436_v9, 4 }
 0x20d   : > { %3989 = vst.msk [vmem:[#allocation2 + $0x5c] sm:$0xf] %vm15315_vm10, %v3889_v30  ;;  %v5573_v51 = vsel %vm12535_vm2, %v5561_v12, %v5572_v2  ;;  %v474_v2 = vld [vmem:[%s10167_s19 + $0x88] sm:$0xf]  ;;  %v4747_v54 = vrot.slane %v4745_v28, 5  ;;  %vm15323_vm10 = vcmask 126016   ;;  %v3756_v9 = vsel %vm10234_vm8, %v3751_v42, %v12570_v1 }
 0x20e   : > { %4361 = vst.msk [vmem:[#allocation2 + $0x58] sm:$0xf] %vm15321_vm6, %v4260_v52  ;;  %2421 = vrot.lane.b32.xlu1 %v2277_v58, %s15316_s18  ;;  %2667 = vrot.lane.b32.xlu0 %v2555_v38, %s15272_s20  ;;  %5574 = vst [vmem:[#allocation4 + $0x10] sm:$0x3] %v5573_v51  ;;  %v4188_v58 = vrot.slane %v12564_v20, 5  ;;  %v4750_v52 = vrot.slane %v4748_v17, 6  ;;  %v821_v41 = vor.u32 %v820_v44, %v817_v10 }
 0x20f   : > { %v12585_v23 = vld [vmem:[%s10167_s19 + $0x84] sm:$0xf]  ;;  %v4741_v25 = vor.u32 %v4740_v11, %v4737_v59  ;;  %v813_v26 = vrot.slane %v12450_v61, 4  ;;  %v828_v35 = vshll.u32 %v474_v2, 16  ;;  %v1167_v60 = vrot.slane %v1165_v48, 4  ;;  %vm15324_vm6 = vmmov %vm15323_vm10 }
 0x210   : > { %v4262_v36 = vpop.permute.xlu1 %4261  ;;  %v4879_v46 = vpop.permute.xlu0 %4878  ;;  %v1016_v51 = vld [vmem:[%s10167_s19 + $0x84] sm:$0xf]  ;;  %v4189_v6 = vsel %vm10259_vm11, %v4187_v55, %v4188_v58  ;;  %v1699_v50 = vshrl.u32 %v12585_v23, 16  ;;  %v1708_v28 = vshrl.u32 %v12590_v29, 16  ;;  %v823_v42 = vrot.slane %v821_v41, 4 }
 0x211   : > { %4362 = vst.msk [vmem:[#allocation2 + $0x5c] sm:$0xf] %vm15322_vm12, %v4262_v36  ;;  %v5321_v31 = vpop.f32.mrb[16].mxu0  ;;  %v822_v61 = vsel %vm10478_vm3, %v813_v26, %v821_v41  ;;  %v830_v33 = vrot.slane %v828_v35, 7  ;;  %v3141_v48 = vshrl.u32 %v12511_v22, 16  ;;  %v4742_v17 = vsel %vm10278_vm14, %v4733_v40, %v4741_v25 }
 0x212   : > { %4980 = vst.msk [vmem:[#allocation2 + $0x58] sm:$0xf] %vm15230_vm15, %v4879_v46  ;;  %2669 = vrot.lane.b32.xlu1 %v2556_v18, %s15272_s20  ;;  %3286 = vrot.lane.b32.xlu0 %v3130_v37, %s15273_s15  ;;  %v5322_v19 = vadd.f32 %v12381_v39, %v5321_v31  ;;  %v9618_v15 = vpop.f32.mrb[17].mxu0  ;;  %v825_v18 = vshrl.u32 %v474_v2, 16  ;;  %v1168_v46 = vrot.slane %v1016_v51, 7  ;;  %v4743_v31 = vrot.slane %v4741_v25, 4 }
 0x213   : > { %v5324_v38 = vpop.f32.mrb[18].mxu0  ;;  %973 = vst.msk [vmem:[#allocation2 + $0x80] sm:$0xf] %vm15224_vm1, %v822_v61  ;;  %v12624_v59 = vor.u32 %v4750_v52, %v4747_v54  ;;  %v12627_v11 = vld [vmem:[%s10167_s19 + $0x88] sm:$0xf]  ;;  %v1701_v10 = vrot.slane %v1699_v50, 7 }
 0x214   : > { %v4881_v12 = vpop.permute.xlu1 %4880  ;;  %v5463_v30 = vmax.f32 %v5322_v19, 0.0  ;;  %v5325_v16 = vadd.f32 %v12381_v39, %v5324_v38  ;;  %v1243_v47 = vpop.permute.xlu0 %1242  ;;  %v827_v5 = vrot.slane %v825_v18, 6  ;;  %v1702_v44 = vshll.u32 %v12585_v23, 16  ;;  %v5813_v15 = vld [vmem:[#allocation4 + $0x8] sm:$0xf] }
 0x215   : > { %4981 = vst.msk [vmem:[#allocation2 + $0x5c] sm:$0xf] %vm15230_vm15, %v4881_v12  ;;  %v9619_v63 = vpop.f32.mrb[19].mxu0  ;;  %v1711_v22 = vshll.u32 %v12590_v29, 16  ;;  %v12633_v2 = vrot.slane %v1708_v28, 7  ;;  %v2283_v54 = vshll.u32 %v12600_v45, 16  ;;  %v4752_v29 = vsel %vm10278_vm14, %v4743_v31, %v12624_v59 }
 0x216   : > { %1342 = vst.msk [vmem:[#allocation2 + $0x60] sm:$0xf] %vm15323_vm10, %v1243_v47  ;;  %3288 = vrot.lane.b32.xlu1 %v3140_v32, %s15273_s15  ;;  %3902 = vrot.lane.b32.xlu0 %v3746_v57, %s15228_s16  ;;  %v5464_v37 = vmax.f32 %v5325_v16, 0.0  ;;  %v2280_v32 = vshrl.u32 %v12600_v45, 16  ;;  %v12631_v19 = vor.u32 %v830_v33, %v827_v5  ;;  %v12636_v12 = vld [vmem:[%s10167_s19 + $0x90] sm:$0xf] }
 0x217   : > { %5505 = vst.msk [vmem:[#allocation3 + $0x40] sm:$0xff] %vm15223_vm5, %v5463_v30  ;;  %v1170_v30 = vrot.slane %v1168_v46, 4  ;;  %v1171_v16 = vrot.slane %v12627_v11, 7  ;;  %v2806_v47 = vld [vmem:[%s10167_s19 + $0x90] sm:$0xf]  ;;  %v5845_v63 = vshrl.u32 %v5813_v15, 16 }
 0x218   : > { %v1245_v36 = vpop.permute.xlu1 %1244  ;;  %5506 = vst.msk [vmem:[#allocation3 + $0x48] sm:$0xff] %vm15223_vm5, %v5464_v37  ;;  %v1827_v7 = vpop.permute.xlu0 %1826  ;;  %v12641_v40 = vrot.slane %v2280_v32, 7  ;;  %v832_v23 = vsel %vm10478_vm3, %v823_v42, %v12631_v19  ;;  %v5848_v52 = vshll.u32 %v5813_v15, 16  ;;  %vm15325_vm12 = vcmask 588800   ;;  %v6486_v51 = vld [vmem:[#allocation4 + $0xc] sm:$0xf] }
 0x219   : > { %1343 = vst.msk [vmem:[#allocation2 + $0x64] sm:$0xf] %vm15324_vm6, %v1245_v36  ;;  %v1697_v41 = vrot.slane %v12454_v49, 4  ;;  %v2289_v25 = vshrl.u32 %v12636_v12, 16  ;;  %v3757_v45 = vshrl.u32 %v12531_v13, 16  ;;  %v1706_v18 = vrot.slane %v1701_v10, 4 }
 0x21a   : > { %1926 = vst.msk [vmem:[#allocation2 + $0x60] sm:$0xf] %vm15222_vm13, %v1827_v7  ;;  %3904 = vrot.lane.b32.xlu1 %v3756_v9, %s15228_s16  ;;  %4275 = vrot.lane.b32.xlu0 %v4186_v27, %s15226_s17  ;;  %v1169_v27 = vsel %vm10175_vm4, %v1167_v60, %v1168_v46  ;;  %v1704_v9 = vor.u32 %v1702_v44, %v1701_v10  ;;  %vm15326_vm10 = vmmov 0   ;;  %vm15327_vm6 = vcmask 257024   ;;  %v3425_v46 = vld [vmem:[%s10167_s19 + $0x98] sm:$0xf] }
 0x21b   : > { %974 = vst.msk [vmem:[#allocation2 + $0x84] sm:$0xf] %vm15224_vm1, %v832_v23  ;;  %v1713_v37 = vor.u32 %v1711_v22, %v12633_v2  ;;  %v2278_v49 = vrot.slane %v12491_v3, 4  ;;  %v2285_v50 = vor.u32 %v2283_v54, %v12641_v40  ;;  %v3147_v35 = vshll.u32 %v2806_v47, 16  ;;  %v5814_v33 = vld [vmem:[#allocation4 + $0xc] sm:$0xf] }
 0x21c   : > { %v1829_v57 = vpop.permute.xlu1 %1828  ;;  %v9846_v55 = vld [vmem:[#allocation2 + $0x58] sm:$0xff]   ;;  %v2408_v38 = vpop.permute.xlu0 %2407  ;;  %6499 = vst.msk [vmem:[#allocation5 + $0x10] sm:$0xf] %vm15327_vm6, %v6486_v51  ;;  %v3151_v36 = vshrl.u32 %v2806_v47, 16  ;;  %v1172_v13 = vsel %vm10175_vm4, %v1170_v30, %v1171_v16  ;;  %v5847_v60 = vrot.slane %v5845_v63, 6  ;;  %v5850_v28 = vrot.slane %v5848_v52, 7 }
 0x21d   : > { %1927 = vst.msk [vmem:[#allocation2 + $0x64] sm:$0xf] %vm15222_vm13, %v1829_v57  ;;  %9645 = vmatmul.mubr.msk.bf16.gmra.mrb[44].mxu0 %vm15325_vm12, %v9846_v55  ;;  %vm15328_vm12 = vcmask 322816   ;;  %v1705_v3 = vsel %vm10193_vm7, %v1697_v41, %v1704_v9  ;;  %v12676_v61 = vrot.slane %v2289_v25, 7  ;;  %v2292_v5 = vshll.u32 %v12636_v12, 16 }
 0x21e   : > { %2507 = vst.msk [vmem:[#allocation2 + $0x60] sm:$0xf] %vm15221_vm0, %v2408_v38  ;;  %4277 = vrot.lane.b32.xlu1 %v4189_v6, %s15226_s17  ;;  %4894 = vrot.lane.b32.xlu0 %v4742_v17, %s15310_s29  ;;  %v3143_v7 = vrot.slane %v3141_v48, 4  ;;  %v1714_v42 = vsel %vm10193_vm7, %v1706_v18, %v1713_v37  ;;  %vm15329_vm6 = vmmov %vm15328_vm12  ;;  %v2286_v31 = vsel %vm10193_vm7, %v2278_v49, %v2285_v50  ;;  %v12685_v10 = vrot.slane %v3147_v35, 5  ;;  %v12692_v15 = vld [vmem:[%s10167_s19 + $0x94] sm:$0xf] }
 0x21f   : > { %9648 = vmatprep.mubr.msk.bf16.mxu0 %vm15326_vm10, %v15247_v8  ;;  %v3153_v44 = vrot.slane %v3151_v36, 4  ;;  %v3759_v22 = vrot.slane %v3757_v45, 4  ;;  %v2287_v48 = vrot.slane %v12641_v40, 4  ;;  %v3763_v57 = vshll.u32 %v3425_v46, 16  ;;  %v4414_v47 = vld [vmem:[%s10167_s19 + $0x98] sm:$0xf] }
 0x220   : > { %v2410_v26 = vpop.permute.xlu1 %2409  ;;  %v2656_v6 = vpop.permute.xlu0 %2655  ;;  %v3767_v55 = vshrl.u32 %v3425_v46, 16  ;;  %v12694_v12 = vor.u32 %v5850_v28, %v5847_v60  ;;  %v2294_v38 = vor.u32 %v2292_v5, %v12676_v61  ;;  %v5855_v54 = vshrl.u32 %v5814_v33, 16  ;;  %v12716_v49 = vld [vmem:[%s10167_s19 + $0x98] sm:$0xf]  ;;  %v4415_v28 = vld [vmem:[%s10167_s19 + $0x9c] sm:$0xf] }
 0x221   : > { %2508 = vst.msk [vmem:[#allocation2 + $0x64] sm:$0xf] %vm15221_vm0, %v2410_v26  ;;  %v5858_v23 = vshll.u32 %v5814_v33, 16  ;;  %v3154_v40 = vor.u32 %v3153_v44, %v12685_v10  ;;  %v3157_v52 = vshll.u32 %v12692_v15, 16  ;;  %v2557_v26 = vld [vmem:[%s10167_s19 + $0x8c] sm:$0xf] }
 0x222   : > { %2755 = vst.msk [vmem:[#allocation2 + $0x60] sm:$0xf] %vm15328_vm12, %v2656_v6  ;;  %4896 = vrot.lane.b32.xlu1 %v4752_v29, %s15310_s29  ;;  %1258 = vrot.lane.b32.xlu0 %v1169_v27, %s15288_s26  ;;  %vm15330_vm12 = vcmask 388416   ;;  %v3144_v27 = vor.u32 %v3143_v7, %v12546_v56  ;;  %v3760_v29 = vor.u32 %v3759_v22, %v12570_v1  ;;  %v5857_v41 = vrot.slane %v5855_v54, 6  ;;  %v12713_v1 = vld [vmem:[%s10167_s19 + $0x9c] sm:$0xf] }
 0x223   : > { %v12706_v56 = vrot.slane %v3763_v57, 5  ;;  %v3769_v9 = vrot.slane %v3767_v55, 4  ;;  %v5853_v25 = vrot.slane %v12694_v12, 4  ;;  %v5860_v51 = vrot.slane %v5858_v23, 7  ;;  %v12742_v57 = vld [vmem:[%s10167_s19 + $0x90] sm:$0xf] }
 0x224   : > { %v2658_v32 = vpop.permute.xlu1 %2657  ;;  %v3275_v17 = vpop.permute.xlu0 %3274  ;;  %v2295_v45 = vsel %vm10193_vm7, %v2287_v48, %v2294_v38  ;;  %v3145_v18 = vrot.slane %v3144_v27, 4  ;;  %v4755_v37 = vshrl.u32 %v4414_v47, 16  ;;  %v4758_v50 = vshll.u32 %v4414_v47, 16  ;;  %v12739_v48 = vld [vmem:[%s10167_s19 + $0x8c] sm:$0xf] }
 0x225   : > { %2756 = vst.msk [vmem:[#allocation2 + $0x64] sm:$0xf] %vm15329_vm6, %v2658_v32  ;;  %vm15331_vm6 = vmmov %vm15330_vm12  ;;  %v12718_v35 = vor.u32 %v5860_v51, %v5857_v41  ;;  %v12721_v60 = vrot.slane %v3157_v52, 5  ;;  %v3770_v5 = vor.u32 %v3769_v9, %v12706_v56  ;;  %v3773_v7 = vshll.u32 %v12713_v1, 16  ;;  %v2558_v32 = vld [vmem:[%s10167_s19 + $0x90] sm:$0xf] }
 0x226   : > { %3374 = vst.msk [vmem:[#allocation2 + $0x60] sm:$0xf] %vm15330_vm12, %v3275_v17  ;;  %1260 = vrot.lane.b32.xlu1 %v1172_v13, %s15288_s26  ;;  %1842 = vrot.lane.b32.xlu0 %v1705_v3, %s15289_s28  ;;  %vm15332_vm12 = vcmask 454016   ;;  %v3155_v13 = vrot.slane %v3154_v40, 4  ;;  %v3761_v3 = vrot.slane %v3760_v29, 4  ;;  %v4191_v33 = vrot.slane %v12716_v49, 5 }
 0x227   : > { %v5862_v46 = vsel %vm10478_vm3, %v5853_v25, %v12718_v35  ;;  %v4757_v17 = vrot.slane %v4755_v37, 5  ;;  %v4760_v44 = vrot.slane %v4758_v50, 6  ;;  %v4765_v22 = vshrl.u32 %v4415_v28, 16  ;;  %v12749_v38 = vld [vmem:[%s10167_s19 + $0x9c] sm:$0xf] }
 0x228   : > { %v3277_v30 = vpop.permute.xlu1 %3276  ;;  %v3891_v63 = vpop.permute.xlu0 %3890  ;;  %v4768_v27 = vshll.u32 %v4415_v28, 16  ;;  %v12752_v54 = vld [vmem:[%s10167_s19 + $0x94] sm:$0xf]  ;;  %v3771_v47 = vrot.slane %v3770_v5, 4  ;;  %v4190_v40 = vrot.slane %v4188_v58, 4  ;;  %v4193_v9 = vrot.slane %v4191_v33, 4 }
 0x229   : > { %3375 = vst.msk [vmem:[#allocation2 + $0x64] sm:$0xf] %vm15331_vm6, %v3277_v30  ;;  %vm15333_vm6 = vmmov %vm15332_vm12  ;;  %v3766_v30 = vsel %vm10234_vm8, %v3761_v3, %v12706_v56  ;;  %v12765_v52 = vld [vmem:[%s10167_s19 + $0x8c] sm:$0xf]  ;;  %v1717_v25 = vshrl.u32 %v12739_v48, 16  ;;  %v1726_v51 = vshrl.u32 %v12742_v57, 16 }
 0x22a   : > { %3990 = vst.msk [vmem:[#allocation2 + $0x60] sm:$0xf] %vm15332_vm12, %v3891_v63  ;;  %1844 = vrot.lane.b32.xlu1 %v1714_v42, %s15289_s28  ;;  %2423 = vrot.lane.b32.xlu0 %v2286_v31, %s15316_s18  ;;  %vm15334_vm12 = vcmask 519616   ;;  %v3150_v42 = vsel %vm10234_vm8, %v3145_v18, %v12685_v10  ;;  %v3160_v10 = vsel %vm10234_vm8, %v3155_v13, %v12721_v60  ;;  %v12760_v63 = vrot.slane %v3773_v7, 5  ;;  %v12785_v5 = vld [vmem:[%s10167_s19 + $0x90] sm:$0xf] }
 0x22b   : > { %v4194_v56 = vrot.slane %v12749_v38, 5  ;;  %v4761_v18 = vor.u32 %v4760_v44, %v4757_v17  ;;  %v4767_v37 = vrot.slane %v4765_v22, 5  ;;  %v2298_v20 = vshrl.u32 %v12752_v54, 16  ;;  %v12934_v38 = vld [vmem:[%s10167_s19 + $0xa4] sm:$0xf] }
 0x22c   : > { %v3893_v6 = vpop.permute.xlu1 %3892  ;;  %v4264_v36 = vpop.permute.xlu0 %4263  ;;  %v1174_v13 = vrot.slane %v12765_v52, 7  ;;  %v3776_v28 = vsel %vm10234_vm8, %v3771_v47, %v12760_v63  ;;  %v4192_v3 = vsel %vm10259_vm11, %v4190_v40, %v4191_v33  ;;  %v1720_v7 = vshll.u32 %v12739_v48, 16  ;;  %v2808_v52 = vld [vmem:[%s10167_s19 + $0x98] sm:$0xf] }
 0x22d   : > { %3991 = vst.msk [vmem:[#allocation2 + $0x64] sm:$0xf] %vm15333_vm6, %v3893_v6  ;;  %vm15335_vm6 = vcmask 257024   ;;  %v12792_v17 = vrot.slane %v1726_v51, 7  ;;  %v4763_v22 = vrot.slane %v4761_v18, 4  ;;  %v1173_v33 = vrot.slane %v1171_v16, 4 }
 0x22e   : > { %4363 = vst.msk [vmem:[#allocation2 + $0x60] sm:$0xf] %vm15334_vm12, %v4264_v36  ;;  %2425 = vrot.lane.b32.xlu1 %v2295_v45, %s15316_s18  ;;  %2671 = vrot.lane.b32.xlu0 %v2557_v26, %s15272_s20  ;;  %v4770_v36 = vrot.slane %v4768_v27, 6  ;;  %v1176_v27 = vrot.slane %v1174_v13, 4  ;;  %v4195_v11 = vsel %vm10259_vm11, %v4193_v9, %v4194_v56 }
 0x22f   : > { %5974 = vst.msk [vmem:[#allocation5 + $0x18] sm:$0xf] %vm15335_vm6, %v5862_v46  ;;  %vm15336_vm6 = vcmask 126016   ;;  %v12789_v46 = vld [vmem:[%s10167_s19 + $0x98] sm:$0xf] }
 0x230   : > { %v4266_v31 = vpop.permute.xlu1 %4265  ;;  %v4883_v55 = vpop.permute.xlu0 %4882 }
 0x231   : > { %4364 = vst.msk [vmem:[#allocation2 + $0x64] sm:$0xf] %vm15334_vm12, %v4266_v31  ;;  %v5329_v23 = vpop.f32.mrb[20].mxu0  ;;  %v1729_v31 = vshll.u32 %v12742_v57, 16  ;;  %vm15337_vm12 = vmmov %vm15336_vm6  ;;  %v1177_v57 = vrot.slane %v12785_v5, 7 }
 0x232   : > { %4982 = vst.msk [vmem:[#allocation2 + $0x60] sm:$0xf] %vm15230_vm15, %v4883_v55  ;;  %2673 = vrot.lane.b32.xlu1 %v2558_v32, %s15272_s20  ;;  %3290 = vrot.lane.b32.xlu0 %v3150_v42, %s15273_s15  ;;  %v5330_v29 = vadd.f32 %v12381_v39, %v5329_v23  ;;  %v9622_v41 = vpop.f32.mrb[21].mxu0  ;;  %v1719_v42 = vrot.slane %v1717_v25, 7  ;;  %v2301_v55 = vshll.u32 %v12752_v54, 16  ;;  %v2307_v23 = vshrl.u32 %v12789_v46, 16 }
 0x233   : > { %v5332_v26 = vpop.f32.mrb[22].mxu0  ;;  %v1715_v54 = vrot.slane %v12633_v2, 4  ;;  %v1731_v40 = vor.u32 %v1729_v31, %v12792_v17  ;;  %v2296_v25 = vrot.slane %v12676_v61, 4  ;;  %v1178_v61 = vsel %vm10175_vm4, %v1176_v27, %v1177_v57 }
 0x234   : > { %v4885_v45 = vpop.permute.xlu1 %4884  ;;  %v5465_v58 = vmax.f32 %v5330_v29, 0.0  ;;  %v5333_v6 = vadd.f32 %v12381_v39, %v5332_v26  ;;  %v1247_v49 = vpop.permute.xlu0 %1246  ;;  %v4753_v39 = vrot.slane %v12624_v59, 4  ;;  %v12797_v59 = vrot.slane %v2298_v20, 7  ;;  %v5578_v26 = vld [vmem:[#allocation3 + $0x38] ss:$2 sm:$0xff] }
 0x235   : > { %4983 = vst.msk [vmem:[#allocation2 + $0x64] sm:$0xf] %vm15230_vm15, %v4885_v45  ;;  %v9623_v50 = vpop.f32.mrb[23].mxu0  ;;  %v1724_v47 = vrot.slane %v1719_v42, 4  ;;  %v5576_v45 = vld [vmem:[#allocation3 + $0x37] ss:$2 sm:$0xff] }
 0x236   : > { %1344 = vst.msk [vmem:[#allocation2 + $0x68] sm:$0xf] %vm15336_vm6, %v1247_v49  ;;  %3292 = vrot.lane.b32.xlu1 %v3160_v10, %s15273_s15  ;;  %3906 = vrot.lane.b32.xlu0 %v3766_v30, %s15228_s16  ;;  %v5466_v32 = vmax.f32 %v5333_v6, 0.0  ;;  %v12802_v10 = vor.u32 %v4770_v36, %v4767_v37  ;;  %v4762_v16 = vsel %vm10278_vm14, %v4753_v39, %v4761_v18  ;;  %v12830_v37 = vrot.slane %v2307_v23, 7  ;;  %v475_v50 = vld [vmem:[%s10167_s19 + $0x8c] sm:$0xf] }
 0x237   : > { %5507 = vst.msk [vmem:[#allocation3 + $0x50] sm:$0xff] %vm15223_vm5, %v5465_v58  ;;  %v1722_v30 = vor.u32 %v1720_v7, %v1719_v42  ;;  %v2303_v51 = vor.u32 %v2301_v55, %v12797_v59  ;;  %v1175_v18 = vsel %vm10175_vm4, %v1173_v33, %v1174_v13  ;;  %v3161_v20 = vshrl.u32 %v12692_v15, 16 }
 0x238   : > { %v1249_v44 = vpop.permute.xlu1 %1248  ;;  %5508 = vst.msk [vmem:[#allocation3 + $0x58] sm:$0xff] %vm15223_vm5, %v5466_v32  ;;  %v1831_v48 = vpop.permute.xlu0 %1830  ;;  %v4772_v2 = vsel %vm10278_vm14, %v4763_v22, %v12802_v10  ;;  %v3777_v58 = vshrl.u32 %v12713_v1, 16  ;;  %v2310_v6 = vshll.u32 %v12789_v46, 16  ;;  %v3167_v49 = vshll.u32 %v2808_v52, 16  ;;  %v3427_v1 = vld [vmem:[%s10167_s19 + $0xa0] sm:$0xf] }
 0x239   : > { %1345 = vst.msk [vmem:[#allocation2 + $0x6c] sm:$0xf] %vm15337_vm12, %v1249_v44  ;;  %vm15338_vm6 = vcmask 588800   ;;  %v1723_v13 = vsel %vm10193_vm7, %v1715_v54, %v1722_v30  ;;  %v12844_v15 = vsel %vm10193_vm7, %v1724_v47, %v1731_v40  ;;  %v5579_v39 = vmax.f32 %v5576_v45, %v5578_v26  ;;  %v476_v44 = vld [vmem:[%s10167_s19 + $0x90] sm:$0xf] }
 0x23a   : > { %1928 = vst.msk [vmem:[#allocation2 + $0x68] sm:$0xf] %vm15222_vm13, %v1831_v48  ;;  %3908 = vrot.lane.b32.xlu1 %v3776_v28, %s15228_s16  ;;  %4279 = vrot.lane.b32.xlu0 %v4192_v3, %s15226_s17  ;;  %v835_v28 = vshrl.u32 %v475_v50, 16  ;;  %v838_v3 = vshll.u32 %v475_v50, 16  ;;  %v2304_v46 = vsel %vm10193_vm7, %v2296_v25, %v2303_v51  ;;  %v3171_v42 = vshrl.u32 %v2808_v52, 16  ;;  %s15352_s16 = smov 48  }
 0x23b   : > { %v833_v31 = vrot.slane %v12631_v19, 4  ;;  %v845_v27 = vshrl.u32 %v476_v44, 16  ;;  %vm15339_vm12 = vcmask 322816   ;;  %v3163_v23 = vrot.slane %v3161_v20, 4  ;;  %v4416_v50 = vld [vmem:[%s10167_s19 + $0xa0] sm:$0xf] }
 0x23c   : > { %v1833_v29 = vpop.permute.xlu1 %1832  ;;  %v9847_v41 = vld [vmem:[#allocation2 + $0x60] sm:$0xff]   ;;  %v2412_v9 = vpop.permute.xlu0 %2411  ;;  %v837_v55 = vrot.slane %v835_v28, 6  ;;  %v840_v48 = vrot.slane %v838_v3, 7  ;;  %v848_v54 = vshll.u32 %v476_v44, 16  ;;  %v2305_v30 = vrot.slane %v12797_v59, 4 }
 0x23d   : > { %1929 = vst.msk [vmem:[#allocation2 + $0x6c] sm:$0xf] %vm15222_vm13, %v1833_v29  ;;  %9649 = vmatmul.mubr.msk.bf16.gmra.mrb[48].mxu0 %vm15338_vm6, %v9847_v41  ;;  %v847_v40 = vrot.slane %v845_v27, 6  ;;  %v2312_v29 = vor.u32 %v2310_v6, %v12830_v37  ;;  %v12859_v41 = vrot.slane %v3167_v49, 5  ;;  %v3173_v25 = vrot.slane %v3171_v42, 4  ;;  %vm15340_vm6 = vmmov %vm15339_vm12 }
 0x23e   : > { %2509 = vst.msk [vmem:[#allocation2 + $0x68] sm:$0xf] %vm15221_vm0, %v2412_v9  ;;  %4281 = vrot.lane.b32.xlu1 %v4195_v11, %s15226_s17  ;;  %4898 = vrot.lane.b32.xlu0 %v4762_v16, %s15310_s29  ;;  %v5581_v36 = vld [vmem:[#allocation3 + $0x49] ss:$2 sm:$0xff]  ;;  %v3783_v11 = vshll.u32 %v3427_v1, 16  ;;  %v3787_v16 = vshrl.u32 %v3427_v1, 16  ;;  %v841_v47 = vor.u32 %v840_v48, %v837_v55  ;;  %v3164_v20 = vor.u32 %v3163_v23, %v12721_v60 }
 0x23f   : > { %v5583_v7 = vld [vmem:[#allocation3 + $0x4a] ss:$2 sm:$0xff]  ;;  %9652 = vmatprep.mubr.msk.bf16.mxu0 %vm15326_vm10, %v15247_v8  ;;  %v850_v51 = vrot.slane %v848_v54, 7  ;;  %v3174_v3 = vor.u32 %v3173_v25, %v12859_v41  ;;  %vm5607_vm13 = vcmask 256000   ;;  %vm15342_vm5 = vcmask 454016   ;;  %s15357_s17 = smov 56  }
 0x240   : > { %v2414_v32 = vpop.permute.xlu1 %2413  ;;  %v5584_v22 = vmax.f32 %v5581_v36, %v5583_v7  ;;  %v2660_v33 = vpop.permute.xlu0 %2659  ;;  %v12863_v9 = vld [vmem:[%s10167_s19 + $0x9c] sm:$0xf]  ;;  %v842_v59 = vsel %vm10478_vm3, %v833_v31, %v841_v47  ;;  %v12871_v6 = vrot.slane %v3783_v11, 5  ;;  %v3789_v49 = vrot.slane %v3787_v16, 4  ;;  %v2559_v48 = vld [vmem:[%s10167_s19 + $0x94] sm:$0xf] }
 0x241   : > { %2510 = vst.msk [vmem:[#allocation2 + $0x6c] sm:$0xf] %vm15221_vm0, %v2414_v32  ;;  %vm15225_vm0 = vsmask.f32 7946  ;;  %v2313_v31 = vsel %vm10193_vm7, %v2305_v30, %v2312_v29  ;;  %v4775_v44 = vshrl.u32 %v4416_v50, 16  ;;  %v3165_v27 = vrot.slane %v3164_v20, 4 }
 0x242   : > { %2757 = vst.msk [vmem:[#allocation2 + $0x68] sm:$0xf] %vm15339_vm12, %v2660_v33  ;;  %4900 = vrot.lane.b32.xlu1 %v4772_v2, %s15310_s29  ;;  %1262 = vrot.lane.b32.xlu0 %v1175_v18, %s15288_s26  ;;  %v5585_v19 = vmax.f32 %v5579_v39, %v5584_v22  ;;  %v3779_v2 = vrot.slane %v3777_v58, 4  ;;  %v843_v18 = vrot.slane %v841_v47, 4  ;;  %vm15341_vm12 = vcmask 388416  }
 0x243   : > { %975 = vst.msk [vmem:[#allocation2 + $0x88] sm:$0xf] %vm15224_vm1, %v842_v59  ;;  %v12875_v58 = vor.u32 %v850_v51, %v847_v40  ;;  %v4778_v22 = vshll.u32 %v4416_v50, 16  ;;  %v5604_v33 = vld [vmem:[#allocation4 + $0x10] sm:$0xc]  ;;  %v12904_v16 = vrot.slane %v3174_v3, 4 }
 0x244   : > { %v2662_v52 = vpop.permute.xlu1 %2661  ;;  %v9393_v45 = vpack.c.bf16 %v5585_v19, %v5585_v19  ;;  %v3279_v26 = vpop.permute.xlu0 %3278  ;;  %v3780_v42 = vor.u32 %v3779_v2, %v12760_v63  ;;  %v15343_v63 = vmov 0  ;;  %v4043_v23 = vld [vmem:[%s10167_s19 + $0xa0] sm:$0xf]  ;;  %v15346_v54 = vmov 0  ;;  %v4417_v29 = vld [vmem:[%s10167_s19 + $0xa4] sm:$0xf] }
 0x245   : > { %2758 = vst.msk [vmem:[#allocation2 + $0x6c] sm:$0xf] %vm15340_vm6, %v2662_v52  ;;  %vm5601_vm6 = vcmask 257026   ;;  %v852_v60 = vsel %vm10478_vm3, %v843_v18, %v12875_v58  ;;  %v5609_v19 = vld [vmem:[#allocation4 + $0x14] sm:$0x7]  ;;  %v4196_v51 = vrot.slane %v4194_v56, 4  ;;  %v3170_v18 = vsel %vm10234_vm8, %v3165_v27, %v12859_v41 }
 0x246   : > { %3376 = vst.msk [vmem:[#allocation2 + $0x68] sm:$0xf] %vm15341_vm12, %v3279_v26  ;;  %1264 = vrot.lane.b32.xlu1 %v1178_v61, %s15288_s26  ;;  %1846 = vrot.lane.b32.xlu0 %v1723_v13, %s15289_s28  ;;  %v5591_v36 = vshrl.u32 %v9393_v45, 16  ;;  %v5594_v1 = vshll.u32 %v9393_v45, 16  ;;  %v3177_v61 = vshll.u32 %v12863_v9, 16  ;;  %v3781_v52 = vrot.slane %v3780_v42, 4 }
 0x247   : > { %v12880_v13 = vld [vmem:[%s10167_s19 + $0xa4] sm:$0xf]  ;;  %976 = vst.msk [vmem:[#allocation2 + $0x8c] sm:$0xf] %vm15224_vm1, %v852_v60  ;;  %v4197_v45 = vrot.slane %v4043_v23, 5  ;;  %v4777_v26 = vrot.slane %v4775_v44, 5 }
 0x248   : > { %v3281_v28 = vpop.permute.xlu1 %3280  ;;  %v5593_v39 = vrot.slane %v5591_v36, 5  ;;  %v5596_v7 = vrot.slane %v5594_v1, 6  ;;  %v3895_v32 = vpop.permute.xlu0 %3894  ;;  %v12913_v40 = vrot.slane %v3177_v61, 5  ;;  %v4780_v2 = vrot.slane %v4778_v22, 6  ;;  %v2560_v59 = vld [vmem:[%s10167_s19 + $0x98] sm:$0xf] }
 0x249   : > { %3377 = vst.msk [vmem:[#allocation2 + $0x6c] sm:$0xf] %vm15341_vm12, %v3281_v28  ;;  %vm12896_vm12 = vmand %vm5601_vm6, %vm15225_vm0  ;;  %vm15348_vm6 = vcmask 454016   ;;  %vm15349_vm0 = vcmask 519616   ;;  %v4785_v56 = vshrl.u32 %v4417_v29, 16  ;;  %v4788_v1 = vshll.u32 %v4417_v29, 16 }
 0x24a   : > { %3992 = vst.msk [vmem:[#allocation2 + $0x68] sm:$0xf] %vm15342_vm5, %v3895_v32  ;;  %1848 = vrot.lane.b32.xlu1 %v12844_v15, %s15289_s28  ;;  %2427 = vrot.lane.b32.xlu0 %v2304_v46, %s15316_s18  ;;  %v15344_v63 = vsel %vm12896_vm12, 4294967295, %v15343_v63  ;;  %v5597_v55 = vor.u32 %v5596_v7, %v5593_v39  ;;  %v3790_v15 = vor.u32 %v3789_v49, %v12871_v6  ;;  %v3793_v46 = vshll.u32 %v12880_v13, 16  ;;  %v12937_v28 = vld [vmem:[%s10167_s19 + $0x94] sm:$0xf] }
 0x24b   : > { %vm15345_vm5 = vsmask.f32 2304  ;;  %v3180_v3 = vsel %vm10234_vm8, %v12904_v16, %v12913_v40  ;;  %v12945_v61 = vld [vmem:[%s10167_s19 + $0x98] sm:$0xf]  ;;  %v3786_v39 = vsel %vm10234_vm8, %v3781_v52, %v12871_v6  ;;  %v4198_v7 = vsel %vm10259_vm11, %v4196_v51, %v4197_v45  ;;  %v12961_v44 = vld [vmem:[%s10167_s19 + $0x9c] sm:$0xf] }
 0x24c   : > { %v3897_v11 = vpop.permute.xlu1 %3896  ;;  %vm12908_vm1 = vmand %vm5607_vm13, %vm15345_vm5  ;;  %v5598_v30 = vrot.slane %v5597_v55, 4  ;;  %v4268_v47 = vpop.permute.xlu0 %4267  ;;  %v5605_v25 = vsel %vm12896_vm12, %v5597_v55, %v5604_v33  ;;  %v12927_v20 = vrot.slane %v3790_v15, 4  ;;  %v12929_v49 = vrot.slane %v3793_v46, 5  ;;  %v12966_v22 = vld [vmem:[%s15286_s2] ss:$0 sm:$0xff] }
 0x24d   : > { %v15347_v54 = vsel %vm12908_vm1, 4294967295, %v15346_v54  ;;  %3993 = vst.msk [vmem:[#allocation2 + $0x6c] sm:$0xf] %vm15348_vm6, %v3897_v11  ;;  %5606 = vst [vmem:[#allocation4 + $0x10] sm:$0xc] %v5605_v25  ;;  %v4199_v32 = vrot.slane %v4197_v45, 4  ;;  %v12955_v42 = vor.u32 %v4780_v2, %v4777_v26 }
 0x24e   : > { %4365 = vst.msk [vmem:[#allocation2 + $0x68] sm:$0xf] %vm15349_vm0, %v4268_v47  ;;  %2429 = vrot.lane.b32.xlu1 %v2313_v31, %s15316_s18  ;;  %2675 = vrot.lane.b32.xlu0 %v2559_v48, %s15272_s20  ;;  %v5610_v50 = vsel %vm12908_vm1, %v5598_v30, %v5609_v19  ;;  %vm15350_vm13 = vmmov %vm15349_vm0  ;;  %v12958_v31 = vld [vmem:[%s10167_s19 + $0x94] sm:$0xf]  ;;  %v4200_v6 = vrot.slane %v12934_v38, 5  ;;  %v4773_v48 = vrot.slane %v12802_v10, 4  ;;  %v3796_v23 = vsel %vm10234_vm8, %v12927_v20, %v12929_v49 }
 0x24f   : > { %5611 = vst [vmem:[#allocation4 + $0x14] sm:$0x7] %v5610_v50  ;;  %v1735_v27 = vshrl.u32 %v12937_v28, 16  ;;  %v4787_v11 = vrot.slane %v4785_v56, 5  ;;  %v4790_v16 = vrot.slane %v4788_v1, 6  ;;  %v1744_v19 = vshrl.u32 %v12945_v61, 16 }
 0x250   : > { %v4270_v36 = vpop.permute.xlu1 %4269  ;;  %v4887_v41 = vpop.permute.xlu0 %4886  ;;  %v7015_v30 = vld [vmem:[#allocation4 + $0xc] sm:$0xe]  ;;  %v1180_v25 = vrot.slane %v12958_v31, 7  ;;  %v2316_v51 = vshrl.u32 %v12961_v44, 16  ;;  %vm15351_vm0 = vcmask 126016   ;;  %v3181_v45 = vshrl.u32 %v12863_v9, 16 }
 0x251   : > { %4366 = vst.msk [vmem:[#allocation2 + $0x6c] sm:$0xf] %vm15350_vm13, %v4270_v36  ;;  %v5337_v60 = vpop.f32.mrb[24].mxu0  ;;  %v3797_v26 = vshrl.u32 %v12880_v13, 16  ;;  %v4783_v2 = vrot.slane %v12955_v42, 4  ;;  %vm15353_vm5 = vcmask 261120   ;;  %vm15355_vm13 = vmmov %vm15351_vm0  ;;  %v4201_v5 = vsel %vm10259_vm11, %v4199_v32, %v4200_v6 }
 0x252   : > { %4984 = vst.msk [vmem:[#allocation2 + $0x68] sm:$0xf] %vm15230_vm15, %v4887_v41  ;;  %2677 = vrot.lane.b32.xlu1 %v2560_v59, %s15272_s20  ;;  %3294 = vrot.lane.b32.xlu0 %v3170_v18, %s15273_s15  ;;  %v5338_v33 = vadd.f32 %v12966_v22, %v5337_v60  ;;  %v9626_v55 = vpop.f32.mrb[25].mxu0  ;;  %v12988_v59 = vld [vmem:[%s10167_s19 + $0x98] sm:$0xf]  ;;  %v1738_v18 = vshll.u32 %v12937_v28, 16  ;;  %vm15354_vm6 = vmmov %vm15353_vm5 }
 0x253   : > { %v5340_v46 = vpop.f32.mrb[26].mxu0  ;;  %v1737_v50 = vrot.slane %v1735_v27, 7  ;;  %v12993_v36 = vld [vmem:[%s10167_s19 + $0xa0] sm:$0xf]  ;;  %v7029_v56 = vshrl.u32 %v7015_v30, 16  ;;  %v7032_v1 = vshll.u32 %v7015_v30, 16 }
 0x254   : > { %v4889_v15 = vpop.permute.xlu1 %4888  ;;  %v5467_v47 = vmax.f32 %v5338_v33, 0.0  ;;  %v5341_v10 = vadd.f32 %v12966_v22, %v5340_v46  ;;  %v1251_v52 = vpop.permute.xlu0 %1250  ;;  %v1179_v60 = vrot.slane %v1177_v57, 4  ;;  %v1747_v31 = vshll.u32 %v12945_v61, 16  ;;  %v2810_v46 = vld [vmem:[%s10167_s19 + $0xa0] sm:$0xf] }
 0x255   : > { %4985 = vst.msk [vmem:[#allocation2 + $0x6c] sm:$0xf] %vm15230_vm15, %v4889_v15  ;;  %v9627_v29 = vpop.f32.mrb[27].mxu0  ;;  %v1182_v33 = vrot.slane %v1180_v25, 4  ;;  %v1183_v55 = vrot.slane %v12988_v59, 7  ;;  %v13005_v27 = vrot.slane %v2316_v51, 7 }
 0x256   : > { %1346 = vst.msk [vmem:[#allocation2 + $0x70] sm:$0xf] %vm15351_vm0, %v1251_v52  ;;  %3296 = vrot.lane.b32.xlu1 %v3180_v3, %s15273_s15  ;;  %3910 = vrot.lane.b32.xlu0 %v3786_v39, %s15352_s16  ;;  %v5468_v20 = vmax.f32 %v5341_v10, 0.0  ;;  %v12995_v3 = vor.u32 %v4790_v16, %v4787_v11  ;;  %v12999_v39 = vrot.slane %v1744_v19, 7  ;;  %v2319_v15 = vshll.u32 %v12961_v44, 16 }
 0x257   : > { %5509 = vst.msk [vmem:[#allocation3 + $0x60] sm:$0xff] %vm15353_vm5, %v5467_v47  ;;  %vm15356_vm0 = vcmask 191616   ;;  %v1733_v57 = vrot.slane %v12792_v17, 4  ;;  %v2325_v61 = vshrl.u32 %v12993_v36, 16  ;;  %v6487_v11 = vld [vmem:[#allocation4 + $0x10] sm:$0xf]  ;;  %v4782_v44 = vsel %vm10278_vm14, %v4773_v48, %v12955_v42 }
 0x258   : > { %v1253_v41 = vpop.permute.xlu1 %1252  ;;  %5510 = vst.msk [vmem:[#allocation3 + $0x68] sm:$0xff] %vm15354_vm6, %v5468_v20  ;;  %v1835_v28 = vpop.permute.xlu0 %1834  ;;  %v1740_v16 = vor.u32 %v1738_v18, %v1737_v50  ;;  %v5815_v19 = vld [vmem:[#allocation4 + $0x10] sm:$0xf]  ;;  %vm15358_vm5 = vcmask 257024   ;;  %v7034_v30 = vrot.slane %v7032_v1, 6  ;;  %v4792_v17 = vsel %vm10278_vm14, %v4783_v2, %v12995_v3  ;;  %vm15359_vm6 = vmmov %vm15356_vm0 }
 0x259   : > { %1347 = vst.msk [vmem:[#allocation2 + $0x74] sm:$0xf] %vm15355_vm13, %v1253_v41  ;;  %v1181_v32 = vsel %vm10175_vm4, %v1179_v60, %v1180_v25  ;;  %v1742_v52 = vrot.slane %v1737_v50, 4  ;;  %v1749_v29 = vor.u32 %v1747_v31, %v12999_v39  ;;  %v1184_v48 = vsel %vm10175_vm4, %v1182_v33, %v1183_v55  ;;  %v478_v9 = vld [vmem:[%s10167_s19 + $0x98] sm:$0xf] }
 0x25a   : > { %1930 = vst.msk [vmem:[#allocation2 + $0x70] sm:$0xf] %vm15356_vm0, %v1835_v28  ;;  %3912 = vrot.lane.b32.xlu1 %v3796_v23, %s15352_s16  ;;  %4283 = vrot.lane.b32.xlu0 %v4198_v7, %s15357_s17  ;;  %v7016_v7 = vld [vmem:[#allocation4 + $0x10] sm:$0xf]  ;;  %v7031_v23 = vrot.slane %v7029_v56, 5  ;;  %v2314_v51 = vrot.slane %v12830_v37, 4  ;;  %v2321_v18 = vor.u32 %v2319_v15, %v13005_v27  ;;  %v1741_v1 = vsel %vm10193_vm7, %v1733_v57, %v1740_v16 }
 0x25b   : > { %6500 = vst.msk [vmem:[#allocation5 + $0x1c] sm:$0xf] %vm15358_vm5, %v6487_v11  ;;  %v3187_v20 = vshll.u32 %v2810_v46, 16  ;;  %vm15360_vm13 = vcmask 257216   ;;  %v5865_v25 = vshrl.u32 %v5815_v19, 16  ;;  %v5868_v2 = vshll.u32 %v5815_v19, 16 }
 0x25c   : > { %v1837_v47 = vpop.permute.xlu1 %1836  ;;  %v9848_v10 = vld [vmem:[#allocation2 + $0x68] sm:$0xff]   ;;  %v2416_v42 = vpop.permute.xlu0 %2415  ;;  %v7038_v50 = vshrl.u32 %v7016_v7, 16  ;;  %v7041_v56 = vshll.u32 %v7016_v7, 16  ;;  %vm15361_vm0 = vcmask 588800   ;;  %v13041_v37 = vrot.slane %v2325_v61, 7  ;;  %vm15362_vm5 = vmmov %vm15360_vm13 }
 0x25d   : > { %1931 = vst.msk [vmem:[#allocation2 + $0x74] sm:$0xf] %vm15359_vm6, %v1837_v47  ;;  %9653 = vmatmul.mubr.msk.bf16.gmra.mrb[52].mxu0 %vm15361_vm0, %v9848_v10  ;;  %v3191_v41 = vshrl.u32 %v2810_v46, 16  ;;  %v7035_v60 = vor.u32 %v7034_v30, %v7031_v23  ;;  %v1750_v28 = vsel %vm10193_vm7, %v1742_v52, %v1749_v29  ;;  %v2328_v33 = vshll.u32 %v12993_v36, 16  ;;  %v477_v46 = vld [vmem:[%s10167_s19 + $0x94] sm:$0xf] }
 0x25e   : > { %2511 = vst.msk [vmem:[#allocation2 + $0x70] sm:$0xf] %vm15360_vm13, %v2416_v42  ;;  %4285 = vrot.lane.b32.xlu1 %v4201_v5, %s15357_s17  ;;  %4902 = vrot.lane.b32.xlu0 %v4782_v44, %s15310_s29  ;;  %v5867_v15 = vrot.slane %v5865_v25, 6  ;;  %v5870_v5 = vrot.slane %v5868_v2, 7  ;;  %v2322_v57 = vsel %vm10193_vm7, %v2314_v51, %v2321_v18  ;;  %v3183_v61 = vrot.slane %v3181_v45, 4 }
 0x25f   : > { %9656 = vmatprep.mubr.msk.bf16.mxu0 %vm15326_vm10, %v15247_v8  ;;  %v7040_v44 = vrot.slane %v7038_v50, 5  ;;  %v7043_v16 = vrot.slane %v7041_v56, 6  ;;  %vm15363_vm6 = vcmask 322816   ;;  %v13057_v36 = vrot.slane %v3187_v20, 5  ;;  %v3429_v29 = vld [vmem:[%s10167_s19 + $0xa8] sm:$0xf] }
 0x260   : > { %v2418_v31 = vpop.permute.xlu1 %2417  ;;  %v2664_v11 = vpop.permute.xlu0 %2663  ;;  %v855_v19 = vshrl.u32 %v477_v46, 16  ;;  %v858_v7 = vshll.u32 %v477_v46, 16  ;;  %v13059_v23 = vor.u32 %v5870_v5, %v5867_v15  ;;  %v3193_v30 = vrot.slane %v3191_v41, 4  ;;  %vm15364_vm13 = vmmov %vm15363_vm6  ;;  %v13070_v2 = vld [vmem:[%s10167_s19 + $0xa4] sm:$0xf] }
 0x261   : > { %2512 = vst.msk [vmem:[#allocation2 + $0x74] sm:$0xf] %vm15362_vm5, %v2418_v31  ;;  %v5863_v45 = vrot.slane %v12718_v35, 4  ;;  %v7036_v47 = vrot.slane %v7035_v60, 4  ;;  %v13063_v10 = vor.u32 %v7043_v16, %v7040_v44  ;;  %v865_v51 = vshrl.u32 %v478_v9, 16 }
 0x262   : > { %2759 = vst.msk [vmem:[#allocation2 + $0x70] sm:$0xf] %vm15363_vm6, %v2664_v11  ;;  %4904 = vrot.lane.b32.xlu1 %v4792_v17, %s15310_s29  ;;  %1266 = vrot.lane.b32.xlu0 %v1181_v32, %s15288_s26  ;;  %v857_v42 = vrot.slane %v855_v19, 6  ;;  %v860_v17 = vrot.slane %v858_v7, 7  ;;  %v868_v32 = vshll.u32 %v478_v9, 16  ;;  %v2323_v20 = vrot.slane %v13005_v27, 4 }
 0x263   : > { %v2330_v25 = vor.u32 %v2328_v33, %v13041_v37  ;;  %v5872_v35 = vsel %vm10478_vm3, %v5863_v45, %v13059_v23  ;;  %v7045_v50 = vsel %vm10278_vm14, %v7036_v47, %v13063_v10  ;;  %vm15365_vm0 = vcmask 388416   ;;  %v2561_v19 = vld [vmem:[%s10167_s19 + $0x9c] sm:$0xf]  ;;  %v13110_v45 = vld [vmem:[%s10167_s19 + $0xac] sm:$0xf] }
 0x264   : > { %v2666_v52 = vpop.permute.xlu1 %2665  ;;  %v3283_v18 = vpop.permute.xlu0 %3282  ;;  %v3799_v27 = vrot.slane %v3797_v26, 4  ;;  %v861_v56 = vor.u32 %v860_v17, %v857_v42  ;;  %v867_v41 = vrot.slane %v865_v51, 6  ;;  %v870_v60 = vrot.slane %v868_v32, 7  ;;  %v2562_v51 = vld [vmem:[%s10167_s19 + $0xa0] sm:$0xf] }
 0x265   : > { %2760 = vst.msk [vmem:[#allocation2 + $0x74] sm:$0xf] %vm15364_vm13, %v2666_v52  ;;  %vm15366_vm5 = vcmask 257024   ;;  %v3184_v31 = vor.u32 %v3183_v61, %v12913_v40  ;;  %v3194_v33 = vor.u32 %v3193_v30, %v13057_v36  ;;  %v3803_v15 = vshll.u32 %v3429_v29, 16  ;;  %vm15368_vm13 = vmmov %vm15365_vm0  ;;  %v4418_v61 = vld [vmem:[%s10167_s19 + $0xa8] sm:$0xf] }
 0x266   : > { %3378 = vst.msk [vmem:[#allocation2 + $0x70] sm:$0xf] %vm15365_vm0, %v3283_v18  ;;  %1268 = vrot.lane.b32.xlu1 %v1184_v48, %s15288_s26  ;;  %1850 = vrot.lane.b32.xlu0 %v1741_v1, %s15289_s28  ;;  %vm15367_vm6 = vmmov %vm15366_vm5  ;;  %v3807_v5 = vshrl.u32 %v3429_v29, 16  ;;  %v3197_v1 = vshll.u32 %v13070_v2, 16  ;;  %v853_v13 = vrot.slane %v12875_v58, 4  ;;  %v863_v26 = vrot.slane %v861_v56, 4 }
 0x267   : > { %5975 = vst.msk [vmem:[#allocation5 + $0x24] sm:$0xf] %vm15366_vm5, %v5872_v35  ;;  %v13089_v11 = vor.u32 %v870_v60, %v867_v41  ;;  %vm15369_vm0 = vcmask 454016   ;;  %v3800_v40 = vor.u32 %v3799_v27, %v12929_v49  ;;  %v2331_v16 = vsel %vm10193_vm7, %v2323_v20, %v2330_v25  ;;  %v4045_v52 = vld [vmem:[%s10167_s19 + $0xa8] sm:$0xf] }
 0x268   : > { %7170 = vst.msk [vmem:[#allocation5 + $0x8] sm:$0xf] %vm15367_vm6, %v7045_v50  ;;  %v3285_v48 = vpop.permute.xlu1 %3284  ;;  %v3899_v46 = vpop.permute.xlu0 %3898  ;;  %v862_v58 = vsel %vm10478_vm3, %v853_v13, %v861_v56  ;;  %v3185_v7 = vrot.slane %v3184_v31, 4  ;;  %v3809_v30 = vrot.slane %v3807_v5, 4  ;;  %vm15370_vm5 = vcmask 60416  }
 0x269   : > { %3379 = vst.msk [vmem:[#allocation2 + $0x74] sm:$0xf] %vm15368_vm13, %v3285_v48  ;;  %v872_v44 = vsel %vm10478_vm3, %v863_v26, %v13089_v11  ;;  %vm15371_vm6 = vmmov %vm15370_vm5  ;;  %v13107_v9 = vrot.slane %v3197_v1, 5  ;;  %v4795_v29 = vshrl.u32 %v4418_v61, 16  ;;  %v4798_v42 = vshll.u32 %v4418_v61, 16 }
 0x26a   : > { %3994 = vst.msk [vmem:[#allocation2 + $0x70] sm:$0xf] %vm15369_vm0, %v3899_v46  ;;  %1852 = vrot.lane.b32.xlu1 %v1750_v28, %s15289_s28  ;;  %2431 = vrot.lane.b32.xlu0 %v2322_v57, %s15316_s18  ;;  %v3805_v28 = vrot.slane %v3803_v15, 5  ;;  %v3195_v57 = vrot.slane %v3194_v33, 4  ;;  %vm15372_vm13 = vmmov %vm15369_vm0  ;;  %vm15373_vm0 = vcmask 519616   ;;  %v3801_v17 = vrot.slane %v3800_v40, 4 }
 0x26b   : > { %977 = vst.msk [vmem:[#allocation2 + $0x90] sm:$0xf] %vm15370_vm5, %v862_v58  ;;  %v3190_v32 = vsel %vm10234_vm8, %v3185_v7, %v13057_v36  ;;  %v3813_v20 = vshll.u32 %v13110_v45, 16  ;;  %v4419_v25 = vld [vmem:[%s10167_s19 + $0xac] sm:$0xf]  ;;  %v4203_v50 = vrot.slane %v4045_v52, 5  ;;  %vm15374_vm5 = vmmov %vm15373_vm0 }
 0x26c   : > { %978 = vst.msk [vmem:[#allocation2 + $0x94] sm:$0xf] %vm15371_vm6, %v872_v44  ;;  %v3901_v49 = vpop.permute.xlu1 %3900  ;;  %v4272_v47 = vpop.permute.xlu0 %4271  ;;  %v3810_v18 = vor.u32 %v3809_v30, %v3805_v28  ;;  %v13124_v27 = vld [vmem:[%s10167_s19 + $0xac] sm:$0xf]  ;;  %v13127_v56 = vld [vmem:[%s10167_s19 + $0x9c] sm:$0xf]  ;;  %v3200_v60 = vsel %vm10234_vm8, %v3195_v57, %v13107_v9  ;;  %v3806_v48 = vsel %vm10234_vm8, %v3801_v17, %v3805_v28 }
 0x26d   : > { %3995 = vst.msk [vmem:[#allocation2 + $0x74] sm:$0xf] %vm15372_vm13, %v3901_v49  ;;  %v4797_v31 = vrot.slane %v4795_v29, 5  ;;  %v4800_v36 = vrot.slane %v4798_v42, 6  ;;  %v13134_v33 = vld [vmem:[%s10167_s19 + $0xa0] sm:$0xf] }
 0x26e   : > { %4367 = vst.msk [vmem:[#allocation2 + $0x70] sm:$0xf] %vm15373_vm0, %v4272_v47  ;;  %2433 = vrot.lane.b32.xlu1 %v2331_v16, %s15316_s18  ;;  %2679 = vrot.lane.b32.xlu0 %v2561_v19, %s15272_s20  ;;  %v13137_v15 = vld [vmem:[%s10167_s19 + $0xa4] sm:$0xf]  ;;  %v4202_v1 = vrot.slane %v4200_v6, 4  ;;  %v4805_v13 = vshrl.u32 %v4419_v25, 16 }
 0x26f   : > { %v4808_v26 = vshll.u32 %v4419_v25, 16  ;;  %v3811_v61 = vrot.slane %v3810_v18, 4  ;;  %v13147_v58 = vrot.slane %v3813_v20, 5  ;;  %v13150_v44 = vld [vmem:[%s10167_s19 + $0x9c] sm:$0xf]  ;;  %v1753_v16 = vshrl.u32 %v13127_v56, 16 }
 0x270   : > { %v4274_v35 = vpop.permute.xlu1 %4273  ;;  %v4891_v41 = vpop.permute.xlu0 %4890  ;;  %v4205_v30 = vrot.slane %v4203_v50, 4  ;;  %v4206_v28 = vrot.slane %v13124_v27, 5  ;;  %v1762_v38 = vshrl.u32 %v13134_v33, 16  ;;  %v2334_v6 = vshrl.u32 %v13137_v15, 16  ;;  %v13166_v20 = vld [vmem:[%s10167_s19 + $0xa8] sm:$0xf] }
 0x271   : > { %4368 = vst.msk [vmem:[#allocation2 + $0x74] sm:$0xf] %vm15374_vm5, %v4274_v35  ;;  %v5345_v5 = vpop.f32.mrb[28].mxu0  ;;  %v4793_v29 = vrot.slane %v12995_v3, 4  ;;  %v4801_v42 = vor.u32 %v4800_v36, %v4797_v31  ;;  %vm15375_vm6 = vcmask 126016   ;;  %v4204_v17 = vsel %vm10259_vm11, %v4202_v1, %v4203_v50 }
 0x272   : > { %4986 = vst.msk [vmem:[#allocation2 + $0x70] sm:$0xf] %vm15230_vm15, %v4891_v41  ;;  %2681 = vrot.lane.b32.xlu1 %v2562_v51, %s15272_s20  ;;  %3298 = vrot.lane.b32.xlu0 %v3190_v32, %s15273_s15  ;;  %v5346_v46 = vadd.f32 %v12966_v22, %v5345_v5  ;;  %v9630_v40 = vpop.f32.mrb[29].mxu0  ;;  %v4807_v51 = vrot.slane %v4805_v13, 5  ;;  %v4810_v32 = vrot.slane %v4808_v26, 6  ;;  %v1186_v18 = vrot.slane %v13150_v44, 7  ;;  %vm15378_vm5 = vmmov %vm15375_vm6 }
 0x273   : > { %v5348_v7 = vpop.f32.mrb[30].mxu0  ;;  %vm15376_vm13 = vcmask 261120   ;;  %v3816_v25 = vsel %vm10234_vm8, %v3811_v61, %v13147_v58  ;;  %v1755_v35 = vrot.slane %v1753_v16, 7  ;;  %v1756_v41 = vshll.u32 %v13127_v56, 16  ;;  %v13174_v31 = vld [vmem:[%s10167_s19 + $0xa0] sm:$0xf] }
 0x274   : > { %v4893_v19 = vpop.permute.xlu1 %4892  ;;  %v5469_v49 = vmax.f32 %v5346_v46, 0.0  ;;  %v5349_v57 = vadd.f32 %v12966_v22, %v5348_v7  ;;  %v1255_v47 = vpop.permute.xlu0 %1254  ;;  %v13176_v50 = vrot.slane %v1762_v38, 7  ;;  %v1765_v36 = vshll.u32 %v13134_v33, 16  ;;  %vm15377_vm0 = vmmov %vm15376_vm13 }
 0x275   : > { %4987 = vst.msk [vmem:[#allocation2 + $0x74] sm:$0xf] %vm15230_vm15, %v4893_v19  ;;  %v9631_v52 = vpop.f32.mrb[31].mxu0  ;;  %v13179_v5 = vrot.slane %v2334_v6, 7  ;;  %v4207_v56 = vsel %vm10259_vm11, %v4205_v30, %v4206_v28  ;;  %v4802_v13 = vsel %vm10278_vm14, %v4793_v29, %v4801_v42  ;;  %v2343_v26 = vshrl.u32 %v13166_v20, 16 }
 0x276   : > { %1348 = vst.msk [vmem:[#allocation2 + $0x78] sm:$0xf] %vm15375_vm6, %v1255_v47  ;;  %3300 = vrot.lane.b32.xlu1 %v3200_v60, %s15273_s15  ;;  %3914 = vrot.lane.b32.xlu0 %v3806_v48, %s15352_s16  ;;  %v5470_v3 = vmax.f32 %v5349_v57, 0.0  ;;  %v2337_v48 = vshll.u32 %v13137_v15, 16  ;;  %vm15379_vm6 = vcmask 191616   ;;  %v4803_v33 = vrot.slane %v4801_v42, 4 }
 0x277   : > { %5511 = vst.msk [vmem:[#allocation3 + $0x70] sm:$0xff] %vm15376_vm13, %v5469_v49  ;;  %v13194_v15 = vor.u32 %v4810_v32, %v4807_v51  ;;  %v1185_v46 = vrot.slane %v1183_v55, 4  ;;  %v1188_v40 = vrot.slane %v1186_v18, 4  ;;  %v15244_v61 = vrot.slane %v13174_v31, 7  ;;  %v2812_v57 = vld [vmem:[%s10167_s19 + $0xa8] sm:$0xf]  ;;  %vm15380_vm13 = vmmov %vm15379_vm6 }
 0x278   : > { %v1257_v60 = vpop.permute.xlu1 %1256  ;;  %5512 = vst.msk [vmem:[#allocation3 + $0x78] sm:$0xff] %vm15377_vm0, %v5470_v3  ;;  %v1839_v1 = vpop.permute.xlu0 %1838  ;;  %v1751_v44 = vrot.slane %v12999_v39, 4  ;;  %v1758_v16 = vor.u32 %v1756_v41, %v1755_v35  ;;  %v1760_v19 = vrot.slane %v1755_v35, 4  ;;  %v1767_v38 = vor.u32 %v1765_v36, %v13176_v50  ;;  %v5613_v39 = vld [vmem:[#allocation3 + $0x5b] ss:$2 sm:$0xff] }
 0x279   : > { %1349 = vst.msk [vmem:[#allocation2 + $0x7c] sm:$0xf] %vm15378_vm5, %v1257_v60  ;;  %v2332_v6 = vrot.slane %v13041_v37, 4  ;;  %v2339_v49 = vor.u32 %v2337_v48, %v13179_v5  ;;  %v13205_v55 = vrot.slane %v2343_v26, 7  ;;  %v2346_v47 = vshll.u32 %v13166_v20, 16 }
 0x27a   : > { %1932 = vst.msk [vmem:[#allocation2 + $0x78] sm:$0xf] %vm15379_vm6, %v1839_v1  ;;  %3916 = vrot.lane.b32.xlu1 %v3816_v25, %s15352_s16  ;;  %4287 = vrot.lane.b32.xlu0 %v4204_v17, %s15357_s17  ;;  %v5615_v52 = vld [vmem:[#allocation3 + $0x5c] ss:$2 sm:$0xff]  ;;  %v3201_v29 = vshrl.u32 %v13070_v2, 16  ;;  %v3817_v42 = vshrl.u32 %v13110_v45, 16  ;;  %v4812_v37 = vsel %vm10278_vm14, %v4803_v33, %v13194_v15  ;;  %v1187_v17 = vsel %vm10175_vm4, %v1185_v46, %v1186_v18 }
 0x27b   : > { %vm15381_vm0 = vcmask 257216   ;;  %vm15382_vm5 = vcmask 588800   ;;  %v1190_v2 = vsel %vm10175_vm4, %v1188_v40, %v15244_v61  ;;  %v1759_v45 = vsel %vm10193_vm7, %v1751_v44, %v1758_v16  ;;  %v479_v3 = vld [vmem:[%s10167_s19 + $0x9c] sm:$0xf]  ;;  %v480_v25 = vld [vmem:[%s10167_s19 + $0xa0] sm:$0xf] }
 0x27c   : > { %v1841_v7 = vpop.permute.xlu1 %1840  ;;  %v9849_v30 = vld [vmem:[#allocation2 + $0x70] sm:$0xff]   ;;  %v2420_v59 = vpop.permute.xlu0 %2419  ;;  %v3207_v51 = vshll.u32 %v2812_v57, 16  ;;  %v3211_v32 = vshrl.u32 %v2812_v57, 16  ;;  %v1768_v18 = vsel %vm10193_vm7, %v1760_v19, %v1767_v38  ;;  %v2340_v36 = vsel %vm10193_vm7, %v2332_v6, %v2339_v49  ;;  %vm15383_vm6 = vmmov %vm15381_vm0 }
 0x27d   : > { %1933 = vst.msk [vmem:[#allocation2 + $0x7c] sm:$0xf] %vm15380_vm13, %v1841_v7  ;;  %9657 = vmatmul.mubr.msk.bf16.gmra.mrb[56].mxu0 %vm15382_vm5, %v9849_v30  ;;  %v875_v48 = vshrl.u32 %v479_v3, 16  ;;  %v878_v1 = vshll.u32 %v479_v3, 16  ;;  %v885_v33 = vshrl.u32 %v480_v25, 16  ;;  %v888_v46 = vshll.u32 %v480_v25, 16 }
 0x27e   : > { %2513 = vst.msk [vmem:[#allocation2 + $0x78] sm:$0xf] %vm15381_vm0, %v2420_v59  ;;  %4289 = vrot.lane.b32.xlu1 %v4207_v56, %s15357_s17  ;;  %4906 = vrot.lane.b32.xlu0 %v4802_v13, %s15310_s29  ;;  %v5616_v56 = vmax.f32 %v5613_v39, %v5615_v52  ;;  %vm15384_vm13 = vcmask 322816   ;;  %v2341_v40 = vrot.slane %v13179_v5, 4  ;;  %v873_v44 = vrot.slane %v13089_v11, 4 }
 0x27f   : > { %v5618_v35 = vld [vmem:[#allocation3 + $0x6d] ss:$2 sm:$0xff]  ;;  %v5620_v41 = vld [vmem:[#allocation3 + $0x6e] ss:$2 sm:$0xff]  ;;  %9660 = vmatprep.mubr.msk.bf16.mxu0 %vm15326_vm10, %v15247_v8  ;;  %v877_v16 = vrot.slane %v875_v48, 6  ;;  %v880_v19 = vrot.slane %v878_v1, 7  ;;  %vm15385_vm0 = vmmov %vm15384_vm13 }
 0x280   : > { %v2422_v60 = vpop.permute.xlu1 %2421  ;;  %v5621_v13 = vmax.f32 %v5618_v35, %v5620_v41  ;;  %v2668_v26 = vpop.permute.xlu0 %2667  ;;  %v3203_v30 = vrot.slane %v3201_v29, 4  ;;  %v3431_v38 = vld [vmem:[%s10167_s19 + $0xb0] sm:$0xf]  ;;  %v887_v6 = vrot.slane %v885_v33, 6  ;;  %v890_v49 = vrot.slane %v888_v46, 7 }
 0x281   : > { %2514 = vst.msk [vmem:[#allocation2 + $0x7c] sm:$0xf] %vm15383_vm6, %v2422_v60  ;;  %v13240_v59 = vrot.slane %v3207_v51, 5  ;;  %v3213_v39 = vrot.slane %v3211_v32, 4  ;;  %v13242_v52 = vrot.slane %v3817_v42, 4  ;;  %vm5638_vm5 = vcmask 257027  }
 0x282   : > { %2761 = vst.msk [vmem:[#allocation2 + $0x78] sm:$0xf] %vm15384_vm13, %v2668_v26  ;;  %4908 = vrot.lane.b32.xlu1 %v4812_v37, %s15310_s29  ;;  %1270 = vrot.lane.b32.xlu0 %v1187_v17, %s15288_s26  ;;  %v5622_v7 = vmax.f32 %v5616_v56, %v5621_v13  ;;  %v881_v37 = vor.u32 %v880_v19, %v877_v16  ;;  %vm15232_vm6 = vsmask.f32 7950  ;;  %vm15386_vm13 = vcmask 388416  }
 0x283   : > { %v13245_v11 = vor.u32 %v890_v49, %v887_v6  ;;  %v2813_v29 = vld [vmem:[%s10167_s19 + $0xac] sm:$0x7]  ;;  %v3823_v51 = vshll.u32 %v3431_v38, 16  ;;  %v3827_v32 = vshrl.u32 %v3431_v38, 16  ;;  %v2348_v41 = vor.u32 %v2346_v47, %v13205_v55  ;;  %v6511_v48 = vld [vmem:[#allocation4 + $0x8] sm:$0xf] }
 0x284   : > { %v2670_v57 = vpop.permute.xlu1 %2669  ;;  %v9394_v17 = vpack.c.bf16 %v5622_v7, %v5622_v7  ;;  %v3287_v5 = vpop.permute.xlu0 %3286  ;;  %v882_v42 = vsel %vm10478_vm3, %v873_v44, %v881_v37  ;;  %v883_v3 = vrot.slane %v881_v37, 4  ;;  %v3204_v60 = vor.u32 %v3203_v30, %v13107_v9  ;;  %v5641_v56 = vld [vmem:[#allocation4 + $0x14] sm:$0x8]  ;;  %v4420_v16 = vld [vmem:[%s10167_s19 + $0xb0] sm:$0xf] }
 0x285   : > { %2762 = vst.msk [vmem:[#allocation2 + $0x7c] sm:$0xf] %vm15385_vm0, %v2670_v57  ;;  %vm15387_vm0 = vcmask 60416   ;;  %v15388_v1 = vmov 0  ;;  %vm15390_vm15 = vcmask 388416   ;;  %v3217_v26 = vshll.u32 %v2813_v29, 16 }
 0x286   : > { %3380 = vst.msk [vmem:[#allocation2 + $0x78] sm:$0xf] %vm15386_vm13, %v3287_v5  ;;  %1272 = vrot.lane.b32.xlu1 %v1190_v2, %s15288_s26  ;;  %1854 = vrot.lane.b32.xlu0 %v1759_v45, %s15289_s28  ;;  %v5628_v25 = vshll.u32 %v9394_v17, 16  ;;  %v5631_v35 = vshrl.u32 %v9394_v17, 16  ;;  %v3214_v45 = vor.u32 %v3213_v39, %v13240_v59  ;;  %vm13261_vm13 = vmand %vm5638_vm5, %vm15232_vm6  ;;  %v892_v20 = vsel %vm10478_vm3, %v883_v3, %v13245_v11  ;;  %v2563_v38 = vld [vmem:[%s10167_s19 + $0xa4] sm:$0xf] }
 0x287   : > { %979 = vst.msk [vmem:[#allocation2 + $0x98] sm:$0xf] %vm15387_vm0, %v882_v42  ;;  %v15389_v1 = vsel %vm13261_vm13, 4294967295, %v15388_v1  ;;  %980 = vst.msk [vmem:[#allocation2 + $0x9c] sm:$0xf] %vm15387_vm0, %v892_v20  ;;  %vm15391_vm1 = vcmask 454016   ;;  %v3820_v33 = vor.u32 %v13242_v52, %v13147_v58  ;;  %v2349_v30 = vsel %vm10193_vm7, %v2341_v40, %v2348_v41 }
 0x288   : > { %v3289_v2 = vpop.permute.xlu1 %3288  ;;  %v5630_v47 = vrot.slane %v5628_v25, 5  ;;  %v5633_v9 = vrot.slane %v5631_v35, 4  ;;  %v3903_v13 = vpop.permute.xlu0 %3902  ;;  %v13275_v46 = vrot.slane %v3823_v51, 5  ;;  %v3829_v44 = vrot.slane %v3827_v32, 4  ;;  %v3432_v49 = vld [vmem:[%s10167_s19 + $0xb4] sm:$0x7] }
 0x289   : > { %3381 = vst.msk [vmem:[#allocation2 + $0x7c] sm:$0xf] %vm15390_vm15, %v3289_v2  ;;  %v6525_v19 = vshrl.u32 %v6511_v48, 16  ;;  %v3205_v6 = vrot.slane %v3204_v60, 4  ;;  %v13284_v57 = vrot.slane %v3214_v45, 4  ;;  %v6528_v58 = vshll.u32 %v6511_v48, 16 }
 0x28a   : > { %3996 = vst.msk [vmem:[#allocation2 + $0x78] sm:$0xf] %vm15391_vm1, %v3903_v13  ;;  %1856 = vrot.lane.b32.xlu1 %v1768_v18, %s15289_s28  ;;  %2435 = vrot.lane.b32.xlu0 %v2340_v36, %s15316_s18  ;;  %v5634_v7 = vor.u32 %v5633_v9, %v5630_v47  ;;  %v5642_v18 = vsel %vm13261_vm13, %v5630_v47, %v5641_v56  ;;  %vm15392_vm15 = vsmask.f32 3328  ;;  %vm15393_vm1 = vcmask 257024  }
 0x28b   : > { %5643 = vst [vmem:[#allocation4 + $0x14] sm:$0x8] %v5642_v18  ;;  %vm13288_vm5 = vmand %vm15393_vm1, %vm15392_vm15  ;;  %v15394_v39 = vmov 0  ;;  %v5646_v52 = vld [vmem:[#allocation4 + $0x18] sm:$0xf]  ;;  %vm15396_vm0 = vcmask 454016   ;;  %v3830_v42 = vor.u32 %v3829_v44, %v13275_v46  ;;  %v3210_v41 = vsel %vm10234_vm8, %v3205_v6, %v13240_v59 }
 0x28c   : > { %v3905_v36 = vpop.permute.xlu1 %3904  ;;  %v15395_v39 = vsel %vm13288_vm5, 4294967295, %v15394_v39  ;;  %v5635_v40 = vrot.slane %v5634_v7, 4  ;;  %v4276_v37 = vpop.permute.xlu0 %4275  ;;  %v13293_v17 = vrot.slane %v3217_v26, 5  ;;  %v4047_v5 = vld [vmem:[%s10167_s19 + $0xb0] sm:$0xf]  ;;  %v4815_v29 = vshrl.u32 %v4420_v16, 16 }
 0x28d   : > { %3997 = vst.msk [vmem:[#allocation2 + $0x7c] sm:$0xf] %vm15396_vm0, %v3905_v36  ;;  %v4818_v51 = vshll.u32 %v4420_v16, 16  ;;  %vm15397_vm6 = vcmask 519616   ;;  %v3821_v32 = vrot.slane %v3820_v33, 4  ;;  %v3833_v3 = vshll.u32 %v3432_v49, 16 }
 0x28e   : > { %4369 = vst.msk [vmem:[#allocation2 + $0x78] sm:$0xf] %vm15397_vm6, %v4276_v37  ;;  %2437 = vrot.lane.b32.xlu1 %v2349_v30, %s15316_s18  ;;  %2683 = vrot.lane.b32.xlu0 %v2563_v38, %s15272_s20  ;;  %v13300_v25 = vld [vmem:[#allocation4 + $0x8] sm:$0xf]  ;;  %v2564_v35 = vld [vmem:[%s10167_s19 + $0xa8] sm:$0xf]  ;;  %v5647_v48 = vsel %vm13288_vm5, %v5635_v40, %v5646_v52  ;;  %v3220_v59 = vsel %vm10234_vm8, %v13284_v57, %v13293_v17 }
 0x28f   : > { %v13306_v60 = vrot.slane %v6525_v19, 4  ;;  %v4209_v45 = vrot.slane %v4047_v5, 5  ;;  %v4421_v56 = vld [vmem:[%s10167_s19 + $0xb4] sm:$0xf]  ;;  %v6512_v20 = vld [vmem:[#allocation4 + $0xc] sm:$0xf]  ;;  %v3826_v19 = vsel %vm10234_vm8, %v3821_v32, %v13275_v46 }
 0x290   : > { %v4278_v2 = vpop.permute.xlu1 %4277  ;;  %v13311_v47 = vrot.slane %v6528_v58, 5  ;;  %5648 = vst [vmem:[#allocation4 + $0x18] sm:$0xf] %v5647_v48  ;;  %v4895_v9 = vpop.permute.xlu0 %4894  ;;  %v13319_v13 = vld [vmem:[%s10167_s19 + $0xb4] sm:$0x7]  ;;  %v4817_v26 = vrot.slane %v4815_v29, 5 }
 0x291   : > { %4370 = vst.msk [vmem:[#allocation2 + $0x7c] sm:$0xf] %vm15397_vm6, %v4278_v2  ;;  %v4820_v33 = vrot.slane %v4818_v51, 6  ;;  %v6316_v44 = vshrl.u32 %v13300_v25, 16  ;;  %vm15398_vm15 = vcmask 585216   ;;  %v5353_v16 = vpop.f32.mrb[32].mxu0 }
 0x292   : > { %4988 = vst.msk [vmem:[#allocation2 + $0x78] sm:$0xf] %vm15398_vm15, %v4895_v9  ;;  %2685 = vrot.lane.b32.xlu1 %v2564_v35, %s15272_s20  ;;  %3302 = vrot.lane.b32.xlu0 %v3210_v41, %s15273_s15  ;;  %v3831_v7 = vrot.slane %v3830_v42, 4  ;;  %v13328_v30 = vrot.slane %v3833_v3, 5  ;;  %v4208_v38 = vrot.slane %v4206_v28, 4  ;;  %v5354_v6 = vadd.f32 %v12966_v22, %v5353_v16  ;;  %v9634_v49 = vpop.f32.mrb[33].mxu0  ;;  %vm15399_vm1 = vmmov %vm15398_vm15 }
 0x293   : > { %v4825_v18 = vshrl.u32 %v4421_v56, 16  ;;  %v4828_v36 = vshll.u32 %v4421_v56, 16  ;;  %v6534_v57 = vshll.u32 %v6512_v20, 16  ;;  %v6705_v58 = vld [vmem:[#allocation4 + $0xc] sm:$0xf]  ;;  %v5356_v40 = vpop.f32.mrb[34].mxu0  ;;  %v13339_v3 = vor.u32 %v4820_v33, %v4817_v26 }
 0x294   : > { %v4897_v52 = vpop.permute.xlu1 %4896  ;;  %v4211_v37 = vrot.slane %v4209_v45, 4  ;;  %v15233_v5 = vrot.slane %v13319_v13, 5  ;;  %v6538_v29 = vshrl.u32 %v6512_v20, 16  ;;  %v13334_v46 = vld [vmem:[#allocation4 + $0x4] sm:$0xf]  ;;  %v5471_v51 = vmax.f32 %v5354_v6, 0.0  ;;  %v1259_v28 = vpop.permute.xlu0 %1258 }
 0x295   : > { %4989 = vst.msk [vmem:[#allocation2 + $0x7c] sm:$0xf] %vm15399_vm1, %v4897_v52  ;;  %v5357_v27 = vadd.f32 %v12966_v22, %v5356_v40  ;;  %v9635_v32 = vpop.f32.mrb[35].mxu0  ;;  %v4813_v42 = vrot.slane %v13194_v15, 4  ;;  %v13341_v35 = vld [vmem:[#allocation4 + $0x8] sm:$0xf]  ;;  %v3836_v41 = vsel %vm10234_vm8, %v3831_v7, %v13328_v30  ;;  %v4210_v22 = vsel %vm10259_vm11, %v4208_v38, %v4209_v45 }
 0x296   : > { %vm15400_vm0 = vcmask 126016   ;;  %3304 = vrot.lane.b32.xlu1 %v3220_v59, %s15273_s15  ;;  %3918 = vrot.lane.b32.xlu0 %v3826_v19, %s15352_s16  ;;  %v5986_v48 = vld [vmem:[#allocation4 + $0x4] sm:$0xf]  ;;  %v6719_v2 = vshrl.u32 %v6705_v58, 16  ;;  %v6722_v15 = vshll.u32 %v6705_v58, 16  ;;  %vm15401_vm6 = vcmask 261120  }
 0x297   : > { %1350 = vst.msk [vmem:[#allocation2 + $0x80] sm:$0xf] %vm15400_vm0, %v1259_v28  ;;  %v5472_v56 = vmax.f32 %v5357_v27, 0.0  ;;  %v4827_v20 = vrot.slane %v4825_v18, 5  ;;  %v4830_v9 = vrot.slane %v4828_v36, 6  ;;  %v6127_v59 = vshrl.u32 %v13334_v46, 16  ;;  %vm15402_vm15 = vmmov %vm15401_vm6 }
 0x298   : > { %5513 = vst.msk [vmem:[#allocation3 + $0x80] sm:$0xff] %vm15401_vm6, %v5471_v51  ;;  %v5985_v26 = vld [vmem:[#allocation4] sm:$0x8]  ;;  %v1261_v33 = vpop.permute.xlu1 %1260  ;;  %v6531_v16 = vor.u32 %v13311_v47, %v13306_v60  ;;  %v13355_v19 = vrot.slane %v6534_v57, 5  ;;  %v6540_v7 = vrot.slane %v6538_v29, 4  ;;  %v6136_v45 = vshrl.u32 %v13341_v35, 16  ;;  %vm15403_vm1 = vmmov %vm15400_vm0  ;;  %v1843_v38 = vpop.permute.xlu0 %1842 }
 0x299   : > { %v6107_v6 = vld [vmem:[#allocation4] sm:$0x8]  ;;  %5514 = vst.msk [vmem:[#allocation3 + $0x88] sm:$0xff] %vm15402_vm15, %v5472_v56  ;;  %v4213_v49 = vsel %vm10259_vm11, %v4211_v37, %v15233_v5  ;;  %v4822_v60 = vsel %vm10278_vm14, %v4813_v42, %v13339_v3  ;;  %v6015_v47 = vrot.slane %v5986_v48, 7  ;;  %v13367_v18 = vld [vmem:[#allocation4 + $0x8] sm:$0xf]  ;;  %v13377_v29 = vor.u32 %v4830_v9, %v4827_v20 }
 0x29a   : > { %1351 = vst.msk [vmem:[#allocation2 + $0x84] sm:$0xf] %vm15403_vm1, %v1261_v33  ;;  %v13369_v36 = vrot.slane %v6316_v44, 7  ;;  %vm15404_vm0 = vcmask 191616   ;;  %3920 = vrot.lane.b32.xlu1 %v3836_v41, %s15352_s16  ;;  %4291 = vrot.lane.b32.xlu0 %v4210_v22, %s15357_s17  ;;  %v4823_v57 = vrot.slane %v13339_v3, 4  ;;  %v9261_v58 = vrot.slane %v5985_v26, 11 }
 0x29b   : > { %1934 = vst.msk [vmem:[#allocation2 + $0x80] sm:$0xf] %vm15404_vm0, %v1843_v38  ;;  %v6721_v52 = vrot.slane %v6719_v2, 4  ;;  %v6724_v40 = vrot.slane %v6722_v15, 5  ;;  %v13375_v37 = vld [vmem:[#allocation4 + $0xc] sm:$0xf]  ;;  %v6541_v22 = vor.u32 %v6540_v7, %v13355_v19  ;;  %vm15406_vm15 = vmmov %vm15404_vm0 }
 0x29c   : > { %v6122_v51 = vshrl.u32 %v6107_v6, 16  ;;  %v13379_v27 = vrot.slane %v6127_v59, 7  ;;  %v6130_v44 = vshll.u32 %v13334_v46, 16  ;;  %v6488_v28 = vld [vmem:[#allocation4 + $0x14] sm:$0xf]  ;;  %v1845_v32 = vpop.permute.xlu1 %1844  ;;  %v9850_v42 = vld [vmem:[#allocation2 + $0x78] sm:$0xff]   ;;  %v2424_v3 = vpop.permute.xlu0 %2423  ;;  %v6016_v46 = vsel %vm10175_vm4, %v9261_v58, %v6015_v47 }
 0x29d   : > { %v13382_v41 = vrot.slane %v6531_v16, 4  ;;  %vm15405_vm6 = vcmask 257024   ;;  %1935 = vst.msk [vmem:[#allocation2 + $0x84] sm:$0xf] %vm15406_vm15, %v1845_v32  ;;  %v6017_v48 = vrot.slane %v6015_v47, 4  ;;  %v6018_v2 = vrot.slane %v13367_v18, 7 }
 0x29e   : > { %6501 = vst.msk [vmem:[#allocation5 + $0x28] sm:$0xf] %vm15405_vm6, %v6488_v28  ;;  %v13388_v15 = vld [vmem:[#allocation4 + $0x10] sm:$0xf]  ;;  %v6325_v56 = vshrl.u32 %v13375_v37, 16  ;;  %vm15407_vm1 = vcmask 257216   ;;  %4293 = vrot.lane.b32.xlu1 %v4213_v49, %s15357_s17  ;;  %4910 = vrot.lane.b32.xlu0 %v4822_v60, %s15310_s29  ;;  %v6725_v9 = vor.u32 %v6724_v40, %v6721_v52  ;;  %v4832_v16 = vsel %vm10278_vm14, %v4823_v57, %v13377_v29 }
 0x29f   : > { %2515 = vst.msk [vmem:[#allocation2 + $0x80] sm:$0xf] %vm15407_vm1, %v2424_v3  ;;  %v13396_v20 = vrot.slane %v6136_v45, 7  ;;  %v6296_v26 = vld [vmem:[#allocation4 + $0x4] sm:$0x8]  ;;  %v6323_v59 = vrot.slane %v13369_v36, 4  ;;  %v13406_v6 = vor.u32 %v6130_v44, %v13379_v27  ;;  %v6537_v60 = vsel %vm10234_vm8, %v13382_v41, %v13355_v19  ;;  %vm15409_vm15 = vmmov %vm15407_vm1 }
 0x2a0   : > { %v6489_v33 = vld [vmem:[#allocation4 + $0x18] sm:$0xf]  ;;  %vm15408_vm0 = vcmask 588800   ;;  %v13403_v7 = vrot.slane %v6122_v51, 11  ;;  %v6139_v38 = vshll.u32 %v13341_v35, 16  ;;  %v2426_v49 = vpop.permute.xlu1 %2425  ;;  %v6542_v47 = vrot.slane %v6541_v22, 4  ;;  %v2672_v35 = vpop.permute.xlu0 %2671 }
 0x2a1   : > { %9661 = vmatmul.mubr.msk.bf16.gmra.mrb[60].mxu0 %vm15408_vm0, %v9850_v42  ;;  %v6706_v45 = vld [vmem:[#allocation4 + $0x10] sm:$0xf]  ;;  %6502 = vst.msk [vmem:[#allocation5 + $0x34] sm:$0xf] %vm15405_vm6, %v6489_v33  ;;  %v6544_v58 = vshll.u32 %v13388_v15, 16  ;;  %v6319_v57 = vshll.u32 %v13300_v25, 16  ;;  %v6019_v40 = vsel %vm10175_vm4, %v6017_v48, %v6018_v2 }
 0x2a2   : > { %9664 = vmatprep.mubr.msk.bf16.mxu0 %vm15326_vm10, %v15247_v8  ;;  %v5816_v52 = vld [vmem:[#allocation4 + $0x14] sm:$0xf]  ;;  %2516 = vst.msk [vmem:[#allocation2 + $0x84] sm:$0xf] %vm15409_vm15, %v2426_v49  ;;  %v6311_v51 = vshrl.u32 %v6296_v26, 16  ;;  %v13423_v44 = vrot.slane %v6325_v56, 7  ;;  %4912 = vrot.lane.b32.xlu1 %v4832_v16, %s15310_s29  ;;  %v6133_v3 = vsel %vm10193_vm7, %v13403_v7, %v13406_v6 }
 0x2a3   : > { %v6328_v19 = vshll.u32 %v13375_v37, 16  ;;  %v5817_v28 = vld [vmem:[#allocation4 + $0x18] sm:$0xf]  ;;  %vm15410_vm1 = vcmask 322816   ;;  %6053 = vrot.lane.b32.xlu0 %v6016_v46, %s15272_s20  ;;  %v6134_v25 = vrot.slane %v13379_v27, 4  ;;  %v13430_v32 = vrot.slane %v6725_v9, 4 }
 0x2a4   : > { %2763 = vst.msk [vmem:[#allocation2 + $0x80] sm:$0xf] %vm15410_vm1, %v2672_v35  ;;  %v6728_v42 = vshll.u32 %v6706_v45, 16  ;;  %v6732_v41 = vshrl.u32 %v6706_v45, 16  ;;  %v7017_v22 = vld [vmem:[#allocation4 + $0x14] sm:$0xf]  ;;  %v6141_v37 = vor.u32 %v6139_v38, %v13396_v20  ;;  %v2674_v26 = vpop.permute.xlu1 %2673  ;;  %v13440_v46 = vor.u32 %v6319_v57, %v13369_v36  ;;  %vm15411_vm0 = vmmov %vm15410_vm1  ;;  %v3291_v16 = vpop.permute.xlu0 %3290 }
 0x2a5   : > { %v5875_v48 = vshrl.u32 %v5816_v52, 16  ;;  %v5878_v56 = vshll.u32 %v5816_v52, 16  ;;  %v13437_v33 = vrot.slane %v6544_v58, 5  ;;  %v5885_v27 = vshrl.u32 %v5817_v28, 16  ;;  %2764 = vst.msk [vmem:[#allocation2 + $0x84] sm:$0xf] %vm15411_vm0, %v2674_v26 }
 0x2a6   : > { %v5888_v9 = vshll.u32 %v5817_v28, 16  ;;  %v13443_v45 = vrot.slane %v6311_v51, 11  ;;  %v7048_v7 = vshrl.u32 %v7017_v22, 16  ;;  %v7018_v6 = vld [vmem:[#allocation4 + $0x18] sm:$0xf]  ;;  %vm15412_vm6 = vcmask 388416   ;;  %6055 = vrot.lane.b32.xlu1 %v6019_v40, %s15272_s20 }
 0x2a7   : > { %v5877_v49 = vrot.slane %v5875_v48, 6  ;;  %v5880_v35 = vrot.slane %v5878_v56, 7  ;;  %3382 = vst.msk [vmem:[#allocation2 + $0x80] sm:$0xf] %vm15412_vm6, %v3291_v16  ;;  %6653 = vrot.lane.b32.xlu0 %v6537_v60, %s15272_s20  ;;  %v13448_v38 = vrot.slane %v6728_v42, 5  ;;  %v13452_v57 = vrot.slane %v6732_v41, 4  ;;  %vm15413_vm15 = vmmov %vm15412_vm6 }
 0x2a8   : > { %v13450_v58 = vld [vmem:[#allocation4 + $0x14] sm:$0xf]  ;;  %v5887_v52 = vrot.slane %v5885_v27, 6  ;;  %v5890_v28 = vrot.slane %v5888_v9, 7  ;;  %v5873_v51 = vrot.slane %v13059_v23, 4  ;;  %v7050_v56 = vrot.slane %v7048_v7, 5  ;;  %v3293_v5 = vpop.permute.xlu1 %3292  ;;  %v3907_v27 = vpop.permute.xlu0 %3906 }
 0x2a9   : > { %v5881_v48 = vor.u32 %v5880_v35, %v5877_v49  ;;  %v7051_v26 = vshll.u32 %v7017_v22, 16  ;;  %v6547_v40 = vsel %vm10234_vm8, %v6542_v47, %v13437_v33  ;;  %v9854_v60 = vld [vmem:[%s15186_s3 + $0x40] sm:$0xff]   ;;  %v7058_v41 = vshrl.u32 %v7018_v6, 16  ;;  %3383 = vst.msk [vmem:[#allocation2 + $0x84] sm:$0xf] %vm15413_vm15, %v3293_v5 }
 0x2aa   : > { %v13461_v42 = vor.u32 %v5890_v28, %v5887_v52  ;;  %v7061_v16 = vshll.u32 %v7018_v6, 16  ;;  %v6738_v23 = vshll.u32 %v13450_v58, 16  ;;  %v9855_v22 = vld [vmem:[%s15186_s3] sm:$0xff]   ;;  %vm15414_vm1 = vcmask 454016   ;;  %6655 = vrot.lane.b32.xlu1 %v6547_v40, %s15272_s20  ;;  %v5811_v28 = vld [vmem:[#allocation4] sm:$0xc]  ;;  %9430 = vmatprep.subr.bf16.mxu1 %v9854_v60 }
 0x2ab   : > { %v5882_v47 = vsel %vm10478_vm3, %v5873_v51, %v5881_v48  ;;  %v5883_v9 = vrot.slane %v5881_v48, 4  ;;  %v7053_v49 = vrot.slane %v7051_v26, 6  ;;  %3998 = vst.msk [vmem:[#allocation2 + $0x80] sm:$0xf] %vm15414_vm1, %v3907_v27  ;;  %6242 = vrot.lane.b32.xlu0 %v6133_v3, %s15310_s29  ;;  %v6142_v5 = vsel %vm10193_vm7, %v6134_v25, %v6141_v37  ;;  %v5812_v51 = vld [vmem:[#allocation4 + $0x4] sm:$0xf]  ;;  %9431 = vmatpush3.bf16.msra.mxu1 %v9855_v22  ;;  %vm15417_vm15 = vmmov %vm15414_vm1 }
 0x2ac   : > { %v13476_v35 = vor.u32 %v6328_v19, %v13423_v44  ;;  %vm15415_vm0 = vcmask 257024   ;;  %v7046_v7 = vrot.slane %v13063_v10, 4  ;;  %v7060_v6 = vrot.slane %v7058_v41, 5  ;;  %v9856_v3 = vld [vmem:[%s15186_s3 + $0x48] sm:$0xff]   ;;  %v3909_v48 = vpop.permute.xlu1 %3908  ;;  %v4280_v60 = vpop.permute.xlu0 %4279  ;;  %v13502_v22 = vld [vmem:[#allocation4 + $0x14] sm:$0xf] }
 0x2ad   : > { %5976 = vst.msk [vmem:[#allocation5 + $0x30] sm:$0xf] %vm15415_vm0, %v5882_v47  ;;  %v6735_v52 = vor.u32 %v13452_v57, %v13448_v38  ;;  %v5892_v19 = vsel %vm10478_vm3, %v5883_v9, %v13461_v42  ;;  %v7054_v25 = vor.u32 %v7053_v49, %v7050_v56  ;;  %v7063_v37 = vrot.slane %v7061_v16, 6  ;;  %v6485_v57 = vld [vmem:[#allocation4 + $0x8] sm:$0xf]  ;;  %vm15416_vm6 = vmmov %vm15415_vm0  ;;  %9432 = vmatprep.subr.bf16.mxu1 %v9856_v3  ;;  %v9857_v9 = vld [vmem:[%s15186_s3 + $0x8] sm:$0xff]  }
 0x2ae   : > { %v5826_v26 = vshrl.u32 %v5811_v28, 16  ;;  %v5829_v10 = vshll.u32 %v5811_v28, 16  ;;  %v5835_v40 = vshrl.u32 %v5812_v51, 16  ;;  %v5838_v41 = vshll.u32 %v5812_v51, 16  ;;  %5977 = vst.msk [vmem:[#allocation5 + $0x3c] sm:$0xf] %vm15416_vm6, %v5892_v19  ;;  %vm15418_vm1 = vmmov %vm15415_vm0  ;;  %6244 = vrot.lane.b32.xlu1 %v6142_v5, %s15310_s29 }
 0x2af   : > { %3999 = vst.msk [vmem:[#allocation2 + $0x84] sm:$0xf] %vm15417_vm15, %v3909_v48  ;;  %v6731_v27 = vsel %vm10234_vm8, %v13430_v32, %v13448_v38  ;;  %v13494_v47 = vrot.slane %v6738_v23, 5  ;;  %v6322_v56 = vsel %vm10193_vm7, %v13443_v45, %v13440_v46  ;;  %v13500_v16 = vld [vmem:[#allocation4 + $0xc] sm:$0xe]  ;;  %v9859_v32 = vld [vmem:[%s15186_s3 + $0x50] sm:$0xff]   ;;  %v7055_v38 = vsel %vm10278_vm14, %v7046_v7, %v7054_v25  ;;  %vm15420_vm6 = vmmov %vm15418_vm1  ;;  %9433 = vmatpush3.bf16.msra.mxu1 %v9857_v9 }
 0x2b0   : > { %6498 = vst.msk [vmem:[#allocation5 + $0x4] sm:$0xf] %vm15418_vm1, %v6485_v57  ;;  %vm15419_vm0 = vcmask 519616   ;;  %6847 = vrot.lane.b32.xlu0 %v6731_v27, %s15310_s29  ;;  %v13516_v46 = vld [vmem:[#allocation4 + $0x10] sm:$0xf]  ;;  %v5828_v45 = vrot.slane %v5826_v26, 6  ;;  %v13522_v48 = vor.u32 %v7063_v37, %v7060_v6  ;;  %v4282_v57 = vpop.permute.xlu1 %4281  ;;  %v4899_v6 = vpop.permute.xlu0 %4898  ;;  %9434 = vmatprep.subr.bf16.mxu1 %v9859_v32 }
 0x2b1   : > { %4371 = vst.msk [vmem:[#allocation2 + $0x80] sm:$0xf] %vm15419_vm0, %v4280_v60  ;;  %v5831_v23 = vrot.slane %v5829_v10, 7  ;;  %v5837_v49 = vrot.slane %v5835_v40, 6  ;;  %v5840_v28 = vrot.slane %v5838_v41, 7  ;;  %v6548_v51 = vshrl.u32 %v13388_v15, 16  ;;  %vm15421_vm15 = vmmov %vm15419_vm0 }
 0x2b2   : > { %7171 = vst.msk [vmem:[#allocation5 + $0x14] sm:$0xf] %vm15420_vm6, %v7055_v38  ;;  %v6736_v3 = vrot.slane %v6735_v52, 4  ;;  %v13520_v19 = vld [vmem:[#allocation4 + $0xc] sm:$0xf]  ;;  %v7056_v7 = vrot.slane %v7054_v25, 4  ;;  %vm15423_vm0 = vmmov %vm15420_vm6 }
 0x2b3   : > { %v13526_v5 = vrot.slane %v6018_v2, 4  ;;  %v6554_v26 = vshll.u32 %v13502_v22, 16  ;;  %v13529_v10 = vld [vmem:[#allocation4 + $0xc] sm:$0xf]  ;;  %v5832_v40 = vor.u32 %v5831_v23, %v5828_v45  ;;  %v5841_v41 = vor.u32 %v5840_v28, %v5837_v49  ;;  %v9860_v15 = vld [vmem:[%s15186_s3 + $0x10] sm:$0xff]   ;;  %v5361_v27 = vpop.f32.mrb[36].mxu0 }
 0x2b4   : > { %4372 = vst.msk [vmem:[#allocation2 + $0x84] sm:$0xf] %vm15421_vm15, %v4282_v57  ;;  %v6741_v18 = vsel %vm10234_vm8, %v6736_v3, %v13494_v47  ;;  %v6927_v2 = vrot.slane %v13516_v46, 5  ;;  %v13539_v52 = vld [vmem:[#allocation4 + $0x14] sm:$0xf]  ;;  %v6558_v25 = vshrl.u32 %v13502_v22, 16  ;;  %v7065_v60 = vsel %vm10278_vm14, %v7056_v7, %v13522_v48  ;;  %6431 = vrot.lane.b32.xlu0 %v6322_v56, %s15235_s23  ;;  %v4901_v3 = vpop.permute.xlu1 %4900  ;;  %9435 = vmatpush3.bf16.msra.mxu1 %v9860_v15  ;;  %vm15425_vm15 = vmmov %vm15423_vm0 }
 0x2b5   : > { %v9861_v37 = vld [vmem:[%s15186_s3 + $0x58] sm:$0xff]   ;;  %vm15422_vm1 = vcmask 585216   ;;  %6849 = vrot.lane.b32.xlu1 %v6741_v18, %s15310_s29  ;;  %v9264_v9 = vrot.slane %v13500_v16, 9  ;;  %v6021_v22 = vrot.slane %v13520_v19, 7  ;;  %v5833_v32 = vrot.slane %v5832_v40, 4  ;;  %v9638_v23 = vpop.f32.mrb[37].mxu0 }
 0x2b6   : > { %4990 = vst.msk [vmem:[#allocation2 + $0x80] sm:$0xf] %vm15422_vm1, %v4899_v6  ;;  %v5843_v38 = vrot.slane %v5841_v41, 4  ;;  %v13557_v46 = vld [vmem:[%s15286_s2] ss:$0 sm:$0xff]  ;;  %v6331_v56 = vsel %vm10193_vm7, %v6323_v59, %v13476_v35  ;;  %v6550_v49 = vrot.slane %v6548_v51, 4  ;;  %vm15424_vm6 = vmmov %vm15422_vm1  ;;  %9436 = vmatprep.subr.bf16.mxu1 %v9861_v37 }
 0x2b7   : > { %7172 = vst.msk [vmem:[#allocation5 + $0x20] sm:$0xf] %vm15423_vm0, %v7065_v60  ;;  %v5362_v45 = vadd.f32 %v13557_v46, %v5361_v27  ;;  %v13565_v16 = vld [vmem:[#allocation4 + $0x10] sm:$0xf]  ;;  %v6145_v28 = vshrl.u32 %v13529_v10, 16  ;;  %v5364_v19 = vpop.f32.mrb[38].mxu0  ;;  %v5842_v6 = vsel %vm10478_vm3, %v5833_v32, %v5841_v41  ;;  %v6928_v60 = vsel %vm10259_vm11, %v9264_v9, %v6927_v2  ;;  %vm15426_vm1 = vmmov %vm15423_vm0 }
 0x2b8   : > { %v6930_v7 = vrot.slane %v13539_v52, 5  ;;  %v13569_v57 = vrot.slane %v6554_v26, 5  ;;  %v13571_v40 = vld [vmem:[#allocation4 + $0x10] sm:$0xf]  ;;  %v5852_v36 = vsel %vm10478_vm3, %v5843_v38, %v12694_v12  ;;  %4991 = vst.msk [vmem:[#allocation2 + $0x84] sm:$0xf] %vm15424_vm6, %v4901_v3  ;;  %v5365_v51 = vadd.f32 %v13557_v46, %v5364_v19  ;;  %v1263_v26 = vpop.permute.xlu0 %1262  ;;  %6963 = vrot.lane.b32.xlu0 %v6928_v60, %s15428_s1  ;;  %v1265_v32 = vpop.permute.xlu1 %1264 }
 0x2b9   : > { %v9862_v59 = vld [vmem:[%s15186_s3 + $0x18] sm:$0xff]   ;;  %v5473_v35 = vmax.f32 %v5362_v45, 0.0  ;;  %v9639_v18 = vpop.f32.mrb[39].mxu0  ;;  %v6560_v41 = vrot.slane %v6558_v25, 4  ;;  %5972 = vst.msk [vmem:[#allocation5] sm:$0xf] %vm15425_vm15, %v5842_v6  ;;  %6433 = vrot.lane.b32.xlu1 %v6331_v56, %s15428_s1  ;;  %v6551_v38 = vor.u32 %v6550_v49, %v13437_v33  ;;  %v6022_v33 = vsel %vm10175_vm4, %v13526_v5, %v6021_v22 }
 0x2ba   : > { %5973 = vst.msk [vmem:[#allocation5 + $0xc] sm:$0xf] %vm15426_vm1, %v5852_v36  ;;  %v9863_v12 = vld [vmem:[%s15186_s3 + $0x60] sm:$0xff]   ;;  %v6742_v15 = vshrl.u32 %v13450_v58, 16  ;;  %vm15427_vm0 = vcmask 126016   ;;  %vm15429_vm6 = vcmask 261120   ;;  %9437 = vmatpush3.bf16.msra.mxu1 %v9862_v59 }
 0x2bb   : > { %1352 = vst.msk [vmem:[#allocation2 + $0x88] sm:$0xf] %vm15427_vm0, %v1263_v26  ;;  %v13594_v27 = vld [vmem:[#allocation4 + $0x18] sm:$0xf]  ;;  %v5474_v25 = vmax.f32 %v5365_v51, 0.0  ;;  %v6929_v9 = vrot.slane %v6927_v2, 4  ;;  %vm15430_vm15 = vmmov %vm15429_vm6  ;;  %v6561_v49 = vor.u32 %v6560_v41, %v13569_v57  ;;  %9438 = vmatprep.subr.bf16.mxu1 %v9863_v12 }
 0x2bc   : > { %5515 = vst.msk [vmem:[#allocation3 + $0x90] sm:$0xff] %vm15429_vm6, %v5473_v35  ;;  %v6024_v37 = vrot.slane %v13565_v16, 7  ;;  %v13599_v45 = vrot.slane %v6145_v28, 7  ;;  %v6154_v58 = vshrl.u32 %v13571_v40, 16  ;;  %v9864_v23 = vld [vmem:[%s15186_s3 + $0x20] sm:$0xff]   ;;  %vm15431_vm1 = vmmov %vm15427_vm0  ;;  %v1847_v56 = vpop.permute.xlu0 %1846  ;;  %v6564_v28 = vshll.u32 %v13594_v27, 16  ;;  %6057 = vrot.lane.b32.xlu0 %v6022_v33, %s15272_s20  ;;  %v1849_v35 = vpop.permute.xlu1 %1848 }
 0x2bd   : > { %5516 = vst.msk [vmem:[#allocation3 + $0x98] sm:$0xff] %vm15430_vm15, %v5474_v25  ;;  %v6931_v2 = vsel %vm10259_vm11, %v6929_v9, %v6930_v7  ;;  %v9865_v3 = vld [vmem:[%s15186_s3 + $0x68] sm:$0xff]   ;;  %vm15432_vm0 = vcmask 191616   ;;  %v6148_v19 = vshll.u32 %v13529_v10, 16  ;;  %v6744_v6 = vrot.slane %v6742_v15, 4  ;;  %s10048_s23 = smov [#allocation9]  }
 0x2be   : > { %1353 = vst.msk [vmem:[#allocation2 + $0x8c] sm:$0xf] %vm15431_vm1, %v1265_v32  ;;  %6965 = vrot.lane.b32.xlu1 %v6931_v2, %s15428_s1  ;;  %v6023_v36 = vrot.slane %v6021_v22, 4  ;;  %v13623_v5 = vld [vmem:[#allocation4 + $0x18] sm:$0xf]  ;;  %v6552_v26 = vrot.slane %v6551_v38, 4  ;;  %9439 = vmatpush3.bf16.msra.mxu1 %v9864_v23  ;;  %vm15433_vm6 = vmmov %vm15432_vm0 }
 0x2bf   : > { %1936 = vst.msk [vmem:[#allocation2 + $0x88] sm:$0xf] %vm15432_vm0, %v1847_v56  ;;  %v6299_v59 = vld [vmem:[#allocation4 + $0x10] sm:$0xf]  ;;  %v9851_v51 = vld [vmem:[#allocation2 + $0x80] sm:$0xff]   ;;  %v6143_v18 = vrot.slane %v13396_v20, 4  ;;  %v6150_v60 = vor.u32 %v6148_v19, %v13599_v45  ;;  %9440 = vmatprep.subr.bf16.mxu1 %v9865_v3  ;;  %v6745_v32 = vor.u32 %v6744_v6, %v13494_v47 }
 0x2c0   : > { %v9866_v41 = vld [vmem:[%s15186_s3 + $0x28] sm:$0xff]   ;;  %1937 = vst.msk [vmem:[#allocation2 + $0x8c] sm:$0xf] %vm15433_vm6, %v1849_v35  ;;  %v2428_v10 = vpop.permute.xlu0 %2427  ;;  %v6025_v22 = vsel %vm10175_vm4, %v6023_v36, %v6024_v37  ;;  %v6562_v12 = vrot.slane %v6561_v49, 4  ;;  %v13635_v15 = vrot.slane %v6564_v28, 5  ;;  %v13637_v25 = vrot.slane %v6154_v58, 7  ;;  %v2430_v56 = vpop.permute.xlu1 %2429 }
 0x2c1   : > { %v9867_v20 = vld [vmem:[%s15186_s3 + $0x70] sm:$0xff]   ;;  %vm15434_vm15 = vcmask 257216   ;;  %vm15435_vm1 = vcmask 588800   ;;  %v6557_v9 = vsel %vm10234_vm8, %v6552_v26, %v13569_v57  ;;  %v6748_v38 = vshll.u32 %v13623_v5, 16 }
 0x2c2   : > { %2517 = vst.msk [vmem:[#allocation2 + $0x88] sm:$0xf] %vm15434_vm15, %v2428_v10  ;;  %6059 = vrot.lane.b32.xlu1 %v6025_v22, %s15272_s20  ;;  %9665 = vmatmul.mubr.msk.bf16.gmra.mrb[64].mxu0 %vm15435_vm1, %v9851_v51  ;;  %v6334_v58 = vshrl.u32 %v6299_v59, 16  ;;  %v6157_v23 = vshll.u32 %v13571_v40, 16  ;;  %v9868_v2 = vld [vmem:[%s15186_s3 + $0x30] sm:$0xff]   ;;  %vm15436_vm0 = vmmov %vm15434_vm15  ;;  %v6567_v47 = vsel %vm10234_vm8, %v6562_v12, %v13635_v15  ;;  %v9869_v40 = vld [vmem:[%s15186_s3 + $0x78] sm:$0xff]   ;;  %v6151_v49 = vsel %vm10193_vm7, %v6143_v18, %v6150_v60 }
 0x2c3   : > { %6657 = vrot.lane.b32.xlu0 %v6557_v9, %s15272_s20  ;;  %9668 = vmatprep.mubr.msk.bf16.mxu0 %vm15326_vm10, %v15247_v8  ;;  %2518 = vst.msk [vmem:[#allocation2 + $0x8c] sm:$0xf] %vm15436_vm0, %v2430_v56  ;;  %vm15437_vm6 = vcmask 322816   ;;  %v6746_v28 = vrot.slane %v6745_v32, 4  ;;  %v13669_v3 = vrot.slane %v6748_v38, 5  ;;  %v6152_v6 = vrot.slane %v13599_v45, 4 }
 0x2c4   : > { %9441 = vmatpush3.bf16.msra.mxu1 %v9866_v41  ;;  %v2676_v57 = vpop.permute.xlu0 %2675  ;;  %v6159_v33 = vor.u32 %v6157_v23, %v13637_v25  ;;  %v13671_v19 = vrot.slane %v6334_v58, 7  ;;  %v2678_v36 = vpop.permute.xlu1 %2677  ;;  %v6337_v35 = vshll.u32 %v6299_v59, 16  ;;  %v9870_v51 = vld [vmem:[%s15186_s3 + $0x38] sm:$0xff]   ;;  %vm15438_vm15 = vmmov %vm15437_vm6  ;;  %vm15439_vm1 = vcmask 388416   ;;  %v13688_v60 = vld [vmem:[#allocation4 + $0x18] sm:$0xf] }
 0x2c5   : > { %9442 = vmatprep.subr.bf16.mxu1 %v9867_v20  ;;  %2765 = vst.msk [vmem:[#allocation2 + $0x88] sm:$0xf] %vm15437_vm6, %v2676_v57  ;;  %v6751_v45 = vsel %vm10234_vm8, %v6746_v28, %v13669_v3  ;;  %v6332_v10 = vrot.slane %v13423_v44, 4  ;;  %vm15440_vm0 = vmmov %vm15439_vm1  ;;  %vm15441_vm6 = vcmask 454016   ;;  %v6933_v20 = vrot.slane %v13688_v60, 5 }
 0x2c6   : > { %6659 = vrot.lane.b32.xlu1 %v6567_v47, %s15272_s20  ;;  %2766 = vst.msk [vmem:[#allocation2 + $0x8c] sm:$0xf] %vm15438_vm15, %v2678_v36  ;;  %v6160_v18 = vsel %vm10193_vm7, %v6152_v6, %v6159_v33  ;;  %v6339_v59 = vor.u32 %v6337_v35, %v13671_v19  ;;  %v13698_v9 = vld [vmem:[#allocation4 + $0x14] sm:$0xf]  ;;  %v6932_v44 = vrot.slane %v6930_v7, 4  ;;  %vm15442_vm15 = vmmov %vm15441_vm6  ;;  %vm15451_vm13 = vcmask 191616  }
 0x2c7   : > { %6246 = vrot.lane.b32.xlu0 %v6151_v49, %s15310_s29  ;;  %v6027_v23 = vrot.slane %v13698_v9, 7  ;;  %vm15459_vm12 = vcmask 257024  }
 0x2c8   : > { %9443 = vmatpush3.bf16.msra.mxu1 %v9868_v2  ;;  %v3295_v26 = vpop.permute.xlu0 %3294  ;;  %v3297_v41 = vpop.permute.xlu1 %3296  ;;  %v6340_v12 = vsel %vm10193_vm7, %v6332_v10, %v6339_v59  ;;  %v6934_v58 = vsel %vm10259_vm11, %v6932_v44, %v6933_v20  ;;  %v6026_v2 = vrot.slane %v6024_v37, 4  ;;  %v5655_v10 = vld [vmem:[#allocation3 + $0x91] ss:$2 sm:$0xff] }
 0x2c9   : > { %9444 = vmatprep.subr.bf16.mxu1 %v9869_v40  ;;  %3384 = vst.msk [vmem:[#allocation2 + $0x88] sm:$0xf] %vm15439_vm1, %v3295_v26  ;;  %vm15443_vm1 = vcmask 519616   ;;  %v5650_v26 = vld [vmem:[#allocation3 + $0x7f] ss:$2 sm:$0xff] }
 0x2ca   : > { %6248 = vrot.lane.b32.xlu1 %v6160_v18, %s15310_s29  ;;  %3385 = vst.msk [vmem:[#allocation2 + $0x8c] sm:$0xf] %vm15440_vm0, %v3297_v41  ;;  %vm15444_vm0 = vmmov %vm15443_vm1  ;;  %v6028_v57 = vsel %vm10175_vm4, %v6026_v2, %v6027_v23  ;;  %v5652_v18 = vld [vmem:[#allocation3 + $0x80] ss:$2 sm:$0xff] }
 0x2cb   : > { %6851 = vrot.lane.b32.xlu0 %v6751_v45, %s15310_s29 }
 0x2cc   : > { %9445 = vmatpush3.bf16.msra.mxu1 %v9870_v51  ;;  %v3911_v22 = vpop.permute.xlu0 %3910  ;;  %v3913_v32 = vpop.permute.xlu1 %3912 }
 0x2cd   : > { %9684 = vmatprep.subr.bf16.mxu1 %v15247_v8  ;;  %4000 = vst.msk [vmem:[#allocation2 + $0x88] sm:$0xf] %vm15441_vm6, %v3911_v22  ;;  %vm15445_vm6 = vcmask 585216  }
 0x2ce   : > { %4001 = vst.msk [vmem:[#allocation2 + $0x8c] sm:$0xf] %vm15442_vm15, %v3913_v32  ;;  %vm15446_vm15 = vmmov %vm15445_vm6 }
 0x2cf   : > { %6435 = vrot.lane.b32.xlu0 %v6340_v12, %s15428_s1  ;;  %v5653_v12 = vmax.f32 %v5650_v26, %v5652_v18 }
 0x2d0   : > { %v4284_v38 = vpop.permute.xlu0 %4283  ;;  %v4286_v56 = vpop.permute.xlu1 %4285 }
 0x2d1   : > { %4373 = vst.msk [vmem:[#allocation2 + $0x88] sm:$0xf] %vm15443_vm1, %v4284_v38  ;;  %v5369_v7 = vpop.f32.mrb[40].mxu0  ;;  %vm15447_vm1 = vcmask 126016  }
 0x2d2   : > { %4374 = vst.msk [vmem:[#allocation2 + $0x8c] sm:$0xf] %vm15444_vm0, %v4286_v56  ;;  %v5370_v47 = vadd.f32 %v13557_v46, %v5369_v7  ;;  %v9642_v33 = vpop.f32.mrb[41].mxu0  ;;  %vm15448_vm0 = vcmask 261120   ;;  %vm15450_vm5 = vmmov %vm15447_vm1 }
 0x2d3   : > { %6967 = vrot.lane.b32.xlu0 %v6934_v58, %s15428_s1  ;;  %v5372_v49 = vpop.f32.mrb[42].mxu0 }
 0x2d4   : > { %v4903_v52 = vpop.permute.xlu0 %4902  ;;  %v4905_v40 = vpop.permute.xlu1 %4904  ;;  %v5475_v16 = vmax.f32 %v5370_v47, 0.0  ;;  %v5373_v37 = vadd.f32 %v13557_v46, %v5372_v49  ;;  %v5676_v49 = vld [vmem:[#allocation4 + $0x1c] sm:$0xf] }
 0x2d5   : > { %4992 = vst.msk [vmem:[#allocation2 + $0x88] sm:$0xf] %vm15445_vm6, %v4903_v52  ;;  %v9643_v6 = vpop.f32.mrb[43].mxu0  ;;  %vm15449_vm6 = vmmov %vm15448_vm0 }
 0x2d6   : > { %4993 = vst.msk [vmem:[#allocation2 + $0x8c] sm:$0xf] %vm15446_vm15, %v4905_v40  ;;  %v5476_v36 = vmax.f32 %v5373_v37, 0.0  ;;  %vm15452_vm15 = vmmov %vm15451_vm13  ;;  %v5681_v37 = vld [vmem:[#allocation4 + $0x20] sm:$0x1] }
 0x2d7   : > { %6061 = vrot.lane.b32.xlu0 %v6028_v57, %s15272_s20  ;;  %5517 = vst.msk [vmem:[#allocation3 + $0xa0] sm:$0xff] %vm15448_vm0, %v5475_v16  ;;  %vm15454_vm0 = vcmask 588800   ;;  %v15463_v16 = vmov 0 }
 0x2d8   : > { %v1267_v28 = vpop.permute.xlu0 %1266  ;;  %v1269_v35 = vpop.permute.xlu1 %1268  ;;  %5518 = vst.msk [vmem:[#allocation3 + $0xa8] sm:$0xff] %vm15449_vm6, %v5476_v36  ;;  %vm5674_vm6 = vsmask.f32 7938 }
 0x2d9   : > { %1354 = vst.msk [vmem:[#allocation2 + $0x90] sm:$0xf] %vm15447_vm1, %v1267_v28  ;;  %vm15453_vm1 = vcmask 257216   ;;  %vm13737_vm2 = vmand %vm15459_vm12, %vm5674_vm6  ;;  %vm15466_vm12 = vcmask 454016  }
 0x2da   : > { %1355 = vst.msk [vmem:[#allocation2 + $0x94] sm:$0xf] %vm15450_vm5, %v1269_v35  ;;  %vm15456_vm5 = vcmask 322816   ;;  %v6568_v35 = vshrl.u32 %v13594_v27, 16  ;;  %vm15467_vm6 = vmmov %vm15466_vm12 }
 0x2dc   : > { %v1851_v51 = vpop.permute.xlu0 %1850  ;;  %v1853_v45 = vpop.permute.xlu1 %1852 }
 0x2dd   : > { %1938 = vst.msk [vmem:[#allocation2 + $0x90] sm:$0xf] %vm15451_vm13, %v1851_v51  ;;  %v9852_v59 = vld [vmem:[#allocation2 + $0x88] sm:$0xff]   ;;  %vm15455_vm13 = vmmov %vm15453_vm1  ;;  %v6752_v51 = vshrl.u32 %v13623_v5, 16  ;;  %v6570_v5 = vrot.slane %v6568_v35, 4 }
 0x2de   : > { %1939 = vst.msk [vmem:[#allocation2 + $0x94] sm:$0xf] %vm15452_vm15, %v1853_v45  ;;  %v5657_v22 = vld [vmem:[#allocation3 + $0x92] ss:$2 sm:$0xff]  ;;  %9669 = vmatmul.mubr.msk.bf16.gmra.mrb[68].mxu0 %vm15454_vm0, %v9852_v59  ;;  %vm15457_vm15 = vmmov %vm15456_vm5  ;;  %vm15458_vm0 = vcmask 388416  }
 0x2df   : > { %v5658_v32 = vmax.f32 %v5655_v10, %v5657_v22  ;;  %9672 = vmatprep.mubr.msk.bf16.mxu0 %vm15326_vm10, %v15247_v8  ;;  %v6112_v10 = vld [vmem:[#allocation4 + $0x14] sm:$0xf]  ;;  %v6754_v27 = vrot.slane %v6752_v51, 4 }
 0x2e0   : > { %v2432_v41 = vpop.permute.xlu0 %2431  ;;  %v2434_v44 = vpop.permute.xlu1 %2433 }
 0x2e1   : > { %2519 = vst.msk [vmem:[#allocation2 + $0x90] sm:$0xf] %vm15453_vm1, %v2432_v41  ;;  %v5659_v38 = vmax.f32 %v5653_v12, %v5658_v32  ;;  %vm5679_vm1 = vcmask 253952   ;;  %v6300_v41 = vld [vmem:[#allocation4 + $0x14] sm:$0xf]  ;;  %v6163_v32 = vshrl.u32 %v6112_v10, 16 }
 0x2e2   : > { %2520 = vst.msk [vmem:[#allocation2 + $0x94] sm:$0xf] %vm15455_vm13, %v2434_v44  ;;  %vm15462_vm13 = vsmask.f32 256  ;;  %v6343_v12 = vshrl.u32 %v6300_v41, 16  ;;  %v6346_v51 = vshll.u32 %v6300_v41, 16 }
 0x2e3   : > { %v9395_v56 = vpack.c.bf16 %v5659_v38, %v5659_v38 }
 0x2e4   : > { %v2680_v58 = vpop.permute.xlu0 %2679  ;;  %v2682_v2 = vpop.permute.xlu1 %2681 }
 0x2e5   : > { %2767 = vst.msk [vmem:[#allocation2 + $0x90] sm:$0xf] %vm15456_vm5, %v2680_v58  ;;  %v5665_v52 = vshrl.u32 %v9395_v56, 16  ;;  %v5668_v47 = vshll.u32 %v9395_v56, 16  ;;  %vm13742_vm5 = vmand %vm5679_vm1, %vm15462_vm13  ;;  %vm15468_vm1 = vcmask 519616   ;;  %vm15470_vm13 = vcmask 585216  }
 0x2e6   : > { %2768 = vst.msk [vmem:[#allocation2 + $0x94] sm:$0xf] %vm15457_vm15, %v2682_v2  ;;  %v15464_v16 = vsel %vm13742_vm5, 4294967295, %v15463_v16  ;;  %vm15465_vm15 = vmmov %vm15458_vm0  ;;  %v6755_v58 = vor.u32 %v6754_v27, %v13669_v3  ;;  %v6571_v56 = vor.u32 %v6570_v5, %v13635_v15 }
 0x2e7   : > { %v5667_v57 = vrot.slane %v5665_v52, 7 }
 0x2e8   : > { %v3299_v7 = vpop.permute.xlu0 %3298  ;;  %v3301_v40 = vpop.permute.xlu1 %3300 }
 0x2e9   : > { %3386 = vst.msk [vmem:[#allocation2 + $0x90] sm:$0xf] %vm15458_vm0, %v3299_v7  ;;  %v5670_v28 = vor.u32 %v5668_v47, %v5667_v57  ;;  %v5671_v6 = vrot.slane %v5667_v57, 4  ;;  %vm15469_vm0 = vmmov %vm15468_vm1 }
 0x2ea   : > { %3387 = vst.msk [vmem:[#allocation2 + $0x94] sm:$0xf] %vm15465_vm15, %v3301_v40  ;;  %vm15471_vm15 = vmmov %vm15470_vm13 }
 0x2eb   : > { %v5677_v26 = vsel %vm13737_vm2, %v5670_v28, %v5676_v49  ;;  %v5682_v18 = vsel %vm13742_vm5, %v5671_v6, %v5681_v37  ;;  %v13767_v28 = vrot.slane %v6343_v12, 7  ;;  %v13769_v6 = vrot.slane %v6163_v32, 7 }
 0x2ec   : > { %v3915_v36 = vpop.permute.xlu0 %3914  ;;  %v3917_v45 = vpop.permute.xlu1 %3916  ;;  %5678 = vst [vmem:[#allocation4 + $0x1c] sm:$0xf] %v5677_v26  ;;  %5683 = vst [vmem:[#allocation4 + $0x20] sm:$0x1] %v5682_v18  ;;  %v6166_v26 = vshll.u32 %v6112_v10, 16  ;;  %v6756_v18 = vrot.slane %v6755_v58, 4 }
 0x2ed   : > { %4002 = vst.msk [vmem:[#allocation2 + $0x90] sm:$0xf] %vm15466_vm12, %v3915_v36  ;;  %vm15472_vm12 = vcmask 126016   ;;  %v6348_v10 = vor.u32 %v6346_v51, %v13767_v28  ;;  %vm15490_vm5 = vcmask 519616  }
 0x2ee   : > { %4003 = vst.msk [vmem:[#allocation2 + $0x94] sm:$0xf] %vm15467_vm6, %v3917_v45  ;;  %vm15473_vm6 = vcmask 261120   ;;  %v6168_v32 = vor.u32 %v6166_v26, %v13769_v6 }
 0x2f0   : > { %v4288_v59 = vpop.permute.xlu0 %4287  ;;  %v4290_v22 = vpop.permute.xlu1 %4289 }
 0x2f1   : > { %4375 = vst.msk [vmem:[#allocation2 + $0x90] sm:$0xf] %vm15468_vm1, %v4288_v59  ;;  %v5377_v38 = vpop.f32.mrb[44].mxu0  ;;  %v6572_v59 = vrot.slane %v6571_v56, 4  ;;  %vm15474_vm1 = vmmov %vm15473_vm6 }
 0x2f2   : > { %4376 = vst.msk [vmem:[#allocation2 + $0x94] sm:$0xf] %vm15469_vm0, %v4290_v22  ;;  %v5378_v2 = vadd.f32 %v13557_v46, %v5377_v38  ;;  %v9646_v52 = vpop.f32.mrb[45].mxu0  ;;  %vm15475_vm0 = vmmov %vm15472_vm12 }
 0x2f3   : > { %v13761_v7 = vld [vmem:[#allocation4 + $0x1c] sm:$0xf]  ;;  %v5380_v40 = vpop.f32.mrb[46].mxu0  ;;  %v6341_v52 = vrot.slane %v13671_v19, 4 }
 0x2f4   : > { %v4907_v44 = vpop.permute.xlu0 %4906  ;;  %v13763_v57 = vld [vmem:[#allocation4 + $0x1c] sm:$0xf]  ;;  %v4909_v47 = vpop.permute.xlu1 %4908  ;;  %v6758_v49 = vshll.u32 %v13761_v7, 16  ;;  %v5477_v3 = vmax.f32 %v5378_v2, 0.0  ;;  %v5381_v15 = vadd.f32 %v13557_v46, %v5380_v40 }
 0x2f5   : > { %4994 = vst.msk [vmem:[#allocation2 + $0x90] sm:$0xf] %vm15470_vm13, %v4907_v44  ;;  %v6574_v37 = vshll.u32 %v13763_v57, 16  ;;  %v9647_v35 = vpop.f32.mrb[47].mxu0  ;;  %v6490_v44 = vld [vmem:[#allocation4 + $0x1c] sm:$0xf] }
 0x2f6   : > { %4995 = vst.msk [vmem:[#allocation2 + $0x94] sm:$0xf] %vm15471_vm15, %v4909_v47  ;;  %v13774_v45 = vrot.slane %v6758_v49, 5  ;;  %v5478_v5 = vmax.f32 %v5381_v15, 0.0  ;;  %v5818_v38 = vld [vmem:[#allocation4 + $0x1c] sm:$0xf] }
 0x2f7   : > { %v13776_v27 = vrot.slane %v6574_v37, 5  ;;  %5519 = vst.msk [vmem:[#allocation3 + $0xb0] sm:$0xff] %vm15473_vm6, %v5477_v3  ;;  %v13791_v56 = vld [vmem:[#allocation4 + $0x1c] sm:$0xf]  ;;  %vm15476_vm13 = vcmask 257024   ;;  %vm15477_vm15 = vcmask 191616   ;;  %v6349_v3 = vsel %vm10193_vm7, %v6341_v52, %v6348_v10 }
 0x2f8   : > { %v1271_v36 = vpop.permute.xlu0 %1270  ;;  %v1273_v22 = vpop.permute.xlu1 %1272  ;;  %v6761_v12 = vsel %vm10234_vm8, %v6756_v18, %v13774_v45  ;;  %5520 = vst.msk [vmem:[#allocation3 + $0xb8] sm:$0xff] %vm15474_vm1, %v5478_v5  ;;  %v7019_v2 = vld [vmem:[#allocation4 + $0x1c] sm:$0xf]  ;;  %v6161_v47 = vrot.slane %v13637_v25, 4  ;;  %v5895_v40 = vshrl.u32 %v5818_v38, 16  ;;  %v5898_v49 = vshll.u32 %v5818_v38, 16 }
 0x2f9   : > { %1356 = vst.msk [vmem:[#allocation2 + $0x98] sm:$0xf] %vm15472_vm12, %v1271_v36  ;;  %v6577_v41 = vsel %vm10234_vm8, %v6572_v59, %v13776_v27  ;;  %6853 = vrot.lane.b32.xlu1 %v6761_v12, %s15310_s29  ;;  %v6936_v35 = vrot.slane %v13791_v56, 5  ;;  %v7068_v51 = vshrl.u32 %v7019_v2, 16  ;;  %vm15478_vm12 = vmmov %vm15477_vm15  ;;  %v13805_v25 = vld [vmem:[#allocation4 + $0x18] sm:$0xf] }
 0x2fa   : > { %1357 = vst.msk [vmem:[#allocation2 + $0x9c] sm:$0xf] %vm15475_vm0, %v1273_v22  ;;  %6661 = vrot.lane.b32.xlu0 %v6577_v41, %s15272_s20  ;;  %v6169_v15 = vsel %vm10193_vm7, %v6161_v47, %v6168_v32  ;;  %v5897_v19 = vrot.slane %v5895_v40, 6  ;;  %v5900_v18 = vrot.slane %v5898_v49, 7  ;;  %v7071_v59 = vshll.u32 %v7019_v2, 16 }
 0x2fb   : > { %6503 = vst.msk [vmem:[#allocation5 + $0x40] sm:$0xf] %vm15476_vm13, %v6490_v44  ;;  %vm15479_vm6 = vcmask 257216   ;;  %vm15480_vm1 = vcmask 588800   ;;  %v6935_v5 = vrot.slane %v6933_v20, 4  ;;  %v7070_v22 = vrot.slane %v7068_v51, 5 }
 0x2fc   : > { %v1855_v58 = vpop.permute.xlu0 %1854  ;;  %v1857_v37 = vpop.permute.xlu1 %1856  ;;  %v5893_v12 = vrot.slane %v13461_v42, 4  ;;  %v13814_v41 = vor.u32 %v5900_v18, %v5897_v19  ;;  %v7073_v10 = vrot.slane %v7071_v59, 6  ;;  %v6030_v38 = vrot.slane %v13805_v25, 7  ;;  %vm15481_vm0 = vmmov %vm15479_vm6 }
 0x2fd   : > { %1940 = vst.msk [vmem:[#allocation2 + $0x98] sm:$0xf] %vm15477_vm15, %v1855_v58  ;;  %v9853_v36 = vld [vmem:[#allocation2 + $0x90] sm:$0xff]   ;;  %6437 = vrot.lane.b32.xlu1 %v6349_v3, %s15428_s1  ;;  %v6937_v44 = vsel %vm10259_vm11, %v6935_v5, %v6936_v35  ;;  %v7066_v20 = vrot.slane %v13522_v48, 4  ;;  %vm15482_vm13 = vcmask 322816   ;;  %v6029_v2 = vrot.slane %v6027_v23, 4 }
 0x2fe   : > { %1941 = vst.msk [vmem:[#allocation2 + $0x9c] sm:$0xf] %vm15478_vm12, %v1857_v37  ;;  %6250 = vrot.lane.b32.xlu0 %v6169_v15, %s15310_s29  ;;  %9673 = vmatmul.mubr.msk.bf16.gmra.mrb[72].mxu0 %vm15480_vm1, %v9853_v36  ;;  %v5902_v42 = vsel %vm10478_vm3, %v5893_v12, %v13814_v41  ;;  %v13827_v58 = vor.u32 %v7073_v10, %v7070_v22  ;;  %vm15483_vm15 = vcmask 257024   ;;  %vm15486_vm1 = vcmask 388416  }
 0x2ff   : > { %9676 = vmatprep.mubr.msk.bf16.mxu0 %vm15326_vm10, %v15247_v8  ;;  %5978 = vst.msk [vmem:[#allocation5 + $0x48] sm:$0xf] %vm15483_vm15, %v5902_v42  ;;  %v6031_v40 = vsel %vm10175_vm4, %v6029_v2, %v6030_v38  ;;  %vm15484_vm12 = vmmov %vm15483_vm15  ;;  %v5687_v42 = vld [vmem:[#allocation3 + $0xa4] ss:$2 sm:$0xff] }
 0x300   : > { %v2436_v26 = vpop.permute.xlu0 %2435  ;;  %v2438_v32 = vpop.permute.xlu1 %2437  ;;  %v7075_v52 = vsel %vm10278_vm14, %v7066_v20, %v13827_v58 }
 0x301   : > { %2521 = vst.msk [vmem:[#allocation2 + $0x98] sm:$0xf] %vm15479_vm6, %v2436_v26  ;;  %6969 = vrot.lane.b32.xlu1 %v6937_v44, %s15428_s1  ;;  %vm15485_vm6 = vmmov %vm15482_vm13 }
 0x302   : > { %2522 = vst.msk [vmem:[#allocation2 + $0x9c] sm:$0xf] %vm15481_vm0, %v2438_v32  ;;  %vm15487_vm0 = vmmov %vm15486_vm1 }
 0x303   : > { %7173 = vst.msk [vmem:[#allocation5 + $0x2c] sm:$0xf] %vm15484_vm12, %v7075_v52  ;;  %vm15491_vm12 = vmmov %vm15490_vm5 }
 0x304   : > { %v2684_v60 = vpop.permute.xlu0 %2683  ;;  %v2686_v47 = vpop.permute.xlu1 %2685 }
 0x305   : > { %2769 = vst.msk [vmem:[#allocation2 + $0x98] sm:$0xf] %vm15482_vm13, %v2684_v60  ;;  %6063 = vrot.lane.b32.xlu1 %v6031_v40, %s15272_s20  ;;  %vm15488_vm13 = vcmask 454016   ;;  %v5685_v60 = vld [vmem:[#allocation3 + $0xa3] ss:$2 sm:$0xff] }
 0x306   : > { %2770 = vst.msk [vmem:[#allocation2 + $0x9c] sm:$0xf] %vm15485_vm6, %v2686_v47  ;;  %vm15489_vm15 = vmmov %vm15488_vm13  ;;  %vm15492_vm6 = vcmask 585216  }
 0x308   : > { %v3303_v48 = vpop.permute.xlu0 %3302  ;;  %v3305_v9 = vpop.permute.xlu1 %3304 }
 0x309   : > { %3388 = vst.msk [vmem:[#allocation2 + $0x98] sm:$0xf] %vm15486_vm1, %v3303_v48  ;;  %vm15493_vm1 = vmmov %vm15492_vm6  ;;  %v5688_v48 = vmax.f32 %v5685_v60, %v5687_v42  ;;  %v6578_v42 = vshrl.u32 %v13763_v57, 16 }
 0x30a   : > { %3389 = vst.msk [vmem:[#allocation2 + $0x9c] sm:$0xf] %vm15487_vm0, %v3305_v9  ;;  %vm6092_vm0 = vcmask 519424  }
 0x30c   : > { %v3919_v23 = vpop.permute.xlu0 %3918  ;;  %v3921_v49 = vpop.permute.xlu1 %3920 }
 0x30d   : > { %4004 = vst.msk [vmem:[#allocation2 + $0x98] sm:$0xf] %vm15488_vm13, %v3919_v23 }
 0x30e   : > { %4005 = vst.msk [vmem:[#allocation2 + $0x9c] sm:$0xf] %vm15489_vm15, %v3921_v49  ;;  %vm6281_vm15 = vcmask 781824  }
 0x310   : > { %v4292_v37 = vpop.permute.xlu0 %4291  ;;  %v4294_v3 = vpop.permute.xlu1 %4293 }
 0x311   : > { %4377 = vst.msk [vmem:[#allocation2 + $0x98] sm:$0xf] %vm15490_vm5, %v4292_v37  ;;  %v5385_v36 = vpop.f32.mrb[48].mxu0  ;;  %vm15494_vm5 = vcmask 261120  }
 0x312   : > { %4378 = vst.msk [vmem:[#allocation2 + $0x9c] sm:$0xf] %vm15491_vm12, %v4294_v3  ;;  %v5386_v51 = vadd.f32 %v13557_v46, %v5385_v36  ;;  %v9650_v26 = vpop.f32.mrb[49].mxu0  ;;  %vm15495_vm13 = vmmov %vm15494_vm5  ;;  %vm15496_vm12 = vcmask 588800  }
 0x313   : > { %v5388_v18 = vpop.f32.mrb[50].mxu0 }
 0x314   : > { %v4911_v15 = vpop.permute.xlu0 %4910  ;;  %v4913_v19 = vpop.permute.xlu1 %4912  ;;  %v5479_v59 = vmax.f32 %v5386_v51, 0.0  ;;  %v5389_v5 = vadd.f32 %v13557_v46, %v5388_v18 }
 0x315   : > { %4996 = vst.msk [vmem:[#allocation2 + $0x98] sm:$0xf] %vm15492_vm6, %v4911_v15  ;;  %v9651_v12 = vpop.f32.mrb[51].mxu0  ;;  %vm6470_vm6 = vcmask 1044224  }
 0x316   : > { %4997 = vst.msk [vmem:[#allocation2 + $0x9c] sm:$0xf] %vm15493_vm1, %v4913_v19  ;;  %v5480_v10 = vmax.f32 %v5389_v5, 0.0  ;;  %v5710_v5 = vld [vmem:[#allocation4 + $0x20] sm:$0xe]  ;;  %vm15497_vm1 = vnez %v15320_v62 }
 0x317   : > { %5521 = vst.msk [vmem:[#allocation3 + $0xc0] sm:$0xff] %vm15494_vm5, %v5479_v59 }
 0x318   : > { %v6054_v22 = vpop.permute.xlu0 %6053  ;;  %v6056_v32 = vpop.permute.xlu1 %6055  ;;  %5522 = vst.msk [vmem:[#allocation3 + $0xc8] sm:$0xff] %vm15495_vm13, %v5480_v10  ;;  %v5713_v10 = vld [vmem:[#allocation4 + $0x24] sm:$0x3]  ;;  %vm15499_vm13 = vcmask 257024  }
 0x319   : > { %6093 = vst.msk [vmem:[#allocation5] sm:$0xf] %vm6092_vm0, %v6054_v22  ;;  %6094 = vst.msk [vmem:[#allocation5 + $0xc] sm:$0xf] %vm6092_vm0, %v6056_v32  ;;  %v6762_v32 = vshrl.u32 %v13761_v7, 16 }
 0x31a   : > { %v6113_v7 = vld [vmem:[#allocation4 + $0x18] sm:$0xf] }
 0x31c   : > { %v6654_v44 = vpop.permute.xlu0 %6653  ;;  %v6656_v20 = vpop.permute.xlu1 %6655 }
 0x31d   : > { %6692 = vst.msk [vmem:[#allocation5 + $0x4] sm:$0xf] %vm6092_vm0, %v6654_v44  ;;  %v9858_v2 = vld [vmem:[#allocation2 + $0x98] sm:$0xff]   ;;  %6693 = vst.msk [vmem:[#allocation5 + $0x10] sm:$0xf] %vm6092_vm0, %v6656_v20 }
 0x31e   : > { %v5690_v47 = vld [vmem:[#allocation3 + $0xb5] ss:$2 sm:$0xff]  ;;  %v5692_v40 = vld [vmem:[#allocation3 + $0xb6] ss:$2 sm:$0xff]  ;;  %9677 = vmatmul.mubr.msk.bf16.gmra.mrb[76].mxu0 %vm15496_vm12, %v9858_v2  ;;  %vm15500_vm12 = vmmov %vm15499_vm13 }
 0x31f   : > { %v5693_v9 = vmax.f32 %v5690_v47, %v5692_v40  ;;  %9680 = vmatprep.mubr.msk.bf16.mxu0 %vm15326_vm10, %v15247_v8  ;;  %v6301_v47 = vld [vmem:[#allocation4 + $0x18] sm:$0xf]  ;;  %v6764_v40 = vrot.slane %v6762_v32, 4 }
 0x320   : > { %v6243_v52 = vpop.permute.xlu0 %6242  ;;  %v6245_v23 = vpop.permute.xlu1 %6244  ;;  %v6352_v57 = vshrl.u32 %v6301_v47, 16 }
 0x321   : > { %6282 = vst.msk [vmem:[#allocation5] sm:$0xf] %vm6281_vm15, %v6243_v52  ;;  %v5694_v49 = vmax.f32 %v5688_v48, %v5693_v9  ;;  %6283 = vst.msk [vmem:[#allocation5 + $0xc] sm:$0xf] %vm6281_vm15, %v6245_v23  ;;  %v6580_v9 = vrot.slane %v6578_v42, 4 }
 0x323   : > { %v9396_v3 = vpack.c.bf16 %v5694_v49, %v5694_v49  ;;  %v6172_v49 = vshrl.u32 %v6113_v7, 16 }
 0x324   : > { %v6848_v37 = vpop.permute.xlu0 %6847 }
 0x325   : > { %6886 = vst.msk [vmem:[#allocation5 + $0x4] sm:$0xf] %vm6281_vm15, %v6848_v37  ;;  %v5700_v36 = vshrl.u32 %v9396_v3, 16  ;;  %v5703_v51 = vshll.u32 %v9396_v3, 16 }
 0x327   : > { %v6850_v15 = vpop.permute.xlu1 %6849  ;;  %v5702_v19 = vrot.slane %v5700_v36, 6  ;;  %v5705_v18 = vrot.slane %v5703_v51, 7 }
 0x328   : > { %6887 = vst.msk [vmem:[#allocation5 + $0x10] sm:$0xf] %vm6281_vm15, %v6850_v15  ;;  %v6432_v26 = vpop.permute.xlu0 %6431  ;;  %v6765_v15 = vor.u32 %v6764_v40, %v13774_v45 }
 0x329   : > { %6471 = vst.msk [vmem:[#allocation5] sm:$0xf] %vm6470_vm6, %v6432_v26  ;;  %v5706_v22 = vor.u32 %v5705_v18, %v5702_v19 }
 0x32a   : > { %v6766_v42 = vrot.slane %v6765_v15, 4 }
 0x32b   : > { %v6434_v59 = vpop.permute.xlu1 %6433  ;;  %v5707_v44 = vrot.slane %v5706_v22, 4  ;;  %v5711_v60 = vsel %vm12517_vm9, %v5706_v22, %v5710_v5  ;;  %vm15498_vm9 = vmmov %vm15494_vm5 }
 0x32c   : > { %6472 = vst.msk [vmem:[#allocation5 + $0xc] sm:$0xf] %vm6470_vm6, %v6434_v59  ;;  %v6964_v12 = vpop.permute.xlu0 %6963  ;;  %5712 = vst [vmem:[#allocation4 + $0x20] sm:$0xe] %v5711_v60  ;;  %v6581_v59 = vor.u32 %v6580_v9, %v13776_v27  ;;  %v13893_v60 = vrot.slane %v6172_v49, 7  ;;  %v6175_v9 = vshll.u32 %v6113_v7, 16 }
 0x32d   : > { %7002 = vst.msk [vmem:[#allocation5 + $0x4] sm:$0xf] %vm6470_vm6, %v6964_v12  ;;  %v5714_v52 = vsel %vm15497_vm1, %v5707_v44, %v5713_v10  ;;  %v13889_v44 = vrot.slane %v6352_v57, 7  ;;  %vm15501_vm1 = vmmov %vm15500_vm12 }
 0x32e   : > { %5715 = vst [vmem:[#allocation4 + $0x24] sm:$0x3] %v5714_v52  ;;  %v6582_v40 = vrot.slane %v6581_v59, 4  ;;  %v6177_v7 = vor.u32 %v6175_v9, %v13893_v60 }
 0x330   : > { %v6966_v20 = vpop.permute.xlu1 %6965  ;;  %v6058_v2 = vpop.permute.xlu0 %6057 }
 0x331   : > { %7003 = vst.msk [vmem:[#allocation5 + $0x10] sm:$0xf] %vm6470_vm6, %v6966_v20  ;;  %v5393_v23 = vpop.f32.mrb[52].mxu0 }
 0x332   : > { %6095 = vst.msk [vmem:[#allocation5 + $0x18] sm:$0xf] %vm6092_vm0, %v6058_v2  ;;  %v5394_v37 = vadd.f32 %v13557_v46, %v5393_v23  ;;  %v9654_v62 = vpop.f32.mrb[53].mxu0  ;;  %v6355_v2 = vshll.u32 %v6301_v47, 16 }
 0x333   : > { %v13880_v3 = vld [vmem:[#allocation4 + $0x20] sm:$0xf]  ;;  %v5396_v26 = vpop.f32.mrb[54].mxu0  ;;  %v9871_v19 = vld [vmem:[#allocation5] ss:$12 sps:$4 sm:$0xff]  }
 0x334   : > { %v6060_v48 = vpop.permute.xlu1 %6059  ;;  %v13883_v36 = vld [vmem:[#allocation4 + $0x20] sm:$0xf]  ;;  %v5481_v5 = vmax.f32 %v5394_v37, 0.0  ;;  %v5397_v22 = vadd.f32 %v13557_v46, %v5396_v26  ;;  %v9655_v10 = vpop.f32.mrb[55].mxu0  ;;  %v6768_v32 = vshll.u32 %v13880_v3, 16  ;;  %v6357_v23 = vor.u32 %v6355_v2, %v13889_v44 }
 0x335   : > { %6096 = vst.msk [vmem:[#allocation5 + $0x24] sm:$0xf] %vm6092_vm0, %v6060_v48  ;;  %v6658_v14 = vpop.permute.xlu0 %6657  ;;  %v6584_v45 = vshll.u32 %v13883_v36, 16  ;;  %v6491_v49 = vld [vmem:[#allocation4 + $0x20] sm:$0xf]  ;;  %v6170_v26 = vrot.slane %v13769_v6, 4 }
 0x336   : > { %6694 = vst.msk [vmem:[#allocation5 + $0x1c] sm:$0xf] %vm6092_vm0, %v6658_v14  ;;  %v5482_v27 = vmax.f32 %v5397_v22, 0.0  ;;  %v13896_v20 = vrot.slane %v6768_v32, 5  ;;  %v5819_v37 = vld [vmem:[#allocation4 + $0x20] sm:$0xf] }
 0x337   : > { %5523 = vst.msk [vmem:[#allocation3 + $0xd0] sm:$0xff] %vm15498_vm9, %v5481_v5  ;;  %v13898_v48 = vrot.slane %v6584_v45, 5  ;;  %v13912_v62 = vld [vmem:[#allocation4 + $0x20] sm:$0xf]  ;;  %v6178_v32 = vsel %vm10193_vm7, %v6170_v26, %v6177_v7  ;;  %v6938_v6 = vrot.slane %v6936_v35, 4  ;;  %v7076_v35 = vrot.slane %v13827_v58, 4  ;;  %vm15502_vm9 = vmmov %vm15494_vm5 }
 0x338   : > { %v6660_v51 = vpop.permute.xlu1 %6659  ;;  %v9873_v18 = vld [vmem:[#allocation5 + $0x4] ss:$12 sps:$4 sm:$0xff]   ;;  %5524 = vst.msk [vmem:[#allocation3 + $0xd8] sm:$0xff] %vm15494_vm5, %v5482_v27  ;;  %v6771_v57 = vsel %vm10234_vm8, %v6766_v42, %v13896_v20  ;;  %v7020_v15 = vld [vmem:[#allocation4 + $0x20] sm:$0xf]  ;;  %v6939_v22 = vrot.slane %v13912_v62, 5 }
 0x339   : > { %6695 = vst.msk [vmem:[#allocation5 + $0x28] sm:$0xf] %vm6092_vm0, %v6660_v51  ;;  %v6247_v12 = vpop.permute.xlu0 %6246  ;;  %7513 = vmatprep.mubr.bf16.mxu1 %v9873_v18  ;;  %6855 = vrot.lane.b32.xlu0 %v6771_v57, %s15310_s29  ;;  %v6587_v47 = vsel %vm10234_vm8, %v6582_v40, %v13898_v48  ;;  %v6350_v51 = vrot.slane %v13767_v28, 4  ;;  %v5908_v18 = vshll.u32 %v5819_v37, 16  ;;  %v7081_v10 = vshll.u32 %v7020_v15, 16 }
 0x33a   : > { %6284 = vst.msk [vmem:[#allocation5 + $0x18] sm:$0xf] %vm6281_vm15, %v6247_v12  ;;  %7514 = vmatmul.mubr.bf16.vlgmr.msra.gmra.mrb[0].mxu1 %v9871_v19  ;;  %6663 = vrot.lane.b32.xlu1 %v6587_v47, %s15272_s20  ;;  %v5905_v19 = vshrl.u32 %v5819_v37, 16  ;;  %v7078_v12 = vshrl.u32 %v7020_v15, 16  ;;  %v13925_v28 = vld [vmem:[#allocation4 + $0x1c] sm:$0xf]  ;;  %v6940_v40 = vsel %vm10259_vm11, %v6938_v6, %v6939_v22 }
 0x33b   : > { %6504 = vst.msk [vmem:[#allocation5 + $0x4c] sm:$0xf] %vm15499_vm13, %v6491_v49  ;;  %v6358_v5 = vsel %vm10193_vm7, %v6350_v51, %v6357_v23  ;;  %v5910_v27 = vrot.slane %v5908_v18, 7  ;;  %v7083_v2 = vrot.slane %v7081_v10, 6  ;;  %v6033_v9 = vrot.slane %v13925_v28, 7 }
 0x33c   : > { %v6249_v52 = vpop.permute.xlu1 %6248  ;;  %v5907_v45 = vrot.slane %v5905_v19, 6  ;;  %v7080_v42 = vrot.slane %v7078_v12, 5  ;;  %v6032_v23 = vrot.slane %v6030_v38, 4  ;;  %vm15503_vm13 = vnez %v15344_v63  ;;  %v13976_v63 = vld [vmem:[%s15286_s2] ss:$0 sm:$0xff] }
 0x33d   : > { %6285 = vst.msk [vmem:[#allocation5 + $0x24] sm:$0xf] %vm6281_vm15, %v6249_v52  ;;  %v6852_v14 = vpop.permute.xlu0 %6851  ;;  %6439 = vrot.lane.b32.xlu0 %v6358_v5, %s15428_s1 }
 0x33e   : > { %6888 = vst.msk [vmem:[#allocation5 + $0x1c] sm:$0xf] %vm6281_vm15, %v6852_v14  ;;  %6252 = vrot.lane.b32.xlu1 %v6178_v32, %s15310_s29  ;;  %v5903_v14 = vrot.slane %v13814_v41, 4  ;;  %v13938_v56 = vor.u32 %v5910_v27, %v5907_v45  ;;  %v13941_v57 = vor.u32 %v7083_v2, %v7080_v42  ;;  %v6034_v41 = vsel %vm10175_vm4, %v6032_v23, %v6033_v9  ;;  %v5717_v18 = vld [vmem:[#allocation3 + $0xc7] ss:$2 sm:$0xff] }
 0x33f   : > { %v6772_v23 = vshrl.u32 %v13880_v3, 16 }
 0x340   : > { %v5912_v49 = vsel %vm10478_vm3, %v5903_v14, %v13938_v56  ;;  %v7085_v37 = vsel %vm10278_vm14, %v7076_v35, %v13941_v57 }
 0x341   : > { %v6436_v59 = vpop.permute.xlu0 %6435  ;;  %6971 = vrot.lane.b32.xlu0 %v6940_v40, %s15428_s1  ;;  %5979 = vst.msk [vmem:[#allocation5 + $0x54] sm:$0xf] %vm15500_vm12, %v5912_v49  ;;  %v5742_v40 = vld [vmem:[#allocation4 + $0x24] sm:$0xc]  ;;  %v6588_v49 = vshrl.u32 %v13883_v36, 16  ;;  %vm15504_vm12 = vnez %v15347_v54  ;;  %v6774_v3 = vrot.slane %v6772_v23, 4 }
 0x342   : > { %6473 = vst.msk [vmem:[#allocation5 + $0x18] sm:$0xf] %vm6470_vm6, %v6436_v59  ;;  %v5719_v59 = vld [vmem:[#allocation3 + $0xc8] ss:$2 sm:$0xff] }
 0x343   : > { %7174 = vst.msk [vmem:[#allocation5 + $0x38] sm:$0xf] %vm15501_vm1, %v7085_v37  ;;  %v5720_v10 = vmax.f32 %v5717_v18, %v5719_v59  ;;  %v5745_v37 = vld [vmem:[#allocation4 + $0x28] sm:$0x7]  ;;  %v6590_v36 = vrot.slane %v6588_v49, 4  ;;  %vm15505_vm1 = vmmov %vm15494_vm5 }
 0x345   : > { %v6968_v52 = vpop.permute.xlu0 %6967  ;;  %6065 = vrot.lane.b32.xlu0 %v6034_v41, %s15272_s20 }
 0x346   : > { %7004 = vst.msk [vmem:[#allocation5 + $0x1c] sm:$0xf] %vm6470_vm6, %v6968_v52 }
 0x349   : > { %v6062_v47 = vpop.permute.xlu0 %6061 }
 0x34a   : > { %6097 = vst.msk [vmem:[#allocation5 + $0x30] sm:$0xf] %vm6092_vm0, %v6062_v47 }
 0x350   : > { %v5401_v25 = vpop.f32.mrb[56].mxu0 }
 0x351   : > { %v5402_v38 = vadd.f32 %v13557_v46, %v5401_v25  ;;  %v9658_v58 = vpop.f32.mrb[57].mxu0  ;;  %v6302_v25 = vld [vmem:[#allocation4 + $0x1c] sm:$0xf] }
 0x352   : > { %v5404_v7 = vpop.f32.mrb[58].mxu0 }
 0x353   : > { %v5483_v15 = vmax.f32 %v5402_v38, 0.0  ;;  %v5405_v51 = vadd.f32 %v13557_v46, %v5404_v7  ;;  %v9659_v26 = vpop.f32.mrb[59].mxu0  ;;  %v6114_v38 = vld [vmem:[#allocation4 + $0x1c] sm:$0xf] }
 0x354   : > { %v6181_v26 = vshrl.u32 %v6114_v38, 16 }
 0x355   : > { %5525 = vst.msk [vmem:[#allocation3 + $0xe0] sm:$0xff] %vm15502_vm9, %v5483_v15  ;;  %v5484_v19 = vmax.f32 %v5405_v51, 0.0  ;;  %v6361_v51 = vshrl.u32 %v6302_v25, 16  ;;  %vm15506_vm9 = vmmov %vm15505_vm1 }
 0x357   : > { %5526 = vst.msk [vmem:[#allocation3 + $0xe8] sm:$0xff] %vm15494_vm5, %v5484_v19  ;;  %vm15507_vm5 = vcmask 257024  }
 0x35c   : > { %v5722_v5 = vld [vmem:[#allocation3 + $0xd9] ss:$2 sm:$0xff] }
 0x35e   : > { %v5724_v12 = vld [vmem:[#allocation3 + $0xda] ss:$2 sm:$0xff] }
 0x35f   : > { %v5725_v32 = vmax.f32 %v5722_v5, %v5724_v12  ;;  %v6775_v12 = vor.u32 %v6774_v3, %v13896_v20 }
 0x361   : > { %v5726_v6 = vmax.f32 %v5720_v10, %v5725_v32  ;;  %v6591_v10 = vor.u32 %v6590_v36, %v13898_v48  ;;  %v13982_v32 = vrot.slane %v6361_v51, 7  ;;  %v6776_v23 = vrot.slane %v6775_v12, 4 }
 0x363   : > { %v9397_v45 = vpack.c.bf16 %v5726_v6, %v5726_v6  ;;  %v13984_v6 = vrot.slane %v6181_v26, 7 }
 0x365   : > { %v5732_v27 = vshrl.u32 %v9397_v45, 16  ;;  %v5735_v42 = vshll.u32 %v9397_v45, 16 }
 0x367   : > { %v5734_v2 = vrot.slane %v5732_v27, 5  ;;  %v5737_v52 = vrot.slane %v5735_v42, 6 }
 0x369   : > { %v5738_v46 = vor.u32 %v5737_v52, %v5734_v2 }
 0x36b   : > { %v6854_v14 = vpop.permute.xlu1 %6853  ;;  %v5739_v47 = vrot.slane %v5738_v46, 4  ;;  %v5743_v41 = vsel %vm15503_vm13, %v5738_v46, %v5742_v40  ;;  %vm15508_vm13 = vmmov %vm15507_vm5 }
 0x36c   : > { %v6662_v35 = vpop.permute.xlu0 %6661  ;;  %6889 = vst.msk [vmem:[#allocation5 + $0x28] sm:$0xf] %vm6281_vm15, %v6854_v14  ;;  %5744 = vst [vmem:[#allocation4 + $0x24] sm:$0xc] %v5743_v41  ;;  %v6364_v14 = vshll.u32 %v6302_v25, 16  ;;  %v6359_v41 = vrot.slane %v13889_v44, 4 }
 0x36d   : > { %6696 = vst.msk [vmem:[#allocation5 + $0x34] sm:$0xf] %vm6092_vm0, %v6662_v35  ;;  %v5746_v15 = vsel %vm15504_vm12, %v5739_v47, %v5745_v37  ;;  %v6184_v35 = vshll.u32 %v6114_v38, 16  ;;  %v6592_v37 = vrot.slane %v6591_v10, 4  ;;  %vm15509_vm12 = vmmov %vm15507_vm5 }
 0x36e   : > { %5747 = vst [vmem:[#allocation4 + $0x28] sm:$0x7] %v5746_v15 }
 0x36f   : > { %v6438_v58 = vpop.permute.xlu1 %6437 }
 0x370   : > { %v6251_v7 = vpop.permute.xlu0 %6250  ;;  %6474 = vst.msk [vmem:[#allocation5 + $0x24] sm:$0xf] %vm6470_vm6, %v6438_v58  ;;  %v6366_v58 = vor.u32 %v6364_v14, %v13982_v32 }
 0x371   : > { %6286 = vst.msk [vmem:[#allocation5 + $0x30] sm:$0xf] %vm6281_vm15, %v6251_v7  ;;  %v6186_v7 = vor.u32 %v6184_v35, %v13984_v6  ;;  %v5913_v35 = vrot.slane %v13938_v56, 4 }
 0x373   : > { %v6970_v59 = vpop.permute.xlu1 %6969  ;;  %v13987_v2 = vld [vmem:[#allocation4 + $0x24] sm:$0xf] }
 0x374   : > { %v5409_v19 = vpop.f32.mrb[60].mxu0  ;;  %7005 = vst.msk [vmem:[#allocation5 + $0x28] sm:$0xf] %vm6470_vm6, %v6970_v59  ;;  %v13989_v52 = vld [vmem:[#allocation4 + $0x24] sm:$0xf]  ;;  %v6778_v40 = vshll.u32 %v13987_v2, 16 }
 0x375   : > { %v5410_v18 = vadd.f32 %v13976_v63, %v5409_v19  ;;  %v9662_v54 = vpop.f32.mrb[61].mxu0  ;;  %v6594_v46 = vshll.u32 %v13989_v52, 16  ;;  %v6492_v15 = vld [vmem:[#allocation4 + $0x24] sm:$0xf]  ;;  %v6179_v19 = vrot.slane %v13893_v60, 4 }
 0x376   : > { %v5412_v5 = vpop.f32.mrb[62].mxu0  ;;  %v13995_v49 = vrot.slane %v6778_v40, 5  ;;  %v14009_v3 = vld [vmem:[#allocation4 + $0x24] sm:$0xf]  ;;  %6505 = vst.msk [vmem:[#allocation5 + $0x58] sm:$0xf] %vm15507_vm5, %v6492_v15  ;;  %vm15511_vm5 = vnez %v15389_v1 }
 0x377   : > { %v5485_v45 = vmax.f32 %v5410_v18, 0.0  ;;  %v5413_v27 = vadd.f32 %v13976_v63, %v5412_v5  ;;  %v9663_v42 = vpop.f32.mrb[63].mxu0  ;;  %v6064_v48 = vpop.permute.xlu1 %6063  ;;  %v13997_v47 = vrot.slane %v6594_v46, 5  ;;  %v5820_v36 = vld [vmem:[#allocation4 + $0x24] sm:$0xf]  ;;  %v6367_v18 = vsel %vm10193_vm7, %v6359_v41, %v6366_v58 }
 0x378   : > { %6098 = vst.msk [vmem:[#allocation5 + $0x3c] sm:$0xf] %vm6092_vm0, %v6064_v48  ;;  %v6781_v25 = vsel %vm10234_vm8, %v6776_v23, %v13995_v49  ;;  %v7021_v51 = vld [vmem:[#allocation4 + $0x24] sm:$0xf]  ;;  %v9876_v26 = vld [vmem:[#allocation5 + $0x18] ss:$12 sps:$4 sm:$0xff]   ;;  %v6187_v59 = vsel %vm10193_vm7, %v6179_v19, %v6186_v7 }
 0x379   : > { %5527 = vst.msk [vmem:[#allocation3 + $0xf0] sm:$0xff] %vm15505_vm1, %v5485_v45  ;;  %v5486_v20 = vmax.f32 %v5413_v27, 0.0  ;;  %v6597_v38 = vsel %vm10234_vm8, %v6592_v37, %v13997_v47  ;;  %6857 = vrot.lane.b32.xlu1 %v6781_v25, %s15310_s29  ;;  %v5915_v54 = vshrl.u32 %v5820_v36, 16  ;;  %v6942_v5 = vrot.slane %v14009_v3, 5  ;;  %v14022_v27 = vld [vmem:[#allocation4 + $0x20] sm:$0xf] }
 0x37a   : > { %6665 = vrot.lane.b32.xlu0 %v6597_v38, %s15272_s20  ;;  %v5918_v12 = vshll.u32 %v5820_v36, 16  ;;  %v7088_v10 = vshrl.u32 %v7021_v51, 16  ;;  %v7091_v45 = vshll.u32 %v7021_v51, 16  ;;  %v6941_v42 = vrot.slane %v6939_v22, 4 }
 0x37b   : > { %5528 = vst.msk [vmem:[#allocation3 + $0xf8] sm:$0xff] %vm15506_vm9, %v5486_v20  ;;  %v9874_v44 = vld [vmem:[#allocation5 + $0x1c] ss:$12 sps:$4 sm:$0xff]   ;;  %v5917_v60 = vrot.slane %v5915_v54, 6  ;;  %v6036_v14 = vrot.slane %v14022_v27, 7  ;;  %v7086_v37 = vrot.slane %v13941_v57, 4  ;;  %vm15510_vm9 = vmmov %vm15505_vm1 }
 0x37c   : > { %7521 = vmatprep.mubr.bf16.mxu1 %v9874_v44  ;;  %v5920_v40 = vrot.slane %v5918_v12, 7  ;;  %v7090_v46 = vrot.slane %v7088_v10, 5  ;;  %v7093_v20 = vrot.slane %v7091_v45, 6  ;;  %v6943_v48 = vsel %vm10259_vm11, %v6941_v42, %v6942_v5 }
 0x37d   : > { %7522 = vmatmul.mubr.bf16.gmra.mrb[4].mxu1 %v9876_v26  ;;  %6441 = vrot.lane.b32.xlu1 %v6367_v18, %s15428_s1  ;;  %v6035_v22 = vrot.slane %v6033_v9, 4  ;;  %v6782_v42 = vshrl.u32 %v13987_v2, 16 }
 0x37e   : > { %6254 = vrot.lane.b32.xlu0 %v6187_v59, %s15310_s29  ;;  %v14032_v23 = vor.u32 %v5920_v40, %v5917_v60  ;;  %v14036_v62 = vor.u32 %v7093_v20, %v7090_v46  ;;  %v5774_v60 = vld [vmem:[#allocation4 + $0x28] sm:$0x8]  ;;  %v6303_v20 = vld [vmem:[#allocation4 + $0x20] sm:$0xf] }
 0x37f   : > { %v6037_v57 = vsel %vm10175_vm4, %v6035_v22, %v6036_v14 }
 0x380   : > { %v5922_v41 = vsel %vm10478_vm3, %v5913_v35, %v14032_v23  ;;  %v7095_v56 = vsel %vm10278_vm14, %v7086_v37, %v14036_v62  ;;  %v6115_v35 = vld [vmem:[#allocation4 + $0x20] sm:$0xf] }
 0x381   : > { %6973 = vrot.lane.b32.xlu1 %v6943_v48, %s15428_s1  ;;  %5980 = vst.msk [vmem:[#allocation5 + $0x60] sm:$0xf] %vm15508_vm13, %v5922_v41  ;;  %v6598_v48 = vshrl.u32 %v13989_v52, 16  ;;  %v6370_v41 = vshrl.u32 %v6303_v20, 16  ;;  %vm15512_vm13 = vnez %v15395_v39 }
 0x382   : > { %7175 = vst.msk [vmem:[#allocation5 + $0x44] sm:$0xf] %vm15509_vm12, %v7095_v56  ;;  %v5749_v51 = vld [vmem:[#allocation3 + $0xeb] ss:$2 sm:$0xff]  ;;  %v5751_v44 = vld [vmem:[#allocation3 + $0xec] ss:$2 sm:$0xff]  ;;  %vm15513_vm12 = vmmov %vm15505_vm1 }
 0x383   : > { %v5752_v18 = vmax.f32 %v5749_v51, %v5751_v44  ;;  %v5777_v56 = vld [vmem:[#allocation4 + $0x2c] sm:$0xf] }
 0x385   : > { %6067 = vrot.lane.b32.xlu1 %v6037_v57, %s15272_s20 }
 0x395   : > { %v5417_v28 = vpop.f32.mrb[64].mxu0 }
 0x396   : > { %v5418_v9 = vadd.f32 %v13976_v63, %v5417_v28  ;;  %v9666_v58 = vpop.f32.mrb[65].mxu0 }
 0x397   : > { %v5420_v7 = vpop.f32.mrb[66].mxu0  ;;  %v6190_v58 = vshrl.u32 %v6115_v35, 16 }
 0x398   : > { %v5487_v15 = vmax.f32 %v5418_v9, 0.0  ;;  %v5421_v25 = vadd.f32 %v13976_v63, %v5420_v7  ;;  %v9667_v38 = vpop.f32.mrb[67].mxu0  ;;  %v6784_v9 = vrot.slane %v6782_v42, 4  ;;  %v6600_v7 = vrot.slane %v6598_v48, 4  ;;  %v6304_v42 = vld [vmem:[#allocation4 + $0x24] sm:$0xf] }
 0x399   : > { %v14068_v38 = vrot.slane %v6190_v58, 7 }
 0x39a   : > { %5529 = vst.msk [vmem:[#allocation3 + $0x100] sm:$0xff] %vm15505_vm1, %v5487_v15  ;;  %v5488_v36 = vmax.f32 %v5421_v25, 0.0  ;;  %v14065_v15 = vrot.slane %v6370_v41, 7  ;;  %v6785_v25 = vor.u32 %v6784_v9, %v13995_v49  ;;  %v6601_v44 = vor.u32 %v6600_v7, %v13997_v47 }
 0x39b   : > { %v6188_v9 = vrot.slane %v13984_v6, 4 }
 0x39c   : > { %5530 = vst.msk [vmem:[#allocation3 + $0x108] sm:$0xff] %vm15510_vm9, %v5488_v36  ;;  %v6786_v48 = vrot.slane %v6785_v25, 4  ;;  %v6602_v41 = vrot.slane %v6601_v44, 4  ;;  %vm15514_vm9 = vcmask 257024  }
 0x3a3   : > { %v5754_v26 = vld [vmem:[#allocation3 + $0xfd] ss:$2 sm:$0xff]  ;;  %v5756_v19 = vld [vmem:[#allocation3 + $0xfe] ss:$2 sm:$0xff] }
 0x3a4   : > { %v5757_v59 = vmax.f32 %v5754_v26, %v5756_v19  ;;  %v6373_v26 = vshll.u32 %v6303_v20, 16 }
 0x3a6   : > { %v5758_v54 = vmax.f32 %v5752_v18, %v5757_v59 }
 0x3a8   : > { %v9398_v12 = vpack.c.bf16 %v5758_v54, %v5758_v54  ;;  %v6193_v54 = vshll.u32 %v6115_v35, 16 }
 0x3aa   : > { %v5764_v10 = vshll.u32 %v9398_v12, 16  ;;  %v5767_v45 = vshrl.u32 %v9398_v12, 16 }
 0x3ab   : > { %v6856_v28 = vpop.permute.xlu0 %6855 }
 0x3ac   : > { %v5766_v40 = vrot.slane %v5764_v10, 5  ;;  %v5769_v46 = vrot.slane %v5767_v45, 4  ;;  %6890 = vst.msk [vmem:[#allocation5 + $0x34] sm:$0xf] %vm6281_vm15, %v6856_v28  ;;  %v6664_v2 = vpop.permute.xlu1 %6663  ;;  %v6368_v28 = vrot.slane %v13982_v32, 4 }
 0x3ad   : > { %6697 = vst.msk [vmem:[#allocation5 + $0x40] sm:$0xf] %vm6092_vm0, %v6664_v2  ;;  %v6379_v2 = vshrl.u32 %v6304_v42, 16 }
 0x3ae   : > { %v5770_v37 = vor.u32 %v5769_v46, %v5766_v40  ;;  %v5775_v22 = vsel %vm15511_vm5, %v5766_v40, %v5774_v60  ;;  %v6375_v60 = vor.u32 %v6373_v26, %v14065_v15  ;;  %vm15515_vm5 = vmmov %vm15514_vm9 }
 0x3af   : > { %5776 = vst [vmem:[#allocation4 + $0x28] sm:$0x8] %v5775_v22  ;;  %v6440_v1 = vpop.permute.xlu0 %6439 }
 0x3b0   : > { %v5771_v57 = vrot.slane %v5770_v37, 4  ;;  %6475 = vst.msk [vmem:[#allocation5 + $0x30] sm:$0xf] %vm6470_vm6, %v6440_v1  ;;  %v6253_v36 = vpop.permute.xlu1 %6252  ;;  %v6195_v37 = vor.u32 %v6193_v54, %v14068_v38  ;;  %v6376_v26 = vsel %vm10193_vm7, %v6368_v28, %v6375_v60 }
 0x3b1   : > { %v5425_v51 = vpop.f32.mrb[68].mxu0  ;;  %6287 = vst.msk [vmem:[#allocation5 + $0x3c] sm:$0xf] %vm6281_vm15, %v6253_v36 }
 0x3b2   : > { %v5778_v52 = vsel %vm15512_vm13, %v5771_v57, %v5777_v56  ;;  %v5426_v39 = vadd.f32 %v13976_v63, %v5425_v51  ;;  %v9670_v19 = vpop.f32.mrb[69].mxu0  ;;  %vm15516_vm13 = vmmov %vm15515_vm5 }
 0x3b3   : > { %5779 = vst [vmem:[#allocation4 + $0x2c] sm:$0xf] %v5778_v52  ;;  %v5428_v12 = vpop.f32.mrb[70].mxu0  ;;  %v6972_v46 = vpop.permute.xlu0 %6971  ;;  %v14096_v19 = vld [vmem:[#allocation4 + $0x24] sm:$0xf] }
 0x3b4   : > { %v5489_v40 = vmax.f32 %v5426_v39, 0.0  ;;  %v5429_v47 = vadd.f32 %v13976_v63, %v5428_v12  ;;  %v9671_v20 = vpop.f32.mrb[71].mxu0  ;;  %7006 = vst.msk [vmem:[#allocation5 + $0x34] sm:$0xf] %vm6470_vm6, %v6972_v46  ;;  %v6196_v39 = vsel %vm10193_vm7, %v6188_v9, %v6195_v37  ;;  %v7026_v9 = vld [vmem:[#allocation4 + $0x38] sm:$0xf] }
 0x3b6   : > { %v6712_v18 = vld [vmem:[#allocation4 + $0x28] sm:$0xf]  ;;  %5531 = vst.msk [vmem:[#allocation3 + $0x110] sm:$0xff] %vm15513_vm12, %v5489_v40  ;;  %v5490_v57 = vmax.f32 %v5429_v47, 0.0  ;;  %vm15517_vm12 = vmmov %vm15515_vm5 }
 0x3b7   : > { %v6519_v59 = vld [vmem:[#allocation4 + $0x28] sm:$0xf]  ;;  %v6788_v10 = vshll.u32 %v6712_v18, 16  ;;  %v6792_v49 = vshrl.u32 %v6712_v18, 16  ;;  %v6066_v44 = vpop.permute.xlu0 %6065 }
 0x3b8   : > { %v6604_v45 = vshll.u32 %v6519_v59, 16  ;;  %v6608_v1 = vshrl.u32 %v6519_v59, 16  ;;  %v6906_v25 = vld [vmem:[#allocation4 + $0x28] sm:$0xf]  ;;  %5532 = vst.msk [vmem:[#allocation3 + $0x118] sm:$0xff] %vm15505_vm1, %v5490_v57  ;;  %v6039_v57 = vrot.slane %v14096_v19, 7  ;;  %vm15518_vm1 = vmmov %vm15515_vm5 }
 0x3b9   : > { %v6790_v22 = vrot.slane %v6788_v10, 5  ;;  %v6794_v56 = vrot.slane %v6792_v49, 4  ;;  %6099 = vst.msk [vmem:[#allocation5 + $0x48] sm:$0xf] %vm6092_vm0, %v6066_v44  ;;  %v6945_v54 = vrot.slane %v6906_v25, 5  ;;  %v14100_v10 = vrot.slane %v6379_v2, 7 }
 0x3ba   : > { %v14078_v35 = vrot.slane %v6604_v45, 5  ;;  %v6713_v58 = vld [vmem:[#allocation4 + $0x2c] sm:$0xf]  ;;  %v6116_v49 = vld [vmem:[#allocation4 + $0x24] sm:$0xf]  ;;  %v6610_v46 = vrot.slane %v6608_v1, 4 }
 0x3bb   : > { %v6791_v7 = vsel %vm10234_vm8, %v6786_v48, %v6790_v22  ;;  %v6795_v36 = vor.u32 %v6794_v56, %v6790_v22  ;;  %v6520_v51 = vld [vmem:[#allocation4 + $0x2c] sm:$0xf]  ;;  %v6798_v32 = vshll.u32 %v6713_v58, 16  ;;  %v6802_v6 = vshrl.u32 %v6713_v58, 16  ;;  %v6493_v20 = vld [vmem:[#allocation4 + $0x28] sm:$0xf] }
 0x3bc   : > { %v6607_v52 = vsel %vm10234_vm8, %v6602_v41, %v14078_v35  ;;  %6859 = vrot.lane.b32.xlu0 %v6791_v7, %s15310_s29  ;;  %v6614_v18 = vshll.u32 %v6520_v51, 16  ;;  %v6618_v59 = vshrl.u32 %v6520_v51, 16  ;;  %6506 = vst.msk [vmem:[#allocation5 + $0x64] sm:$0xf] %vm15514_vm9, %v6493_v20  ;;  %v6494_v37 = vld [vmem:[#allocation4 + $0x2c] sm:$0xf]  ;;  %vm15519_vm9 = vmmov %vm15518_vm1 }
 0x3bd   : > { %6667 = vrot.lane.b32.xlu1 %v6607_v52, %s15272_s20  ;;  %v14098_v12 = vrot.slane %v6798_v32, 5  ;;  %v14102_v45 = vrot.slane %v6802_v6, 4  ;;  %v6796_v40 = vrot.slane %v6795_v36, 4  ;;  %v6944_v22 = vrot.slane %v6942_v5, 4  ;;  %6507 = vst.msk [vmem:[#allocation5 + $0x70] sm:$0xf] %vm15515_vm5, %v6494_v37  ;;  %vm15520_vm5 = vmmov %vm15518_vm1 }
 0x3be   : > { %v14104_v47 = vrot.slane %v6614_v18, 5  ;;  %v14106_v60 = vrot.slane %v6618_v59, 4  ;;  %v6382_v41 = vshll.u32 %v6304_v42, 16  ;;  %v6199_v28 = vshrl.u32 %v6116_v49, 16  ;;  %v7027_v42 = vld [vmem:[#allocation4 + $0x3c] sm:$0xf] }
 0x3bf   : > { %v6805_v48 = vor.u32 %v14102_v45, %v14098_v12  ;;  %v6946_v58 = vsel %vm10259_vm11, %v6944_v22, %v6945_v54  ;;  %v6801_v2 = vsel %vm10234_vm8, %v6796_v40, %v14098_v12  ;;  %v6611_v5 = vor.u32 %v6610_v46, %v14078_v35  ;;  %v14128_v7 = vld [vmem:[#allocation4 + $0x2c] sm:$0xf]  ;;  %v5821_v25 = vld [vmem:[#allocation4 + $0x28] sm:$0xf] }
 0x3c0   : > { %6443 = vrot.lane.b32.xlu0 %v6376_v26, %s15428_s1  ;;  %v6621_v56 = vor.u32 %v14106_v60, %v14104_v47  ;;  %v6384_v3 = vor.u32 %v6382_v41, %v14100_v10  ;;  %v6038_v52 = vrot.slane %v6036_v14, 4  ;;  %v6377_v1 = vrot.slane %v14065_v15, 4  ;;  %v14142_v27 = vld [vmem:[#allocation4 + $0x28] sm:$0xf]  ;;  %v5822_v40 = vld [vmem:[#allocation4 + $0x2c] sm:$0xf] }
 0x3c1   : > { %6256 = vrot.lane.b32.xlu1 %v6196_v39, %s15310_s29  ;;  %v7138_v36 = vshrl.u32 %v7026_v9, 16  ;;  %v7141_v51 = vshll.u32 %v7026_v9, 16  ;;  %v14133_v44 = vrot.slane %v6199_v28, 7  ;;  %v7148_v32 = vshrl.u32 %v7027_v42, 16 }
 0x3c2   : > { %v7151_v6 = vshll.u32 %v7027_v42, 16  ;;  %v6040_v35 = vsel %vm10175_vm4, %v6038_v52, %v6039_v57  ;;  %v6385_v26 = vsel %vm10193_vm7, %v6377_v1, %v6384_v3  ;;  %v6948_v39 = vrot.slane %v14128_v7, 5  ;;  %v7022_v42 = vld [vmem:[#allocation4 + $0x28] sm:$0xf] }
 0x3c3   : > { %v6612_v19 = vrot.slane %v6611_v5, 4  ;;  %v6202_v14 = vshll.u32 %v6116_v49, 16  ;;  %v5925_v15 = vshrl.u32 %v5821_v25, 16  ;;  %v6947_v18 = vrot.slane %v6945_v54, 4 }
 0x3c4   : > { %6975 = vrot.lane.b32.xlu0 %v6946_v58, %s15428_s1  ;;  %v5928_v59 = vshll.u32 %v5821_v25, 16  ;;  %v7140_v46 = vrot.slane %v7138_v36, 5  ;;  %v7143_v20 = vrot.slane %v7141_v51, 6  ;;  %v7150_v41 = vrot.slane %v7148_v32, 5  ;;  %v7023_v36 = vld [vmem:[#allocation4 + $0x2c] sm:$0xf] }
 0x3c5   : > { %6861 = vrot.lane.b32.xlu1 %v6801_v2, %s15310_s29  ;;  %v6204_v37 = vor.u32 %v6202_v14, %v14133_v44  ;;  %v5927_v22 = vrot.slane %v5925_v15, 6  ;;  %v7153_v28 = vrot.slane %v7151_v6, 6  ;;  %v6949_v9 = vsel %vm10259_vm11, %v6947_v18, %v6948_v39 }
 0x3c6   : > { %v6617_v49 = vsel %vm10234_vm8, %v6612_v19, %v14104_v47  ;;  %v6042_v54 = vrot.slane %v14142_v27, 7  ;;  %v5930_v58 = vrot.slane %v5928_v59, 7  ;;  %v6197_v2 = vrot.slane %v14068_v38, 4 }
 0x3c7   : > { %v5935_v3 = vshrl.u32 %v5822_v40, 16  ;;  %v5938_v5 = vshll.u32 %v5822_v40, 16  ;;  %v6041_v52 = vrot.slane %v6039_v57, 4  ;;  %v5923_v1 = vrot.slane %v14032_v23, 4 }
 0x3c8   : > { %6069 = vrot.lane.b32.xlu0 %v6040_v35, %s15272_s20  ;;  %v5931_v25 = vor.u32 %v5930_v58, %v5927_v22  ;;  %v14157_v51 = vor.u32 %v7143_v20, %v7140_v46  ;;  %v6205_v32 = vsel %vm10193_vm7, %v6197_v2, %v6204_v37  ;;  %v7098_v57 = vshrl.u32 %v7022_v42, 16 }
 0x3c9   : > { %6445 = vrot.lane.b32.xlu1 %v6385_v26, %s15428_s1  ;;  %v5937_v6 = vrot.slane %v5935_v3, 6  ;;  %v5940_v35 = vrot.slane %v5938_v5, 7  ;;  %v6043_v38 = vsel %vm10175_vm4, %v6041_v52, %v6042_v54  ;;  %v14167_v19 = vor.u32 %v7153_v28, %v7150_v41 }
 0x3ca   : > { %v5932_v26 = vsel %vm10478_vm3, %v5923_v1, %v5931_v25  ;;  %v5933_v23 = vrot.slane %v5931_v25, 4  ;;  %v7101_v15 = vshll.u32 %v7022_v42, 16  ;;  %v7108_v18 = vshrl.u32 %v7023_v36, 16 }
 0x3cb   : > { %5981 = vst.msk [vmem:[#allocation5 + $0x6c] sm:$0xf] %vm15516_vm13, %v5932_v26  ;;  %v14172_v14 = vor.u32 %v5940_v35, %v5937_v6  ;;  %v7100_v59 = vrot.slane %v7098_v57, 5  ;;  %v7111_v40 = vshll.u32 %v7023_v36, 16  ;;  %v7146_v46 = vrot.slane %v14157_v51, 4 }
 0x3cc   : > { %6669 = vrot.lane.b32.xlu0 %v6617_v49, %s15272_s20  ;;  %v7103_v37 = vrot.slane %v7101_v15, 6  ;;  %v7110_v22 = vrot.slane %v7108_v18, 5  ;;  %vm15521_vm13 = vcmask 261120  }
 0x3cd   : > { %6977 = vrot.lane.b32.xlu1 %v6949_v9, %s15428_s1  ;;  %v5942_v20 = vsel %vm10478_vm3, %v5933_v23, %v14172_v14  ;;  %v7113_v41 = vrot.slane %v7111_v40, 6  ;;  %v7155_v28 = vsel %vm10278_vm14, %v7146_v46, %v14167_v19  ;;  %v7096_v9 = vrot.slane %v14036_v62, 4 }
 0x3ce   : > { %5982 = vst.msk [vmem:[#allocation5 + $0x78] sm:$0xf] %vm15517_vm12, %v5942_v20  ;;  %v7104_v49 = vor.u32 %v7103_v37, %v7100_v59  ;;  %vm15522_vm12 = vmmov %vm15521_vm13 }
 0x3cf   : > { %7181 = vst.msk [vmem:[#allocation5 + $0x8c] sm:$0xf] %vm15518_vm1, %v7155_v28  ;;  %v14184_v2 = vor.u32 %v7113_v41, %v7110_v22  ;;  %vm15523_vm1 = vmmov %vm15522_vm12  ;;  %v5781_v22 = vld [vmem:[#allocation3 + $0x10f] ss:$2 sm:$0xff]  ;;  %v5783_v41 = vld [vmem:[#allocation3 + $0x110] ss:$2 sm:$0xff] }
 0x3d0   : > { %6258 = vrot.lane.b32.xlu0 %v6205_v32, %s15310_s29  ;;  %v7105_v42 = vsel %vm10278_vm14, %v7096_v9, %v7104_v49  ;;  %v7106_v52 = vrot.slane %v7104_v49, 4 }
 0x3d1   : > { %6071 = vrot.lane.b32.xlu1 %v6043_v38, %s15272_s20  ;;  %v5433_v58 = vpop.f32.mrb[72].mxu0  ;;  %7176 = vst.msk [vmem:[#allocation5 + $0x50] sm:$0xf] %vm15519_vm9, %v7105_v42  ;;  %vm15524_vm9 = vnez %v15464_v16 }
 0x3d2   : > { %v5434_v3 = vadd.f32 %v13976_v63, %v5433_v58  ;;  %v9674_v5 = vpop.f32.mrb[73].mxu0  ;;  %v7115_v32 = vsel %vm10278_vm14, %v7106_v52, %v14184_v2 }
 0x3d3   : > { %v5436_v1 = vpop.f32.mrb[74].mxu0  ;;  %7177 = vst.msk [vmem:[#allocation5 + $0x5c] sm:$0xf] %vm15520_vm5, %v7115_v32 }
 0x3d4   : > { %v5491_v25 = vmax.f32 %v5434_v3, 0.0  ;;  %v5437_v36 = vadd.f32 %v13976_v63, %v5436_v1  ;;  %v9675_v62 = vpop.f32.mrb[75].mxu0  ;;  %v5784_v3 = vmax.f32 %v5781_v22, %v5783_v41  ;;  %v14211_v22 = vld [vmem:[#allocation4 + $0x38] sm:$0xf] }
 0x3d5   : > { %v5808_v62 = vld [vmem:[#allocation4 + $0x34] sm:$0x1] }
 0x3d6   : > { %5533 = vst.msk [vmem:[#allocation3 + $0x120] sm:$0xff] %vm15521_vm13, %v5491_v25  ;;  %v5492_v6 = vmax.f32 %v5437_v36, 0.0  ;;  %v5805_v36 = vld [vmem:[#allocation4 + $0x30] sm:$0xf] }
 0x3d8   : > { %5534 = vst.msk [vmem:[#allocation3 + $0x128] sm:$0xff] %vm15522_vm12, %v5492_v6  ;;  %vm15528_vm12 = vcmask 254976  }
 0x3df   : > { %v5786_v49 = vld [vmem:[#allocation3 + $0x121] ss:$2 sm:$0xff] }
 0x3eb   : > { %v6858_v35 = vpop.permute.xlu1 %6857 }
 0x3ec   : > { %v6666_v38 = vpop.permute.xlu0 %6665  ;;  %6891 = vst.msk [vmem:[#allocation5 + $0x40] sm:$0xf] %vm6281_vm15, %v6858_v35 }
 0x3ed   : > { %6698 = vst.msk [vmem:[#allocation5 + $0x4c] sm:$0xf] %vm6092_vm0, %v6666_v38 }
 0x3ef   : > { %v6442_v26 = vpop.permute.xlu1 %6441 }
 0x3f0   : > { %v6255_v57 = vpop.permute.xlu0 %6254  ;;  %6476 = vst.msk [vmem:[#allocation5 + $0x3c] sm:$0xf] %vm6470_vm6, %v6442_v26 }
 0x3f1   : > { %6288 = vst.msk [vmem:[#allocation5 + $0x48] sm:$0xf] %vm6281_vm15, %v6255_v57  ;;  %v5441_v23 = vpop.f32.mrb[76].mxu0 }
 0x3f2   : > { %v5442_v15 = vadd.f32 %v13976_v63, %v5441_v23  ;;  %v9678_v18 = vpop.f32.mrb[77].mxu0 }
 0x3f3   : > { %v5444_v59 = vpop.f32.mrb[78].mxu0  ;;  %v6974_v46 = vpop.permute.xlu1 %6973 }
 0x3f4   : > { %v5493_v40 = vmax.f32 %v5442_v15, 0.0  ;;  %v9679_v20 = vpop.f32.mrb[79].mxu0  ;;  %7007 = vst.msk [vmem:[#allocation5 + $0x40] sm:$0xf] %vm6470_vm6, %v6974_v46  ;;  %v6305_v15 = vld [vmem:[#allocation4 + $0x28] sm:$0xf] }
 0x3f5   : > { %v6117_v59 = vld [vmem:[#allocation4 + $0x28] sm:$0xf]  ;;  %v6388_v46 = vshrl.u32 %v6305_v15, 16 }
 0x3f6   : > { %5535 = vst.msk [vmem:[#allocation3 + $0x130] sm:$0xff] %vm15523_vm1, %v5493_v40  ;;  %v6208_v20 = vshrl.u32 %v6117_v59, 16 }
 0x3f7   : > { %v6068_v37 = vpop.permute.xlu1 %6067  ;;  %v9879_v9 = vld [vmem:[#allocation5 + $0x30] ss:$12 sps:$4 sm:$0xff]   ;;  %v14213_v33 = vrot.slane %v6388_v46, 7  ;;  %v14245_v46 = vld [vmem:[#allocation4 + $0x2c] sm:$0xf] }
 0x3f8   : > { %6100 = vst.msk [vmem:[#allocation5 + $0x54] sm:$0xf] %vm6092_vm0, %v6068_v37  ;;  %v6306_v37 = vld [vmem:[#allocation4 + $0x2c] sm:$0xf] }
 0x3fb   : > { %v9877_v28 = vld [vmem:[#allocation5 + $0x34] ss:$12 sps:$4 sm:$0xff]  }
 0x3fc   : > { %7529 = vmatprep.mubr.bf16.mxu1 %v9877_v28 }
 0x3fd   : > { %v5788_v58 = vld [vmem:[#allocation3 + $0x122] ss:$2 sm:$0xff]  ;;  %7530 = vmatmul.mubr.bf16.gmra.mrb[8].mxu1 %v9879_v9  ;;  %v6391_v9 = vshll.u32 %v6305_v15, 16  ;;  %v6386_v15 = vrot.slane %v14100_v10, 4 }
 0x3fe   : > { %v5789_v63 = vmax.f32 %v5786_v49, %v5788_v58 }
 0x400   : > { %v5790_v5 = vmax.f32 %v5784_v3, %v5789_v63  ;;  %v14215_v3 = vrot.slane %v6208_v20, 7  ;;  %v14217_v63 = vld [vmem:[#allocation4 + $0x38] sm:$0x7] }
 0x401   : > { %v6644_v12 = vshll.u32 %v14217_v63, 16 }
 0x402   : > { %v9399_v42 = vpack.c.bf16 %v5790_v5, %v5790_v5  ;;  %v6806_v5 = vrot.slane %v6805_v48, 4 }
 0x404   : > { %v5796_v52 = vshrl.u32 %v9399_v42, 16  ;;  %v5799_v25 = vshll.u32 %v9399_v42, 16  ;;  %v6622_v42 = vrot.slane %v6621_v56, 4 }
 0x406   : > { %v5798_v1 = vrot.slane %v5796_v52, 7  ;;  %v6211_v52 = vshll.u32 %v6117_v59, 16 }
 0x408   : > { %v5801_v32 = vor.u32 %v5799_v25, %v5798_v1  ;;  %v5802_v6 = vrot.slane %v5798_v1, 4  ;;  %v6397_v1 = vshrl.u32 %v6306_v37, 16  ;;  %v6213_v60 = vor.u32 %v6211_v52, %v14215_v3 }
 0x40a   : > { %v5806_v26 = vsel %vm13737_vm2, %v5801_v32, %v5805_v36  ;;  %v5809_v57 = vsel %vm15524_vm9, %v5802_v6, %v5808_v62  ;;  %v6118_v6 = vld [vmem:[#allocation4 + $0x2c] sm:$0xf]  ;;  %vm15525_vm2 = vmmov %vm15520_vm5 }
 0x40b   : > { %5807 = vst [vmem:[#allocation4 + $0x30] sm:$0xf] %v5806_v26  ;;  %5810 = vst [vmem:[#allocation4 + $0x34] sm:$0x1] %v5809_v57  ;;  %v6828_v26 = vshll.u32 %v14211_v22, 16  ;;  %v14240_v57 = vrot.slane %v6397_v1, 7 }
 0x40c   : > { %v6045_v1 = vrot.slane %v14245_v46, 7  ;;  %vm15526_vm5 = vmmov %vm15525_vm2 }
 0x40d   : > { %v9446_v35 = vpop.f32.mrb[0].mxu1  ;;  %vm15527_vm13 = vmmov %vm15525_vm2 }
 0x40e   : > { %v9447_v38 = vpop.f32.mrb[1].mxu1  ;;  %v6393_v35 = vor.u32 %v6391_v9, %v14213_v33  ;;  %v6832_v9 = vshrl.u32 %v14211_v22, 16  ;;  %vm15529_vm1 = vmmov %vm15525_vm2 }
 0x40f   : > { %v9449_v23 = vpop.f32.mrb[2].mxu1  ;;  %vm15530_vm9 = vmmov %vm15529_vm1 }
 0x410   : > { %v9450_v18 = vpop.f32.mrb[3].mxu1 }
 0x411   : > { %v14209_v40 = vadd.f32 %v9450_v18, %v9449_v23  ;;  %v6217_v23 = vshrl.u32 %v6118_v6, 16  ;;  %v6206_v18 = vrot.slane %v14133_v44, 4 }
 0x412   : > { %v6714_v41 = vld [vmem:[#allocation4 + $0x30] sm:$0xf]  ;;  %v14228_v38 = vld [vmem:[#allocation4 + $0x34] sm:$0xf] }
 0x413   : > { %v6521_v28 = vld [vmem:[#allocation4 + $0x30] sm:$0xf]  ;;  %v6808_v16 = vshll.u32 %v6714_v41, 16  ;;  %v6812_v49 = vshrl.u32 %v6714_v41, 16  ;;  %v6818_v59 = vshll.u32 %v14228_v38, 16  ;;  %v6400_v41 = vshll.u32 %v6306_v37, 16 }
 0x414   : > { %v6624_v58 = vshll.u32 %v6521_v28, 16  ;;  %v6628_v62 = vshrl.u32 %v6521_v28, 16  ;;  %v6908_v56 = vld [vmem:[#allocation4 + $0x30] sm:$0xf]  ;;  %v14247_v28 = vrot.slane %v6828_v26, 5  ;;  %v6214_v10 = vsel %vm10193_vm7, %v6206_v18, %v6213_v60 }
 0x415   : > { %v6810_v25 = vrot.slane %v6808_v16, 5  ;;  %v6814_v32 = vrot.slane %v6812_v49, 4  ;;  %v14250_v16 = vrot.slane %v6644_v12, 5  ;;  %v6495_v49 = vld [vmem:[#allocation4 + $0x30] sm:$0xf]  ;;  %v6951_v44 = vrot.slane %v6908_v56, 5 }
 0x416   : > { %v14225_v36 = vrot.slane %v6624_v58, 5  ;;  %v6630_v20 = vrot.slane %v6628_v62, 4  ;;  %v6394_v58 = vsel %vm10193_vm7, %v6386_v15, %v6393_v35  ;;  %6508 = vst.msk [vmem:[#allocation5 + $0x7c] sm:$0xf] %vm15525_vm2, %v6495_v49  ;;  %v6496_v52 = vld [vmem:[#allocation4 + $0x34] sm:$0xf]  ;;  %vm15531_vm2 = vmmov %vm15529_vm1 }
 0x417   : > { %v6811_v45 = vsel %vm10234_vm8, %v6806_v5, %v6810_v25  ;;  %v6815_v48 = vor.u32 %v6814_v32, %v6810_v25  ;;  %v6950_v37 = vrot.slane %v6948_v39, 4  ;;  %v6402_v25 = vor.u32 %v6400_v41, %v14240_v57  ;;  %6509 = vst.msk [vmem:[#allocation5 + $0x88] sm:$0xf] %vm15526_vm5, %v6496_v52  ;;  %v5823_v60 = vld [vmem:[#allocation4 + $0x30] sm:$0xf]  ;;  %vm15532_vm5 = vmmov %vm15528_vm12 }
 0x418   : > { %v6627_v47 = vsel %vm10234_vm8, %v6622_v42, %v14225_v36  ;;  %6863 = vrot.lane.b32.xlu0 %v6811_v45, %s15310_s29  ;;  %v6522_v42 = vld [vmem:[#allocation4 + $0x34] sm:$0xf]  ;;  %v14263_v62 = vrot.slane %v6217_v23, 7  ;;  %v14266_v32 = vrot.slane %v6818_v59, 5  ;;  %v6044_v35 = vrot.slane %v6042_v54, 4 }
 0x419   : > { %6671 = vrot.lane.b32.xlu1 %v6627_v47, %s15272_s20  ;;  %v6816_v5 = vrot.slane %v6815_v48, 4  ;;  %v6395_v26 = vrot.slane %v14213_v33, 4  ;;  %v6631_v12 = vor.u32 %v6630_v20, %v14225_v36  ;;  %v6822_v7 = vshrl.u32 %v14228_v38, 16  ;;  %v9883_v33 = vld [vmem:[%s15186_s3 + $0x80] sm:$0xff]   ;;  %v7024_v36 = vld [vmem:[#allocation4 + $0x30] sm:$0xf] }
 0x41a   : > { %v6634_v39 = vshll.u32 %v6522_v42, 16  ;;  %v6215_v45 = vrot.slane %v14215_v3, 4  ;;  %v6220_v47 = vshll.u32 %v6118_v6, 16  ;;  %v6952_v48 = vsel %vm10259_vm11, %v6950_v37, %v6951_v44  ;;  %v14291_v38 = vld [vmem:[#allocation4 + $0x34] sm:$0xf]  ;;  %9685 = vmatpush3.bf16.msra.mxu1 %v9883_v33 }
 0x41b   : > { %v6821_v56 = vsel %vm10234_vm8, %v6816_v5, %v14266_v32  ;;  %v6638_v27 = vshrl.u32 %v6522_v42, 16  ;;  %v5943_v54 = vrot.slane %v14172_v14, 4  ;;  %v6046_v3 = vsel %vm10175_vm4, %v6044_v35, %v6045_v1  ;;  %v14294_v23 = vld [vmem:[#allocation4 + $0x30] sm:$0xf]  ;;  %v5824_v15 = vld [vmem:[#allocation4 + $0x34] sm:$0x1]  ;;  %9686 = vmatprep.subr.bf16.mxu1 %v15247_v8 }
 0x41c   : > { %6447 = vrot.lane.b32.xlu0 %v6394_v58, %s15428_s1  ;;  %v6403_v6 = vsel %vm10193_vm7, %v6395_v26, %v6402_v25  ;;  %v6222_v14 = vor.u32 %v6220_v47, %v14263_v62  ;;  %v6632_v18 = vrot.slane %v6631_v12, 4  ;;  %v6953_v59 = vrot.slane %v6951_v44, 4  ;;  %v14296_v20 = vld [vmem:[#allocation4 + $0x30] sm:$0xf]  ;;  %v7025_v42 = vld [vmem:[#allocation4 + $0x34] sm:$0xf] }
 0x41d   : > { %6260 = vrot.lane.b32.xlu1 %v6214_v10, %s15310_s29  ;;  %v5945_v41 = vshrl.u32 %v5823_v60, 16  ;;  %v7116_v49 = vrot.slane %v14184_v2, 4  ;;  %v6636_v58 = vrot.slane %v6634_v39, 5  ;;  %v6824_v10 = vrot.slane %v6822_v7, 4  ;;  %v6119_v12 = vld [vmem:[#allocation4 + $0x30] sm:$0xf] }
 0x41e   : > { %v5948_v5 = vshll.u32 %v5823_v60, 16  ;;  %v7118_v52 = vshrl.u32 %v7024_v36, 16  ;;  %v6954_v37 = vrot.slane %v14291_v38, 5  ;;  %v6640_v25 = vrot.slane %v6638_v27, 4 }
 0x41f   : > { %v5947_v35 = vrot.slane %v5945_v41, 6  ;;  %v5955_v26 = vshll.u32 %v5824_v15, 16  ;;  %v6048_v44 = vrot.slane %v14294_v23, 7  ;;  %v7121_v7 = vshll.u32 %v7024_v36, 16 }
 0x420   : > { %6979 = vrot.lane.b32.xlu0 %v6952_v48, %s15428_s1  ;;  %v5950_v2 = vrot.slane %v5948_v5, 7  ;;  %v7120_v39 = vrot.slane %v7118_v52, 5  ;;  %v6637_v47 = vsel %vm10234_vm8, %v6632_v18, %v6636_v58  ;;  %v6955_v60 = vsel %vm10259_vm11, %v6953_v59, %v6954_v37 }
 0x421   : > { %6865 = vrot.lane.b32.xlu1 %v6821_v56, %s15310_s29  ;;  %v6406_v48 = vshrl.u32 %v14296_v20, 16  ;;  %v7128_v56 = vshrl.u32 %v7025_v42, 16  ;;  %v6825_v27 = vor.u32 %v6824_v10, %v14266_v32  ;;  %v6641_v15 = vor.u32 %v6640_v25, %v6636_v58 }
 0x422   : > { %v5951_v33 = vor.u32 %v5950_v2, %v5947_v35  ;;  %v6226_v41 = vshrl.u32 %v6119_v12, 16  ;;  %v5957_v5 = vrot.slane %v5955_v26, 7  ;;  %v6223_v32 = vsel %vm10193_vm7, %v6215_v45, %v6222_v14 }
 0x423   : > { %v7130_v36 = vrot.slane %v7128_v56, 5  ;;  %v6047_v58 = vrot.slane %v6045_v1, 4  ;;  %v14320_v10 = vrot.slane %v6406_v48, 7  ;;  %v6642_v14 = vrot.slane %v6641_v15, 4 }
 0x424   : > { %6073 = vrot.lane.b32.xlu0 %v6046_v3, %s15272_s20  ;;  %v7123_v3 = vrot.slane %v7121_v7, 6  ;;  %v5952_v18 = vsel %vm10478_vm3, %v5943_v54, %v5951_v33  ;;  %v5953_v59 = vrot.slane %v5951_v33, 4  ;;  %v14327_v54 = vld [vmem:[#allocation4 + $0x3c] sm:$0x7]  ;;  %v6404_v15 = vrot.slane %v14240_v57, 4 }
 0x425   : > { %6449 = vrot.lane.b32.xlu1 %v6403_v6, %s15428_s1  ;;  %v7131_v6 = vshll.u32 %v7025_v42, 16  ;;  %v6834_v42 = vrot.slane %v6832_v9, 4  ;;  %5983 = vst.msk [vmem:[#allocation5 + $0x84] sm:$0xf] %vm15527_vm13, %v5952_v18  ;;  %v6049_v22 = vsel %vm10175_vm4, %v6047_v58, %v6048_v44  ;;  %v6826_v9 = vrot.slane %v6825_v27, 4  ;;  %vm15533_vm13 = vmmov %vm15532_vm5 }
 0x426   : > { %v7124_v52 = vor.u32 %v7123_v3, %v7120_v39  ;;  %v5958_v25 = vsel %vm10478_vm3, %v5953_v59, %v5957_v5  ;;  %v6229_v39 = vshll.u32 %v6119_v12, 16  ;;  %v6647_v48 = vsel %vm10234_vm8, %v6642_v14, %v14250_v16  ;;  %v6910_v27 = vld [vmem:[#allocation4 + $0x38] sm:$0xf]  ;;  %v6120_v3 = vld [vmem:[#allocation4 + $0x34] sm:$0x3] }
 0x427   : > { %v7133_v61 = vrot.slane %v7131_v6, 6  ;;  %5984 = vst.msk [vmem:[#allocation5 + $0x90] sm:$0x3] %vm15528_vm12, %v5958_v25  ;;  %v6835_v7 = vor.u32 %v6834_v42, %v14247_v28  ;;  %v6831_v12 = vsel %vm10234_vm8, %v6826_v9, %v14247_v28  ;;  %v6224_v28 = vrot.slane %v14263_v62, 4  ;;  %v6309_v62 = vld [vmem:[#allocation4 + $0x38] sm:$0x3] }
 0x428   : > { %6673 = vrot.lane.b32.xlu0 %v6637_v47, %s15272_s20  ;;  %v7125_v46 = vsel %vm10278_vm14, %v7116_v49, %v7124_v52  ;;  %v7126_v1 = vrot.slane %v7124_v52, 4  ;;  %v6838_v47 = vshll.u32 %v14327_v54, 16  ;;  %v6957_v18 = vrot.slane %v6910_v27, 5 }
 0x429   : > { %6981 = vrot.lane.b32.xlu1 %v6955_v60, %s15428_s1  ;;  %v7134_v45 = vor.u32 %v7133_v61, %v7130_v36  ;;  %7178 = vst.msk [vmem:[#allocation5 + $0x68] sm:$0xf] %vm15529_vm1, %v7125_v46  ;;  %v6308_v61 = vld [vmem:[#allocation4 + $0x34] sm:$0xf]  ;;  %v6956_v36 = vrot.slane %v6954_v37, 4  ;;  %v6648_v58 = vshrl.u32 %v14217_v63, 16 }
 0x42a   : > { %v6415_v33 = vshrl.u32 %v6308_v61, 16  ;;  %v14367_v5 = vrot.slane %v6838_v47, 5  ;;  %v6418_v37 = vshll.u32 %v6308_v61, 16  ;;  %v6911_v46 = vld [vmem:[#allocation4 + $0x3c] sm:$0x7]  ;;  %v6413_v9 = vrot.slane %v14320_v10, 4 }
 0x42b   : > { %v7135_v49 = vsel %vm10278_vm14, %v7126_v1, %v7134_v45  ;;  %v7136_v35 = vrot.slane %v7134_v45, 4  ;;  %v5998_v1 = vld [vmem:[#allocation4 + $0x34] sm:$0x1]  ;;  %v6050_v45 = vrot.slane %v6048_v44, 4  ;;  %v6958_v63 = vsel %vm10259_vm11, %v6956_v36, %v6957_v18 }
 0x42c   : > { %6262 = vrot.lane.b32.xlu0 %v6223_v32, %s15310_s29  ;;  %7179 = vst.msk [vmem:[#allocation5 + $0x74] sm:$0xf] %vm15530_vm9, %v7135_v49  ;;  %v6417_v57 = vrot.slane %v6415_v33, 7  ;;  %v6235_v32 = vshrl.u32 %v6120_v3, 16  ;;  %v6497_v49 = vld [vmem:[#allocation4 + $0x38] sm:$0x3] }
 0x42d   : > { %6075 = vrot.lane.b32.xlu1 %v6049_v22, %s15272_s20  ;;  %v7145_v60 = vsel %vm10278_vm14, %v7136_v35, %v14157_v51  ;;  %v6424_v22 = vshrl.u32 %v6309_v62, 16  ;;  %v6650_v61 = vrot.slane %v6648_v58, 4  ;;  %v6842_v35 = vshrl.u32 %v14327_v54, 16  ;;  %6510 = vst.msk [vmem:[#allocation5 + $0x94] sm:$0x3] %vm15532_vm5, %v6497_v49 }
 0x42e   : > { %v6860_v43 = vpop.permute.xlu0 %6859  ;;  %7180 = vst.msk [vmem:[#allocation5 + $0x80] sm:$0xf] %vm15531_vm2, %v7145_v60  ;;  %v6420_v14 = vor.u32 %v6418_v37, %v6417_v57  ;;  %v6427_v47 = vshll.u32 %v6309_v62, 16  ;;  %vm6105_vm12 = vcmask 517376   ;;  %vm6483_vm1 = vcmask 1042176  }
 0x42f   : > { %v6668_v8 = vpop.permute.xlu1 %6667  ;;  %6892 = vst.msk [vmem:[#allocation5 + $0x4c] sm:$0xf] %vm6281_vm15, %v6860_v43  ;;  %v14337_v43 = vrot.slane %v6226_v41, 7  ;;  %v6836_v41 = vrot.slane %v6835_v7, 4  ;;  %v6960_v7 = vrot.slane %v6911_v46, 5  ;;  %v6844_v27 = vrot.slane %v6842_v35, 4 }
 0x430   : > { %6699 = vst.msk [vmem:[#allocation5 + $0x58] sm:$0xf] %vm6092_vm0, %v6668_v8  ;;  %v6409_v8 = vshll.u32 %v14296_v20, 16  ;;  %6867 = vrot.lane.b32.xlu0 %v6831_v12, %s15310_s29  ;;  %v6421_v54 = vsel %vm10193_vm7, %v6413_v9, %v6420_v14 }
 0x431   : > { %v6231_v56 = vor.u32 %v6229_v39, %v14337_v43  ;;  %6675 = vrot.lane.b32.xlu1 %v6647_v48, %s15272_s20  ;;  %v6841_v38 = vsel %vm10234_vm8, %v6836_v41, %v14367_v5  ;;  %v6959_v39 = vrot.slane %v6957_v18, 4  ;;  %v6233_v60 = vrot.slane %v14337_v43, 4  ;;  %v9887_v48 = vld [vmem:[%s15186_s3 + $0x88] sm:$0xff]  }
 0x432   : > { %v6444_v26 = vpop.permute.xlu0 %6443  ;;  %v6411_v20 = vor.u32 %v6409_v8, %v14320_v10  ;;  %v6237_v8 = vrot.slane %v6235_v32, 7  ;;  %v6426_v10 = vrot.slane %v6424_v22, 7  ;;  %9687 = vmatpush3.bf16.msra.mxu1 %v9887_v48 }
 0x433   : > { %v6257_v2 = vpop.permute.xlu1 %6256  ;;  %6477 = vst.msk [vmem:[#allocation5 + $0x48] sm:$0xf] %vm6470_vm6, %v6444_v26  ;;  %v6232_v52 = vsel %vm10193_vm7, %v6224_v28, %v6231_v56  ;;  %v6051_v26 = vrot.slane %v5998_v1, 7  ;;  %v6651_v56 = vor.u32 %v6650_v61, %v14250_v16  ;;  %v6845_v28 = vor.u32 %v6844_v27, %v14367_v5 }
 0x434   : > { %6289 = vst.msk [vmem:[#allocation5 + $0x54] sm:$0xf] %vm6281_vm15, %v6257_v2  ;;  %v6412_v59 = vsel %vm10193_vm7, %v6404_v15, %v6411_v20  ;;  %v6238_v2 = vshll.u32 %v6120_v3, 16  ;;  %v6429_v15 = vor.u32 %v6427_v47, %v6426_v10 }
 0x435   : > { %6451 = vrot.lane.b32.xlu0 %v6412_v59, %s15428_s1  ;;  %6264 = vrot.lane.b32.xlu1 %v6232_v52, %s15310_s29  ;;  %v6052_v20 = vsel %vm10175_vm4, %v6050_v45, %v6051_v26  ;;  %v6652_v16 = vrot.slane %v6651_v56, 4  ;;  %v6846_v59 = vrot.slane %v6845_v28, 4  ;;  %v6962_v52 = vrot.slane %v6960_v7, 4  ;;  %v9892_v28 = vld [vmem:[#allocation5 + $0x8] ss:$12 sps:$4 sm:$0xff]  }
 0x436   : > { %v6976_v51 = vpop.permute.xlu0 %6975  ;;  %v6240_v12 = vor.u32 %v6238_v2, %v6237_v8 }
 0x437   : > { %v6862_v6 = vpop.permute.xlu1 %6861  ;;  %7008 = vst.msk [vmem:[#allocation5 + $0x4c] sm:$0xf] %vm6470_vm6, %v6976_v51  ;;  %v6961_v51 = vsel %vm10259_vm11, %v6959_v39, %v6960_v7 }
 0x438   : > { %6893 = vst.msk [vmem:[#allocation5 + $0x58] sm:$0xf] %vm6281_vm15, %v6862_v6  ;;  %v6241_v43 = vsel %vm10193_vm7, %v6233_v60, %v6240_v12  ;;  %v6422_v6 = vrot.slane %v6417_v57, 4 }
 0x439   : > { %6983 = vrot.lane.b32.xlu0 %v6958_v63, %s15428_s1  ;;  %6869 = vrot.lane.b32.xlu1 %v6841_v38, %s15310_s29 }
 0x43a   : > { %v6070_v42 = vpop.permute.xlu0 %6069  ;;  %v6430_v18 = vsel %vm10193_vm7, %v6422_v6, %v6429_v15 }
 0x43b   : > { %v6446_v25 = vpop.permute.xlu1 %6445  ;;  %6101 = vst.msk [vmem:[#allocation5 + $0x60] sm:$0xf] %vm6092_vm0, %v6070_v42 }
 0x43c   : > { %6478 = vst.msk [vmem:[#allocation5 + $0x54] sm:$0xf] %vm6470_vm6, %v6446_v25  ;;  %v7156_v25 = vrot.slane %v14167_v19, 4 }
 0x43d   : > { %6077 = vrot.lane.b32.xlu0 %v6052_v20, %s15272_s20  ;;  %6453 = vrot.lane.b32.xlu1 %v6421_v54, %s15428_s1 }
 0x43e   : > { %v6670_v44 = vpop.permute.xlu0 %6669  ;;  %7182 = vst.msk [vmem:[#allocation5 + $0x98] sm:$0x3] %vm15533_vm13, %v7156_v25  ;;  %v9896_v25 = vld [vmem:[#allocation5 + $0x68] ss:$12 sps:$4 sm:$0xff]  }
 0x43f   : > { %v6978_v23 = vpop.permute.xlu1 %6977  ;;  %6700 = vst.msk [vmem:[#allocation5 + $0x64] sm:$0xf] %vm6092_vm0, %v6670_v44 }
 0x440   : > { %7009 = vst.msk [vmem:[#allocation5 + $0x58] sm:$0xf] %vm6470_vm6, %v6978_v23 }
 0x441   : > { %6266 = vrot.lane.b32.xlu0 %v6241_v43, %s15310_s29  ;;  %6985 = vrot.lane.b32.xlu1 %v6961_v51, %s15428_s1 }
 0x442   : > { %v6259_v3 = vpop.permute.xlu0 %6258 }
 0x443   : > { %v6072_v33 = vpop.permute.xlu1 %6071  ;;  %6290 = vst.msk [vmem:[#allocation5 + $0x60] sm:$0xf] %vm6281_vm15, %v6259_v3  ;;  %v9882_v36 = vld [vmem:[#allocation5 + $0x48] ss:$12 sps:$4 sm:$0xff]  }
 0x444   : > { %6102 = vst.msk [vmem:[#allocation5 + $0x6c] sm:$0xf] %vm6092_vm0, %v6072_v33 }
 0x445   : > { %6455 = vrot.lane.b32.xlu0 %v6430_v18, %s15428_s1  ;;  %6677 = vrot.lane.b32.xlu1 %v6652_v16, %s15272_s20  ;;  %v15534_v16 = vmov 0.0  }
 0x447   : > { %v9880_v41 = vld [vmem:[#allocation5 + $0x4c] ss:$12 sps:$4 sm:$0xff]  }
 0x448   : > { %7537 = vmatprep.mubr.bf16.mxu1 %v9880_v41 }
 0x449   : > { %7538 = vmatmul.mubr.bf16.gmra.mrb[12].mxu1 %v9882_v36  ;;  %6871 = vrot.lane.b32.xlu1 %v6846_v59, %s15310_s29 }
 0x44d   : > { %6987 = vrot.lane.b32.xlu1 %v6962_v52, %s15428_s1 }
 0x450   : > { %v9452_v57 = vpop.f32.mrb[4].mxu1 }
 0x451   : > { %v9453_v32 = vpop.f32.mrb[5].mxu1 }
 0x452   : > { %v14422_v5 = vadd.f32 %v9453_v32, %v9452_v57  ;;  %v9455_v62 = vpop.f32.mrb[6].mxu1  ;;  %v9893_v32 = vld [vmem:[#allocation5 + $0x20] ss:$12 sps:$4 sm:$0xff]  }
 0x453   : > { %v9456_v58 = vpop.f32.mrb[7].mxu1 }
 0x454   : > { %v14424_v42 = vadd.f32 %v9456_v58, %v9455_v62  ;;  %v9894_v62 = vld [vmem:[#allocation5 + $0x38] ss:$12 sps:$4 sm:$0xff]   ;;  %v9895_v58 = vld [vmem:[#allocation5 + $0x50] ss:$12 sps:$4 sm:$0xff]  }
 0x48a   : > { %v6864_v38 = vpop.permute.xlu0 %6863 }
 0x48b   : > { %v6672_v37 = vpop.permute.xlu1 %6671  ;;  %6894 = vst.msk [vmem:[#allocation5 + $0x64] sm:$0xf] %vm6281_vm15, %v6864_v38  ;;  %v9897_v38 = vld [vmem:[#allocation5 + $0x80] ss:$12 sps:$4 sm:$0xff]  }
 0x48c   : > { %6701 = vst.msk [vmem:[#allocation5 + $0x70] sm:$0xf] %vm6092_vm0, %v6672_v37  ;;  %v9898_v37 = vld [vmem:[#allocation5 + $0x98] ss:$0 sps:$4 sm:$0x33]  }
 0x48e   : > { %v6448_v46 = vpop.permute.xlu0 %6447 }
 0x48f   : > { %v6261_v1 = vpop.permute.xlu1 %6260  ;;  %6479 = vst.msk [vmem:[#allocation5 + $0x60] sm:$0xf] %vm6470_vm6, %v6448_v46 }
 0x490   : > { %6291 = vst.msk [vmem:[#allocation5 + $0x6c] sm:$0xf] %vm6281_vm15, %v6261_v1 }
 0x492   : > { %v6980_v45 = vpop.permute.xlu0 %6979 }
 0x493   : > { %v6866_v22 = vpop.permute.xlu1 %6865  ;;  %7010 = vst.msk [vmem:[#allocation5 + $0x64] sm:$0xf] %vm6470_vm6, %v6980_v45 }
 0x494   : > { %6895 = vst.msk [vmem:[#allocation5 + $0x70] sm:$0xf] %vm6281_vm15, %v6866_v22 }
 0x496   : > { %v6074_v19 = vpop.permute.xlu0 %6073 }
 0x497   : > { %v6450_v63 = vpop.permute.xlu1 %6449  ;;  %6103 = vst.msk [vmem:[#allocation5 + $0x78] sm:$0xf] %vm6092_vm0, %v6074_v19 }
 0x498   : > { %6480 = vst.msk [vmem:[#allocation5 + $0x6c] sm:$0xf] %vm6470_vm6, %v6450_v63 }
 0x49a   : > { %v6674_v9 = vpop.permute.xlu0 %6673 }
 0x49b   : > { %v6982_v14 = vpop.permute.xlu1 %6981  ;;  %6702 = vst.msk [vmem:[#allocation5 + $0x7c] sm:$0xf] %vm6092_vm0, %v6674_v9  ;;  %v15542_v9 = vmov 0  }
 0x49c   : > { %7011 = vst.msk [vmem:[#allocation5 + $0x70] sm:$0xf] %vm6470_vm6, %v6982_v14  ;;  %v1024_v14 = vld [vmem:[%s10167_s19 + $0xa4] sm:$0x1] }
 0x49e   : > { %v6263_v8 = vpop.permute.xlu0 %6262 }
 0x49f   : > { %v6076_v49 = vpop.permute.xlu1 %6075  ;;  %6292 = vst.msk [vmem:[#allocation5 + $0x78] sm:$0xf] %vm6281_vm15, %v6263_v8  ;;  %v9886_v44 = vld [vmem:[#allocation5 + $0x60] ss:$12 sps:$4 sm:$0xff]   ;;  %v15543_v8 = vrot.slane %v13174_v31, 7  ;;  %v9899_v31 = vld [vmem:[%s15188_s5 + $0x100] sm:$0xff]  }
 0x4a0   : > { %6104 = vst.msk [vmem:[#allocation5 + $0x84] sm:$0xf] %vm6092_vm0, %v6076_v49  ;;  %9717 = vmatpush3.bf16.msra.mxu0 %v9899_v31 }
 0x4a1   : > { %v1191_v49 = vrot.slane %v15543_v8, 4  ;;  %9718 = vmatprep.subr.bf16.mxu0 %v15534_v16 }
 0x4a2   : > { %v6868_v61 = vpop.permute.xlu0 %6867 }
 0x4a3   : > { %v6676_v35 = vpop.permute.xlu1 %6675  ;;  %v9884_v23 = vld [vmem:[#allocation5 + $0x64] ss:$12 sps:$4 sm:$0xff]   ;;  %6896 = vst.msk [vmem:[#allocation5 + $0x7c] sm:$0xf] %vm6281_vm15, %v6868_v61  ;;  %v1192_v61 = vrot.slane %v1024_v14, 7 }
 0x4a4   : > { %6703 = vst.msk [vmem:[#allocation5 + $0x88] sm:$0xf] %vm6092_vm0, %v6676_v35  ;;  %7545 = vmatprep.mubr.bf16.mxu1 %v9884_v23  ;;  %vm6294_vm0 = vcmask 779776   ;;  %v1401_v23 = vld [vmem:[%s10167_s19 + $0xa4] sm:$0x3] }
 0x4a5   : > { %7546 = vmatmul.mubr.bf16.gmra.mrb[16].mxu1 %v9886_v44  ;;  %v1193_v35 = vsel %vm10175_vm4, %v1191_v49, %v1192_v61  ;;  %v1771_v44 = vshrl.u32 %v1401_v23, 16 }
 0x4a6   : > { %1274 = vrot.lane.b32.xlu0 %v1193_v35, %s15288_s26 }
 0x4a7   : > { %v6452_v26 = vpop.permute.xlu0 %6451  ;;  %v6265_v2 = vpop.permute.xlu1 %6264 }
 0x4a8   : > { %6481 = vst.msk [vmem:[#allocation5 + $0x78] sm:$0xf] %vm6470_vm6, %v6452_v26  ;;  %v1774_v26 = vshll.u32 %v1401_v23, 16 }
 0x4a9   : > { %6293 = vst.msk [vmem:[#allocation5 + $0x84] sm:$0xf] %vm6281_vm15, %v6265_v2  ;;  %v1769_v2 = vrot.slane %v13176_v50, 4 }
 0x4ab   : > { %v6984_v39 = vpop.permute.xlu0 %6983  ;;  %v6870_v7 = vpop.permute.xlu1 %6869 }
 0x4ac   : > { %7012 = vst.msk [vmem:[#allocation5 + $0x7c] sm:$0xf] %vm6470_vm6, %v6984_v39  ;;  %v1773_v39 = vrot.slane %v1771_v44, 7 }
 0x4ad   : > { %6897 = vst.msk [vmem:[#allocation5 + $0x88] sm:$0xf] %vm6281_vm15, %v6870_v7  ;;  %vm15535_vm15 = vcmask 261120  }
 0x4ae   : > { %v1776_v7 = vor.u32 %v1774_v26, %v1773_v39 }
 0x4af   : > { %v6078_v10 = vpop.permute.xlu0 %6077  ;;  %v6454_v47 = vpop.permute.xlu1 %6453 }
 0x4b0   : > { %6106 = vst.msk [vmem:[#allocation5 + $0x90] sm:$0x3] %vm6105_vm12, %v6078_v10  ;;  %v1777_v10 = vsel %vm10193_vm7, %v1769_v2, %v1776_v7 }
 0x4b1   : > { %6482 = vst.msk [vmem:[#allocation5 + $0x84] sm:$0xf] %vm6470_vm6, %v6454_v47  ;;  %1858 = vrot.lane.b32.xlu1 %v1777_v10, %s15289_s28 }
 0x4b3   : > { %v6267_v20 = vpop.permute.xlu0 %6266  ;;  %v6986_v54 = vpop.permute.xlu1 %6985  ;;  %v7203_v56 = vld [vmem:[#allocation5 + $0x78] sm:$0xff] }
 0x4b4   : > { %6295 = vst.msk [vmem:[#allocation5 + $0x90] sm:$0x3] %vm6294_vm0, %v6267_v20 }
 0x4b5   : > { %7013 = vst.msk [vmem:[#allocation5 + $0x88] sm:$0xf] %vm6470_vm6, %v6986_v54  ;;  %vm15536_vm6 = vmmov %vm15535_vm15 }
 0x4b6   : > { %vm15537_vm9 = vmmov %vm15536_vm6 }
 0x4b7   : > { %v6456_v60 = vpop.permute.xlu0 %6455  ;;  %v6678_v12 = vpop.permute.xlu1 %6677  ;;  %vm15538_vm2 = vmmov %vm15536_vm6 }
 0x4b8   : > { %6484 = vst.msk [vmem:[#allocation5 + $0x90] sm:$0x3] %vm6483_vm1, %v6456_v60  ;;  %vm15539_vm5 = vmmov %vm15538_vm2 }
 0x4b9   : > { %6704 = vst.msk [vmem:[#allocation5 + $0x94] sm:$0x3] %vm6105_vm12, %v6678_v12  ;;  %vm15540_vm13 = vmmov %vm15538_vm2 }
 0x4ba   : > { %vm15541_vm12 = vmmov %vm15538_vm2 }
 0x4bb   : > { %v6872_v48 = vpop.permute.xlu1 %6871 }
 0x4bc   : > { %v7205_v27 = vld [vmem:[#allocation5 + $0x84] sm:$0xff]  ;;  %6898 = vst.msk [vmem:[#allocation5 + $0x94] sm:$0x3] %vm6294_vm0, %v6872_v48  ;;  %vm431_vm0 = vcmask 519168  }
 0x4bd   : > { %v9888_v33 = vld [vmem:[#allocation5 + $0x7c] ss:$12 sps:$4 sm:$0xff]   ;;  %v9281_v3 = vcombine.low %v7203_v56, %v7205_v27  ;;  %432 = vst.msk [vmem:[#allocation7] sm:$0xf] %vm431_vm0, %v15542_v9  ;;  %433 = vst.msk [vmem:[#allocation7 + $0x4] sm:$0xf] %vm431_vm0, %v15542_v9 }
 0x4be   : > { %7553 = vmatprep.mubr.bf16.mxu1 %v9888_v33  ;;  %434 = vst.msk [vmem:[#allocation7 + $0x8] sm:$0xf] %vm431_vm0, %v15542_v9  ;;  %435 = vst.msk [vmem:[#allocation7 + $0xc] sm:$0xf] %vm431_vm0, %v15542_v9  ;;  %v9900_v56 = vld [vmem:[%s15188_s5 + $0x108] sm:$0xff]  }
 0x4bf   : > { %7554 = vmatmul.mubr.bf16.gmra.mrb[20].mxu1 %v9281_v3  ;;  %v6988_v51 = vpop.permute.xlu1 %6987  ;;  %436 = vst.msk [vmem:[#allocation7 + $0x10] sm:$0xf] %vm431_vm0, %v15542_v9  ;;  %437 = vst.msk [vmem:[#allocation7 + $0x14] sm:$0xf] %vm431_vm0, %v15542_v9  ;;  %9719 = vmatpush3.bf16.msra.mxu0 %v9900_v56 }
 0x4c0   : > { %7014 = vst.msk [vmem:[#allocation5 + $0x94] sm:$0x3] %vm6483_vm1, %v6988_v51  ;;  %vm15249_vm1 = vcmask 517120   ;;  %9720 = vmatprep.subr.bf16.mxu0 %v15534_v16 }
 0x4c1   : > { %439 = vst.msk [vmem:[#allocation7 + $0x18] sm:$0x3] %vm15249_vm1, %v15542_v9 }
 0x4c7   : > { %v7207_v43 = vld [vmem:[#allocation5 + $0x90] sm:$0x33] }
 0x4c8   : > { %v9285_v6 = vcombine.high %v7207_v43, %v7207_v43  ;;  %v9284_v15 = vcombine.low %v7207_v43, %v7207_v43 }
 0x4ca   : > { %7561 = vmatprep.mubr.bf16.mxu1 %v9285_v6  ;;  %v9901_v6 = vld [vmem:[%s15188_s5 + $0x40] sm:$0xff]  }
 0x4cb   : > { %7562 = vmatmul.mubr.bf16.gmra.mrb[24].mxu1 %v9284_v15  ;;  %v9902_v15 = vld [vmem:[%s15188_s5] sm:$0xff]   ;;  %9497 = vmatprep.subr.bf16.mxu1 %v9901_v6 }
 0x4cc   : > { %9688 = vmatprep.mubr.msk.bf16.mxu1 %vm15326_vm10, %v15534_v16 }
 0x4d0   : > { %v9458_v41 = vpop.f32.mrb[8].mxu1 }
 0x4d1   : > { %v9459_v36 = vpop.f32.mrb[9].mxu1 }
 0x4d2   : > { %v14453_v18 = vadd.f32 %v9459_v36, %v9458_v41  ;;  %v9461_v59 = vpop.f32.mrb[10].mxu1  ;;  %v9905_v41 = vld [vmem:[%s15188_s5 + $0x110] sm:$0xff]   ;;  %v481_v36 = vld [vmem:[%s10167_s19 + $0xa4] sm:$0x1] }
 0x4d3   : > { %9689 = vmatmul.mubr.msk.bf16.vlgmr.msra.gmra.mrb[28].mxu1 %vm15535_vm15, %v9892_v28  ;;  %v9462_v52 = vpop.f32.mrb[11].mxu1  ;;  %v9903_v28 = vld [vmem:[%s15188_s5 + $0x48] sm:$0xff]   ;;  %9721 = vmatpush3.bf16.msra.mxu0 %v9905_v41  ;;  %vm981_vm15 = vcmask 58368  }
 0x4d4   : > { %9692 = vmatprep.mubr.msk.bf16.mxu1 %vm15326_vm10, %v15534_v16  ;;  %v14455_v57 = vadd.f32 %v9462_v52, %v9461_v59  ;;  %v893_v59 = vrot.slane %v13245_v11, 4  ;;  %v895_v52 = vshll.u32 %v481_v36, 16  ;;  %9498 = vmatpush3.bf16.msra.mxu1 %v9902_v15  ;;  %v9907_v11 = vld [vmem:[%s15188_s5 + $0x10] sm:$0xff]  }
 0x4d5   : > { %9499 = vmatprep.subr.bf16.mxu1 %v9903_v28  ;;  %9722 = vmatprep.subr.bf16.mxu0 %v15534_v16 }
 0x4db   : > { %9693 = vmatmul.mubr.msk.bf16.gmra.mrb[32].mxu1 %vm15536_vm6, %v9893_v32  ;;  %v9904_v32 = vld [vmem:[%s15188_s5 + $0x8] sm:$0xff]   ;;  %vm7670_vm6 = vcmask 523264  }
 0x4dc   : > { %9696 = vmatprep.mubr.msk.bf16.mxu1 %vm15326_vm10, %v15534_v16  ;;  %9500 = vmatpush3.bf16.msra.mxu1 %v9904_v32 }
 0x4e3   : > { %9697 = vmatmul.mubr.msk.bf16.gmra.mrb[36].mxu1 %vm15537_vm9, %v9894_v62  ;;  %v897_v62 = vrot.slane %v895_v52, 7  ;;  %vm7710_vm9 = vcmask 519171  }
 0x4e4   : > { %9700 = vmatprep.mubr.msk.bf16.mxu1 %vm15326_vm10, %v15534_v16 }
 0x4eb   : > { %9701 = vmatmul.mubr.msk.bf16.gmra.mrb[40].mxu1 %vm15538_vm2, %v9895_v58  ;;  %v9906_v58 = vld [vmem:[%s15188_s5 + $0x50] sm:$0xff]   ;;  %vm15544_vm2 = vsmask.f32 7950 }
 0x4ec   : > { %9704 = vmatprep.mubr.msk.bf16.mxu1 %vm15326_vm10, %v15534_v16  ;;  %9501 = vmatprep.subr.bf16.mxu1 %v9906_v58 }
 0x4ed   : > { %9502 = vmatpush3.bf16.msra.mxu1 %v9907_v11 }
 0x4f3   : > { %9705 = vmatmul.mubr.msk.bf16.gmra.mrb[44].mxu1 %vm15539_vm5, %v9896_v25  ;;  %v898_v25 = vsel %vm10478_vm3, %v893_v59, %v897_v62  ;;  %vm14582_vm5 = vmand %vm7710_vm9, %vm15544_vm2  ;;  %vm7751_vm9 = vcmask 516096   ;;  %vm1358_vm2 = vcmask 123968  }
 0x4f4   : > { %9708 = vmatprep.mubr.msk.bf16.mxu1 %vm15326_vm10, %v15534_v16  ;;  %982 = vst.msk [vmem:[#allocation2 + $0xa0] sm:$0x3] %vm981_vm15, %v898_v25  ;;  %v7925_v25 = vld [vmem:[#allocation7] sm:$0xe]  ;;  %vm7746_vm15 = vcmask 519170  }
 0x4fb   : > { %9709 = vmatmul.mubr.msk.bf16.gmra.mrb[48].mxu1 %vm15540_vm13, %v9897_v38  ;;  %vm15548_vm13 = vsmask.f32 1280 }
 0x4fc   : > { %9712 = vmatprep.mubr.msk.bf16.mxu1 %vm15326_vm10, %v15534_v16 }
 0x503   : > { %9713 = vmatmul.mubr.msk.bf16.gmra.mrb[52].mxu1 %vm15541_vm12, %v9898_v37  ;;  %vm14606_vm12 = vmand %vm15249_vm1, %vm15548_vm13 }
 0x51c   : > { %v9464_v46 = vpop.f32.mrb[12].mxu1 }
 0x51d   : > { %v9465_v1 = vpop.f32.mrb[13].mxu1 }
 0x51e   : > { %v14473_v45 = vadd.f32 %v9465_v1, %v9464_v46  ;;  %v9467_v22 = vpop.f32.mrb[14].mxu1 }
 0x51f   : > { %v9468_v19 = vpop.f32.mrb[15].mxu1 }
 0x520   : > { %v14475_v63 = vadd.f32 %v9468_v19, %v9467_v22  ;;  %v14547_v22 = vld [vmem:[%s15187_s4] ss:$0 sm:$0xff] }
 0x521   : > { %v7519_v14 = vadd.f32 %v14209_v40, %v14547_v22  ;;  %v7524_v23 = vadd.f32 %v14422_v5, %v14547_v22  ;;  %v7527_v39 = vadd.f32 %v14424_v42, %v14547_v22  ;;  %v7535_v42 = vadd.f32 %v14455_v57, %v14547_v22 }
 0x522   : > { %v7540_v57 = vadd.f32 %v14473_v45, %v14547_v22 }
 0x578   : > { %v9470_v47 = vpop.f32.mrb[16].mxu1 }
 0x579   : > { %v9471_v20 = vpop.f32.mrb[17].mxu1 }
 0x57a   : > { %v14506_v54 = vadd.f32 %v9471_v20, %v9470_v47  ;;  %v9473_v60 = vpop.f32.mrb[18].mxu1  ;;  %v7532_v20 = vadd.f32 %v14453_v18, %v14547_v22  ;;  %v9969_v18 = vld [vmem:[%s10167_s19 + $0xac] sm:$0x7] }
 0x57b   : > { %v9474_v50 = vpop.f32.mrb[19].mxu1  ;;  %v3221_v59 = vshrl.u32 %v9969_v18, 16 }
 0x57c   : > { %v14508_v12 = vadd.f32 %v9474_v50, %v9473_v60  ;;  %v7815_v60 = vld [vmem:[#allocation7] sm:$0xf] }
 0x57d   : > { %v7821_v6 = vshrl.u32 %v7815_v60, 16  ;;  %v7824_v15 = vshll.u32 %v7815_v60, 16 }
 0x592   : > { %v9476_v48 = vpop.f32.mrb[20].mxu1 }
 0x593   : > { %v9477_v27 = vpop.f32.mrb[21].mxu1 }
 0x594   : > { %v14513_v33 = vadd.f32 %v9477_v27, %v9476_v48  ;;  %v9479_v3 = vpop.f32.mrb[22].mxu1 }
 0x595   : > { %v9480_v51 = vpop.f32.mrb[23].mxu1 }
 0x596   : > { %v14516_v43 = vadd.f32 %v9480_v51, %v9479_v3 }
 0x59e   : > { %v9482_v38 = vpop.f32.mrb[24].mxu1 }
 0x59f   : > { %v9483_v37 = vpop.f32.mrb[25].mxu1  ;;  %v7989_v38 = vld [vmem:[#allocation7] sm:$0x8] }
 0x5a0   : > { %v9485_v46 = vpop.f32.mrb[26].mxu1  ;;  %v7823_v37 = vrot.slane %v7821_v6, 4 }
 0x5a1   : > { %v9486_v1 = vpop.f32.mrb[27].mxu1  ;;  %v7826_v46 = vrot.slane %v7824_v15, 5 }
 0x5a6   : > { %v7603_v19 = vpop.f32.mrb[28].mxu1 }
 0x5a7   : > { %v9690_v9 = vpop.f32.mrb[29].mxu1 }
 0x5a8   : > { %v7606_v8 = vpop.f32.mrb[30].mxu1 }
 0x5a9   : > { %v7607_v49 = vadd.f32 %v7606_v8, %v7519_v14  ;;  %v9691_v61 = vpop.f32.mrb[31].mxu1  ;;  %v7543_v14 = vadd.f32 %v14475_v63, %v14547_v22  ;;  %v14569_v8 = vld [vmem:[#allocation7] sm:$0xe]  ;;  %v2350_v63 = vrot.slane %v13205_v55, 4 }
 0x5ab   : > { %v7658_v35 = vmax.f32 %v7607_v49, 0.0  ;;  %v14572_v49 = vld [vmem:[%s10167_s19 + $0xac] sm:$0x3] }
 0x5ad   : > { %7672 = vst.msk [vmem:[#allocation6 + $0x8] sm:$0xff] %vm7670_vm6, %v7658_v35  ;;  %v3223_v35 = vrot.slane %v3221_v59, 4 }
 0x5ae   : > { %v7611_v44 = vpop.f32.mrb[32].mxu1 }
 0x5af   : > { %v7612_v26 = vadd.f32 %v7611_v44, %v7524_v23  ;;  %v9694_v2 = vpop.f32.mrb[33].mxu1  ;;  %v9970_v23 = vld [vmem:[%s10167_s19 + $0xb4] sm:$0x7]  ;;  %v7931_v44 = vshrl.u32 %v7925_v25, 16 }
 0x5b0   : > { %v7614_v31 = vpop.f32.mrb[34].mxu1  ;;  %v3837_v45 = vshrl.u32 %v9970_v23, 16 }
 0x5b1   : > { %v7659_v7 = vmax.f32 %v7612_v26, 0.0  ;;  %v7615_v10 = vadd.f32 %v7614_v31, %v7527_v39  ;;  %v9695_v40 = vpop.f32.mrb[35].mxu1  ;;  %v7934_v26 = vshll.u32 %v7925_v25, 16 }
 0x5b2   : > { %v9316_v40 = vrot.slane %v14569_v8, 9  ;;  %v7753_v8 = vld [vmem:[#allocation7 + $0xc] sm:$0x1] }
 0x5b3   : > { %7673 = vst.msk [vmem:[#allocation6 + $0x10] sm:$0xff] %vm7670_vm6, %v7659_v7  ;;  %v7660_v47 = vmax.f32 %v7615_v10, 0.0  ;;  %v7996_v10 = vshrl.u32 %v7989_v38, 16  ;;  %v7936_v6 = vrot.slane %v7934_v26, 6  ;;  %v7551_v38 = vadd.f32 %v14508_v12, %v14547_v22 }
 0x5b5   : > { %7674 = vst.msk [vmem:[#allocation6 + $0x18] sm:$0xff] %vm7670_vm6, %v7660_v47  ;;  %v2352_v47 = vshrl.u32 %v14572_v49, 16 }
 0x5b6   : > { %v7619_v5 = vpop.f32.mrb[36].mxu1 }
 0x5b7   : > { %v7620_v50 = vadd.f32 %v7619_v5, %v7532_v20  ;;  %v9698_v48 = vpop.f32.mrb[37].mxu1  ;;  %v7827_v20 = vor.u32 %v7826_v46, %v7823_v37  ;;  %v14592_v59 = vrot.slane %v2352_v47, 7  ;;  %v7717_v37 = vld [vmem:[#allocation7 + $0x8] sm:$0x3]  ;;  %v14616_v47 = vld [vmem:[#allocation7 + $0x14] sm:$0x3] }
 0x5b8   : > { %v7622_v56 = vpop.f32.mrb[38].mxu1  ;;  %v2355_v48 = vshll.u32 %v14572_v49, 16  ;;  %v9913_v49 = vld [vmem:[%s15188_s5 + $0x28] sm:$0xff]  }
 0x5b9   : > { %v7661_v27 = vmax.f32 %v7620_v50, 0.0  ;;  %v7623_v3 = vadd.f32 %v7622_v56, %v7535_v42  ;;  %v9699_v51 = vpop.f32.mrb[39].mxu1  ;;  %v7712_v56 = vld [vmem:[#allocation7 + $0x4] sm:$0x8] }
 0x5ba   : > { %v7685_v28 = vld [vmem:[#allocation6 + $0xb] ss:$2 sm:$0xf]  ;;  %v7687_v41 = vld [vmem:[#allocation6 + $0xc] ss:$2 sm:$0xf] }
 0x5bb   : > { %7675 = vst.msk [vmem:[#allocation6 + $0x20] sm:$0xff] %vm7670_vm6, %v7661_v27  ;;  %v7662_v36 = vmax.f32 %v7623_v3, 0.0  ;;  %v7688_v62 = vmax.f32 %v7685_v28, %v7687_v41  ;;  %v3224_v27 = vor.u32 %v3223_v35, %v13293_v17  ;;  %v3839_v3 = vrot.slane %v3837_v45, 4  ;;  %v8078_v17 = vld [vmem:[#allocation7 + $0x14] sm:$0x7] }
 0x5bc   : > { %v7690_v52 = vld [vmem:[#allocation6 + $0x15] ss:$2 sm:$0xf]  ;;  %v7692_v32 = vld [vmem:[#allocation6 + $0x16] ss:$2 sm:$0xf]  ;;  %v7548_v41 = vadd.f32 %v14506_v54, %v14547_v22 }
 0x5bd   : > { %v7693_v58 = vmax.f32 %v7690_v52, %v7692_v32  ;;  %7676 = vst.msk [vmem:[#allocation6 + $0x28] sm:$0xff] %vm7670_vm6, %v7662_v36  ;;  %v7933_v51 = vrot.slane %v7931_v44, 5  ;;  %v14590_v36 = vrot.slane %v7996_v10, 11  ;;  %v15547_v52 = vrot.slane %v13319_v13, 5 }
 0x5be   : > { %v7627_v11 = vpop.f32.mrb[40].mxu1  ;;  %v8119_v44 = vshll.u32 %v8078_v17, 16 }
 0x5bf   : > { %v7694_v1 = vmax.f32 %v7688_v62, %v7693_v58  ;;  %v7628_v19 = vadd.f32 %v7627_v11, %v7540_v57  ;;  %v9702_v9 = vpop.f32.mrb[41].mxu1  ;;  %v14596_v32 = vrot.slane %v15547_v52, 4  ;;  %v14598_v62 = vrot.slane %v7827_v20, 4 }
 0x5c0   : > { %v7630_v61 = vpop.f32.mrb[42].mxu1  ;;  %v3840_v9 = vor.u32 %v3839_v3, %v13328_v30  ;;  %v7937_v12 = vor.u32 %v7936_v6, %v7933_v51  ;;  %v4833_v20 = vrot.slane %v13377_v29, 4  ;;  %v8037_v51 = vshrl.u32 %v14616_v47, 16 }
 0x5c1   : > { %v9400_v2 = vpack.c.bf16 %v7694_v1, %v7694_v1  ;;  %v7663_v39 = vmax.f32 %v7628_v19, 0.0  ;;  %v7631_v31 = vadd.f32 %v7630_v61, %v7543_v14  ;;  %v9703_v7 = vpop.f32.mrb[43].mxu1  ;;  %v14610_v19 = vrot.slane %v3224_v27, 4 }
 0x5c2   : > { %v7721_v57 = vld [vmem:[#allocation6 + $0x1f] ss:$2 sm:$0xf]  ;;  %v7723_v46 = vld [vmem:[#allocation6 + $0x20] ss:$2 sm:$0xf]  ;;  %v7556_v27 = vadd.f32 %v14513_v33, %v14547_v22 }
 0x5c3   : > { %v7700_v5 = vshll.u32 %v9400_v2, 16  ;;  %v7703_v60 = vshrl.u32 %v9400_v2, 16  ;;  %7677 = vst.msk [vmem:[#allocation6 + $0x30] sm:$0xff] %vm7670_vm6, %v7663_v39  ;;  %v7664_v50 = vmax.f32 %v7631_v31, 0.0  ;;  %v8123_v14 = vshrl.u32 %v8078_v17, 16 }
 0x5c4   : > { %v7726_v26 = vld [vmem:[#allocation6 + $0x29] ss:$2 sm:$0xf]  ;;  %v7724_v39 = vmax.f32 %v7721_v57, %v7723_v46  ;;  %v14618_v30 = vrot.slane %v3840_v9, 4  ;;  %v14627_v6 = vrot.slane %v8119_v44, 5  ;;  %v7559_v17 = vadd.f32 %v14516_v43, %v14547_v22  ;;  %v9911_v43 = vld [vmem:[%s15188_s5 + $0x20] sm:$0xff]  }
 0x5c5   : > { %v7702_v15 = vrot.slane %v7700_v5, 5  ;;  %v7705_v28 = vrot.slane %v7703_v60, 4  ;;  %7678 = vst.msk [vmem:[#allocation6 + $0x38] sm:$0xff] %vm7670_vm6, %v7664_v50  ;;  %v8125_v5 = vrot.slane %v8123_v14, 4  ;;  %v14621_v60 = vrot.slane %v7937_v12, 4 }
 0x5c6   : > { %v7635_v18 = vpop.f32.mrb[44].mxu1 }
 0x5c7   : > { %v7706_v58 = vor.u32 %v7705_v28, %v7702_v15  ;;  %v7636_v25 = vadd.f32 %v7635_v18, %v7548_v41  ;;  %v9706_v11 = vpop.f32.mrb[45].mxu1  ;;  %v7713_v54 = vsel %vm14582_vm5, %v7702_v15, %v7712_v56  ;;  %v9908_v15 = vld [vmem:[%s15188_s5 + $0x58] sm:$0xff]   ;;  %v9910_v41 = vld [vmem:[%s15188_s5 + $0x60] sm:$0xff]   ;;  %vm15554_vm5 = vsmask.f32 256 }
 0x5c8   : > { %v7638_v1 = vpop.f32.mrb[46].mxu1  ;;  %7714 = vst [vmem:[#allocation7 + $0x4] sm:$0x8] %v7713_v54  ;;  %v9909_v28 = vld [vmem:[%s15188_s5 + $0x18] sm:$0xff]   ;;  %9503 = vmatprep.subr.bf16.mxu1 %v9908_v15  ;;  %vm14664_vm13 = vmand %vm7751_vm9, %vm15554_vm5  ;;  %vm15557_vm9 = vsmask.f32 3334 }
 0x5c9   : > { %v7707_v61 = vrot.slane %v7706_v58, 4  ;;  %v7665_v35 = vmax.f32 %v7636_v25, 0.0  ;;  %v7639_v23 = vadd.f32 %v7638_v1, %v7551_v38  ;;  %v9707_v45 = vpop.f32.mrb[47].mxu1  ;;  %v8040_v25 = vshll.u32 %v14616_v47, 16  ;;  %9504 = vmatpush3.bf16.msra.mxu1 %v9909_v28 }
 0x5ca   : > { %v7728_v2 = vld [vmem:[#allocation6 + $0x2a] ss:$2 sm:$0xf]  ;;  %9505 = vmatprep.subr.bf16.mxu1 %v9910_v41 }
 0x5cb   : > { %v7729_v31 = vmax.f32 %v7726_v26, %v7728_v2  ;;  %7679 = vst.msk [vmem:[#allocation6 + $0x40] sm:$0xff] %vm7670_vm6, %v7665_v35  ;;  %v7666_v7 = vmax.f32 %v7639_v23, 0.0  ;;  %v7718_v10 = vsel %vm14606_vm12, %v7707_v61, %v7717_v37  ;;  %v8126_v37 = vor.u32 %v8125_v5, %v14627_v6  ;;  %v7748_v23 = vld [vmem:[#allocation7 + $0x8] sm:$0xc]  ;;  %v14673_v5 = vld [vmem:[#allocation7 + $0x14] sm:$0xf] }
 0x5cc   : > { %7719 = vst [vmem:[#allocation7 + $0x8] sm:$0x3] %v7718_v10  ;;  %v7757_v42 = vld [vmem:[#allocation6 + $0x33] ss:$2 sm:$0xf] }
 0x5cd   : > { %v7730_v50 = vmax.f32 %v7724_v39, %v7729_v31  ;;  %v7759_v56 = vld [vmem:[#allocation6 + $0x34] ss:$2 sm:$0xf]  ;;  %7680 = vst.msk [vmem:[#allocation6 + $0x48] sm:$0xff] %vm7670_vm6, %v7666_v7  ;;  %vm15551_vm12 = vsmask.f32 7946  ;;  %v1275_v31 = vpop.permute.xlu0 %1274  ;;  %9506 = vmatpush3.bf16.msra.mxu1 %v9911_v43 }
 0x5ce   : > { %v7643_v3 = vpop.f32.mrb[48].mxu1  ;;  %v7760_v22 = vmax.f32 %v7757_v42, %v7759_v56  ;;  %vm14658_vm1 = vmand %vm7746_vm15, %vm15551_vm12  ;;  %v14668_v7 = vrot.slane %v8037_v51, 7  ;;  %v14670_v10 = vrot.slane %v8126_v37, 4  ;;  %1359 = vst.msk [vmem:[#allocation2 + $0xa0] sm:$0x3] %vm1358_vm2, %v1275_v31  ;;  %vm15558_vm2 = vcmask 519169  }
 0x5cf   : > { %v9401_v18 = vpack.c.bf16 %v7730_v50, %v7730_v50  ;;  %v7644_v52 = vadd.f32 %v7643_v3, %v7556_v27  ;;  %v9710_v33 = vpop.f32.mrb[49].mxu1  ;;  %v14640_v58 = vld [vmem:[#allocation7 + $0x4] sm:$0xf]  ;;  %v14675_v50 = vld [vmem:[#allocation7 + $0x14] sm:$0xf]  ;;  %vm14714_vm5 = vmand %vm15558_vm2, %vm15557_vm9  ;;  %vm4006_vm9 = vcmask 451968  }
 0x5d0   : > { %v7990_v57 = vld [vmem:[#allocation7 + $0x4] sm:$0xf]  ;;  %v7646_v11 = vpop.f32.mrb[50].mxu1  ;;  %v7891_v38 = vrot.slane %v14640_v58, 5  ;;  %v9912_v33 = vld [vmem:[%s15188_s5 + $0x68] sm:$0xff]   ;;  %vm4379_vm2 = vcmask 517568  }
 0x5d1   : > { %v8001_v54 = vshrl.u32 %v7990_v57, 16  ;;  %v7736_v46 = vshrl.u32 %v9401_v18, 16  ;;  %v7739_v1 = vshll.u32 %v9401_v18, 16  ;;  %v7667_v13 = vmax.f32 %v7644_v52, 0.0  ;;  %v9711_v14 = vpop.f32.mrb[51].mxu1  ;;  %9507 = vmatprep.subr.bf16.mxu1 %v9912_v33 }
 0x5d2   : > { %v7647_v9 = vadd.f32 %v7646_v11, %v7559_v17  ;;  %v7762_v12 = vld [vmem:[#allocation6 + $0x3d] ss:$2 sm:$0xf]  ;;  %v7764_v61 = vld [vmem:[#allocation6 + $0x3e] ss:$2 sm:$0xf]  ;;  %v7892_v35 = vsel %vm10259_vm11, %v9316_v40, %v7891_v38  ;;  %v2357_v18 = vor.u32 %v2355_v48, %v14592_v59  ;;  %9508 = vmatpush3.bf16.msra.mxu1 %v9913_v49 }
 0x5d3   : > { %v7738_v45 = vrot.slane %v7736_v46, 5  ;;  %v7741_v44 = vrot.slane %v7739_v1, 6  ;;  %v7765_v26 = vmax.f32 %v7762_v12, %v7764_v61  ;;  %7681 = vst.msk [vmem:[#allocation6 + $0x50] sm:$0xff] %vm7670_vm6, %v7667_v13  ;;  %7903 = vrot.lane.b32.xlu0 %v7892_v35, %s15310_s29  ;;  %v8074_v3 = vld [vmem:[#allocation7 + $0x4] sm:$0xf]  ;;  %v14678_v41 = vrot.slane %v8001_v54, 7 }
 0x5d4   : > { %v7668_v2 = vmax.f32 %v7647_v9, 0.0  ;;  %v8064_v15 = vld [vmem:[#allocation7 + $0x4] sm:$0xf]  ;;  %v8004_v51 = vshll.u32 %v7990_v57, 16  ;;  %v8080_v46 = vshrl.u32 %v8074_v3, 16  ;;  %v8083_v1 = vshll.u32 %v8074_v3, 16 }
 0x5d5   : > { %v7742_v42 = vor.u32 %v7741_v44, %v7738_v45  ;;  %v7743_v56 = vrot.slane %v7738_v45, 4  ;;  %v7766_v27 = vmax.f32 %v7760_v22, %v7765_v26  ;;  %v14683_v52 = vld [vmem:[#allocation7 + $0x4] sm:$0xf]  ;;  %8069 = vst.msk [vmem:[#allocation8 + $0x8] sm:$0xf] %vm431_vm0, %v8064_v15  ;;  %v8305_v9 = vshrl.u32 %v14675_v50, 16 }
 0x5d6   : > { %7682 = vst.msk [vmem:[#allocation6 + $0x58] sm:$0xff] %vm7670_vm6, %v7668_v2  ;;  %v7651_v28 = vpop.f32.mrb[52].mxu1  ;;  %v7787_v11 = vld [vmem:[#allocation6 + $0x47] ss:$2 sm:$0xf]  ;;  %v8006_v59 = vor.u32 %v8004_v51, %v14678_v41  ;;  %v8194_v12 = vshrl.u32 %v14673_v5, 16  ;;  %v2358_v45 = vsel %vm10193_vm7, %v2350_v63, %v2357_v18 }
 0x5d7   : > { %v9402_v17 = vpack.c.bf16 %v7766_v27, %v7766_v27  ;;  %v7789_v37 = vld [vmem:[#allocation6 + $0x48] ss:$2 sm:$0xf]  ;;  %v7749_v54 = vsel %vm14658_vm1, %v7742_v42, %v7748_v23  ;;  %v7754_v57 = vsel %vm14664_vm13, %v7743_v56, %v7753_v8  ;;  %v9714_v48 = vpop.f32.mrb[53].mxu1  ;;  %v7830_v44 = vshll.u32 %v14683_v52, 16 }
 0x5d8   : > { %7750 = vst [vmem:[#allocation7 + $0x8] sm:$0xc] %v7749_v54  ;;  %7755 = vst [vmem:[#allocation7 + $0xc] sm:$0x1] %v7754_v57  ;;  %v7926_v13 = vld [vmem:[#allocation7 + $0x4] sm:$0xf]  ;;  %v8007_v23 = vsel %vm10193_vm7, %v14590_v36, %v8006_v59  ;;  %v7790_v40 = vmax.f32 %v7787_v11, %v7789_v37 }
 0x5d9   : > { %v7654_v14 = vpop.f32.mrb[54].mxu1  ;;  %v7772_v43 = vshrl.u32 %v9402_v17, 16  ;;  %v7775_v22 = vshll.u32 %v9402_v17, 16  ;;  %v9914_v26 = vld [vmem:[%s15188_s5 + $0x70] sm:$0xff]   ;;  %v8197_v2 = vshll.u32 %v14673_v5, 16  ;;  %8044 = vrot.lane.b32.xlu0 %v8007_v23, %s15310_s29  ;;  %vm7809_vm1 = vcmask 518144  }
 0x5da   : > { %v9715_v61 = vpop.f32.mrb[55].mxu1  ;;  %v7792_v35 = vld [vmem:[#allocation6 + $0x51] ss:$2 sm:$0xf]  ;;  %vm7810_vm15 = vsmask.f32 2306  ;;  %9509 = vmatprep.subr.bf16.mxu1 %v9914_v26 }
 0x5db   : > { %v7774_v39 = vrot.slane %v7772_v43, 6  ;;  %v7777_v8 = vrot.slane %v7775_v22, 7  ;;  %v7783_v31 = vld [vmem:[#allocation7 + $0xc] sm:$0xe]  ;;  %v7940_v36 = vshrl.u32 %v7926_v13, 16  ;;  %v7943_v55 = vshll.u32 %v7926_v13, 16  ;;  %vm14780_vm12 = vmand %vm7809_vm1, %vm7810_vm15 }
 0x5dc   : > { %v8082_v56 = vrot.slane %v8080_v46, 4  ;;  %v8085_v27 = vrot.slane %v8083_v1, 5  ;;  %v14718_v3 = vrot.slane %v7830_v44, 5  ;;  %v7834_v17 = vshrl.u32 %v14683_v52, 16  ;;  %v9915_v11 = vld [vmem:[%s15188_s5 + $0x30] sm:$0xff]   ;;  %v9916_v37 = vld [vmem:[%s15188_s5 + $0x78] sm:$0xff]  }
 0x5dd   : > { %v7794_v42 = vld [vmem:[#allocation6 + $0x52] ss:$2 sm:$0xf]  ;;  %v7778_v15 = vor.u32 %v7777_v8, %v7774_v39  ;;  %v7942_v51 = vrot.slane %v7940_v36, 5  ;;  %v7945_v18 = vrot.slane %v7943_v55, 6  ;;  %vm1942_vm13 = vcmask 189568   ;;  %2439 = vrot.lane.b32.xlu0 %v2358_v45, %s15316_s18  ;;  %9510 = vmatpush3.bf16.msra.mxu1 %v9915_v11 }
 0x5de   : > { %v7795_v28 = vmax.f32 %v7792_v35, %v7794_v42  ;;  %v7833_v33 = vsel %vm10234_vm8, %v14598_v62, %v14718_v3  ;;  %v14731_v54 = vrot.slane %v8305_v9, 7  ;;  %v7893_v46 = vrot.slane %v7891_v38, 4  ;;  %v1859_v35 = vpop.permute.xlu1 %1858  ;;  %9511 = vmatprep.subr.bf16.mxu1 %v9916_v37  ;;  %v14750_v44 = vld [vmem:[#allocation7 + $0x4] sm:$0x8] }
 0x5df   : > { %v7881_v49 = vld [vmem:[#allocation7 + $0x8] sm:$0xf]  ;;  %v7784_v62 = vsel %vm14714_vm5, %v7778_v15, %v7783_v31  ;;  %7874 = vst.msk [vmem:[#allocation8] sm:$0xf] %vm431_vm0, %v7833_v33  ;;  %v14737_v59 = vor.u32 %v7945_v18, %v7942_v51  ;;  %v8308_v9 = vshll.u32 %v14675_v50, 16  ;;  %v8086_v22 = vor.u32 %v8085_v27, %v8082_v56  ;;  %v9921_v33 = vld [vmem:[%s15188_s5 + $0xc0] sm:$0xff]  }
 0x5e0   : > { %v7796_v57 = vmax.f32 %v7790_v40, %v7795_v28  ;;  %v7991_v48 = vld [vmem:[#allocation7 + $0x8] sm:$0xf]  ;;  %v7894_v1 = vrot.slane %v7881_v49, 5  ;;  %7785 = vst [vmem:[#allocation7 + $0xc] sm:$0xe] %v7784_v62  ;;  %v7836_v39 = vrot.slane %v7834_v17, 4 }
 0x5e1   : > { %v8075_v52 = vld [vmem:[#allocation7 + $0x8] sm:$0xf]  ;;  %v8010_v13 = vshrl.u32 %v7991_v48, 16  ;;  %v8013_v43 = vshll.u32 %v7991_v48, 16  ;;  %v7947_v61 = vsel %vm10278_vm14, %v14621_v60, %v14737_v59  ;;  %1943 = vst.msk [vmem:[#allocation2 + $0xa0] sm:$0x3] %vm1942_vm13, %v1859_v35  ;;  %3306 = vrot.lane.b32.xlu0 %v14610_v19, %s15273_s15 }
 0x5e2   : > { %v9403_v14 = vpack.c.bf16 %v7796_v57, %v7796_v57  ;;  %v7895_v58 = vsel %vm10259_vm11, %v7893_v46, %v7894_v1  ;;  %v8089_v23 = vshll.u32 %v8075_v52, 16  ;;  %v8093_v45 = vshrl.u32 %v8075_v52, 16  ;;  %7984 = vst.msk [vmem:[#allocation8 + $0x4] sm:$0xf] %vm431_vm0, %v7947_v61  ;;  %v9917_v26 = vld [vmem:[%s15188_s5 + $0x38] sm:$0xff]   ;;  %s9976_s15 = sshll.u32 %s10048_s23, 4  ;;  %s9977_s15 = int_to_ptr.vmem [resolvable:$false] %s9976_s15 }
 0x5e3   : > { %v14748_v38 = vrot.slane %v8010_v13, 7  ;;  %7905 = vrot.lane.b32.xlu1 %v7895_v58, %s15310_s29  ;;  %v7817_v8 = vld [vmem:[#allocation7 + $0x8] sm:$0xf]  ;;  %v8008_v36 = vrot.slane %v14678_v41, 4  ;;  %v7812_v40 = vld [vmem:[#allocation7 + $0x10] sm:$0x7]  ;;  %9512 = vmatpush3.bf16.msra.mxu1 %v9917_v26  ;;  %v7837_v49 = vor.u32 %v7836_v39, %v14718_v3  ;;  %v14809_v26 = vor.u32 %v8040_v25, %v14668_v7 }
 0x5e4   : > { %v7802_v60 = vshrl.u32 %v9403_v14, 16  ;;  %v8065_v31 = vld [vmem:[#allocation7 + $0x8] sm:$0xf]  ;;  %v14765_v42 = vrot.slane %v8194_v12, 6  ;;  %v14769_v63 = vrot.slane %v8197_v2, 7  ;;  %v7805_v56 = vshll.u32 %v9403_v14, 16  ;;  %9531 = vmatprep.subr.bf16.mxu1 %v9921_v33 }
 0x5e5   : > { %v8015_v55 = vor.u32 %v8013_v43, %v14748_v38  ;;  %8070 = vst.msk [vmem:[#allocation8 + $0x1c] sm:$0xf] %vm431_vm0, %v8065_v31  ;;  %v14771_v27 = vrot.slane %v8086_v22, 4  ;;  %v14773_v15 = vld [vmem:[#allocation7 + $0x8] sm:$0xf]  ;;  %v9318_v41 = vrot.slane %v14750_v44, 11 }
 0x5e6   : > { %v7804_v19 = vrot.slane %v7802_v60, 7  ;;  %v14784_v5 = vrot.slane %v8089_v23, 5  ;;  %v8095_v2 = vrot.slane %v8093_v45, 4  ;;  %v7840_v51 = vshll.u32 %v7817_v8, 16  ;;  %v7927_v18 = vld [vmem:[#allocation7 + $0x8] sm:$0xf] }
 0x5e7   : > { %v8016_v28 = vsel %vm10193_vm7, %v8008_v36, %v8015_v55  ;;  %v7882_v11 = vld [vmem:[#allocation7 + $0xc] sm:$0xf]  ;;  %v7896_v48 = vrot.slane %v7894_v1, 4  ;;  %v2565_v52 = vld [vmem:[%s10167_s19 + $0xac] sm:$0x3]  ;;  %v7844_v22 = vshrl.u32 %v7817_v8, 16 }
 0x5e8   : > { %v7807_v17 = vor.u32 %v7805_v56, %v7804_v19  ;;  %8046 = vrot.lane.b32.xlu1 %v8016_v28, %s15310_s29  ;;  %v7992_v37 = vld [vmem:[#allocation7 + $0xc] sm:$0xf]  ;;  %v7897_v62 = vrot.slane %v7882_v11, 5  ;;  %v7950_v61 = vshrl.u32 %v7927_v18, 16  ;;  %v8232_v3 = vrot.slane %v14773_v15, 7  ;;  %v9923_v1 = vld [vmem:[%s15188_s5 + $0x118] sm:$0xff]  }
 0x5e9   : > { %v8076_v57 = vld [vmem:[#allocation7 + $0xc] sm:$0xf]  ;;  %v8019_v46 = vshrl.u32 %v7992_v37, 16  ;;  %v8022_v23 = vshll.u32 %v7992_v37, 16  ;;  %v14802_v45 = vld [vmem:[#allocation7 + $0x4] sm:$0xc]  ;;  %v8096_v60 = vor.u32 %v8095_v2, %v14784_v5  ;;  %9723 = vmatpush3.bf16.msra.mxu0 %v9923_v1 }
 0x5ea   : > { %v8099_v13 = vshll.u32 %v8076_v57, 16  ;;  %v7813_v14 = vsel %vm14780_vm12, %v7807_v17, %v7812_v40  ;;  %v8103_v43 = vshrl.u32 %v8076_v57, 16  ;;  %v7898_v35 = vsel %vm10259_vm11, %v7896_v48, %v7897_v62  ;;  %v14812_v31 = vld [vmem:[#allocation7 + $0xc] sm:$0xf]  ;;  %9746 = vmatprep.subr.bf16.mxu0 %v15534_v16  ;;  %s9978_s1 = scalar_lea.vmem %s9977_s15, 32 }
 0x5eb   : > { %v14796_v58 = vrot.slane %v8019_v46, 7  ;;  %7814 = vst [vmem:[#allocation7 + $0x10] sm:$0x7] %v7813_v14  ;;  %7907 = vrot.lane.b32.xlu0 %v7898_v35, %s15310_s29  ;;  %v7838_v39 = vrot.slane %v7837_v49, 4  ;;  %v7842_v8 = vrot.slane %v7840_v51, 5  ;;  %v8017_v55 = vrot.slane %v14748_v38, 4 }
 0x5ec   : > { %2687 = vrot.lane.b32.xlu1 %v2565_v52, %s15272_s20  ;;  %v8066_v36 = vld [vmem:[#allocation7 + $0xc] sm:$0xf]  ;;  %v14816_v19 = vrot.slane %v8099_v13, 5  ;;  %v8105_v56 = vrot.slane %v8103_v43, 4  ;;  %v7952_v25 = vrot.slane %v7950_v61, 5  ;;  %v7953_v7 = vshll.u32 %v7927_v18, 16 }
 0x5ed   : > { %v8024_v40 = vor.u32 %v8022_v23, %v14796_v58  ;;  %v14818_v15 = vld [vmem:[#allocation7 + $0xc] sm:$0xf]  ;;  %8071 = vst.msk [vmem:[#allocation8 + $0x30] sm:$0xf] %vm431_vm0, %v8066_v36  ;;  %v7843_v47 = vsel %vm10234_vm8, %v7838_v39, %v7842_v8  ;;  %v7846_v28 = vrot.slane %v7844_v22, 4  ;;  %v14826_v2 = vrot.slane %v8232_v3, 4 }
 0x5ee   : > { %v7928_v12 = vld [vmem:[#allocation7 + $0xc] sm:$0xf]  ;;  %7875 = vst.msk [vmem:[#allocation8 + $0x14] sm:$0xf] %vm431_vm0, %v7843_v47  ;;  %v7850_v51 = vshll.u32 %v14812_v31, 16  ;;  %v8155_v33 = vshrl.u32 %v14802_v45, 16  ;;  %v14844_v14 = vsel %vm10175_vm4, %v9318_v41, %v8232_v3  ;;  %v8106_v43 = vor.u32 %v8105_v56, %v14816_v19 }
 0x5ef   : > { %v8025_v38 = vsel %vm10193_vm7, %v8017_v55, %v8024_v40  ;;  %v14834_v18 = vrot.slane %v8096_v60, 4  ;;  %v7948_v17 = vrot.slane %v14737_v59, 4  ;;  %v7955_v11 = vrot.slane %v7953_v7, 6  ;;  %s404_s20 = sand.u32 1, %s10026_s22  }
 0x5f0   : > { %8048 = vrot.lane.b32.xlu0 %v8025_v38, %s15310_s29  ;;  %3922 = vrot.lane.b32.xlu1 %v14618_v30, %s15352_s16  ;;  %v7847_v37 = vor.u32 %v7846_v28, %v7842_v8  ;;  %v7899_v57 = vrot.slane %v7897_v62, 4  ;;  %v8235_v49 = vrot.slane %v14818_v15, 7  ;;  %v14838_v48 = vrot.slane %v7850_v51, 5  ;;  %s405_s27 = scalar_lea.vmem [#allocation9], %s404_s20  ;;  %s9129_s18 = scalar_lea.sflag [#allocation10], %s404_s20 }
 0x5f1   : > { %v7960_v52 = vshrl.u32 %v7928_v12, 16  ;;  %v7956_v59 = vor.u32 %v7955_v11, %v7952_v25  ;;  %v14849_v62 = vor.u32 %v14769_v63, %v14765_v42  ;;  %v7854_v23 = vshrl.u32 %v14812_v31, 16  ;;  %s9141_s26 = sshll.u32 %s405_s27, 4  ;;  %s15143_s26 = int_to_ptr.vmem [resolvable:$true] %s9141_s26 }
 0x5f2   : > { %v7883_v46 = vld [vmem:[#allocation7 + $0x10] sm:$0x7]  ;;  %v7963_v1 = vshll.u32 %v7928_v12, 16  ;;  %v7848_v60 = vrot.slane %v7847_v37, 4  ;;  %v8026_v56 = vrot.slane %v14796_v58, 4  ;;  %v8102_v25 = vsel %vm10234_vm8, %v14834_v18, %v14816_v19  ;;  %p9979_p0 = scmp.lt.s32.totalorder %s15143_s26, %s9977_s15 }
 0x5f3   : > { %v7993_v13 = vld [vmem:[#allocation7 + $0x10] sm:$0xf]  ;;  %v7900_v22 = vrot.slane %v7883_v46, 5  ;;  %v7957_v3 = vsel %vm10278_vm14, %v7948_v17, %v7956_v59  ;;  %v7962_v34 = vrot.slane %v7960_v52, 5  ;;  %v8237_v7 = vrot.slane %v8235_v49, 4 }
 0x5f4   : > { %v8077_v30 = vld [vmem:[#allocation7 + $0x10] sm:$0xf]  ;;  %v8028_v61 = vshrl.u32 %v7993_v13, 16  ;;  %4295 = vrot.lane.b32.xlu0 %v14596_v32, %s15357_s17  ;;  %v8031_v44 = vshll.u32 %v7993_v13, 16  ;;  %7985 = vst.msk [vmem:[#allocation8 + $0x18] sm:$0xf] %vm431_vm0, %v7957_v3  ;;  %v8092_v32 = vsel %vm10234_vm8, %v14771_v27, %v14784_v5  ;;  %v7853_v36 = vsel %vm10234_vm8, %v7848_v60, %v14838_v48 }
 0x5f5   : > { %v14851_v35 = vld [vmem:[#allocation7 + $0x10] sm:$0xf]  ;;  %v8109_v41 = vshll.u32 %v8077_v30, 16  ;;  %v7901_v42 = vsel %vm10259_vm11, %v7899_v57, %v7900_v22  ;;  %v7902_v63 = vrot.slane %v7900_v22, 4  ;;  %v8113_v31 = vshrl.u32 %v8077_v30, 16  ;;  %s9389_s17 = sshll.u32 %s10135_s25, 4 }
 0x5f6   : > { %v8030_v39 = vrot.slane %v8028_v61, 7  ;;  %v8238_v8 = vrot.slane %v14851_v35, 7  ;;  %7909 = vrot.lane.b32.xlu1 %v7901_v42, %s15310_s29  ;;  %v7819_v55 = vld [vmem:[#allocation7 + $0x10] sm:$0x7]  ;;  %7876 = vst.msk [vmem:[#allocation8 + $0x28] sm:$0xf] %vm431_vm0, %v7853_v36  ;;  %v8236_v19 = vsel %vm10175_vm4, %v14826_v2, %v8235_v49  ;;  %s15141_s0 = scalar_lea.hbm %s15195_s12, %s9389_s17 }
 0x5f7   : > { %v8067_v40 = vld [vmem:[#allocation7 + $0x10] sm:$0xf]  ;;  %v14880_v5 = vrot.slane %v8106_v43, 4  ;;  %v14882_v28 = vrot.slane %v8109_v41, 5  ;;  %v7965_v58 = vrot.slane %v7963_v1, 6  ;;  %v7856_v17 = vrot.slane %v7854_v23, 4 }
 0x5f8   : > { %v8033_v47 = vor.u32 %v8031_v44, %v8030_v39  ;;  %8072 = vst.msk [vmem:[#allocation8 + $0x44] sm:$0xf] %vm431_vm0, %v8067_v40  ;;  %7911 = vrot.lane.b32.xlu0 %v7902_v63, %s15310_s29  ;;  %v8035_v27 = vrot.slane %v8030_v39, 4  ;;  %v7929_v12 = vld [vmem:[#allocation7 + $0x10] sm:$0xf]  ;;  %v14890_v51 = vsel %vm10175_vm4, %v8237_v7, %v8238_v8  ;;  %v7860_v11 = vshll.u32 %v7819_v55, 16 }
 0x5f9   : > { %v14893_v37 = vrot.slane %v8113_v31, 4  ;;  %v7958_v57 = vrot.slane %v7956_v59, 4  ;;  %v7966_v52 = vor.u32 %v7965_v58, %v7962_v34  ;;  %v7864_v46 = vshrl.u32 %v7819_v55, 16  ;;  %v8149_v61 = vld [vmem:[#allocation7 + $0x8] sm:$0xf]  ;;  %s9972_s25 = scalar_lea.vmem %s15143_s26, 16 }
 0x5fa   : > { %v8034_v38 = vsel %vm10193_vm7, %v8026_v56, %v8033_v47  ;;  %v7857_v13 = vor.u32 %v7856_v17, %v14838_v48  ;;  %v7862_v30 = vrot.slane %v7860_v11, 5  ;;  %v7970_v43 = vshrl.u32 %v7929_v12, 16  ;;  %v8150_v48 = vld [vmem:[#allocation7 + $0xc] sm:$0xf]  ;;  %v8151_v55 = vld [vmem:[#allocation7 + $0x10] sm:$0xf]  ;;  %p9973_p11 = scmp.ne.s32.totalorder %s15143_s26, %s9972_s25  ;;  %p9980_p1 = scmp.lt.s32.totalorder %s9978_s1, %s9972_s25 }
 0x5fb   : > { %8050 = vrot.lane.b32.xlu1 %v8034_v38, %s15310_s29  ;;  %v7973_v22 = vshll.u32 %v7929_v12, 16  ;;  %v8043_v23 = vsel %vm10193_vm7, %v8035_v27, %v14809_v26  ;;  %v8112_v1 = vsel %vm10234_vm8, %v14880_v5, %v14882_v28  ;;  %v7967_v59 = vsel %vm10278_vm14, %v7958_v57, %v7966_v52  ;;  %v8266_v56 = vld [vmem:[#allocation7 + $0x4] sm:$0x8]  ;;  %v8267_v7 = vld [vmem:[#allocation7 + $0x8] sm:$0xf] }
 0x5fc   : > { %8128 = vrot.lane.b32.xlu0 %v8092_v32, %s15310_s29  ;;  %v7866_v44 = vrot.slane %v7864_v46, 4  ;;  %7986 = vst.msk [vmem:[#allocation8 + $0x2c] sm:$0xf] %vm431_vm0, %v7967_v59  ;;  %v7858_v41 = vrot.slane %v7857_v13, 4  ;;  %v7968_v3 = vrot.slane %v7966_v52, 4  ;;  %v7972_v60 = vrot.slane %v7970_v43, 5  ;;  %p9974_p12 = pnand %p9973_p11, %p10152_p5  ;;  %p9981_p2 = por %p9980_p1, %p9979_p0 }
 0x5fd   : > { %v7975_v42 = vrot.slane %v7973_v22, 6  ;;  %v8157_v63 = vrot.slane %v8155_v33, 6  ;;  %v8158_v39 = vshll.u32 %v14802_v45, 16  ;;  %v8164_v32 = vshrl.u32 %v8149_v61, 16  ;;  %v8268_v11 = vld [vmem:[#allocation7 + $0xc] sm:$0xf] }
 0x5fe   : > { %v7867_v26 = vor.u32 %v7866_v44, %v7862_v30  ;;  %v7863_v31 = vsel %vm10234_vm8, %v7858_v41, %v7862_v30  ;;  %v8167_v34 = vshll.u32 %v8149_v61, 16  ;;  %v8174_v40 = vshrl.u32 %v8150_v48, 16  ;;  %p9975_p13 = pneg %p9974_p12 }
 0x5ff   : > { %4914 = vrot.lane.b32.xlu1 %v4833_v20, %s15310_s29  ;;  %v7976_v36 = vor.u32 %v7975_v42, %v7972_v60  ;;  %7877 = vst.msk [vmem:[#allocation8 + $0x3c] sm:$0xf] %vm431_vm0, %v7863_v31  ;;  %v8160_v20 = vrot.slane %v8158_v39, 7  ;;  %v8166_v47 = vrot.slane %v8164_v32, 6  ;;  %v8177_v33 = vshll.u32 %v8150_v48, 16 }
 0x600   : > { %8246 = vrot.lane.b32.xlu0 %v14844_v14, %s15310_s29  ;;  %v7868_v29 = vrot.slane %v7867_v26, 4  ;;  %v8169_v27 = vrot.slane %v8167_v34, 7  ;;  %v8176_v58 = vrot.slane %v8174_v40, 6  ;;  %vm15563_vm11 = vcmask 517120   ;;  %v8269_v48 = vld [vmem:[#allocation7 + $0x10] sm:$0xf]  ;;  %p9982_p3 = pnand %p9981_p2, %p9975_p13 }
 0x601   : > { %v7977_v45 = vsel %vm10278_vm14, %v7968_v3, %v7976_v36  ;;  %v7978_v5 = vrot.slane %v7976_v36, 4  ;;  %v8161_v14 = vor.u32 %v8160_v20, %v8157_v63  ;;  %v8179_v12 = vrot.slane %v8177_v33, 7  ;;  %vm15564_vm1 = vmmov %vm15563_vm11  ;;  %v8222_v32 = vld [vmem:[#allocation7 + $0x14] sm:$0xf]  ;;  %v8153_v40 = vld [vmem:[#allocation7 + $0x18] sm:$0x1] }
 0x602   : > { %7878 = vst.msk [vmem:[#allocation8 + $0x50] sm:$0x3] %vm15563_vm11, %v7868_v29  ;;  %v8184_v38 = vshrl.u32 %v8151_v55, 16  ;;  %v8187_v17 = vshll.u32 %v8151_v55, 16  ;;  %v8116_v57 = vor.u32 %v14893_v37, %v14882_v28  ;;  %v8170_v52 = vor.u32 %v8169_v27, %v8166_v47  ;;  %v8068_v55 = vld [vmem:[#allocation7 + $0x14] sm:$0x3]  ;;  %vm15565_vm14 = vmmov %vm15564_vm1 }
 0x603   : > { %8052 = vrot.lane.b32.xlu1 %v8043_v23, %s15310_s29  ;;  %7987 = vst.msk [vmem:[#allocation8 + $0x40] sm:$0xf] %vm431_vm0, %v7977_v45  ;;  %v8273_v53 = vshrl.u32 %v8266_v56, 16  ;;  %v8278_v46 = vshrl.u32 %v8267_v7, 16  ;;  %v8162_v13 = vrot.slane %v8161_v14, 4  ;;  %v8180_v30 = vor.u32 %v8179_v12, %v8176_v58 }
 0x604   : > { %7988 = vst.msk [vmem:[#allocation8 + $0x54] sm:$0x3] %vm15564_vm1, %v7978_v5  ;;  %8132 = vrot.lane.b32.xlu0 %v8112_v1, %s15310_s29  ;;  %v8186_v43 = vrot.slane %v8184_v38, 6  ;;  %v8189_v22 = vrot.slane %v8187_v17, 7  ;;  %v8172_v61 = vrot.slane %v8170_v52, 4  ;;  %v8281_v59 = vshll.u32 %v8267_v7, 16 }
 0x605   : > { %v8280_v23 = vrot.slane %v8278_v46, 7  ;;  %v8287_v44 = vshrl.u32 %v8268_v11, 16  ;;  %v8171_v28 = vsel %vm10478_vm3, %v8162_v13, %v8170_v52  ;;  %v8182_v37 = vrot.slane %v8180_v30, 4  ;;  %8073 = vst.msk [vmem:[#allocation8 + $0x58] sm:$0x3] %vm15565_vm14, %v8068_v55  ;;  %v9938_v55 = vld [vmem:[%s15188_s5 + $0xf0] sm:$0xff]  }
 0x606   : > { %v8190_v1 = vor.u32 %v8189_v22, %v8186_v43  ;;  %v9319_v41 = vrot.slane %v8273_v53, 11  ;;  %8213 = vst.msk [vmem:[#allocation8 + $0xc] sm:$0xf] %vm431_vm0, %v8171_v28  ;;  %v8181_v3 = vsel %vm10478_vm3, %v8172_v61, %v8180_v30  ;;  %v8290_v26 = vshll.u32 %v8268_v11, 16  ;;  %v8223_v47 = vld [vmem:[#allocation7 + $0x18] sm:$0x1] }
 0x607   : > { %8130 = vrot.lane.b32.xlu1 %v8102_v25, %s15310_s29  ;;  %v8283_v60 = vor.u32 %v8281_v59, %v8280_v23  ;;  %v8289_v42 = vrot.slane %v8287_v44, 7  ;;  %8214 = vst.msk [vmem:[#allocation8 + $0x20] sm:$0xf] %vm431_vm0, %v8181_v3  ;;  %v8296_v63 = vshrl.u32 %v8269_v48, 16  ;;  %v8117_v39 = vrot.slane %v8116_v57, 4  ;;  %v9922_v43 = vld [vmem:[%s15188_s5 + $0x80] sm:$0xff]  }
 0x608   : > { %8250 = vrot.lane.b32.xlu0 %v14890_v51, %s15310_s29  ;;  %v8191_v18 = vsel %vm10478_vm3, %v8182_v37, %v8190_v1  ;;  %v8192_v25 = vrot.slane %v8190_v1, 4  ;;  %v8285_v31 = vrot.slane %v8280_v23, 4  ;;  %v8299_v36 = vshll.u32 %v8269_v48, 16  ;;  %v9924_v44 = vld [vmem:[%s15188_s5 + $0xc8] sm:$0xff]   ;;  %v9926_v37 = vld [vmem:[%s15188_s5 + $0xd0] sm:$0xff]  }
 0x609   : > { %8215 = vst.msk [vmem:[#allocation8 + $0x34] sm:$0xf] %vm431_vm0, %v8191_v18  ;;  %v8284_v51 = vsel %vm10193_vm7, %v9319_v41, %v8283_v60  ;;  %v8292_v15 = vor.u32 %v8290_v26, %v8289_v42  ;;  %v8298_v49 = vrot.slane %v8296_v63, 7  ;;  %v8310_v34 = vor.u32 %v8308_v9, %v14731_v54  ;;  %v9925_v28 = vld [vmem:[%s15188_s5 + $0x88] sm:$0xff]   ;;  %v9927_v3 = vld [vmem:[%s15188_s5 + $0x90] sm:$0xff]   ;;  %v9928_v60 = vld [vmem:[%s15188_s5 + $0xd8] sm:$0xff]  }
 0x60a   : > { %8326 = vst.msk [vmem:[#allocation8 + $0x10] sm:$0xf] %vm431_vm0, %v8284_v51  ;;  %v8201_v2 = vsel %vm10478_vm3, %v8192_v25, %v14849_v62  ;;  %v8202_v29 = vrot.slane %v14849_v62, 4  ;;  %v8204_v20 = vshll.u32 %v8153_v40, 16  ;;  %v8294_v50 = vrot.slane %v8289_v42, 4  ;;  %v9932_v18 = vld [vmem:[%s15188_s5 + $0xe0] sm:$0xff]  }
 0x60b   : > { %8248 = vrot.lane.b32.xlu1 %v8236_v19, %s15310_s29  ;;  %v8293_v56 = vsel %vm10193_vm7, %v8285_v31, %v8292_v15  ;;  %8216 = vst.msk [vmem:[#allocation8 + $0x48] sm:$0xf] %vm431_vm0, %v8201_v2  ;;  %v8301_v9 = vor.u32 %v8299_v36, %v8298_v49  ;;  %v8303_v33 = vrot.slane %v8298_v49, 4  ;;  %v8122_v7 = vsel %vm10234_vm8, %v8117_v39, %v14627_v6  ;;  %vm15566_vm8 = vmmov %vm15564_vm1  ;;  %v9929_v19 = vld [vmem:[%s15188_s5 + $0x98] sm:$0xff]   ;;  %v9933_v39 = vld [vmem:[%s15188_s5 + $0xa0] sm:$0xff]  }
 0x60c   : > { %8136 = vrot.lane.b32.xlu0 %v14670_v10, %s15310_s29  ;;  %8327 = vst.msk [vmem:[#allocation8 + $0x24] sm:$0xf] %vm431_vm0, %v8293_v56  ;;  %v8240_v45 = vrot.slane %v8238_v8, 4  ;;  %v8241_v27 = vrot.slane %v8222_v32, 7  ;;  %v8206_v5 = vrot.slane %v8204_v20, 7  ;;  %v8244_v14 = vrot.slane %v8223_v47, 7 }
 0x60d   : > { %v8302_v10 = vsel %vm10193_vm7, %v8294_v50, %v8301_v9  ;;  %v8311_v62 = vsel %vm10193_vm7, %v8303_v33, %v8310_v34  ;;  %v8271_v8 = vld [vmem:[#allocation7 + $0x18] sm:$0x3]  ;;  %v8312_v17 = vrot.slane %v14731_v54, 4  ;;  %vm3390_vm15 = vcmask 386368   ;;  %v9939_v20 = vld [vmem:[%s15188_s5 + $0xb0] sm:$0xff]   ;;  %v9941_v47 = vld [vmem:[%s15188_s5 + $0xf8] sm:$0xff]  }
 0x60e   : > { %v8243_v58 = vrot.slane %v8241_v27, 4  ;;  %8328 = vst.msk [vmem:[#allocation8 + $0x38] sm:$0xf] %vm431_vm0, %v8302_v10  ;;  %8329 = vst.msk [vmem:[#allocation8 + $0x4c] sm:$0xf] %vm431_vm0, %v8311_v62  ;;  %v8207_v0 = vsel %vm10478_vm3, %v8202_v29, %v8206_v5  ;;  %v8242_v6 = vsel %vm10175_vm4, %v8240_v45, %v8241_v27  ;;  %v8314_v12 = vshrl.u32 %v8271_v8, 16 }
 0x60f   : > { %8134 = vrot.lane.b32.xlu1 %v8122_v7, %s15310_s29  ;;  %8217 = vst.msk [vmem:[#allocation8 + $0x5c] sm:$0x3] %vm15566_vm8, %v8207_v0  ;;  %v8317_v38 = vshll.u32 %v8271_v8, 16  ;;  %vm15567_vm3 = vmmov %vm15564_vm1  ;;  %vm7918_vm0 = vcmask 1043968   ;;  %vm7923_vm5 = vcmask 1041920   ;;  %vm4998_vm13 = vcmask 583168  }
 0x610   : > { %v8245_v35 = vsel %vm10175_vm4, %v8243_v58, %v8244_v14  ;;  %v8316_v11 = vrot.slane %v8314_v12, 7  ;;  %vm2523_vm4 = vcmask 255168   ;;  %v9935_v32 = vld [vmem:[%s15188_s5 + $0xe8] sm:$0xff]   ;;  %vm15568_vm12 = vcmask 588800   ;;  %v9942_v45 = vld [vmem:[%s15188_s5 + $0xb8] sm:$0xff]  }
 0x611   : > { %v9936_v34 = vld [vmem:[%s15188_s5 + $0xa8] sm:$0xff]   ;;  %vm8898_vm11 = vcmask 1041408   ;;  %vm8894_vm1 = vcmask 293888  }
 0x612   : > { %v8319_v21 = vor.u32 %v8317_v38, %v8316_v11 }
 0x613   : > { %8252 = vrot.lane.b32.xlu1 %v8242_v6, %s15310_s29  ;;  %v9940_v10 = vld [vmem:[#allocation8 + $0x10] ss:$20 sps:$4 sm:$0xff]  }
 0x614   : > { %v8320_v57 = vsel %vm10193_vm7, %v8312_v17, %v8319_v21  ;;  %vm2771_vm7 = vcmask 320768   ;;  %v9953_v21 = vld [vmem:[%s15191_s8] sm:$0xff]  }
 0x615   : > { %8330 = vst.msk [vmem:[#allocation8 + $0x60] sm:$0x3] %vm15567_vm3, %v8320_v57  ;;  %v9946_v0 = vld [vmem:[#allocation8 + $0x38] ss:$20 sps:$4 sm:$0xff]  }
 0x616   : > { %v9954_v57 = vld [vmem:[%s15191_s8 + $0x8] sm:$0xff]  }
 0x617   : > { %8254 = vrot.lane.b32.xlu1 %v8245_v35, %s15310_s29 }
 0x61c   : > { %v9952_v12 = vld [vmem:[#allocation8 + $0x60] ss:$0 sps:$4 sm:$0x33]  }
 0x645   : > { %v7904_v52 = vpop.permute.xlu0 %7903 }
 0x646   : > { %7919 = vst.msk [vmem:[#allocation8] sm:$0xf] %vm7918_vm0, %v7904_v52  ;;  %v9955_v52 = vld [vmem:[%s15191_s8 + $0x10] sm:$0xff]  }
 0x64b   : > { %v8045_v4 = vpop.permute.xlu0 %8044 }
 0x64c   : > { %8059 = vst.msk [vmem:[#allocation8 + $0x4] sm:$0xf] %vm7918_vm0, %v8045_v4  ;;  %v9956_v4 = vld [vmem:[%s15191_s8 + $0x18] sm:$0xff]  }
 0x64f   : > { %v2440_v53 = vpop.permute.xlu0 %2439 }
 0x650   : > { %2524 = vst.msk [vmem:[#allocation2 + $0xa0] sm:$0x3] %vm2523_vm4, %v2440_v53  ;;  %v9957_v53 = vld [vmem:[%s15191_s8 + $0x20] sm:$0xff]  }
 0x653   : > { %v3307_v54 = vpop.permute.xlu0 %3306 }
 0x655   : > { %v7906_v46 = vpop.permute.xlu1 %7905 }
 0x656   : > { %7920 = vst.msk [vmem:[#allocation8 + $0x14] sm:$0xf] %vm7918_vm0, %v7906_v46  ;;  %v9958_v46 = vld [vmem:[%s15191_s8 + $0x28] sm:$0xff]  }
 0x65a   : > { %v8047_v13 = vpop.permute.xlu1 %8046 }
 0x65b   : > { %8060 = vst.msk [vmem:[#allocation8 + $0x18] sm:$0xf] %vm7918_vm0, %v8047_v13 }
 0x65d   : > { %v7908_v24 = vpop.permute.xlu0 %7907  ;;  %v9918_v23 = vld [vmem:[#allocation8] ss:$20 sps:$4 sm:$0xff]  }
 0x65e   : > { %v2688_v30 = vpop.permute.xlu1 %2687  ;;  %7921 = vst.msk [vmem:[#allocation8 + $0x28] sm:$0xf] %vm7918_vm0, %v7908_v24 }
 0x65f   : > { %2772 = vst.msk [vmem:[#allocation2 + $0xa0] sm:$0x3] %vm2771_vm7, %v2688_v30 }
 0x660   : > { %3391 = vst.msk [vmem:[#allocation2 + $0xa0] sm:$0x3] %vm3390_vm15, %v3307_v54  ;;  %v9959_v54 = vld [vmem:[%s15191_s8 + $0x30] sm:$0xff]  }
 0x662   : > { %v8049_v22 = vpop.permute.xlu0 %8048  ;;  %v3923_v61 = vpop.permute.xlu1 %3922  ;;  %v9920_v59 = vld [vmem:[#allocation8 + $0x4] ss:$20 sps:$4 sm:$0xff]  }
 0x663   : > { %8061 = vst.msk [vmem:[#allocation8 + $0x2c] sm:$0xf] %vm7918_vm0, %v8049_v22  ;;  %8749 = vmatprep.mubr.bf16.mxu1 %v9920_v59 }
 0x664   : > { %4007 = vst.msk [vmem:[#allocation2 + $0xa0] sm:$0x3] %vm4006_vm9, %v3923_v61  ;;  %8750 = vmatmul.mubr.bf16.vlgmr.msra.gmra.mrb[56].mxu1 %v9918_v23 }
 0x665   : > { %9532 = vmatpush3.bf16.msra.mxu1 %v9922_v43 }
 0x666   : > { %v4296_v48 = vpop.permute.xlu0 %4295  ;;  %9533 = vmatprep.subr.bf16.mxu1 %v9924_v44 }
 0x667   : > { %4380 = vst.msk [vmem:[#allocation2 + $0xa0] sm:$0x3] %vm4379_vm2, %v4296_v48 }
 0x668   : > { %v7910_v1 = vpop.permute.xlu1 %7909 }
 0x669   : > { %7922 = vst.msk [vmem:[#allocation8 + $0x3c] sm:$0xf] %vm7918_vm0, %v7910_v1  ;;  %9534 = vmatpush3.bf16.msra.mxu1 %v9925_v28 }
 0x66a   : > { %v7912_v41 = vpop.permute.xlu0 %7911  ;;  %9535 = vmatprep.subr.bf16.mxu1 %v9926_v37  ;;  %v8337_v31 = vld [vmem:[#allocation8 + $0x28] sm:$0xff] }
 0x66b   : > { %7924 = vst.msk [vmem:[#allocation8 + $0x50] sm:$0x3] %vm7923_vm5, %v7912_v41 }
 0x66d   : > { %v8051_v42 = vpop.permute.xlu1 %8050  ;;  %9536 = vmatpush3.bf16.msra.mxu1 %v9927_v3 }
 0x66e   : > { %8062 = vst.msk [vmem:[#allocation8 + $0x40] sm:$0xf] %vm7918_vm0, %v8051_v42  ;;  %v8129_v26 = vpop.permute.xlu0 %8128  ;;  %9537 = vmatprep.subr.bf16.mxu1 %v9928_v60 }
 0x66f   : > { %8143 = vst.msk [vmem:[#allocation8 + $0x8] sm:$0xf] %vm7918_vm0, %v8129_v26 }
 0x671   : > { %v4915_v25 = vpop.permute.xlu1 %4914  ;;  %9538 = vmatpush3.bf16.msra.mxu1 %v9929_v19 }
 0x672   : > { %4999 = vst.msk [vmem:[#allocation2 + $0xa0] sm:$0x3] %vm4998_vm13, %v4915_v25  ;;  %v8247_v63 = vpop.permute.xlu0 %8246  ;;  %9539 = vmatprep.subr.bf16.mxu1 %v9932_v18 }
 0x673   : > { %8261 = vst.msk [vmem:[#allocation8 + $0xc] sm:$0xf] %vm7918_vm0, %v8247_v63 }
 0x675   : > { %v8053_v51 = vpop.permute.xlu1 %8052  ;;  %v8340_v15 = vld [vmem:[#allocation8 + $0x3c] sm:$0xff]  ;;  %9540 = vmatpush3.bf16.msra.mxu1 %v9933_v39 }
 0x676   : > { %v9930_v2 = vld [vmem:[#allocation8 + $0x2c] ss:$20 sps:$4 sm:$0xff]   ;;  %8063 = vst.msk [vmem:[#allocation8 + $0x54] sm:$0x3] %vm7923_vm5, %v8053_v51  ;;  %v9326_v49 = vcombine.low %v8337_v31, %v8340_v15  ;;  %v8133_v36 = vpop.permute.xlu0 %8132  ;;  %9541 = vmatprep.subr.bf16.mxu1 %v9935_v32  ;;  %v9320_v31 = vld [vmem:[%s15189_s6] ss:$0 sm:$0xff] }
 0x677   : > { %8757 = vmatprep.mubr.bf16.mxu1 %v9930_v2  ;;  %8145 = vst.msk [vmem:[#allocation8 + $0x30] sm:$0xf] %vm7918_vm0, %v8133_v36 }
 0x678   : > { %8758 = vmatmul.mubr.bf16.gmra.mrb[60].mxu1 %v9326_v49 }
 0x679   : > { %v8131_v40 = vpop.permute.xlu1 %8130  ;;  %v9934_v56 = vld [vmem:[#allocation2 + $0xa0] ss:$0 sps:$4 sm:$0x33]   ;;  %9542 = vmatpush3.bf16.msra.mxu1 %v9936_v34 }
 0x67a   : > { %8144 = vst.msk [vmem:[#allocation8 + $0x1c] sm:$0xf] %vm7918_vm0, %v8131_v40  ;;  %v8251_v29 = vpop.permute.xlu0 %8250  ;;  %9681 = vmatmul.mubr.msk.bf16.gmra.mrb[80].mxu0 %vm15568_vm12, %v9934_v56  ;;  %9543 = vmatprep.subr.bf16.mxu1 %v9938_v55 }
 0x67b   : > { %8263 = vst.msk [vmem:[#allocation8 + $0x34] sm:$0xf] %vm7918_vm0, %v8251_v29  ;;  %9724 = vmatprep.mubr.msk.bf16.mxu0 %vm15326_vm10, %v15534_v16 }
 0x67d   : > { %v8249_v50 = vpop.permute.xlu1 %8248  ;;  %v8343_v9 = vld [vmem:[#allocation8 + $0x50] sm:$0x33]  ;;  %9544 = vmatpush3.bf16.msra.mxu1 %v9939_v20 }
 0x67e   : > { %8262 = vst.msk [vmem:[#allocation8 + $0x20] sm:$0xf] %vm7918_vm0, %v8249_v50  ;;  %v9332_v33 = vcombine.high %v8343_v9, %v8343_v9  ;;  %v9331_v7 = vcombine.low %v8343_v9, %v8343_v9  ;;  %v8137_v27 = vpop.permute.xlu0 %8136  ;;  %9545 = vmatprep.subr.bf16.mxu1 %v9941_v47 }
 0x67f   : > { %8147 = vst.msk [vmem:[#allocation8 + $0x58] sm:$0x3] %vm7923_vm5, %v8137_v27 }
 0x680   : > { %8765 = vmatprep.mubr.bf16.mxu1 %v9332_v33 }
 0x681   : > { %v8135_v5 = vpop.permute.xlu1 %8134  ;;  %8766 = vmatmul.mubr.bf16.gmra.mrb[64].mxu1 %v9331_v7  ;;  %v9943_v14 = vld [vmem:[#allocation8 + $0x8] ss:$20 sps:$4 sm:$0xff]  }
 0x682   : > { %8146 = vst.msk [vmem:[#allocation8 + $0x44] sm:$0xf] %vm7918_vm0, %v8135_v5  ;;  %9725 = vmatmul.mubr.msk.bf16.vlgmr.msra.gmra.mrb[84].mxu0 %vm7670_vm6, %v9940_v10  ;;  %9546 = vmatpush3.bf16.msra.mxu1 %v9942_v45 }
 0x683   : > { %9728 = vmatprep.mubr.msk.bf16.mxu0 %vm15326_vm10, %v15534_v16  ;;  %9736 = vmatprep.subr.bf16.mxu1 %v15534_v16 }
 0x684   : > { %9747 = vmatpush3.bf16.msra.mxu0 %v9953_v21 }
 0x685   : > { %v8253_v62 = vpop.permute.xlu1 %8252  ;;  %v9945_v58 = vld [vmem:[#allocation8 + $0xc] ss:$20 sps:$4 sm:$0xff]   ;;  %9748 = vmatprep.subr.bf16.mxu0 %v15534_v16 }
 0x686   : > { %8264 = vst.msk [vmem:[#allocation8 + $0x48] sm:$0xf] %vm7918_vm0, %v8253_v62  ;;  %8805 = vmatprep.mubr.bf16.mxu1 %v9945_v58 }
 0x688   : > { %9749 = vmatpush3.bf16.msra.mxu0 %v9954_v57 }
 0x689   : > { %8806 = vmatmul.mubr.bf16.vlgmr.msra.gmra.mrb[68].mxu1 %v9943_v14  ;;  %v8255_v6 = vpop.permute.xlu1 %8254  ;;  %v9949_v8 = vld [vmem:[#allocation8 + $0x30] ss:$20 sps:$4 sm:$0xff]   ;;  %9750 = vmatprep.subr.bf16.mxu0 %v15534_v16 }
 0x68a   : > { %8265 = vst.msk [vmem:[#allocation8 + $0x5c] sm:$0x3] %vm7923_vm5, %v8255_v6  ;;  %9729 = vmatmul.mubr.msk.bf16.gmra.mrb[88].mxu0 %vm7670_vm6, %v9946_v0 }
 0x68b   : > { %9732 = vmatprep.mubr.msk.bf16.mxu0 %vm15326_vm10, %v15534_v16 }
 0x68c   : > { %9751 = vmatpush3.bf16.msra.mxu0 %v9955_v52 }
 0x68d   : > { %v9947_v35 = vld [vmem:[#allocation8 + $0x34] ss:$20 sps:$4 sm:$0xff]   ;;  %9752 = vmatprep.subr.bf16.mxu0 %v15534_v16 }
 0x68e   : > { %8813 = vmatprep.mubr.bf16.mxu1 %v9947_v35 }
 0x690   : > { %9753 = vmatpush3.bf16.msra.mxu0 %v9956_v4 }
 0x691   : > { %8814 = vmatmul.mubr.bf16.gmra.mrb[72].mxu1 %v9949_v8  ;;  %v8344_v38 = vld [vmem:[#allocation8 + $0x58] sm:$0x33]  ;;  %9754 = vmatprep.subr.bf16.mxu0 %v15534_v16 }
 0x692   : > { %v9334_v17 = vcombine.high %v8344_v38, %v8344_v38  ;;  %9733 = vmatmul.mubr.msk.bf16.gmra.mrb[92].mxu0 %vm7670_vm6, %v9952_v12  ;;  %v9333_v11 = vcombine.low %v8344_v38, %v8344_v38 }
 0x693   : > { %9762 = vmatprep.mubr.msk.bf16.mxu0 %vm15326_vm10, %v15534_v16 }
 0x694   : > { %8821 = vmatprep.mubr.bf16.mxu1 %v9334_v17  ;;  %9755 = vmatpush3.bf16.msra.mxu0 %v9957_v53 }
 0x695   : > { %9756 = vmatprep.subr.bf16.mxu0 %v15534_v16 }
 0x698   : > { %9757 = vmatpush3.bf16.msra.mxu0 %v9958_v46 }
 0x699   : > { %8822 = vmatmul.mubr.bf16.gmra.mrb[76].mxu1 %v9333_v11  ;;  %9758 = vmatprep.subr.bf16.mxu0 %v15534_v16 }
 0x69a   : > { %9742 = vmatprep.mubr.msk.bf16.mxu1 %vm15326_vm10, %v15534_v16 }
 0x69c   : > { %9759 = vmatpush3.bf16.msra.mxu0 %v9959_v54 }
 0x69d   : > { %9760 = vmatprep.subr.bf16.mxu0 %v15534_v16 }
 0x737   : > { %v9513_v13 = vpop.f32.mrb[56].mxu1 }
 0x738   : > { %v9514_v24 = vpop.f32.mrb[57].mxu1 }
 0x739   : > { %v9515_v30 = vadd.f32 %v9514_v24, %v9513_v13  ;;  %v9516_v43 = vpop.f32.mrb[58].mxu1 }
 0x73a   : > { %v9517_v22 = vpop.f32.mrb[59].mxu1 }
 0x73b   : > { %v9518_v61 = vadd.f32 %v9517_v22, %v9516_v43  ;;  %v8752_v49 = vadd.f32 %v9515_v30, %v9320_v31 }
 0x73d   : > { %v8755_v29 = vadd.f32 %v9518_v61, %v9320_v31 }
 0x74b   : > { %v9519_v23 = vpop.f32.mrb[60].mxu1 }
 0x74c   : > { %v9520_v59 = vpop.f32.mrb[61].mxu1 }
 0x74d   : > { %v9521_v44 = vadd.f32 %v9520_v59, %v9519_v23  ;;  %v9522_v48 = vpop.f32.mrb[62].mxu1  ;;  %v5449_v28 = vpop.f32.mrb[80].mxu0 }
 0x74e   : > { %v9523_v37 = vpop.f32.mrb[63].mxu1  ;;  %v9682_v41 = vpop.f32.mrb[81].mxu0 }
 0x74f   : > { %v9524_v1 = vadd.f32 %v9523_v37, %v9522_v48  ;;  %v5452_v3 = vpop.f32.mrb[82].mxu0  ;;  %v8760_v10 = vadd.f32 %v9521_v44, %v9320_v31  ;;  %v9960_v41 = vld [vmem:[%s15191_s8 + $0x38] sm:$0xff]  }
 0x750   : > { %v9683_v60 = vpop.f32.mrb[83].mxu0  ;;  %9761 = vmatpush3.bf16.msra.mxu0 %v9960_v41  ;;  %v9961_v3 = vld [vmem:[%s15193_s10] sm:$0xff]  }
 0x751   : > { %v8763_v12 = vadd.f32 %v9524_v1, %v9320_v31  ;;  %v8890_v1 = vld [vmem:[%s15190_s7] sm:$0x1]  ;;  %v9962_v60 = vld [vmem:[%s15193_s10 + $0x8] sm:$0xff]  }
 0x754   : > { %v9525_v42 = vpop.f32.mrb[64].mxu1 }
 0x755   : > { %v9526_v26 = vpop.f32.mrb[65].mxu1  ;;  %v8863_v25 = vpop.f32.mrb[84].mxu0 }
 0x756   : > { %v9527_v19 = vadd.f32 %v9526_v26, %v9525_v42  ;;  %v9528_v18 = vpop.f32.mrb[66].mxu1  ;;  %v9726_v39 = vpop.f32.mrb[85].mxu0 }
 0x757   : > { %v9529_v63 = vpop.f32.mrb[67].mxu1  ;;  %v8866_v32 = vpop.f32.mrb[86].mxu0  ;;  %v9963_v39 = vld [vmem:[%s15193_s10 + $0x10] sm:$0xff]  }
 0x758   : > { %v9727_v51 = vpop.f32.mrb[87].mxu0  ;;  %v8768_v13 = vadd.f32 %v9527_v19, %v9320_v31 }
 0x759   : > { %v8960_v51 = vld [vmem:[%s15192_s9] sm:$0x1] }
 0x75c   : > { %v9547_v15 = vpop.f32.mrb[68].mxu1 }
 0x75d   : > { %v9548_v2 = vpop.f32.mrb[69].mxu1  ;;  %v8871_v55 = vpop.f32.mrb[88].mxu0 }
 0x75e   : > { %v9549_v36 = vadd.f32 %v9548_v2, %v9547_v15  ;;  %v9550_v34 = vpop.f32.mrb[70].mxu1  ;;  %v9730_v56 = vpop.f32.mrb[89].mxu0 }
 0x75f   : > { %v9551_v40 = vpop.f32.mrb[71].mxu1  ;;  %v8874_v50 = vpop.f32.mrb[90].mxu0 }
 0x760   : > { %v8808_v20 = vadd.f32 %v9549_v36, %v8752_v49  ;;  %v9552_v47 = vadd.f32 %v9551_v40, %v9550_v34  ;;  %v9731_v9 = vpop.f32.mrb[91].mxu0 }
 0x762   : > { %v8864_v33 = vadd.f32 %v8863_v25, %v8808_v20  ;;  %v8811_v7 = vadd.f32 %v9552_v47, %v8755_v29 }
 0x764   : > { %v8867_v45 = vadd.f32 %v8866_v32, %v8811_v7  ;;  %v9553_v27 = vpop.f32.mrb[72].mxu1  ;;  %v8885_v62 = vmax.f32 %v8864_v33, 0.0  ;;  %v9964_v32 = vld [vmem:[%s15193_s10 + $0x18] sm:$0xff]  }
 0x765   : > { %v9554_v5 = vpop.f32.mrb[73].mxu1  ;;  %v8879_v6 = vpop.f32.mrb[92].mxu0 }
 0x766   : > { %v8886_v58 = vmax.f32 %v8867_v45, 0.0  ;;  %v9555_v14 = vadd.f32 %v9554_v5, %v9553_v27  ;;  %v9556_v0 = vpop.f32.mrb[74].mxu1  ;;  %v9734_v8 = vpop.f32.mrb[93].mxu0 }
 0x767   : > { %v9557_v35 = vpop.f32.mrb[75].mxu1  ;;  %v8882_v21 = vpop.f32.mrb[94].mxu0 }
 0x768   : > { %v8891_v38 = vpack.c.bf16 %v8886_v58, %v8885_v62  ;;  %v8816_v17 = vadd.f32 %v9555_v14, %v8760_v10  ;;  %v9558_v11 = vadd.f32 %v9557_v35, %v9556_v0  ;;  %v9735_v57 = vpop.f32.mrb[95].mxu0 }
 0x76a   : > { %v8872_v52 = vadd.f32 %v8871_v55, %v8816_v17  ;;  %v8819_v4 = vadd.f32 %v9558_v11, %v8763_v12  ;;  %9737 = vmatpush3.bf16.msra.mxu1 %v8891_v38 }
 0x76b   : > { %9738 = vmatprep.subr.bf16.mxu1 %v15534_v16 }
 0x76c   : > { %v8875_v53 = vadd.f32 %v8874_v50, %v8819_v4  ;;  %v9559_v46 = vpop.f32.mrb[76].mxu1  ;;  %v8887_v24 = vmax.f32 %v8872_v52, 0.0 }
 0x76d   : > { %v9560_v54 = vpop.f32.mrb[77].mxu1 }
 0x76e   : > { %v8888_v30 = vmax.f32 %v8875_v53, 0.0  ;;  %v9561_v43 = vadd.f32 %v9560_v54, %v9559_v46  ;;  %v9562_v22 = vpop.f32.mrb[78].mxu1 }
 0x76f   : > { %v9563_v61 = vpop.f32.mrb[79].mxu1 }
 0x770   : > { %v8892_v23 = vpack.c.bf16 %v8888_v30, %v8887_v24  ;;  %v8824_v59 = vadd.f32 %v9561_v43, %v8768_v13 }
 0x772   : > { %v8880_v44 = vadd.f32 %v8879_v6, %v8824_v59  ;;  %9739 = vmatpush3.bf16.msra.mxu1 %v8892_v23 }
 0x773   : > { %9740 = vmatprep.subr.bf16.mxu1 %v15534_v16 }
 0x774   : > { %v8889_v48 = vmax.f32 %v8880_v44, 0.0 }
 0x776   : > { %v8893_v28 = vpack.c.bf16 %v8889_v48, %v8889_v48 }
 0x778   : > { %v8900_v37 = vsel %vm8898_vm11, %v8893_v28, 0 }
 0x779   : > { %9741 = vmatpush3.bf16.msra.mxu1 %v8900_v37 }
 0x77a   : > { %9766 = vmatprep.subr.bf16.mxu1 %v15534_v16 }
 0x77c   : > { %9743 = vmatmul.mubr.msk.bf16.vlgmr.msra.gmra.mrb[80].mxu1 %vm8894_vm1, %v8890_v1 }
 0x77d   : > { %9774 = vmatprep.mubr.msk.bf16.mxu1 %vm15326_vm10, %v15534_v16  ;;  %9767 = vmatpush3.bf16.msra.mxu1 %v9961_v3 }
 0x77e   : > { %9768 = vmatprep.subr.bf16.mxu1 %v15534_v16 }
 0x781   : > { %9769 = vmatpush3.bf16.msra.mxu1 %v9962_v60 }
 0x782   : > { %9770 = vmatprep.subr.bf16.mxu1 %v15534_v16 }
 0x785   : > { %9771 = vmatpush3.bf16.msra.mxu1 %v9963_v39 }
 0x786   : > { %9772 = vmatprep.subr.bf16.mxu1 %v15534_v16  ;;  %v9059_v16 = vld [vmem:[%s15194_s11] sm:$0x1] }
 0x789   : > { %9773 = vmatpush3.bf16.msra.mxu1 %v9964_v32 }
 0x84f   : > { %v8936_v42 = vpop.f32.mrb[80].mxu1 }
 0x850   : > { %v8942_v26 = vmul.f32 0.0625, %v8936_v42  ;;  %v9744_v19 = vpop.f32.mrb[81].mxu1 }
 0x851   : > { %v8939_v18 = vpop.f32.mrb[82].mxu1 }
 0x852   : > { %v8943_v25 = vpack.c.bf16 %v8942_v26, %v8942_v26  ;;  %v9745_v63 = vpop.f32.mrb[83].mxu1 }
 0x854   : > { %9763 = vmatmul.mubr.bf16.vlgmr.msra.gmra.mrb[96].mxu0 %v8943_v25 }
 0x927   : > { %v9043_v31 = vpop.f32.mrb[96].mxu0 }
 0x928   : > { %v9044_v15 = vadd.f32 %v9043_v31, %v8960_v51  ;;  %v9764_v2 = vpop.f32.mrb[97].mxu0 }
 0x929   : > { %v9046_v49 = vpop.f32.mrb[98].mxu0 }
 0x92a   : > { %v9049_v36 = vmax.f32 %v9044_v15, 0.0  ;;  %v9765_v34 = vpop.f32.mrb[99].mxu0 }
 0x92c   : > { %v9050_v55 = vpack.c.bf16 %v9049_v36, %v9049_v36 }
 0x92e   : > { %9775 = vmatmul.mubr.msk.bf16.vlgmr.msra.gmra.mrb[84].mxu1 %vm7670_vm6, %v9050_v55 }
 0xa01   : > { %v9121_v40 = vpop.f32.mrb[84].mxu1 }
 0xa02   : > { %v9122_v56 = vadd.f32 %v9121_v40, %v9059_v16  ;;  %v9776_v29 = vpop.f32.mrb[85].mxu1 }
 0xa03   : > { %v9124_v20 = vpop.f32.mrb[86].mxu1 }
 0xa04   : > { %9127 = vst [vmem:[%s405_s27] sm:$0x1] %v9122_v56  ;;  %v9777_v47 = vpop.f32.mrb[87].mxu1 }
 0xa05   : > { %9985 = shalt.err (!%p9982_p3)
}
 0xa06   : > { %s9986_s2 = scalar_lea.hbm %s15141_s0, 16  ;;  %s9990_s29 = scalar_lea.hbm %s15195_s12, 32 }
 0xa07   : > { %p9987_p4 = scmp.ne.s32.totalorder %s15141_s0, %s9986_s2  ;;  %p9991_p9 = scmp.lt.u32.totalorder %s15141_s0, %s15195_s12 }
 0xa08   : > { %p9992_p10 = scmp.lt.u32.totalorder %s9990_s29, %s9986_s2  ;;  %p9994_p12 = scmp.lt.u32.totalorder %s9986_s2, %s15141_s0 }
 0xa09   : > { %p9988_p7 = pnand %p9987_p4, %p10152_p5 }
 0xa0a   : > { %p9993_p11 = por %p9992_p10, %p9991_p9 }
 0xa0b   : > { %p9989_p8 = pneg %p9988_p7 }
 0xa0c   : > { %p9995_p13 = por %p9994_p12, %p9993_p11 }
 0xa0e   : > { %p9996_p0 = pnand %p9995_p13, %p9989_p8 }
 0xa10   : > { %9999 = shalt.err (!%p9996_p0)
}
 0xa11   : > { %9779 = dma.vmem_to_hbm [thread:$0]  (%p10152_p5), %s15143_s26, 16, %s15141_s0, %s9129_s18  }
 0xa12 PF: > { %p9785_p1 = scmp.ge.s32.totalorder %s10034_s24, 2  ;;  %s9153_s27 = sand.u32 1, %s10022_s21  }
 0xa13   : > { %s9154_s30 = scalar_lea.sflag [#allocation10], %s9153_s27 }
 0xa14   : > { %p9782_p2 = pnand %p9785_p1, %p10156_p6 }
 0xa16   : > { %10017 = dma.done.wait (!%p9782_p2), %s9154_s30, 16  }
 0xa17   : > { %10019 = vsyncadd (!%p9782_p2), %s9154_s30, 4294967280  ;;  %s15569_s24 = sld [smem:[#allocation13_spill]]  ;;  %s15570_s28 = sld [smem:[#allocation12_spill]] }
 0xa18   : > { %s15571_s23 = sld [smem:[#allocation14_spill]]  ;;  %s15572_s21 = smov %s10026_s22 }
 0xa1d   : > { %p22_p3 = scmp.ge.s32.totalorder %s15569_s24, 4   ;;  %s15573_s22 = smov %s15570_s28 }
 0xa1f   :  { %24 = sbr.rel (!%p22_p3) target bundleno = 7 (0x7), region = 151 }
 0xa26   :  { %9158 = vsyncpa [#allocation10], 1 }
 0xa27   :  { %9160 = vsyncpa [#allocation10 + $0x1], 1 }

</bundles_post_ra>
